<compile_context>
chip_gen: v6e
topology: v6e:2x2x1
jax: 0.10.0
libtpu: 0.0.40
codegen_flags: <defaults>
</compile_context>

<pallas_src>
import functools

import numpy as np
import jax
import jax.numpy as jnp
from jax.experimental import pallas as pl
from jax.experimental.pallas import tpu as pltpu

DIM = 64  # Block channel count (must be a multiple of 8 for channel//8)


# ----------------------------------------------------------------------------
# Fused Block kernel (one batch element per grid step)
# ----------------------------------------------------------------------------
def _block_kernel(x_ref,
                  w1_ref, b1_ref, w2_ref, b2_ref,
                  caw1_ref, cab1_ref, caw2_ref, cab2_ref,
                  paw1_ref, pab1_ref, paw2_ref, pab2_ref,
                  o_ref, xpad_ref, rpad_ref, *, H, W, C):
    Wp = W + 2                 # padded width = row stride in the flat scratches
    L = H * Wp                 # conv output rows in padded-width layout
    HW = H * W

    # ---- one-time zero init of the halo scratches ---------------------------
    # Invariant: only the interior windows written below are touched afterwards;
    # halo rows/cols (and the +8 slack rows) stay zero across grid steps.  The
    # batch axis is sequential ("arbitrary"), so step 0 always runs first.
    @pl.when(pl.program_id(0) == 0)
    def _init():
        xpad_ref[...] = jnp.zeros(xpad_ref.shape, jnp.float32)
        rpad_ref[...] = jnp.zeros(rpad_ref.shape, jnp.float32)

    # ---- scatter x rows into the xpad interior (no wrapper pre-pad) ---------
    for y in range(H):
        xpad_ref[(y + 1) * Wp + 1:(y + 1) * Wp + 1 + W, :] = \
            x_ref[y * W:(y + 1) * W, :]

    # validity mask over padded-width rows: column (r % Wp) < W is a real pixel
    col = jax.lax.broadcasted_iota(jnp.int32, (L, 1), 0) % Wp
    valid = col < W                                             # (L, 1) bool

    def conv3x3(src_ref, w_ref, b_ref):
        # 9 accumulating K=C MXU dots; each tap is a contiguous sublane-offset
        # slice of the flat padded scratch (no 2-D window relayout, no concat).
        acc = jnp.zeros((L, C), jnp.float32)
        for t in range(9):
            d = (t // 3) * Wp + (t % 3)
            tap = src_ref[d:d + L, :].astype(jnp.bfloat16)
            acc = acc + jnp.dot(tap, w_ref[t],
                                preferred_element_type=jnp.float32)
        return acc + b_ref[...]

    # conv1 -> ReLU -> +x  (residual, padded-width layout; junk cols stay junk)
    x_pw = xpad_ref[Wp + 1:Wp + 1 + L, :]
    res = jnp.maximum(conv3x3(xpad_ref, w1_ref, b1_ref), 0.0) + x_pw

    # Masked contiguous store into the rpad interior.  The junk columns land
    # exactly on rpad halo positions, so forcing them to 0 preserves the
    # zero-halo invariant without re-zeroing the scratch.
    rpad_ref[Wp + 1:Wp + 1 + L, :] = jnp.where(valid, res, 0.0)

    # conv2 (taps sliced straight from the rpad ref)
    res = conv3x3(rpad_ref, w2_ref, b2_ref)                     # (L, C)

    # CALayer on VPU/XLU: gate = sigmoid(W2 relu(W1 avgpool(res) + b1) + b2)
    pooled = jnp.sum(jnp.where(valid, res, 0.0),
                     axis=0, keepdims=True) * (1.0 / HW)        # (1, C)
    h = jnp.maximum(jnp.sum(caw1_ref[...] * pooled, axis=1, keepdims=True)
                    + cab1_ref[...], 0.0)                       # (C/8, 1)
    gate = jax.nn.sigmoid(jnp.sum(caw2_ref[...] * h, axis=0, keepdims=True)
                          + cab2_ref[...])                      # (1, C)
    res = res * gate

    # PALayer: per-pixel 1x1 MLP; the C/8 -> 1 projection stays on the VPU.
    hp = jnp.maximum(jnp.dot(res, paw1_ref[...],
                             preferred_element_type=jnp.float32)
                     + pab1_ref[...], 0.0)                      # (L, C/8)
    pa = jax.nn.sigmoid(jnp.sum(hp * paw2_ref[...], axis=-1, keepdims=True)
                        + pab2_ref[...])                        # (L, 1)
    res = res * pa + xpad_ref[Wp + 1:Wp + 1 + L, :]             # final residual

    # Compact the valid columns into the (H*W, C) output block.
    for y in range(H):
        o_ref[y * W:(y + 1) * W, :] = res[y * Wp:y * Wp + W, :].astype(o_ref.dtype)


# ----------------------------------------------------------------------------
# Wrapper
# ----------------------------------------------------------------------------
def block_forward(x, p):
    """x: (N, H, W, C) NHWC float32."""
    N, H, W, C = x.shape
    xf = x.reshape(N, H * W, C)          # adjacent-dim merge: free, no HBM copy

    names = ("w1", "b1", "w2", "b2", "caw1", "cab1", "caw2", "cab2",
             "paw1", "pab1", "paw2", "pab2")
    weights = [p[k] for k in names]
    w_specs = [pl.BlockSpec(w.shape, lambda n, _r=w.ndim: (0,) * _r)
               for w in weights]

    padf = (H + 2) * (W + 2) + 8         # flat padded rows (+8 tap-slice slack)
    kernel = functools.partial(_block_kernel, H=H, W=W, C=C)
    out = pl.pallas_call(
        kernel,
        out_shape=jax.ShapeDtypeStruct((N, H * W, C), x.dtype),
        grid=(N,),
        in_specs=[pl.BlockSpec((None, H * W, C), lambda n: (n, 0, 0))] + w_specs,
        out_specs=pl.BlockSpec((None, H * W, C), lambda n: (n, 0, 0)),
        scratch_shapes=[pltpu.VMEM((padf, C), jnp.float32),    # xpad (zero halo)
                        pltpu.VMEM((padf, C), jnp.float32)],   # rpad (zero halo)
        compiler_params=pltpu.CompilerParams(
            # Sequential batch: the halo zero-init runs only at step 0 and the
            # scratch halos must persist untouched across steps.
            dimension_semantics=("arbitrary",),
            vmem_limit_bytes=48 * 1024 * 1024),
    )(xf, *weights)
    return out.reshape(N, H, W, C)


# ----------------------------------------------------------------------------
# Parameters (deterministic synthetic init, matches module shapes)
# ----------------------------------------------------------------------------
def init_params(key, dim=DIM):
    d8 = dim // 8
    ks = jax.random.split(key, 12)

    def conv_p(kw, kb, cin, cout):
        w = jax.random.normal(kw, (3, 3, cin, cout), jnp.float32) / np.sqrt(9 * cin)
        b = jax.random.normal(kb, (1, cout), jnp.float32) * 0.05
        # (ky,kx,cin,cout) -> (9, cin, cout); bf16 operands for the MXU
        return w.reshape(9, cin, cout).astype(jnp.bfloat16), b

    rnd = lambda k, shape, s: jax.random.normal(k, shape, jnp.float32) * s

    w1, b1 = conv_p(ks[0], ks[1], dim, dim)
    w2, b2 = conv_p(ks[2], ks[3], dim, dim)
    caw1 = rnd(ks[4], (d8, dim), 1.0 / np.sqrt(dim))   # [out, in]
    cab1 = rnd(ks[5], (d8, 1), 0.05)
    caw2 = rnd(ks[6], (d8, dim), 1.0 / np.sqrt(d8))    # [in, out]
    cab2 = rnd(ks[7], (1, dim), 0.05)
    paw1 = rnd(ks[8], (dim, d8), 1.0 / np.sqrt(dim))   # [in, out]
    pab1 = rnd(ks[9], (1, d8), 0.05)
    paw2 = rnd(ks[10], (1, d8), 1.0 / np.sqrt(d8))
    pab2 = rnd(ks[11], (1, 1), 0.05)
    return dict(w1=w1, b1=b1, w2=w2, b2=b2,
                caw1=caw1, cab1=cab1, caw2=caw2, cab2=cab2,
                paw1=paw1, pab1=pab1, paw2=paw2, pab2=pab2)


# ----------------------------------------------------------------------------
# Pure-JAX reference (same bf16 conv operands / f32 accumulation as the kernel)
# ----------------------------------------------------------------------------
def block_ref(x, p):
    C = x.shape[-1]

    def conv3(inp, w9, b):
        w = w9.reshape(3, 3, C, C)                       # bf16, HWIO
        y = jax.lax.conv_general_dilated(
            inp.astype(jnp.bfloat16), w, window_strides=(1, 1),
            padding=((1, 1), (1, 1)),
            dimension_numbers=("NHWC", "HWIO", "NHWC"),
            preferred_element_type=jnp.float32)
        return y + b.reshape(1, 1, 1, C)

    res = jax.nn.relu(conv3(x, p["w1"], p["b1"])) + x
    res = conv3(res, p["w2"], p["b2"])
    pooled = res.mean(axis=(1, 2), keepdims=True)                        # (N,1,1,C)
    h = jax.nn.relu(jnp.einsum("nyxc,kc->nyxk", pooled, p["caw1"])
                    + p["cab1"].reshape(1, 1, 1, -1))
    gate = jax.nn.sigmoid(jnp.einsum("nyxk,kc->nyxc", h, p["caw2"])
                          + p["cab2"].reshape(1, 1, 1, -1))
    res = res * gate
    hp = jax.nn.relu(jnp.einsum("nyxc,ck->nyxk", res, p["paw1"])
                     + p["pab1"].reshape(1, 1, 1, -1))
    pa = jax.nn.sigmoid(jnp.sum(hp * p["paw2"].reshape(1, 1, 1, -1),
                                axis=-1, keepdims=True)
                        + p["pab2"].reshape(1, 1, 1, 1))
    return res * pa + x


if __name__ == "__main__":
    key = jax.random.PRNGKey(0)
    kx, kp = jax.random.split(key)
    N, H, W = 2, 16, 16

    x = jax.random.normal(kx, (N, H, W, DIM), jnp.float32)
    params = init_params(kp, DIM)

    out = jax.jit(block_forward)(x, params)
    jax.block_until_ready(out)
    assert out.shape == (N, H, W, DIM)

    ref = block_ref(x, params)
    # Kernel and reference quantize the conv operands to bf16 identically and
    # accumulate in f32, so the residual delta is accumulation order plus the
    # small f32 CA/PA projections; 1e-2 is a comfortable, justified bound.
    np.testing.assert_allclose(np.asarray(out), np.asarray(ref),
                               atol=1e-2, rtol=1e-2)
    print("KERNEL_OK")
</pallas_src>

<mosaic_0001>
module attributes {stable_mosaic.version = 11 : i64} {
  func.func @_block_kernel(%arg0: i32, %arg1: memref<1x256x64xf32, #tpu.memory_space<vmem>>, %arg2: memref<9x64x64xbf16, #tpu.memory_space<vmem>>, %arg3: memref<1x64xf32, #tpu.memory_space<vmem>>, %arg4: memref<9x64x64xbf16, #tpu.memory_space<vmem>>, %arg5: memref<1x64xf32, #tpu.memory_space<vmem>>, %arg6: memref<8x64xf32, #tpu.memory_space<vmem>>, %arg7: memref<8x1xf32, #tpu.memory_space<vmem>>, %arg8: memref<8x64xf32, #tpu.memory_space<vmem>>, %arg9: memref<1x64xf32, #tpu.memory_space<vmem>>, %arg10: memref<64x8xf32, #tpu.memory_space<vmem>>, %arg11: memref<1x8xf32, #tpu.memory_space<vmem>>, %arg12: memref<1x8xf32, #tpu.memory_space<vmem>>, %arg13: memref<1x1xf32, #tpu.memory_space<vmem>>, %arg14: memref<1x256x64xf32, #tpu.memory_space<vmem>>, %arg15: memref<332x64xf32, #tpu.memory_space<vmem>>, %arg16: memref<332x64xf32, #tpu.memory_space<vmem>>) attributes {dimension_semantics = [#tpu.dimension_semantics<arbitrary>], iteration_bounds = array<i64: 2>, scalar_prefetch = 0 : i64, scratch_operands = 2 : i64, tpu.core_type = #tpu.core_type<tc>, window_params = [{transform_indices = @transform_0, window_bounds = array<i64: 1, 256, 64>}, {pipeline_mode = #tpu.pipeline_mode<synchronous>, transform_indices = @transform_1, window_bounds = array<i64: 9, 64, 64>}, {pipeline_mode = #tpu.pipeline_mode<synchronous>, transform_indices = @transform_2, window_bounds = array<i64: 1, 64>}, {pipeline_mode = #tpu.pipeline_mode<synchronous>, transform_indices = @transform_3, window_bounds = array<i64: 9, 64, 64>}, {pipeline_mode = #tpu.pipeline_mode<synchronous>, transform_indices = @transform_4, window_bounds = array<i64: 1, 64>}, {pipeline_mode = #tpu.pipeline_mode<synchronous>, transform_indices = @transform_5, window_bounds = array<i64: 8, 64>}, {pipeline_mode = #tpu.pipeline_mode<synchronous>, transform_indices = @transform_6, window_bounds = array<i64: 8, 1>}, {pipeline_mode = #tpu.pipeline_mode<synchronous>, transform_indices = @transform_7, window_bounds = array<i64: 8, 64>}, {pipeline_mode = #tpu.pipeline_mode<synchronous>, transform_indices = @transform_8, window_bounds = array<i64: 1, 64>}, {pipeline_mode = #tpu.pipeline_mode<synchronous>, transform_indices = @transform_9, window_bounds = array<i64: 64, 8>}, {pipeline_mode = #tpu.pipeline_mode<synchronous>, transform_indices = @transform_10, window_bounds = array<i64: 1, 8>}, {pipeline_mode = #tpu.pipeline_mode<synchronous>, transform_indices = @transform_11, window_bounds = array<i64: 1, 8>}, {pipeline_mode = #tpu.pipeline_mode<synchronous>, transform_indices = @transform_12, window_bounds = array<i64: 1, 1>}, {transform_indices = @transform_13, window_bounds = array<i64: 1, 256, 64>}]} {
    %c0_i32 = arith.constant 0 : i32
    %0 = arith.cmpi eq, %arg0, %c0_i32 : i32
    %1 = arith.extui %0 : i1 to i32
    %c0_i32_0 = arith.constant 0 : i32
    %2 = arith.cmpi ne, %1, %c0_i32_0 : i32
    scf.if %2 {
      %cst_237 = arith.constant 0.000000e+00 : f32
      %314 = vector.broadcast %cst_237 : f32 to vector<332x64xf32>
      %c0_238 = arith.constant 0 : index
      %c0_239 = arith.constant 0 : index
      %315 = vector.load %arg15[%c0_238, %c0_239] : memref<332x64xf32, #tpu.memory_space<vmem>>, vector<332x64xf32>
      tpu.vector_store %arg15[%c0_238, %c0_239], %314 {strides = array<i32>} : memref<332x64xf32, #tpu.memory_space<vmem>>, vector<332x64xf32>,
      %cst_240 = arith.constant 0.000000e+00 : f32
      %316 = vector.broadcast %cst_240 : f32 to vector<332x64xf32>
      %c0_241 = arith.constant 0 : index
      %c0_242 = arith.constant 0 : index
      %317 = vector.load %arg16[%c0_241, %c0_242] : memref<332x64xf32, #tpu.memory_space<vmem>>, vector<332x64xf32>
      tpu.vector_store %arg16[%c0_241, %c0_242], %316 {strides = array<i32>} : memref<332x64xf32, #tpu.memory_space<vmem>>, vector<332x64xf32>,
    } else {
    }
    %c0 = arith.constant 0 : index
    %c0_1 = arith.constant 0 : index
    %c0_2 = arith.constant 0 : index
    %3 = vector.load %arg1[%c0, %c0_1, %c0_2] : memref<1x256x64xf32, #tpu.memory_space<vmem>>, vector<1x16x64xf32>
    %4 = vector.shape_cast %3 : vector<1x16x64xf32> to vector<16x64xf32>
    %c19 = arith.constant 19 : index
    %c0_3 = arith.constant 0 : index
    %5 = vector.load %arg15[%c19, %c0_3] : memref<332x64xf32, #tpu.memory_space<vmem>>, vector<16x64xf32>
    tpu.vector_store %arg15[%c19, %c0_3], %4 {strides = array<i32>} : memref<332x64xf32, #tpu.memory_space<vmem>>, vector<16x64xf32>,
    %c0_4 = arith.constant 0 : index
    %c16 = arith.constant 16 : index
    %c0_5 = arith.constant 0 : index
    %6 = vector.load %arg1[%c0_4, %c16, %c0_5] : memref<1x256x64xf32, #tpu.memory_space<vmem>>, vector<1x16x64xf32>
    %7 = vector.shape_cast %6 : vector<1x16x64xf32> to vector<16x64xf32>
    %c37 = arith.constant 37 : index
    %c0_6 = arith.constant 0 : index
    %8 = vector.load %arg15[%c37, %c0_6] : memref<332x64xf32, #tpu.memory_space<vmem>>, vector<16x64xf32>
    tpu.vector_store %arg15[%c37, %c0_6], %7 {strides = array<i32>} : memref<332x64xf32, #tpu.memory_space<vmem>>, vector<16x64xf32>,
    %c0_7 = arith.constant 0 : index
    %c32 = arith.constant 32 : index
    %c0_8 = arith.constant 0 : index
    %9 = vector.load %arg1[%c0_7, %c32, %c0_8] : memref<1x256x64xf32, #tpu.memory_space<vmem>>, vector<1x16x64xf32>
    %10 = vector.shape_cast %9 : vector<1x16x64xf32> to vector<16x64xf32>
    %c55 = arith.constant 55 : index
    %c0_9 = arith.constant 0 : index
    %11 = vector.load %arg15[%c55, %c0_9] : memref<332x64xf32, #tpu.memory_space<vmem>>, vector<16x64xf32>
    tpu.vector_store %arg15[%c55, %c0_9], %10 {strides = array<i32>} : memref<332x64xf32, #tpu.memory_space<vmem>>, vector<16x64xf32>,
    %c0_10 = arith.constant 0 : index
    %c48 = arith.constant 48 : index
    %c0_11 = arith.constant 0 : index
    %12 = vector.load %arg1[%c0_10, %c48, %c0_11] : memref<1x256x64xf32, #tpu.memory_space<vmem>>, vector<1x16x64xf32>
    %13 = vector.shape_cast %12 : vector<1x16x64xf32> to vector<16x64xf32>
    %c73 = arith.constant 73 : index
    %c0_12 = arith.constant 0 : index
    %14 = vector.load %arg15[%c73, %c0_12] : memref<332x64xf32, #tpu.memory_space<vmem>>, vector<16x64xf32>
    tpu.vector_store %arg15[%c73, %c0_12], %13 {strides = array<i32>} : memref<332x64xf32, #tpu.memory_space<vmem>>, vector<16x64xf32>,
    %c0_13 = arith.constant 0 : index
    %c64 = arith.constant 64 : index
    %c0_14 = arith.constant 0 : index
    %15 = vector.load %arg1[%c0_13, %c64, %c0_14] : memref<1x256x64xf32, #tpu.memory_space<vmem>>, vector<1x16x64xf32>
    %16 = vector.shape_cast %15 : vector<1x16x64xf32> to vector<16x64xf32>
    %c91 = arith.constant 91 : index
    %c0_15 = arith.constant 0 : index
    %17 = vector.load %arg15[%c91, %c0_15] : memref<332x64xf32, #tpu.memory_space<vmem>>, vector<16x64xf32>
    tpu.vector_store %arg15[%c91, %c0_15], %16 {strides = array<i32>} : memref<332x64xf32, #tpu.memory_space<vmem>>, vector<16x64xf32>,
    %c0_16 = arith.constant 0 : index
    %c80 = arith.constant 80 : index
    %c0_17 = arith.constant 0 : index
    %18 = vector.load %arg1[%c0_16, %c80, %c0_17] : memref<1x256x64xf32, #tpu.memory_space<vmem>>, vector<1x16x64xf32>
    %19 = vector.shape_cast %18 : vector<1x16x64xf32> to vector<16x64xf32>
    %c109 = arith.constant 109 : index
    %c0_18 = arith.constant 0 : index
    %20 = vector.load %arg15[%c109, %c0_18] : memref<332x64xf32, #tpu.memory_space<vmem>>, vector<16x64xf32>
    tpu.vector_store %arg15[%c109, %c0_18], %19 {strides = array<i32>} : memref<332x64xf32, #tpu.memory_space<vmem>>, vector<16x64xf32>,
    %c0_19 = arith.constant 0 : index
    %c96 = arith.constant 96 : index
    %c0_20 = arith.constant 0 : index
    %21 = vector.load %arg1[%c0_19, %c96, %c0_20] : memref<1x256x64xf32, #tpu.memory_space<vmem>>, vector<1x16x64xf32>
    %22 = vector.shape_cast %21 : vector<1x16x64xf32> to vector<16x64xf32>
    %c127 = arith.constant 127 : index
    %c0_21 = arith.constant 0 : index
    %23 = vector.load %arg15[%c127, %c0_21] : memref<332x64xf32, #tpu.memory_space<vmem>>, vector<16x64xf32>
    tpu.vector_store %arg15[%c127, %c0_21], %22 {strides = array<i32>} : memref<332x64xf32, #tpu.memory_space<vmem>>, vector<16x64xf32>,
    %c0_22 = arith.constant 0 : index
    %c112 = arith.constant 112 : index
    %c0_23 = arith.constant 0 : index
    %24 = vector.load %arg1[%c0_22, %c112, %c0_23] : memref<1x256x64xf32, #tpu.memory_space<vmem>>, vector<1x16x64xf32>
    %25 = vector.shape_cast %24 : vector<1x16x64xf32> to vector<16x64xf32>
    %c145 = arith.constant 145 : index
    %c0_24 = arith.constant 0 : index
    %26 = vector.load %arg15[%c145, %c0_24] : memref<332x64xf32, #tpu.memory_space<vmem>>, vector<16x64xf32>
    tpu.vector_store %arg15[%c145, %c0_24], %25 {strides = array<i32>} : memref<332x64xf32, #tpu.memory_space<vmem>>, vector<16x64xf32>,
    %c0_25 = arith.constant 0 : index
    %c128 = arith.constant 128 : index
    %c0_26 = arith.constant 0 : index
    %27 = vector.load %arg1[%c0_25, %c128, %c0_26] : memref<1x256x64xf32, #tpu.memory_space<vmem>>, vector<1x16x64xf32>
    %28 = vector.shape_cast %27 : vector<1x16x64xf32> to vector<16x64xf32>
    %c163 = arith.constant 163 : index
    %c0_27 = arith.constant 0 : index
    %29 = vector.load %arg15[%c163, %c0_27] : memref<332x64xf32, #tpu.memory_space<vmem>>, vector<16x64xf32>
    tpu.vector_store %arg15[%c163, %c0_27], %28 {strides = array<i32>} : memref<332x64xf32, #tpu.memory_space<vmem>>, vector<16x64xf32>,
    %c0_28 = arith.constant 0 : index
    %c144 = arith.constant 144 : index
    %c0_29 = arith.constant 0 : index
    %30 = vector.load %arg1[%c0_28, %c144, %c0_29] : memref<1x256x64xf32, #tpu.memory_space<vmem>>, vector<1x16x64xf32>
    %31 = vector.shape_cast %30 : vector<1x16x64xf32> to vector<16x64xf32>
    %c181 = arith.constant 181 : index
    %c0_30 = arith.constant 0 : index
    %32 = vector.load %arg15[%c181, %c0_30] : memref<332x64xf32, #tpu.memory_space<vmem>>, vector<16x64xf32>
    tpu.vector_store %arg15[%c181, %c0_30], %31 {strides = array<i32>} : memref<332x64xf32, #tpu.memory_space<vmem>>, vector<16x64xf32>,
    %c0_31 = arith.constant 0 : index
    %c160 = arith.constant 160 : index
    %c0_32 = arith.constant 0 : index
    %33 = vector.load %arg1[%c0_31, %c160, %c0_32] : memref<1x256x64xf32, #tpu.memory_space<vmem>>, vector<1x16x64xf32>
    %34 = vector.shape_cast %33 : vector<1x16x64xf32> to vector<16x64xf32>
    %c199 = arith.constant 199 : index
    %c0_33 = arith.constant 0 : index
    %35 = vector.load %arg15[%c199, %c0_33] : memref<332x64xf32, #tpu.memory_space<vmem>>, vector<16x64xf32>
    tpu.vector_store %arg15[%c199, %c0_33], %34 {strides = array<i32>} : memref<332x64xf32, #tpu.memory_space<vmem>>, vector<16x64xf32>,
    %c0_34 = arith.constant 0 : index
    %c176 = arith.constant 176 : index
    %c0_35 = arith.constant 0 : index
    %36 = vector.load %arg1[%c0_34, %c176, %c0_35] : memref<1x256x64xf32, #tpu.memory_space<vmem>>, vector<1x16x64xf32>
    %37 = vector.shape_cast %36 : vector<1x16x64xf32> to vector<16x64xf32>
    %c217 = arith.constant 217 : index
    %c0_36 = arith.constant 0 : index
    %38 = vector.load %arg15[%c217, %c0_36] : memref<332x64xf32, #tpu.memory_space<vmem>>, vector<16x64xf32>
    tpu.vector_store %arg15[%c217, %c0_36], %37 {strides = array<i32>} : memref<332x64xf32, #tpu.memory_space<vmem>>, vector<16x64xf32>,
    %c0_37 = arith.constant 0 : index
    %c192 = arith.constant 192 : index
    %c0_38 = arith.constant 0 : index
    %39 = vector.load %arg1[%c0_37, %c192, %c0_38] : memref<1x256x64xf32, #tpu.memory_space<vmem>>, vector<1x16x64xf32>
    %40 = vector.shape_cast %39 : vector<1x16x64xf32> to vector<16x64xf32>
    %c235 = arith.constant 235 : index
    %c0_39 = arith.constant 0 : index
    %41 = vector.load %arg15[%c235, %c0_39] : memref<332x64xf32, #tpu.memory_space<vmem>>, vector<16x64xf32>
    tpu.vector_store %arg15[%c235, %c0_39], %40 {strides = array<i32>} : memref<332x64xf32, #tpu.memory_space<vmem>>, vector<16x64xf32>,
    %c0_40 = arith.constant 0 : index
    %c208 = arith.constant 208 : index
    %c0_41 = arith.constant 0 : index
    %42 = vector.load %arg1[%c0_40, %c208, %c0_41] : memref<1x256x64xf32, #tpu.memory_space<vmem>>, vector<1x16x64xf32>
    %43 = vector.shape_cast %42 : vector<1x16x64xf32> to vector<16x64xf32>
    %c253 = arith.constant 253 : index
    %c0_42 = arith.constant 0 : index
    %44 = vector.load %arg15[%c253, %c0_42] : memref<332x64xf32, #tpu.memory_space<vmem>>, vector<16x64xf32>
    tpu.vector_store %arg15[%c253, %c0_42], %43 {strides = array<i32>} : memref<332x64xf32, #tpu.memory_space<vmem>>, vector<16x64xf32>,
    %c0_43 = arith.constant 0 : index
    %c224 = arith.constant 224 : index
    %c0_44 = arith.constant 0 : index
    %45 = vector.load %arg1[%c0_43, %c224, %c0_44] : memref<1x256x64xf32, #tpu.memory_space<vmem>>, vector<1x16x64xf32>
    %46 = vector.shape_cast %45 : vector<1x16x64xf32> to vector<16x64xf32>
    %c271 = arith.constant 271 : index
    %c0_45 = arith.constant 0 : index
    %47 = vector.load %arg15[%c271, %c0_45] : memref<332x64xf32, #tpu.memory_space<vmem>>, vector<16x64xf32>
    tpu.vector_store %arg15[%c271, %c0_45], %46 {strides = array<i32>} : memref<332x64xf32, #tpu.memory_space<vmem>>, vector<16x64xf32>,
    %c0_46 = arith.constant 0 : index
    %c240 = arith.constant 240 : index
    %c0_47 = arith.constant 0 : index
    %48 = vector.load %arg1[%c0_46, %c240, %c0_47] : memref<1x256x64xf32, #tpu.memory_space<vmem>>, vector<1x16x64xf32>
    %49 = vector.shape_cast %48 : vector<1x16x64xf32> to vector<16x64xf32>
    %c289 = arith.constant 289 : index
    %c0_48 = arith.constant 0 : index
    %50 = vector.load %arg15[%c289, %c0_48] : memref<332x64xf32, #tpu.memory_space<vmem>>, vector<16x64xf32>
    tpu.vector_store %arg15[%c289, %c0_48], %49 {strides = array<i32>} : memref<332x64xf32, #tpu.memory_space<vmem>>, vector<16x64xf32>,
    %51 = tpu.iota {dimensions = array<i32: 0>} : vector<288x1xi32>
    %c18_i32 = arith.constant 18 : i32
    %c0_i32_49 = arith.constant 0 : i32
    %52 = arith.cmpi eq, %c18_i32, %c0_i32_49 : i32
    %c1_i32 = arith.constant 1 : i32
    %53 = arith.select %52, %c1_i32, %c18_i32 : i32
    %54 = vector.broadcast %53 : i32 to vector<288x1xi32>
    %55 = arith.remsi %51, %54 : vector<288x1xi32>
    %c0_i32_50 = arith.constant 0 : i32
    %56 = vector.broadcast %c0_i32_50 : i32 to vector<288x1xi32>
    %57 = arith.cmpi ne, %55, %56 : vector<288x1xi32>
    %c0_i32_51 = arith.constant 0 : i32
    %58 = vector.broadcast %c0_i32_51 : i32 to vector<288x1xi32>
    %59 = arith.cmpi slt, %55, %58 : vector<288x1xi32>
    %c0_i32_52 = arith.constant 0 : i32
    %60 = arith.cmpi slt, %53, %c0_i32_52 : i32
    %61 = vector.broadcast %60 : i1 to vector<288x1xi1>
    %62 = vector.broadcast %61 : vector<288x1xi1> to vector<288x1xi1>
    %63 = arith.xori %59, %62 : vector<288x1xi1>
    %64 = arith.andi %63, %57 : vector<288x1xi1>
    %65 = vector.broadcast %53 : i32 to vector<288x1xi32>
    %66 = arith.addi %55, %65 : vector<288x1xi32>
    %67 = arith.select %64, %66, %55 : vector<288x1xi1>, vector<288x1xi32>
    %c16_i32 = arith.constant 16 : i32
    %68 = vector.broadcast %c16_i32 : i32 to vector<288x1xi32>
    %69 = arith.cmpi slt, %67, %68 : vector<288x1xi32>
    %c19_53 = arith.constant 19 : index
    %c0_54 = arith.constant 0 : index
    %70 = vector.load %arg15[%c19_53, %c0_54] : memref<332x64xf32, #tpu.memory_space<vmem>>, vector<288x64xf32>
    %cst = arith.constant 0.000000e+00 : f32
    %71 = vector.broadcast %cst : f32 to vector<288x64xf32>
    %c0_55 = arith.constant 0 : index
    %c0_56 = arith.constant 0 : index
    %72 = vector.load %arg15[%c0_55, %c0_56] : memref<332x64xf32, #tpu.memory_space<vmem>>, vector<288x64xf32>
    %73 = arith.truncf %72 : vector<288x64xf32> to vector<288x64xbf16>
    %c0_57 = arith.constant 0 : index
    %c0_58 = arith.constant 0 : index
    %c0_59 = arith.constant 0 : index
    %74 = vector.load %arg2[%c0_57, %c0_58, %c0_59] : memref<9x64x64xbf16, #tpu.memory_space<vmem>>, vector<1x64x64xbf16>
    %75 = vector.shape_cast %74 : vector<1x64x64xbf16> to vector<64x64xbf16>
    %cst_60 = arith.constant dense<0.000000e+00> : vector<288x64xf32>
    %76 = tpu.matmul %73, %75, %cst_60 {dimension_numbers = #tpu.dot_dimension_numbers<[1], [0], [0], [1], [0, 0, 1, 1], [], []>} : vector<288x64xbf16>, vector<64x64xbf16>, vector<288x64xf32> -> vector<288x64xf32>
    %77 = arith.addf %71, %76 : vector<288x64xf32>
    %c1 = arith.constant 1 : index
    %c0_61 = arith.constant 0 : index
    %78 = vector.load %arg15[%c1, %c0_61] : memref<332x64xf32, #tpu.memory_space<vmem>>, vector<288x64xf32>
    %79 = arith.truncf %78 : vector<288x64xf32> to vector<288x64xbf16>
    %c1_62 = arith.constant 1 : index
    %c0_63 = arith.constant 0 : index
    %c0_64 = arith.constant 0 : index
    %80 = vector.load %arg2[%c1_62, %c0_63, %c0_64] : memref<9x64x64xbf16, #tpu.memory_space<vmem>>, vector<1x64x64xbf16>
    %81 = vector.shape_cast %80 : vector<1x64x64xbf16> to vector<64x64xbf16>
    %cst_65 = arith.constant dense<0.000000e+00> : vector<288x64xf32>
    %82 = tpu.matmul %79, %81, %cst_65 {dimension_numbers = #tpu.dot_dimension_numbers<[1], [0], [0], [1], [0, 0, 1, 1], [], []>} : vector<288x64xbf16>, vector<64x64xbf16>, vector<288x64xf32> -> vector<288x64xf32>
    %83 = arith.addf %77, %82 : vector<288x64xf32>
    %c2 = arith.constant 2 : index
    %c0_66 = arith.constant 0 : index
    %84 = vector.load %arg15[%c2, %c0_66] : memref<332x64xf32, #tpu.memory_space<vmem>>, vector<288x64xf32>
    %85 = arith.truncf %84 : vector<288x64xf32> to vector<288x64xbf16>
    %c2_67 = arith.constant 2 : index
    %c0_68 = arith.constant 0 : index
    %c0_69 = arith.constant 0 : index
    %86 = vector.load %arg2[%c2_67, %c0_68, %c0_69] : memref<9x64x64xbf16, #tpu.memory_space<vmem>>, vector<1x64x64xbf16>
    %87 = vector.shape_cast %86 : vector<1x64x64xbf16> to vector<64x64xbf16>
    %cst_70 = arith.constant dense<0.000000e+00> : vector<288x64xf32>
    %88 = tpu.matmul %85, %87, %cst_70 {dimension_numbers = #tpu.dot_dimension_numbers<[1], [0], [0], [1], [0, 0, 1, 1], [], []>} : vector<288x64xbf16>, vector<64x64xbf16>, vector<288x64xf32> -> vector<288x64xf32>
    %89 = arith.addf %83, %88 : vector<288x64xf32>
    %c18 = arith.constant 18 : index
    %c0_71 = arith.constant 0 : index
    %90 = vector.load %arg15[%c18, %c0_71] : memref<332x64xf32, #tpu.memory_space<vmem>>, vector<288x64xf32>
    %91 = arith.truncf %90 : vector<288x64xf32> to vector<288x64xbf16>
    %c3 = arith.constant 3 : index
    %c0_72 = arith.constant 0 : index
    %c0_73 = arith.constant 0 : index
    %92 = vector.load %arg2[%c3, %c0_72, %c0_73] : memref<9x64x64xbf16, #tpu.memory_space<vmem>>, vector<1x64x64xbf16>
    %93 = vector.shape_cast %92 : vector<1x64x64xbf16> to vector<64x64xbf16>
    %cst_74 = arith.constant dense<0.000000e+00> : vector<288x64xf32>
    %94 = tpu.matmul %91, %93, %cst_74 {dimension_numbers = #tpu.dot_dimension_numbers<[1], [0], [0], [1], [0, 0, 1, 1], [], []>} : vector<288x64xbf16>, vector<64x64xbf16>, vector<288x64xf32> -> vector<288x64xf32>
    %95 = arith.addf %89, %94 : vector<288x64xf32>
    %c19_75 = arith.constant 19 : index
    %c0_76 = arith.constant 0 : index
    %96 = vector.load %arg15[%c19_75, %c0_76] : memref<332x64xf32, #tpu.memory_space<vmem>>, vector<288x64xf32>
    %97 = arith.truncf %96 : vector<288x64xf32> to vector<288x64xbf16>
    %c4 = arith.constant 4 : index
    %c0_77 = arith.constant 0 : index
    %c0_78 = arith.constant 0 : index
    %98 = vector.load %arg2[%c4, %c0_77, %c0_78] : memref<9x64x64xbf16, #tpu.memory_space<vmem>>, vector<1x64x64xbf16>
    %99 = vector.shape_cast %98 : vector<1x64x64xbf16> to vector<64x64xbf16>
    %cst_79 = arith.constant dense<0.000000e+00> : vector<288x64xf32>
    %100 = tpu.matmul %97, %99, %cst_79 {dimension_numbers = #tpu.dot_dimension_numbers<[1], [0], [0], [1], [0, 0, 1, 1], [], []>} : vector<288x64xbf16>, vector<64x64xbf16>, vector<288x64xf32> -> vector<288x64xf32>
    %101 = arith.addf %95, %100 : vector<288x64xf32>
    %c20 = arith.constant 20 : index
    %c0_80 = arith.constant 0 : index
    %102 = vector.load %arg15[%c20, %c0_80] : memref<332x64xf32, #tpu.memory_space<vmem>>, vector<288x64xf32>
    %103 = arith.truncf %102 : vector<288x64xf32> to vector<288x64xbf16>
    %c5 = arith.constant 5 : index
    %c0_81 = arith.constant 0 : index
    %c0_82 = arith.constant 0 : index
    %104 = vector.load %arg2[%c5, %c0_81, %c0_82] : memref<9x64x64xbf16, #tpu.memory_space<vmem>>, vector<1x64x64xbf16>
    %105 = vector.shape_cast %104 : vector<1x64x64xbf16> to vector<64x64xbf16>
    %cst_83 = arith.constant dense<0.000000e+00> : vector<288x64xf32>
    %106 = tpu.matmul %103, %105, %cst_83 {dimension_numbers = #tpu.dot_dimension_numbers<[1], [0], [0], [1], [0, 0, 1, 1], [], []>} : vector<288x64xbf16>, vector<64x64xbf16>, vector<288x64xf32> -> vector<288x64xf32>
    %107 = arith.addf %101, %106 : vector<288x64xf32>
    %c36 = arith.constant 36 : index
    %c0_84 = arith.constant 0 : index
    %108 = vector.load %arg15[%c36, %c0_84] : memref<332x64xf32, #tpu.memory_space<vmem>>, vector<288x64xf32>
    %109 = arith.truncf %108 : vector<288x64xf32> to vector<288x64xbf16>
    %c6 = arith.constant 6 : index
    %c0_85 = arith.constant 0 : index
    %c0_86 = arith.constant 0 : index
    %110 = vector.load %arg2[%c6, %c0_85, %c0_86] : memref<9x64x64xbf16, #tpu.memory_space<vmem>>, vector<1x64x64xbf16>
    %111 = vector.shape_cast %110 : vector<1x64x64xbf16> to vector<64x64xbf16>
    %cst_87 = arith.constant dense<0.000000e+00> : vector<288x64xf32>
    %112 = tpu.matmul %109, %111, %cst_87 {dimension_numbers = #tpu.dot_dimension_numbers<[1], [0], [0], [1], [0, 0, 1, 1], [], []>} : vector<288x64xbf16>, vector<64x64xbf16>, vector<288x64xf32> -> vector<288x64xf32>
    %113 = arith.addf %107, %112 : vector<288x64xf32>
    %c37_88 = arith.constant 37 : index
    %c0_89 = arith.constant 0 : index
    %114 = vector.load %arg15[%c37_88, %c0_89] : memref<332x64xf32, #tpu.memory_space<vmem>>, vector<288x64xf32>
    %115 = arith.truncf %114 : vector<288x64xf32> to vector<288x64xbf16>
    %c7 = arith.constant 7 : index
    %c0_90 = arith.constant 0 : index
    %c0_91 = arith.constant 0 : index
    %116 = vector.load %arg2[%c7, %c0_90, %c0_91] : memref<9x64x64xbf16, #tpu.memory_space<vmem>>, vector<1x64x64xbf16>
    %117 = vector.shape_cast %116 : vector<1x64x64xbf16> to vector<64x64xbf16>
    %cst_92 = arith.constant dense<0.000000e+00> : vector<288x64xf32>
    %118 = tpu.matmul %115, %117, %cst_92 {dimension_numbers = #tpu.dot_dimension_numbers<[1], [0], [0], [1], [0, 0, 1, 1], [], []>} : vector<288x64xbf16>, vector<64x64xbf16>, vector<288x64xf32> -> vector<288x64xf32>
    %119 = arith.addf %113, %118 : vector<288x64xf32>
    %c38 = arith.constant 38 : index
    %c0_93 = arith.constant 0 : index
    %120 = vector.load %arg15[%c38, %c0_93] : memref<332x64xf32, #tpu.memory_space<vmem>>, vector<288x64xf32>
    %121 = arith.truncf %120 : vector<288x64xf32> to vector<288x64xbf16>
    %c8 = arith.constant 8 : index
    %c0_94 = arith.constant 0 : index
    %c0_95 = arith.constant 0 : index
    %122 = vector.load %arg2[%c8, %c0_94, %c0_95] : memref<9x64x64xbf16, #tpu.memory_space<vmem>>, vector<1x64x64xbf16>
    %123 = vector.shape_cast %122 : vector<1x64x64xbf16> to vector<64x64xbf16>
    %cst_96 = arith.constant dense<0.000000e+00> : vector<288x64xf32>
    %124 = tpu.matmul %121, %123, %cst_96 {dimension_numbers = #tpu.dot_dimension_numbers<[1], [0], [0], [1], [0, 0, 1, 1], [], []>} : vector<288x64xbf16>, vector<64x64xbf16>, vector<288x64xf32> -> vector<288x64xf32>
    %125 = arith.addf %119, %124 : vector<288x64xf32>
    %c0_97 = arith.constant 0 : index
    %c0_98 = arith.constant 0 : index
    %126 = vector.load %arg3[%c0_97, %c0_98] : memref<1x64xf32, #tpu.memory_space<vmem>>, vector<1x64xf32>
    %127 = vector.broadcast %126 : vector<1x64xf32> to vector<288x64xf32>
    %128 = arith.addf %125, %127 : vector<288x64xf32>
    %cst_99 = arith.constant 0.000000e+00 : f32
    %129 = vector.broadcast %cst_99 : f32 to vector<288x64xf32>
    %130 = arith.maximumf %128, %129 : vector<288x64xf32>
    %131 = arith.addf %130, %70 : vector<288x64xf32>
    %cst_100 = arith.constant 0.000000e+00 : f32
    %132 = vector.shape_cast %69 : vector<288x1xi1> to vector<288x1xi1>
    %133 = vector.broadcast %132 : vector<288x1xi1> to vector<288x64xi1>
    %134 = vector.broadcast %cst_100 : f32 to vector<288x64xf32>
    %135 = arith.select %133, %131, %134 : vector<288x64xi1>, vector<288x64xf32>
    %c19_101 = arith.constant 19 : index
    %c0_102 = arith.constant 0 : index
    %136 = vector.load %arg16[%c19_101, %c0_102] : memref<332x64xf32, #tpu.memory_space<vmem>>, vector<288x64xf32>
    tpu.vector_store %arg16[%c19_101, %c0_102], %135 {strides = array<i32>} : memref<332x64xf32, #tpu.memory_space<vmem>>, vector<288x64xf32>,
    %cst_103 = arith.constant 0.000000e+00 : f32
    %137 = vector.broadcast %cst_103 : f32 to vector<288x64xf32>
    %c0_104 = arith.constant 0 : index
    %c0_105 = arith.constant 0 : index
    %138 = vector.load %arg16[%c0_104, %c0_105] : memref<332x64xf32, #tpu.memory_space<vmem>>, vector<288x64xf32>
    %139 = arith.truncf %138 : vector<288x64xf32> to vector<288x64xbf16>
    %c0_106 = arith.constant 0 : index
    %c0_107 = arith.constant 0 : index
    %c0_108 = arith.constant 0 : index
    %140 = vector.load %arg4[%c0_106, %c0_107, %c0_108] : memref<9x64x64xbf16, #tpu.memory_space<vmem>>, vector<1x64x64xbf16>
    %141 = vector.shape_cast %140 : vector<1x64x64xbf16> to vector<64x64xbf16>
    %cst_109 = arith.constant dense<0.000000e+00> : vector<288x64xf32>
    %142 = tpu.matmul %139, %141, %cst_109 {dimension_numbers = #tpu.dot_dimension_numbers<[1], [0], [0], [1], [0, 0, 1, 1], [], []>} : vector<288x64xbf16>, vector<64x64xbf16>, vector<288x64xf32> -> vector<288x64xf32>
    %143 = arith.addf %137, %142 : vector<288x64xf32>
    %c1_110 = arith.constant 1 : index
    %c0_111 = arith.constant 0 : index
    %144 = vector.load %arg16[%c1_110, %c0_111] : memref<332x64xf32, #tpu.memory_space<vmem>>, vector<288x64xf32>
    %145 = arith.truncf %144 : vector<288x64xf32> to vector<288x64xbf16>
    %c1_112 = arith.constant 1 : index
    %c0_113 = arith.constant 0 : index
    %c0_114 = arith.constant 0 : index
    %146 = vector.load %arg4[%c1_112, %c0_113, %c0_114] : memref<9x64x64xbf16, #tpu.memory_space<vmem>>, vector<1x64x64xbf16>
    %147 = vector.shape_cast %146 : vector<1x64x64xbf16> to vector<64x64xbf16>
    %cst_115 = arith.constant dense<0.000000e+00> : vector<288x64xf32>
    %148 = tpu.matmul %145, %147, %cst_115 {dimension_numbers = #tpu.dot_dimension_numbers<[1], [0], [0], [1], [0, 0, 1, 1], [], []>} : vector<288x64xbf16>, vector<64x64xbf16>, vector<288x64xf32> -> vector<288x64xf32>
    %149 = arith.addf %143, %148 : vector<288x64xf32>
    %c2_116 = arith.constant 2 : index
    %c0_117 = arith.constant 0 : index
    %150 = vector.load %arg16[%c2_116, %c0_117] : memref<332x64xf32, #tpu.memory_space<vmem>>, vector<288x64xf32>
    %151 = arith.truncf %150 : vector<288x64xf32> to vector<288x64xbf16>
    %c2_118 = arith.constant 2 : index
    %c0_119 = arith.constant 0 : index
    %c0_120 = arith.constant 0 : index
    %152 = vector.load %arg4[%c2_118, %c0_119, %c0_120] : memref<9x64x64xbf16, #tpu.memory_space<vmem>>, vector<1x64x64xbf16>
    %153 = vector.shape_cast %152 : vector<1x64x64xbf16> to vector<64x64xbf16>
    %cst_121 = arith.constant dense<0.000000e+00> : vector<288x64xf32>
    %154 = tpu.matmul %151, %153, %cst_121 {dimension_numbers = #tpu.dot_dimension_numbers<[1], [0], [0], [1], [0, 0, 1, 1], [], []>} : vector<288x64xbf16>, vector<64x64xbf16>, vector<288x64xf32> -> vector<288x64xf32>
    %155 = arith.addf %149, %154 : vector<288x64xf32>
    %c18_122 = arith.constant 18 : index
    %c0_123 = arith.constant 0 : index
    %156 = vector.load %arg16[%c18_122, %c0_123] : memref<332x64xf32, #tpu.memory_space<vmem>>, vector<288x64xf32>
    %157 = arith.truncf %156 : vector<288x64xf32> to vector<288x64xbf16>
    %c3_124 = arith.constant 3 : index
    %c0_125 = arith.constant 0 : index
    %c0_126 = arith.constant 0 : index
    %158 = vector.load %arg4[%c3_124, %c0_125, %c0_126] : memref<9x64x64xbf16, #tpu.memory_space<vmem>>, vector<1x64x64xbf16>
    %159 = vector.shape_cast %158 : vector<1x64x64xbf16> to vector<64x64xbf16>
    %cst_127 = arith.constant dense<0.000000e+00> : vector<288x64xf32>
    %160 = tpu.matmul %157, %159, %cst_127 {dimension_numbers = #tpu.dot_dimension_numbers<[1], [0], [0], [1], [0, 0, 1, 1], [], []>} : vector<288x64xbf16>, vector<64x64xbf16>, vector<288x64xf32> -> vector<288x64xf32>
    %161 = arith.addf %155, %160 : vector<288x64xf32>
    %c19_128 = arith.constant 19 : index
    %c0_129 = arith.constant 0 : index
    %162 = vector.load %arg16[%c19_128, %c0_129] : memref<332x64xf32, #tpu.memory_space<vmem>>, vector<288x64xf32>
    %163 = arith.truncf %162 : vector<288x64xf32> to vector<288x64xbf16>
    %c4_130 = arith.constant 4 : index
    %c0_131 = arith.constant 0 : index
    %c0_132 = arith.constant 0 : index
    %164 = vector.load %arg4[%c4_130, %c0_131, %c0_132] : memref<9x64x64xbf16, #tpu.memory_space<vmem>>, vector<1x64x64xbf16>
    %165 = vector.shape_cast %164 : vector<1x64x64xbf16> to vector<64x64xbf16>
    %cst_133 = arith.constant dense<0.000000e+00> : vector<288x64xf32>
    %166 = tpu.matmul %163, %165, %cst_133 {dimension_numbers = #tpu.dot_dimension_numbers<[1], [0], [0], [1], [0, 0, 1, 1], [], []>} : vector<288x64xbf16>, vector<64x64xbf16>, vector<288x64xf32> -> vector<288x64xf32>
    %167 = arith.addf %161, %166 : vector<288x64xf32>
    %c20_134 = arith.constant 20 : index
    %c0_135 = arith.constant 0 : index
    %168 = vector.load %arg16[%c20_134, %c0_135] : memref<332x64xf32, #tpu.memory_space<vmem>>, vector<288x64xf32>
    %169 = arith.truncf %168 : vector<288x64xf32> to vector<288x64xbf16>
    %c5_136 = arith.constant 5 : index
    %c0_137 = arith.constant 0 : index
    %c0_138 = arith.constant 0 : index
    %170 = vector.load %arg4[%c5_136, %c0_137, %c0_138] : memref<9x64x64xbf16, #tpu.memory_space<vmem>>, vector<1x64x64xbf16>
    %171 = vector.shape_cast %170 : vector<1x64x64xbf16> to vector<64x64xbf16>
    %cst_139 = arith.constant dense<0.000000e+00> : vector<288x64xf32>
    %172 = tpu.matmul %169, %171, %cst_139 {dimension_numbers = #tpu.dot_dimension_numbers<[1], [0], [0], [1], [0, 0, 1, 1], [], []>} : vector<288x64xbf16>, vector<64x64xbf16>, vector<288x64xf32> -> vector<288x64xf32>
    %173 = arith.addf %167, %172 : vector<288x64xf32>
    %c36_140 = arith.constant 36 : index
    %c0_141 = arith.constant 0 : index
    %174 = vector.load %arg16[%c36_140, %c0_141] : memref<332x64xf32, #tpu.memory_space<vmem>>, vector<288x64xf32>
    %175 = arith.truncf %174 : vector<288x64xf32> to vector<288x64xbf16>
    %c6_142 = arith.constant 6 : index
    %c0_143 = arith.constant 0 : index
    %c0_144 = arith.constant 0 : index
    %176 = vector.load %arg4[%c6_142, %c0_143, %c0_144] : memref<9x64x64xbf16, #tpu.memory_space<vmem>>, vector<1x64x64xbf16>
    %177 = vector.shape_cast %176 : vector<1x64x64xbf16> to vector<64x64xbf16>
    %cst_145 = arith.constant dense<0.000000e+00> : vector<288x64xf32>
    %178 = tpu.matmul %175, %177, %cst_145 {dimension_numbers = #tpu.dot_dimension_numbers<[1], [0], [0], [1], [0, 0, 1, 1], [], []>} : vector<288x64xbf16>, vector<64x64xbf16>, vector<288x64xf32> -> vector<288x64xf32>
    %179 = arith.addf %173, %178 : vector<288x64xf32>
    %c37_146 = arith.constant 37 : index
    %c0_147 = arith.constant 0 : index
    %180 = vector.load %arg16[%c37_146, %c0_147] : memref<332x64xf32, #tpu.memory_space<vmem>>, vector<288x64xf32>
    %181 = arith.truncf %180 : vector<288x64xf32> to vector<288x64xbf16>
    %c7_148 = arith.constant 7 : index
    %c0_149 = arith.constant 0 : index
    %c0_150 = arith.constant 0 : index
    %182 = vector.load %arg4[%c7_148, %c0_149, %c0_150] : memref<9x64x64xbf16, #tpu.memory_space<vmem>>, vector<1x64x64xbf16>
    %183 = vector.shape_cast %182 : vector<1x64x64xbf16> to vector<64x64xbf16>
    %cst_151 = arith.constant dense<0.000000e+00> : vector<288x64xf32>
    %184 = tpu.matmul %181, %183, %cst_151 {dimension_numbers = #tpu.dot_dimension_numbers<[1], [0], [0], [1], [0, 0, 1, 1], [], []>} : vector<288x64xbf16>, vector<64x64xbf16>, vector<288x64xf32> -> vector<288x64xf32>
    %185 = arith.addf %179, %184 : vector<288x64xf32>
    %c38_152 = arith.constant 38 : index
    %c0_153 = arith.constant 0 : index
    %186 = vector.load %arg16[%c38_152, %c0_153] : memref<332x64xf32, #tpu.memory_space<vmem>>, vector<288x64xf32>
    %187 = arith.truncf %186 : vector<288x64xf32> to vector<288x64xbf16>
    %c8_154 = arith.constant 8 : index
    %c0_155 = arith.constant 0 : index
    %c0_156 = arith.constant 0 : index
    %188 = vector.load %arg4[%c8_154, %c0_155, %c0_156] : memref<9x64x64xbf16, #tpu.memory_space<vmem>>, vector<1x64x64xbf16>
    %189 = vector.shape_cast %188 : vector<1x64x64xbf16> to vector<64x64xbf16>
    %cst_157 = arith.constant dense<0.000000e+00> : vector<288x64xf32>
    %190 = tpu.matmul %187, %189, %cst_157 {dimension_numbers = #tpu.dot_dimension_numbers<[1], [0], [0], [1], [0, 0, 1, 1], [], []>} : vector<288x64xbf16>, vector<64x64xbf16>, vector<288x64xf32> -> vector<288x64xf32>
    %191 = arith.addf %185, %190 : vector<288x64xf32>
    %c0_158 = arith.constant 0 : index
    %c0_159 = arith.constant 0 : index
    %192 = vector.load %arg5[%c0_158, %c0_159] : memref<1x64xf32, #tpu.memory_space<vmem>>, vector<1x64xf32>
    %193 = vector.broadcast %192 : vector<1x64xf32> to vector<288x64xf32>
    %194 = arith.addf %191, %193 : vector<288x64xf32>
    %cst_160 = arith.constant 0.000000e+00 : f32
    %195 = vector.shape_cast %69 : vector<288x1xi1> to vector<288x1xi1>
    %196 = vector.broadcast %195 : vector<288x1xi1> to vector<288x64xi1>
    %197 = vector.broadcast %cst_160 : f32 to vector<288x64xf32>
    %198 = arith.select %196, %194, %197 : vector<288x64xi1>, vector<288x64xf32>
    %cst_161 = arith.constant dense<0.000000e+00> : vector<64xf32>
    %199 = vector.multi_reduction <add>, %198, %cst_161 [0] : vector<288x64xf32> to vector<64xf32>
    %200 = vector.shape_cast %199 : vector<64xf32> to vector<1x64xf32>
    %cst_162 = arith.constant 3.906250e-03 : f32
    %201 = vector.broadcast %cst_162 : f32 to vector<1x64xf32>
    %202 = arith.mulf %200, %201 : vector<1x64xf32>
    %c0_163 = arith.constant 0 : index
    %c0_164 = arith.constant 0 : index
    %203 = vector.load %arg6[%c0_163, %c0_164] : memref<8x64xf32, #tpu.memory_space<vmem>>, vector<8x64xf32>
    %204 = vector.broadcast %202 : vector<1x64xf32> to vector<8x64xf32>
    %205 = arith.mulf %203, %204 : vector<8x64xf32>
    %cst_165 = arith.constant dense<0.000000e+00> : vector<8xf32>
    %206 = vector.multi_reduction <add>, %205, %cst_165 [1] : vector<8x64xf32> to vector<8xf32>
    %207 = vector.shape_cast %206 : vector<8xf32> to vector<8x1xf32>
    %c0_166 = arith.constant 0 : index
    %c0_167 = arith.constant 0 : index
    %208 = vector.load %arg7[%c0_166, %c0_167] : memref<8x1xf32, #tpu.memory_space<vmem>>, vector<8x1xf32>
    %209 = arith.addf %207, %208 : vector<8x1xf32>
    %cst_168 = arith.constant 0.000000e+00 : f32
    %210 = vector.broadcast %cst_168 : f32 to vector<8x1xf32>
    %211 = arith.maximumf %209, %210 : vector<8x1xf32>
    %c0_169 = arith.constant 0 : index
    %c0_170 = arith.constant 0 : index
    %212 = vector.load %arg8[%c0_169, %c0_170] : memref<8x64xf32, #tpu.memory_space<vmem>>, vector<8x64xf32>
    %213 = vector.broadcast %211 : vector<8x1xf32> to vector<8x64xf32>
    %214 = arith.mulf %212, %213 : vector<8x64xf32>
    %cst_171 = arith.constant dense<0.000000e+00> : vector<64xf32>
    %215 = vector.multi_reduction <add>, %214, %cst_171 [0] : vector<8x64xf32> to vector<64xf32>
    %216 = vector.shape_cast %215 : vector<64xf32> to vector<1x64xf32>
    %c0_172 = arith.constant 0 : index
    %c0_173 = arith.constant 0 : index
    %217 = vector.load %arg9[%c0_172, %c0_173] : memref<1x64xf32, #tpu.memory_space<vmem>>, vector<1x64xf32>
    %218 = arith.addf %216, %217 : vector<1x64xf32>
    %219 = arith.negf %218 : vector<1x64xf32>
    %220 = math.exp %219 : vector<1x64xf32>
    %cst_174 = arith.constant 1.000000e+00 : f32
    %221 = vector.broadcast %cst_174 : f32 to vector<1x64xf32>
    %222 = arith.addf %221, %220 : vector<1x64xf32>
    %223 = arith.divf %221, %222 : vector<1x64xf32>
    %224 = vector.broadcast %223 : vector<1x64xf32> to vector<288x64xf32>
    %225 = arith.mulf %194, %224 : vector<288x64xf32>
    %c0_175 = arith.constant 0 : index
    %c0_176 = arith.constant 0 : index
    %226 = vector.load %arg10[%c0_175, %c0_176] : memref<64x8xf32, #tpu.memory_space<vmem>>, vector<64x8xf32>
    %cst_177 = arith.constant dense<0.000000e+00> : vector<288x8xf32>
    %227 = tpu.matmul %225, %226, %cst_177 {dimension_numbers = #tpu.dot_dimension_numbers<[1], [0], [0], [1], [0, 0, 1, 1], [], []>} : vector<288x64xf32>, vector<64x8xf32>, vector<288x8xf32> -> vector<288x8xf32>
    %c0_178 = arith.constant 0 : index
    %c0_179 = arith.constant 0 : index
    %228 = vector.load %arg11[%c0_178, %c0_179] : memref<1x8xf32, #tpu.memory_space<vmem>>, vector<1x8xf32>
    %229 = vector.broadcast %228 : vector<1x8xf32> to vector<288x8xf32>
    %230 = arith.addf %227, %229 : vector<288x8xf32>
    %cst_180 = arith.constant 0.000000e+00 : f32
    %231 = vector.broadcast %cst_180 : f32 to vector<288x8xf32>
    %232 = arith.maximumf %230, %231 : vector<288x8xf32>
    %c0_181 = arith.constant 0 : index
    %c0_182 = arith.constant 0 : index
    %233 = vector.load %arg12[%c0_181, %c0_182] : memref<1x8xf32, #tpu.memory_space<vmem>>, vector<1x8xf32>
    %234 = vector.broadcast %233 : vector<1x8xf32> to vector<288x8xf32>
    %235 = arith.mulf %232, %234 : vector<288x8xf32>
    %cst_183 = arith.constant dense<0.000000e+00> : vector<288xf32>
    %236 = vector.multi_reduction <add>, %235, %cst_183 [1] : vector<288x8xf32> to vector<288xf32>
    %237 = vector.shape_cast %236 : vector<288xf32> to vector<288x1xf32>
    %c0_184 = arith.constant 0 : index
    %c0_185 = arith.constant 0 : index
    %238 = vector.load %arg13[%c0_184, %c0_185] : memref<1x1xf32, #tpu.memory_space<vmem>>, vector<1x1xf32>
    %239 = vector.broadcast %238 : vector<1x1xf32> to vector<288x1xf32>
    %240 = arith.addf %237, %239 : vector<288x1xf32>
    %241 = arith.negf %240 : vector<288x1xf32>
    %242 = math.exp %241 : vector<288x1xf32>
    %cst_186 = arith.constant 1.000000e+00 : f32
    %243 = vector.broadcast %cst_186 : f32 to vector<288x1xf32>
    %244 = arith.addf %243, %242 : vector<288x1xf32>
    %245 = arith.divf %243, %244 : vector<288x1xf32>
    %246 = vector.broadcast %245 : vector<288x1xf32> to vector<288x64xf32>
    %247 = arith.mulf %225, %246 : vector<288x64xf32>
    %c19_187 = arith.constant 19 : index
    %c0_188 = arith.constant 0 : index
    %248 = vector.load %arg15[%c19_187, %c0_188] : memref<332x64xf32, #tpu.memory_space<vmem>>, vector<288x64xf32>
    %249 = arith.addf %247, %248 : vector<288x64xf32>
    %250 = vector.extract_strided_slice %249 {offsets = [0, 0], sizes = [16, 64], strides = [1, 1]} : vector<288x64xf32> to vector<16x64xf32>
    %c0_189 = arith.constant 0 : index
    %c0_190 = arith.constant 0 : index
    %c0_191 = arith.constant 0 : index
    %251 = vector.load %arg14[%c0_189, %c0_190, %c0_191] : memref<1x256x64xf32, #tpu.memory_space<vmem>>, vector<1x16x64xf32>
    %252 = vector.shape_cast %251 : vector<1x16x64xf32> to vector<16x64xf32>
    %253 = vector.shape_cast %250 : vector<16x64xf32> to vector<1x16x64xf32>
    tpu.vector_store %arg14[%c0_189, %c0_190, %c0_191], %253 {strides = array<i32>} : memref<1x256x64xf32, #tpu.memory_space<vmem>>, vector<1x16x64xf32>,
    %254 = vector.extract_strided_slice %249 {offsets = [18, 0], sizes = [16, 64], strides = [1, 1]} : vector<288x64xf32> to vector<16x64xf32>
    %c0_192 = arith.constant 0 : index
    %c16_193 = arith.constant 16 : index
    %c0_194 = arith.constant 0 : index
    %255 = vector.load %arg14[%c0_192, %c16_193, %c0_194] : memref<1x256x64xf32, #tpu.memory_space<vmem>>, vector<1x16x64xf32>
    %256 = vector.shape_cast %255 : vector<1x16x64xf32> to vector<16x64xf32>
    %257 = vector.shape_cast %254 : vector<16x64xf32> to vector<1x16x64xf32>
    tpu.vector_store %arg14[%c0_192, %c16_193, %c0_194], %257 {strides = array<i32>} : memref<1x256x64xf32, #tpu.memory_space<vmem>>, vector<1x16x64xf32>,
    %258 = vector.extract_strided_slice %249 {offsets = [36, 0], sizes = [16, 64], strides = [1, 1]} : vector<288x64xf32> to vector<16x64xf32>
    %c0_195 = arith.constant 0 : index
    %c32_196 = arith.constant 32 : index
    %c0_197 = arith.constant 0 : index
    %259 = vector.load %arg14[%c0_195, %c32_196, %c0_197] : memref<1x256x64xf32, #tpu.memory_space<vmem>>, vector<1x16x64xf32>
    %260 = vector.shape_cast %259 : vector<1x16x64xf32> to vector<16x64xf32>
    %261 = vector.shape_cast %258 : vector<16x64xf32> to vector<1x16x64xf32>
    tpu.vector_store %arg14[%c0_195, %c32_196, %c0_197], %261 {strides = array<i32>} : memref<1x256x64xf32, #tpu.memory_space<vmem>>, vector<1x16x64xf32>,
    %262 = vector.extract_strided_slice %249 {offsets = [54, 0], sizes = [16, 64], strides = [1, 1]} : vector<288x64xf32> to vector<16x64xf32>
    %c0_198 = arith.constant 0 : index
    %c48_199 = arith.constant 48 : index
    %c0_200 = arith.constant 0 : index
    %263 = vector.load %arg14[%c0_198, %c48_199, %c0_200] : memref<1x256x64xf32, #tpu.memory_space<vmem>>, vector<1x16x64xf32>
    %264 = vector.shape_cast %263 : vector<1x16x64xf32> to vector<16x64xf32>
    %265 = vector.shape_cast %262 : vector<16x64xf32> to vector<1x16x64xf32>
    tpu.vector_store %arg14[%c0_198, %c48_199, %c0_200], %265 {strides = array<i32>} : memref<1x256x64xf32, #tpu.memory_space<vmem>>, vector<1x16x64xf32>,
    %266 = vector.extract_strided_slice %249 {offsets = [72, 0], sizes = [16, 64], strides = [1, 1]} : vector<288x64xf32> to vector<16x64xf32>
    %c0_201 = arith.constant 0 : index
    %c64_202 = arith.constant 64 : index
    %c0_203 = arith.constant 0 : index
    %267 = vector.load %arg14[%c0_201, %c64_202, %c0_203] : memref<1x256x64xf32, #tpu.memory_space<vmem>>, vector<1x16x64xf32>
    %268 = vector.shape_cast %267 : vector<1x16x64xf32> to vector<16x64xf32>
    %269 = vector.shape_cast %266 : vector<16x64xf32> to vector<1x16x64xf32>
    tpu.vector_store %arg14[%c0_201, %c64_202, %c0_203], %269 {strides = array<i32>} : memref<1x256x64xf32, #tpu.memory_space<vmem>>, vector<1x16x64xf32>,
    %270 = vector.extract_strided_slice %249 {offsets = [90, 0], sizes = [16, 64], strides = [1, 1]} : vector<288x64xf32> to vector<16x64xf32>
    %c0_204 = arith.constant 0 : index
    %c80_205 = arith.constant 80 : index
    %c0_206 = arith.constant 0 : index
    %271 = vector.load %arg14[%c0_204, %c80_205, %c0_206] : memref<1x256x64xf32, #tpu.memory_space<vmem>>, vector<1x16x64xf32>
    %272 = vector.shape_cast %271 : vector<1x16x64xf32> to vector<16x64xf32>
    %273 = vector.shape_cast %270 : vector<16x64xf32> to vector<1x16x64xf32>
    tpu.vector_store %arg14[%c0_204, %c80_205, %c0_206], %273 {strides = array<i32>} : memref<1x256x64xf32, #tpu.memory_space<vmem>>, vector<1x16x64xf32>,
    %274 = vector.extract_strided_slice %249 {offsets = [108, 0], sizes = [16, 64], strides = [1, 1]} : vector<288x64xf32> to vector<16x64xf32>
    %c0_207 = arith.constant 0 : index
    %c96_208 = arith.constant 96 : index
    %c0_209 = arith.constant 0 : index
    %275 = vector.load %arg14[%c0_207, %c96_208, %c0_209] : memref<1x256x64xf32, #tpu.memory_space<vmem>>, vector<1x16x64xf32>
    %276 = vector.shape_cast %275 : vector<1x16x64xf32> to vector<16x64xf32>
    %277 = vector.shape_cast %274 : vector<16x64xf32> to vector<1x16x64xf32>
    tpu.vector_store %arg14[%c0_207, %c96_208, %c0_209], %277 {strides = array<i32>} : memref<1x256x64xf32, #tpu.memory_space<vmem>>, vector<1x16x64xf32>,
    %278 = vector.extract_strided_slice %249 {offsets = [126, 0], sizes = [16, 64], strides = [1, 1]} : vector<288x64xf32> to vector<16x64xf32>
    %c0_210 = arith.constant 0 : index
    %c112_211 = arith.constant 112 : index
    %c0_212 = arith.constant 0 : index
    %279 = vector.load %arg14[%c0_210, %c112_211, %c0_212] : memref<1x256x64xf32, #tpu.memory_space<vmem>>, vector<1x16x64xf32>
    %280 = vector.shape_cast %279 : vector<1x16x64xf32> to vector<16x64xf32>
    %281 = vector.shape_cast %278 : vector<16x64xf32> to vector<1x16x64xf32>
    tpu.vector_store %arg14[%c0_210, %c112_211, %c0_212], %281 {strides = array<i32>} : memref<1x256x64xf32, #tpu.memory_space<vmem>>, vector<1x16x64xf32>,
    %282 = vector.extract_strided_slice %249 {offsets = [144, 0], sizes = [16, 64], strides = [1, 1]} : vector<288x64xf32> to vector<16x64xf32>
    %c0_213 = arith.constant 0 : index
    %c128_214 = arith.constant 128 : index
    %c0_215 = arith.constant 0 : index
    %283 = vector.load %arg14[%c0_213, %c128_214, %c0_215] : memref<1x256x64xf32, #tpu.memory_space<vmem>>, vector<1x16x64xf32>
    %284 = vector.shape_cast %283 : vector<1x16x64xf32> to vector<16x64xf32>
    %285 = vector.shape_cast %282 : vector<16x64xf32> to vector<1x16x64xf32>
    tpu.vector_store %arg14[%c0_213, %c128_214, %c0_215], %285 {strides = array<i32>} : memref<1x256x64xf32, #tpu.memory_space<vmem>>, vector<1x16x64xf32>,
    %286 = vector.extract_strided_slice %249 {offsets = [162, 0], sizes = [16, 64], strides = [1, 1]} : vector<288x64xf32> to vector<16x64xf32>
    %c0_216 = arith.constant 0 : index
    %c144_217 = arith.constant 144 : index
    %c0_218 = arith.constant 0 : index
    %287 = vector.load %arg14[%c0_216, %c144_217, %c0_218] : memref<1x256x64xf32, #tpu.memory_space<vmem>>, vector<1x16x64xf32>
    %288 = vector.shape_cast %287 : vector<1x16x64xf32> to vector<16x64xf32>
    %289 = vector.shape_cast %286 : vector<16x64xf32> to vector<1x16x64xf32>
    tpu.vector_store %arg14[%c0_216, %c144_217, %c0_218], %289 {strides = array<i32>} : memref<1x256x64xf32, #tpu.memory_space<vmem>>, vector<1x16x64xf32>,
    %290 = vector.extract_strided_slice %249 {offsets = [180, 0], sizes = [16, 64], strides = [1, 1]} : vector<288x64xf32> to vector<16x64xf32>
    %c0_219 = arith.constant 0 : index
    %c160_220 = arith.constant 160 : index
    %c0_221 = arith.constant 0 : index
    %291 = vector.load %arg14[%c0_219, %c160_220, %c0_221] : memref<1x256x64xf32, #tpu.memory_space<vmem>>, vector<1x16x64xf32>
    %292 = vector.shape_cast %291 : vector<1x16x64xf32> to vector<16x64xf32>
    %293 = vector.shape_cast %290 : vector<16x64xf32> to vector<1x16x64xf32>
    tpu.vector_store %arg14[%c0_219, %c160_220, %c0_221], %293 {strides = array<i32>} : memref<1x256x64xf32, #tpu.memory_space<vmem>>, vector<1x16x64xf32>,
    %294 = vector.extract_strided_slice %249 {offsets = [198, 0], sizes = [16, 64], strides = [1, 1]} : vector<288x64xf32> to vector<16x64xf32>
    %c0_222 = arith.constant 0 : index
    %c176_223 = arith.constant 176 : index
    %c0_224 = arith.constant 0 : index
    %295 = vector.load %arg14[%c0_222, %c176_223, %c0_224] : memref<1x256x64xf32, #tpu.memory_space<vmem>>, vector<1x16x64xf32>
    %296 = vector.shape_cast %295 : vector<1x16x64xf32> to vector<16x64xf32>
    %297 = vector.shape_cast %294 : vector<16x64xf32> to vector<1x16x64xf32>
    tpu.vector_store %arg14[%c0_222, %c176_223, %c0_224], %297 {strides = array<i32>} : memref<1x256x64xf32, #tpu.memory_space<vmem>>, vector<1x16x64xf32>,
    %298 = vector.extract_strided_slice %249 {offsets = [216, 0], sizes = [16, 64], strides = [1, 1]} : vector<288x64xf32> to vector<16x64xf32>
    %c0_225 = arith.constant 0 : index
    %c192_226 = arith.constant 192 : index
    %c0_227 = arith.constant 0 : index
    %299 = vector.load %arg14[%c0_225, %c192_226, %c0_227] : memref<1x256x64xf32, #tpu.memory_space<vmem>>, vector<1x16x64xf32>
    %300 = vector.shape_cast %299 : vector<1x16x64xf32> to vector<16x64xf32>
    %301 = vector.shape_cast %298 : vector<16x64xf32> to vector<1x16x64xf32>
    tpu.vector_store %arg14[%c0_225, %c192_226, %c0_227], %301 {strides = array<i32>} : memref<1x256x64xf32, #tpu.memory_space<vmem>>, vector<1x16x64xf32>,
    %302 = vector.extract_strided_slice %249 {offsets = [234, 0], sizes = [16, 64], strides = [1, 1]} : vector<288x64xf32> to vector<16x64xf32>
    %c0_228 = arith.constant 0 : index
    %c208_229 = arith.constant 208 : index
    %c0_230 = arith.constant 0 : index
    %303 = vector.load %arg14[%c0_228, %c208_229, %c0_230] : memref<1x256x64xf32, #tpu.memory_space<vmem>>, vector<1x16x64xf32>
    %304 = vector.shape_cast %303 : vector<1x16x64xf32> to vector<16x64xf32>
    %305 = vector.shape_cast %302 : vector<16x64xf32> to vector<1x16x64xf32>
    tpu.vector_store %arg14[%c0_228, %c208_229, %c0_230], %305 {strides = array<i32>} : memref<1x256x64xf32, #tpu.memory_space<vmem>>, vector<1x16x64xf32>,
    %306 = vector.extract_strided_slice %249 {offsets = [252, 0], sizes = [16, 64], strides = [1, 1]} : vector<288x64xf32> to vector<16x64xf32>
    %c0_231 = arith.constant 0 : index
    %c224_232 = arith.constant 224 : index
    %c0_233 = arith.constant 0 : index
    %307 = vector.load %arg14[%c0_231, %c224_232, %c0_233] : memref<1x256x64xf32, #tpu.memory_space<vmem>>, vector<1x16x64xf32>
    %308 = vector.shape_cast %307 : vector<1x16x64xf32> to vector<16x64xf32>
    %309 = vector.shape_cast %306 : vector<16x64xf32> to vector<1x16x64xf32>
    tpu.vector_store %arg14[%c0_231, %c224_232, %c0_233], %309 {strides = array<i32>} : memref<1x256x64xf32, #tpu.memory_space<vmem>>, vector<1x16x64xf32>,
    %310 = vector.extract_strided_slice %249 {offsets = [270, 0], sizes = [16, 64], strides = [1, 1]} : vector<288x64xf32> to vector<16x64xf32>
    %c0_234 = arith.constant 0 : index
    %c240_235 = arith.constant 240 : index
    %c0_236 = arith.constant 0 : index
    %311 = vector.load %arg14[%c0_234, %c240_235, %c0_236] : memref<1x256x64xf32, #tpu.memory_space<vmem>>, vector<1x16x64xf32>
    %312 = vector.shape_cast %311 : vector<1x16x64xf32> to vector<16x64xf32>
    %313 = vector.shape_cast %310 : vector<16x64xf32> to vector<1x16x64xf32>
    tpu.vector_store %arg14[%c0_234, %c240_235, %c0_236], %313 {strides = array<i32>} : memref<1x256x64xf32, #tpu.memory_space<vmem>>, vector<1x16x64xf32>,
    return
  }
  func.func @transform_0(%arg0: i32) -> (i32, i32, i32) {
    %c0_i32 = arith.constant 0 : i32
    %c0_i32_0 = arith.constant 0 : i32
    %c0_i32_1 = arith.constant 0 : i32
    return %arg0, %c0_i32, %c0_i32_0 : i32, i32, i32
  }
  func.func @transform_1(%arg0: i32) -> (i32, i32, i32) {
    %c0_i32 = arith.constant 0 : i32
    %c0_i32_0 = arith.constant 0 : i32
    %c0_i32_1 = arith.constant 0 : i32
    %c0_i32_2 = arith.constant 0 : i32
    return %c0_i32, %c0_i32_0, %c0_i32_1 : i32, i32, i32
  }
  func.func @transform_2(%arg0: i32) -> (i32, i32) {
    %c0_i32 = arith.constant 0 : i32
    %c0_i32_0 = arith.constant 0 : i32
    %c0_i32_1 = arith.constant 0 : i32
    return %c0_i32, %c0_i32_0 : i32, i32
  }
  func.func @transform_3(%arg0: i32) -> (i32, i32, i32) {
    %c0_i32 = arith.constant 0 : i32
    %c0_i32_0 = arith.constant 0 : i32
    %c0_i32_1 = arith.constant 0 : i32
    %c0_i32_2 = arith.constant 0 : i32
    return %c0_i32, %c0_i32_0, %c0_i32_1 : i32, i32, i32
  }
  func.func @transform_4(%arg0: i32) -> (i32, i32) {
    %c0_i32 = arith.constant 0 : i32
    %c0_i32_0 = arith.constant 0 : i32
    %c0_i32_1 = arith.constant 0 : i32
    return %c0_i32, %c0_i32_0 : i32, i32
  }
  func.func @transform_5(%arg0: i32) -> (i32, i32) {
    %c0_i32 = arith.constant 0 : i32
    %c0_i32_0 = arith.constant 0 : i32
    %c0_i32_1 = arith.constant 0 : i32
    return %c0_i32, %c0_i32_0 : i32, i32
  }
  func.func @transform_6(%arg0: i32) -> (i32, i32) {
    %c0_i32 = arith.constant 0 : i32
    %c0_i32_0 = arith.constant 0 : i32
    %c0_i32_1 = arith.constant 0 : i32
    return %c0_i32, %c0_i32_0 : i32, i32
  }
  func.func @transform_7(%arg0: i32) -> (i32, i32) {
    %c0_i32 = arith.constant 0 : i32
    %c0_i32_0 = arith.constant 0 : i32
    %c0_i32_1 = arith.constant 0 : i32
    return %c0_i32, %c0_i32_0 : i32, i32
  }
  func.func @transform_8(%arg0: i32) -> (i32, i32) {
    %c0_i32 = arith.constant 0 : i32
    %c0_i32_0 = arith.constant 0 : i32
    %c0_i32_1 = arith.constant 0 : i32
    return %c0_i32, %c0_i32_0 : i32, i32
  }
  func.func @transform_9(%arg0: i32) -> (i32, i32) {
    %c0_i32 = arith.constant 0 : i32
    %c0_i32_0 = arith.constant 0 : i32
    %c0_i32_1 = arith.constant 0 : i32
    return %c0_i32, %c0_i32_0 : i32, i32
  }
  func.func @transform_10(%arg0: i32) -> (i32, i32) {
    %c0_i32 = arith.constant 0 : i32
    %c0_i32_0 = arith.constant 0 : i32
    %c0_i32_1 = arith.constant 0 : i32
    return %c0_i32, %c0_i32_0 : i32, i32
  }
  func.func @transform_11(%arg0: i32) -> (i32, i32) {
    %c0_i32 = arith.constant 0 : i32
    %c0_i32_0 = arith.constant 0 : i32
    %c0_i32_1 = arith.constant 0 : i32
    return %c0_i32, %c0_i32_0 : i32, i32
  }
  func.func @transform_12(%arg0: i32) -> (i32, i32) {
    %c0_i32 = arith.constant 0 : i32
    %c0_i32_0 = arith.constant 0 : i32
    %c0_i32_1 = arith.constant 0 : i32
    return %c0_i32, %c0_i32_0 : i32, i32
  }
  func.func @transform_13(%arg0: i32) -> (i32, i32, i32) {
    %c0_i32 = arith.constant 0 : i32
    %c0_i32_0 = arith.constant 0 : i32
    %c0_i32_1 = arith.constant 0 : i32
    return %arg0, %c0_i32, %c0_i32_0 : i32, i32, i32
  }
}

</mosaic_0001>

<bundles_post_ra>
// kernel: block_forward.1
= control target key start
LH: loop header
LB: loop body
LE: loop exit
PB: predicated region body
PF: predicated region fallthrough
CT: control target
= control target key end

     0   :  { %s16199_s0 = inlined_call_operand.hbm [shape: f32[2,256,64], index: 0, kind: input, shape index: {}]   ;;  %s16200_s1 = inlined_call_operand.hbm [shape: bf16[9,64,64], index: 1, kind: input, shape index: {}]   ;;  %s16201_s2 = inlined_call_operand.vmem [shape: f32[1,64], index: 2, kind: input, shape index: {}]   ;;  %s16202_s3 = inlined_call_operand.hbm [shape: bf16[9,64,64], index: 3, kind: input, shape index: {}]   ;;  %s16203_s4 = inlined_call_operand.vmem [shape: f32[1,64], index: 4, kind: input, shape index: {}]   ;;  %s16204_s5 = inlined_call_operand.vmem [shape: f32[8,64], index: 5, kind: input, shape index: {}]   ;;  %s16205_s6 = inlined_call_operand.vmem [shape: f32[8,1], index: 6, kind: input, shape index: {}]   ;;  %s16206_s7 = inlined_call_operand.vmem [shape: f32[8,64], index: 7, kind: input, shape index: {}]   ;;  %s16207_s8 = inlined_call_operand.vmem [shape: f32[1,64], index: 8, kind: input, shape index: {}]   ;;  %s16208_s9 = inlined_call_operand.vmem [shape: f32[64,8], index: 9, kind: input, shape index: {}]   ;;  %s16209_s10 = inlined_call_operand.vmem [shape: f32[1,8], index: 10, kind: input, shape index: {}]   ;;  %s16210_s11 = inlined_call_operand.vmem [shape: f32[1,8], index: 11, kind: input, shape index: {}]   ;;  %s16211_s12 = inlined_call_operand.<no memory space> [shape: f32[1,1], index: 12, kind: input, shape index: {}]   ;;  %s16212_s13 = inlined_call_operand.hbm [shape: f32[2,256,64], index: 13, kind: output, shape index: {}]  }
   0x1   :  { %16396 = sst [smem:[#allocation113_spill]] %s16200_s1  ;;  %v18_v0 = vstv %s16211_s12 }
   0x2   :  { %16397 = sst [smem:[#allocation114_spill]] %s16202_s3  ;;  %19 = vst [vmem:[#allocation4] sm:$0x1] %v18_v0 }
   0x3   :  { %20 = vsyncpa [#allocation6], 0 }
   0x4   :  { %22 = vsyncpa [#allocation6 + $0x1], 0 }
   0x5   :  { %23 = vsyncpa [#allocation9], 0 }
   0x6   :  { %24 = vsyncpa [#allocation7], 0 }
   0x7   :  { %26 = vsyncpa [#allocation7 + $0x1], 0  ;;  %s11721_s27 = smov 0   ;;  %s11723_s28 = smov 0  }
   0x8   :  { %s11725_s29 = smov 0   ;;  %s11727_s30 = smov 0  }
   0x9 LB: > { %16398 = sst [smem:[#allocation15_spill]] %s11630_s29  ;;  %s11742_s12 = sadd.s32 4294967295, %s11634_s30   ;;  %s11634_s30 = sphi %s11727_s30, %s17295_s30   ;;  %s11630_s29 = sphi %s11725_s29, %s17297_s29   ;;  %s11626_s28 = sphi %s11723_s28, %s17299_s28   ;;  %s11622_s27 = sphi %s11721_s27, %s17298_s27  }
   0xa   : > { %16399 = sst [smem:[#allocation16_spill]] %s11634_s30  ;;  %s9266_s14 = sadd.s32 4294967294, %s11634_s30  }
   0xb   : > { %p52_p0 = scmp.ne.s32.totalorder %s11626_s28, %s11622_s27  ;;  %p16213_p1 = scmp.eq.s32.totalorder %s11742_s12, 0 }
   0xc   : > { %p334_p3 = scmp.eq.s32.totalorder %s9266_s14, 1  ;;  %p9267_p5 = scmp.ge.s32.totalorder %s11634_s30, 1 }
   0xd   : > { %p11751_p4 = por %p16213_p1, %p52_p0  ;;  %p341_p7 = scmp.lt.s32.totalorder %s11634_s30, 3 }
   0xe   : > { %p11756_p6 = por %p334_p3, %p52_p0  ;;  %s11636_s18 = smov [#allocation8]  }
   0xf   : > { %s16400_s15 = scalar_select %p11751_p4, 1, 0 }
  0x10   : > { %s16401_s16 = scalar_select %p11756_p6, 1, 0 }
  0x11   : > { %p11762_p9 = pnand %p9267_p5, %p341_p7  ;;  %s353_s19 = sshll.u32 %s11636_s18, 4  ;;  %s354_s19 = int_to_ptr.vmem [resolvable:$true] %s353_s19 }
  0x12   : > { %s11637_s21 = smov [#allocation10]   ;;  %s11497_s23 = scalar_lea.vmem %s354_s19, 4608 }
  0x13   : > { %s16402_s17 = scalar_select %p11762_p9, 1, 0 }
  0x14   : > { %p11163_p10 = pneg %p11762_p9  ;;  %s369_s22 = sshll.u32 %s11637_s21, 4  ;;  %s370_s22 = int_to_ptr.vmem [resolvable:$true] %s369_s22 }
  0x15   : > { %p11498_p0 = scmp.ne.s32.totalorder %s354_s19, %s11497_s23  ;;  %p11505_p7 = scmp.lt.s32.totalorder %s354_s19, %s354_s19 }
  0x16   : > { %p11771_p12 = pnand %p11163_p10, %p16213_p1  ;;  %p11506_p11 = scmp.lt.s32.totalorder %s11497_s23, %s11497_s23 }
  0x18   : > { %p11488_p13 = pneg %p11771_p12  ;;  %p11507_p8 = por %p11506_p11, %p11505_p7 }
  0x1a   : > { %p11500_p3 = pnand %p11498_p0, %p11488_p13 }
  0x1c   : > { %p11501_p5 = pneg %p11500_p3 }
  0x1e   : > { %p11508_p10 = pnand %p11507_p8, %p11501_p5 }
  0x20   : > { %11511 = shalt.err (!%p11508_p10)
}
  0x21   : > { %s11638_s24 = smov 64   ;;  %s11639_s25 = smov 4  }
  0x22   : > { %s16404_s1 = sld [smem:[#allocation113_spill]]  ;;  %s11523_s18 = scalar_lea.vmem %s370_s22, 4608 }
  0x23   : > { %p11524_p1 = scmp.ne.s32.totalorder %s370_s22, %s11523_s18  ;;  %p11531_p2 = scmp.lt.s32.totalorder %s370_s22, %s370_s22 }
  0x24   : > { %p11532_p6 = scmp.lt.s32.totalorder %s11523_s18, %s11523_s18 }
  0x25   : > { %p11526_p0 = pnand %p11524_p1, %p11488_p13 }
  0x26   : > { %p11533_p11 = por %p11532_p6, %p11531_p2 }
  0x27   : > { %p11527_p3 = pneg %p11526_p0 }
  0x28   : > { %11166 = dma.hbm_to_vmem [thread:$0]  (!%p11771_p12), %s16404_s1, 4608, %s354_s19, [#allocation9], %s11638_s24, %s11638_s24, %s11639_s25  }
  0x29   : > { %p11534_p8 = pnand %p11533_p11, %p11527_p3 }
  0x2b   : > { %11537 = shalt.err (!%p11534_p8)
}
  0x2c   : > { %s16405_s3 = sld [smem:[#allocation114_spill]]  ;;  %s11794_s19 = sadd.s32 1, %s11634_s30  }
  0x2d   : > { %16406 = sst [smem:[#allocation17_spill]] %s11794_s19  ;;  %s39_s26 = sadd.s32 1, %s11630_s29 }
  0x2e   : > { %s36_s20 = ssub.s32 %s11634_s30, %s11794_s19  ;;  %p46_p1 = scmp.ne.s32.totalorder %s11630_s29, %s11626_s28 }
  0x2f   : > { %p37_p2 = scmp.eq.s32.totalorder %s36_s20, 0  ;;  %p47_p6 = scmp.eq.s32.totalorder %s11634_s30, 0 }
  0x30   : > { %p16407_p13 = scmp.eq.s32.totalorder %s11742_s12, 1  ;;  %p11180_p7 = scmp.lt.s32.totalorder %s11634_s30, 2 }
  0x31   : > { %s11810_s18 = scalar_select %p37_p2, %s11630_s29, %s39_s26  }
  0x32   : > { %11169 = dma.hbm_to_vmem [thread:$0]  (!%p11771_p12), %s16405_s3, 4608, %s370_s22, [#allocation9], %s11638_s24, %s11638_s24, %s11639_s25  }
  0x33   : > { %p11804_p5 = por %p16407_p13, %p46_p1  ;;  %16409 = sst [smem:[#allocation18_spill]] %s11810_s18 }
  0x34   : > { %p48_p10 = por %p47_p6, %p46_p1  ;;  %s410_s21 = sand.u32 1, %s11630_s29  }
  0x35   : > { %s16408_s14 = scalar_select %p11804_p5, 1, 0 }
  0x36   : > { %s9271_s23 = sshll.u32 %s410_s21, 8  ;;  %s9759_s22 = sshll.u32 %s11634_s30, 12 }
  0x37   : > { %s11817_s1 = scalar_lea.hbm %s16199_s0, %s9759_s22  ;;  %s414_s20 = scalar_lea.vmem [#allocation5], %s9271_s23 }
  0x38   : > { %s421_s3 = sshll.u32 %s414_s20, 4  ;;  %p11821_p12 = pnand %p11180_p7, %p48_p10  ;;  %s11819_s3 = int_to_ptr.vmem [resolvable:$true] %s421_s3 }
  0x39   : > { %s11825_s26 = scalar_lea.sflag [#allocation6], %s410_s21  ;;  %s11538_s18 = scalar_lea.hbm %s11817_s1, 4096 }
  0x3a   : > { %p11539_p0 = scmp.ne.s32.totalorder %s11817_s1, %s11538_s18  ;;  %p11540_p3 = pneg %p11821_p12 }
  0x3b   : > { %s11543_s23 = scalar_lea.hbm %s16199_s0, 8192  ;;  %p11544_p1 = scmp.lt.s32.totalorder %s11817_s1, %s16199_s0 }
  0x3c   : > { %p11541_p11 = pnand %p11540_p3, %p11539_p0  ;;  %p11545_p2 = scmp.lt.s32.totalorder %s11543_s23, %s11538_s18 }
  0x3e   : > { %p11542_p8 = pneg %p11541_p11  ;;  %p11546_p6 = por %p11545_p2, %p11544_p1 }
  0x40   : > { %p11547_p13 = pnand %p11546_p6, %p11542_p8 }
  0x42   : > { %11550 = shalt.err (!%p11547_p13)
}
  0x43   : > { %s11551_s21 = scalar_lea.vmem %s11819_s3, 4096  ;;  %s11640_s29 = smov [#allocation5]  }
  0x44   : > { %p11552_p7 = scmp.ne.s32.totalorder %s11819_s3, %s11551_s21  ;;  %s11556_s30 = sshll.u32 %s11640_s29, 4  ;;  %s11557_s30 = int_to_ptr.vmem [resolvable:$false] %s11556_s30 }
  0x45   : > { %s11558_s22 = scalar_lea.vmem %s11557_s30, 8192  ;;  %p11559_p11 = scmp.lt.s32.totalorder %s11819_s3, %s11557_s30 }
  0x46   : > { %p11554_p10 = pnand %p11552_p7, %p11540_p3  ;;  %p11560_p5 = scmp.lt.s32.totalorder %s11558_s22, %s11551_s21 }
  0x48   : > { %p11555_p0 = pneg %p11554_p10  ;;  %p11561_p4 = por %p11560_p5, %p11559_p11 }
  0x4a   : > { %p11562_p9 = pnand %p11561_p4, %p11555_p0 }
  0x4c   : > { %11565 = shalt.err (!%p11562_p9)
}
  0x4d   : > { %s11641_s18 = smov 128   ;;  %s11642_s24 = smov 8  }
  0x4e   : > { %11173 = dma.hbm_to_vmem [thread:$0]  (!%p11821_p12), %s11817_s1, 4096, %s11819_s3, %s11825_s26, %s11641_s18, %s11641_s18, %s11642_s24  }
  0x4f   : > { %p16411_p3 = scmp.ne.s32.totalorder %s16402_s17, 0 }
  0x51   : > { %433 = sbr.rel (%p16411_p3) target bundleno = 2228 (0x8b4), region = 72 }
  0x56   : > { %s11849_s29 = sand.u32 1, %s11626_s28   ;;  %p16412_p4 = scmp.ne.s32.totalorder %s16400_s15, 0 }
  0x57   : > { %s9275_s30 = sshll.u32 %s11849_s29, 8  ;;  %s436_s23 = scalar_lea.sflag [#allocation6], %s11849_s29 }
  0x58   : > { %s11853_s25 = scalar_lea.vmem [#allocation5], %s9275_s30 }
  0x59   : > { %11609 = dma.done.wait (%p16412_p4), %s436_s23, 4096  }
  0x5a   : > { %11611 = vsyncadd (%p16412_p4), %s436_s23, 4294963200  ;;  %p16413_p9 = scmp.eq.s32.totalorder %s11742_s12, 0 }
  0x5c   : > { %11613 = dma.done.wait (%p16413_p9), [#allocation9], 9216   ;;  %p16414_p5 = pmov %p16413_p9 }
  0x5d   : > { %s11863_s1 = scalar_lea.vmem [#allocation11], %s9275_s30  ;;  %p16415_p12 = scmp.ne.s32.totalorder %s11742_s12, 0 }
  0x5e   : > { %11615 = vsyncadd (%p16414_p5), [#allocation9], 4294958080 }
  0x5f   : > { %494 = sbr.rel (%p16415_p12) target bundleno = 142 (0x8e), region = 88 }
  0x64   : > { %vm495_vm0 = vcmask 523264   ;;  %v11643_v1 = vmov 0.0  }
  0x65   : > { %496 = vst.msk [vmem:[#allocation2] sm:$0xff] %vm495_vm0, %v11643_v1  ;;  %497 = vst.msk [vmem:[#allocation2 + $0x8] sm:$0xff] %vm495_vm0, %v11643_v1 }
  0x66   : > { %498 = vst.msk [vmem:[#allocation2 + $0x10] sm:$0xff] %vm495_vm0, %v11643_v1  ;;  %499 = vst.msk [vmem:[#allocation2 + $0x18] sm:$0xff] %vm495_vm0, %v11643_v1 }
  0x67   : > { %500 = vst.msk [vmem:[#allocation2 + $0x20] sm:$0xff] %vm495_vm0, %v11643_v1  ;;  %501 = vst.msk [vmem:[#allocation2 + $0x28] sm:$0xff] %vm495_vm0, %v11643_v1 }
  0x68   : > { %502 = vst.msk [vmem:[#allocation2 + $0x30] sm:$0xff] %vm495_vm0, %v11643_v1  ;;  %503 = vst.msk [vmem:[#allocation2 + $0x38] sm:$0xff] %vm495_vm0, %v11643_v1 }
  0x69   : > { %504 = vst.msk [vmem:[#allocation2 + $0x40] sm:$0xff] %vm495_vm0, %v11643_v1  ;;  %505 = vst.msk [vmem:[#allocation2 + $0x48] sm:$0xff] %vm495_vm0, %v11643_v1 }
  0x6a   : > { %506 = vst.msk [vmem:[#allocation2 + $0x50] sm:$0xff] %vm495_vm0, %v11643_v1  ;;  %507 = vst.msk [vmem:[#allocation2 + $0x58] sm:$0xff] %vm495_vm0, %v11643_v1 }
  0x6b   : > { %508 = vst.msk [vmem:[#allocation2 + $0x60] sm:$0xff] %vm495_vm0, %v11643_v1  ;;  %509 = vst.msk [vmem:[#allocation2 + $0x68] sm:$0xff] %vm495_vm0, %v11643_v1 }
  0x6c   : > { %510 = vst.msk [vmem:[#allocation2 + $0x70] sm:$0xff] %vm495_vm0, %v11643_v1  ;;  %511 = vst.msk [vmem:[#allocation2 + $0x78] sm:$0xff] %vm495_vm0, %v11643_v1 }
  0x6d   : > { %512 = vst.msk [vmem:[#allocation2 + $0x80] sm:$0xff] %vm495_vm0, %v11643_v1  ;;  %513 = vst.msk [vmem:[#allocation2 + $0x88] sm:$0xff] %vm495_vm0, %v11643_v1 }
  0x6e   : > { %514 = vst.msk [vmem:[#allocation2 + $0x90] sm:$0xff] %vm495_vm0, %v11643_v1  ;;  %515 = vst.msk [vmem:[#allocation2 + $0x98] sm:$0xff] %vm495_vm0, %v11643_v1 }
  0x6f   : > { %516 = vst.msk [vmem:[#allocation2 + $0xa0] sm:$0xff] %vm495_vm0, %v11643_v1  ;;  %517 = vst.msk [vmem:[#allocation2 + $0xa8] sm:$0xff] %vm495_vm0, %v11643_v1 }
  0x70   : > { %518 = vst.msk [vmem:[#allocation2 + $0xb0] sm:$0xff] %vm495_vm0, %v11643_v1  ;;  %519 = vst.msk [vmem:[#allocation2 + $0xb8] sm:$0xff] %vm495_vm0, %v11643_v1 }
  0x71   : > { %520 = vst.msk [vmem:[#allocation2 + $0xc0] sm:$0xff] %vm495_vm0, %v11643_v1  ;;  %521 = vst.msk [vmem:[#allocation2 + $0xc8] sm:$0xff] %vm495_vm0, %v11643_v1 }
  0x72   : > { %522 = vst.msk [vmem:[#allocation2 + $0xd0] sm:$0xff] %vm495_vm0, %v11643_v1  ;;  %523 = vst.msk [vmem:[#allocation2 + $0xd8] sm:$0xff] %vm495_vm0, %v11643_v1 }
  0x73   : > { %524 = vst.msk [vmem:[#allocation2 + $0xe0] sm:$0xff] %vm495_vm0, %v11643_v1  ;;  %525 = vst.msk [vmem:[#allocation2 + $0xe8] sm:$0xff] %vm495_vm0, %v11643_v1 }
  0x74   : > { %526 = vst.msk [vmem:[#allocation2 + $0xf0] sm:$0xff] %vm495_vm0, %v11643_v1  ;;  %527 = vst.msk [vmem:[#allocation2 + $0xf8] sm:$0xff] %vm495_vm0, %v11643_v1 }
  0x75   : > { %528 = vst.msk [vmem:[#allocation2 + $0x100] sm:$0xff] %vm495_vm0, %v11643_v1  ;;  %529 = vst.msk [vmem:[#allocation2 + $0x108] sm:$0xff] %vm495_vm0, %v11643_v1 }
  0x76   : > { %530 = vst.msk [vmem:[#allocation2 + $0x110] sm:$0xff] %vm495_vm0, %v11643_v1  ;;  %531 = vst.msk [vmem:[#allocation2 + $0x118] sm:$0xff] %vm495_vm0, %v11643_v1 }
  0x77   : > { %532 = vst.msk [vmem:[#allocation2 + $0x120] sm:$0xff] %vm495_vm0, %v11643_v1  ;;  %533 = vst.msk [vmem:[#allocation2 + $0x128] sm:$0xff] %vm495_vm0, %v11643_v1 }
  0x78   : > { %534 = vst.msk [vmem:[#allocation2 + $0x130] sm:$0xff] %vm495_vm0, %v11643_v1  ;;  %535 = vst.msk [vmem:[#allocation2 + $0x138] sm:$0xff] %vm495_vm0, %v11643_v1 }
  0x79   : > { %536 = vst.msk [vmem:[#allocation2 + $0x140] sm:$0xff] %vm495_vm0, %v11643_v1  ;;  %539 = vst.msk [vmem:[#allocation3] sm:$0xff] %vm495_vm0, %v11643_v1 }
  0x7a   : > { %540 = vst.msk [vmem:[#allocation3 + $0x8] sm:$0xff] %vm495_vm0, %v11643_v1  ;;  %541 = vst.msk [vmem:[#allocation3 + $0x10] sm:$0xff] %vm495_vm0, %v11643_v1 }
  0x7b   : > { %542 = vst.msk [vmem:[#allocation3 + $0x18] sm:$0xff] %vm495_vm0, %v11643_v1  ;;  %543 = vst.msk [vmem:[#allocation3 + $0x20] sm:$0xff] %vm495_vm0, %v11643_v1 }
  0x7c   : > { %544 = vst.msk [vmem:[#allocation3 + $0x28] sm:$0xff] %vm495_vm0, %v11643_v1  ;;  %545 = vst.msk [vmem:[#allocation3 + $0x30] sm:$0xff] %vm495_vm0, %v11643_v1 }
  0x7d   : > { %546 = vst.msk [vmem:[#allocation3 + $0x38] sm:$0xff] %vm495_vm0, %v11643_v1  ;;  %547 = vst.msk [vmem:[#allocation3 + $0x40] sm:$0xff] %vm495_vm0, %v11643_v1 }
  0x7e   : > { %548 = vst.msk [vmem:[#allocation3 + $0x48] sm:$0xff] %vm495_vm0, %v11643_v1  ;;  %549 = vst.msk [vmem:[#allocation3 + $0x50] sm:$0xff] %vm495_vm0, %v11643_v1 }
  0x7f   : > { %550 = vst.msk [vmem:[#allocation3 + $0x58] sm:$0xff] %vm495_vm0, %v11643_v1  ;;  %551 = vst.msk [vmem:[#allocation3 + $0x60] sm:$0xff] %vm495_vm0, %v11643_v1 }
  0x80   : > { %552 = vst.msk [vmem:[#allocation3 + $0x68] sm:$0xff] %vm495_vm0, %v11643_v1  ;;  %553 = vst.msk [vmem:[#allocation3 + $0x70] sm:$0xff] %vm495_vm0, %v11643_v1 }
  0x81   : > { %554 = vst.msk [vmem:[#allocation3 + $0x78] sm:$0xff] %vm495_vm0, %v11643_v1  ;;  %555 = vst.msk [vmem:[#allocation3 + $0x80] sm:$0xff] %vm495_vm0, %v11643_v1 }
  0x82   : > { %556 = vst.msk [vmem:[#allocation3 + $0x88] sm:$0xff] %vm495_vm0, %v11643_v1  ;;  %557 = vst.msk [vmem:[#allocation3 + $0x90] sm:$0xff] %vm495_vm0, %v11643_v1 }
  0x83   : > { %558 = vst.msk [vmem:[#allocation3 + $0x98] sm:$0xff] %vm495_vm0, %v11643_v1  ;;  %559 = vst.msk [vmem:[#allocation3 + $0xa0] sm:$0xff] %vm495_vm0, %v11643_v1 }
  0x84   : > { %560 = vst.msk [vmem:[#allocation3 + $0xa8] sm:$0xff] %vm495_vm0, %v11643_v1  ;;  %561 = vst.msk [vmem:[#allocation3 + $0xb0] sm:$0xff] %vm495_vm0, %v11643_v1 }
  0x85   : > { %562 = vst.msk [vmem:[#allocation3 + $0xb8] sm:$0xff] %vm495_vm0, %v11643_v1  ;;  %563 = vst.msk [vmem:[#allocation3 + $0xc0] sm:$0xff] %vm495_vm0, %v11643_v1 }
  0x86   : > { %564 = vst.msk [vmem:[#allocation3 + $0xc8] sm:$0xff] %vm495_vm0, %v11643_v1  ;;  %565 = vst.msk [vmem:[#allocation3 + $0xd0] sm:$0xff] %vm495_vm0, %v11643_v1 }
  0x87   : > { %566 = vst.msk [vmem:[#allocation3 + $0xd8] sm:$0xff] %vm495_vm0, %v11643_v1  ;;  %567 = vst.msk [vmem:[#allocation3 + $0xe0] sm:$0xff] %vm495_vm0, %v11643_v1 }
  0x88   : > { %568 = vst.msk [vmem:[#allocation3 + $0xe8] sm:$0xff] %vm495_vm0, %v11643_v1  ;;  %569 = vst.msk [vmem:[#allocation3 + $0xf0] sm:$0xff] %vm495_vm0, %v11643_v1 }
  0x89   : > { %570 = vst.msk [vmem:[#allocation3 + $0xf8] sm:$0xff] %vm495_vm0, %v11643_v1  ;;  %571 = vst.msk [vmem:[#allocation3 + $0x100] sm:$0xff] %vm495_vm0, %v11643_v1 }
  0x8a   : > { %572 = vst.msk [vmem:[#allocation3 + $0x108] sm:$0xff] %vm495_vm0, %v11643_v1  ;;  %573 = vst.msk [vmem:[#allocation3 + $0x110] sm:$0xff] %vm495_vm0, %v11643_v1 }
  0x8b   : > { %574 = vst.msk [vmem:[#allocation3 + $0x118] sm:$0xff] %vm495_vm0, %v11643_v1  ;;  %575 = vst.msk [vmem:[#allocation3 + $0x120] sm:$0xff] %vm495_vm0, %v11643_v1 }
  0x8c   : > { %576 = vst.msk [vmem:[#allocation3 + $0x128] sm:$0xff] %vm495_vm0, %v11643_v1  ;;  %577 = vst.msk [vmem:[#allocation3 + $0x130] sm:$0xff] %vm495_vm0, %v11643_v1 }
  0x8d   : > { %578 = vst.msk [vmem:[#allocation3 + $0x138] sm:$0xff] %vm495_vm0, %v11643_v1  ;;  %579 = vst.msk [vmem:[#allocation3 + $0x140] sm:$0xff] %vm495_vm0, %v11643_v1 }
  0x8e PF: > { %v11228_v2 = vld [vmem:[#allocation8 + $0x38] sm:$0xff]   ;;  %v11230_v4 = vld [vmem:[#allocation8 + $0x30] sm:$0xff]   ;;  %v11232_v6 = vld [vmem:[#allocation8 + $0x28] sm:$0xff]   ;;  %vm16237_vm1 = vcmask 523264   ;;  %s9760_s18 = sshll.u32 %s11742_s12, 12  ;;  %s9174_s24 = sshll.u32 %s11863_s1, 4  ;;  %s16154_s24 = int_to_ptr.vmem [resolvable:$true] %s9174_s24 }
  0x8f   : > { %v11229_v3 = vld [vmem:[#allocation8 + $0x18] sm:$0xff]   ;;  %10201 = vmatprep.subr.bf16.mxu0 %v11228_v2  ;;  %v11231_v5 = vld [vmem:[#allocation8 + $0x10] sm:$0xff]   ;;  %v11233_v7 = vld [vmem:[#allocation8 + $0x8] sm:$0xff]   ;;  %s9161_s12 = scalar_lea.sflag [#allocation7], %s11849_s29  ;;  %s11566_s3 = scalar_lea.vmem %s16154_s24, 4096 }
  0x90   : > { %10245 = vmatprep.subr.bf16.mxu1 %v11229_v3  ;;  %10202 = vmatpush3.bf16.msra.mxu0 %v11228_v2  ;;  %v11234_v8 = vld [vmem:[#allocation8 + $0x20] sm:$0xff]   ;;  %v1394_v11 = vld [vmem:[#allocation2 + $0x9] sm:$0xff]  ;;  %v11236_v18 = vld [vmem:[#allocation8 + $0x58] sm:$0xff]   ;;  %p11567_p8 = scmp.ne.s32.totalorder %s16154_s24, %s11566_s3  ;;  %p17291_p1 = scmp.ne.s32.totalorder %s16408_s14, 0 }
  0x91   : > { %10246 = vmatpush3.bf16.msra.mxu1 %v11229_v3  ;;  %10203 = vmatprep.subr.bf16.mxu0 %v11230_v4  ;;  %v11235_v9 = vld [vmem:[#allocation8] sm:$0xff]   ;;  %v582_v16 = vld [vmem:[%s11853_s25 + $0x8] sm:$0xff]  ;;  %v586_v19 = vld [vmem:[%s11853_s25 + $0x10] sm:$0xff]  ;;  %s11645_s15 = smov [#allocation11]  }
  0x92   : > { %10247 = vmatprep.subr.bf16.mxu1 %v11231_v5  ;;  %v1393_v10 = vld [vmem:[#allocation2 + $0x1] sm:$0xff]  ;;  %585 = vst.msk [vmem:[#allocation2 + $0x1b] sm:$0xff] %vm16237_vm1, %v582_v16  ;;  %v587_v20 = vld [vmem:[%s11853_s25 + $0x18] sm:$0xff]  ;;  %588 = vst.msk [vmem:[#allocation2 + $0x25] sm:$0xff] %vm16237_vm1, %v586_v19  ;;  %p11568_p2 = pnand %p11567_p8, %p17291_p1  ;;  %s11570_s17 = sshll.u32 %s11645_s15, 4  ;;  %s11571_s17 = int_to_ptr.vmem [resolvable:$false] %s11570_s17 }
  0x93   : > { %v1331_v12 = vld [vmem:[#allocation2] sm:$0xff]  ;;  %v1429_v13 = vpack.c.bf16 %v1394_v11, %v1393_v10  ;;  %v1332_v14 = vld [vmem:[#allocation2 + $0x8] sm:$0xff]  ;;  %589 = vst.msk [vmem:[#allocation2 + $0x2d] sm:$0xff] %vm16237_vm1, %v587_v20  ;;  %v594_v23 = vld [vmem:[%s11853_s25 + $0x30] sm:$0xff]  ;;  %s11572_s19 = scalar_lea.vmem %s11571_s17, 8192  ;;  %p11573_p13 = scmp.lt.s32.totalorder %s16154_s24, %s11571_s17 }
  0x94   : > { %10204 = vmatpush3.bf16.msra.mxu0 %v11230_v4  ;;  %v581_v15 = vld [vmem:[%s11853_s25] sm:$0xff]  ;;  %v1367_v17 = vpack.c.bf16 %v1332_v14, %v1331_v12  ;;  %v591_v22 = vld [vmem:[%s11853_s25 + $0x28] sm:$0xff]  ;;  %v595_v24 = vld [vmem:[%s11853_s25 + $0x38] sm:$0xff]  ;;  %596 = vst.msk [vmem:[#allocation2 + $0x49] sm:$0xff] %vm16237_vm1, %v594_v23  ;;  %p11569_p6 = pneg %p11568_p2  ;;  %p11574_p7 = scmp.lt.s32.totalorder %s11572_s19, %s11566_s3 }
  0x95   : > { %10248 = vmatpush3.bf16.msra.mxu1 %v11231_v5  ;;  %10205 = vmatprep.subr.bf16.mxu0 %v11232_v6  ;;  %584 = vst.msk [vmem:[#allocation2 + $0x13] sm:$0xff] %vm16237_vm1, %v581_v15  ;;  %v590_v21 = vld [vmem:[%s11853_s25 + $0x20] sm:$0xff]  ;;  %593 = vst.msk [vmem:[#allocation2 + $0x3f] sm:$0xff] %vm16237_vm1, %v591_v22  ;;  %v599_v26 = vld [vmem:[%s11853_s25 + $0x48] sm:$0xff] }
  0x96   : > { %10249 = vmatprep.subr.bf16.mxu1 %v11233_v7  ;;  %10209 = vmatprep.mubr.msk.bf16.mxu0 %vm16237_vm1, %v1429_v13  ;;  %592 = vst.msk [vmem:[#allocation2 + $0x37] sm:$0xff] %vm16237_vm1, %v590_v21  ;;  %597 = vst.msk [vmem:[#allocation2 + $0x51] sm:$0xff] %vm16237_vm1, %v595_v24  ;;  %v598_v25 = vld [vmem:[%s11853_s25 + $0x40] sm:$0xff]  ;;  %v602_v27 = vld [vmem:[%s11853_s25 + $0x50] sm:$0xff]  ;;  %p11575_p10 = por %p11574_p7, %p11573_p13 }
  0x97   : > { %10253 = vmatprep.mubr.msk.bf16.mxu1 %vm16237_vm1, %v1367_v17  ;;  %600 = vst.msk [vmem:[#allocation2 + $0x5b] sm:$0xff] %vm16237_vm1, %v598_v25  ;;  %601 = vst.msk [vmem:[#allocation2 + $0x63] sm:$0xff] %vm16237_vm1, %v599_v26  ;;  %v603_v28 = vld [vmem:[%s11853_s25 + $0x58] sm:$0xff]  ;;  %v606_v29 = vld [vmem:[%s11853_s25 + $0x60] sm:$0xff] }
  0x98   : > { %10206 = vmatpush3.bf16.msra.mxu0 %v11232_v6  ;;  %604 = vst.msk [vmem:[#allocation2 + $0x6d] sm:$0xff] %vm16237_vm1, %v602_v27  ;;  %v607_v30 = vld [vmem:[%s11853_s25 + $0x68] sm:$0xff]  ;;  %605 = vst.msk [vmem:[#allocation2 + $0x75] sm:$0xff] %vm16237_vm1, %v603_v28  ;;  %v610_v31 = vld [vmem:[%s11853_s25 + $0x70] sm:$0xff]  ;;  %p11576_p0 = pnand %p11575_p10, %p11569_p6 }
  0x99   : > { %10250 = vmatpush3.bf16.msra.mxu1 %v11233_v7  ;;  %10207 = vmatprep.subr.bf16.mxu0 %v11234_v8  ;;  %608 = vst.msk [vmem:[#allocation2 + $0x7f] sm:$0xff] %vm16237_vm1, %v606_v29  ;;  %609 = vst.msk [vmem:[#allocation2 + $0x87] sm:$0xff] %vm16237_vm1, %v607_v30  ;;  %v611_v32 = vld [vmem:[%s11853_s25 + $0x78] sm:$0xff]  ;;  %v11237_v38 = vld [vmem:[#allocation8 + $0x50] sm:$0xff]  }
  0x9a   : > { %10251 = vmatprep.subr.bf16.mxu1 %v11235_v9  ;;  %612 = vst.msk [vmem:[#allocation2 + $0x91] sm:$0xff] %vm16237_vm1, %v610_v31  ;;  %613 = vst.msk [vmem:[#allocation2 + $0x99] sm:$0xff] %vm16237_vm1, %v611_v32  ;;  %v1397_v40 = vld [vmem:[#allocation2 + $0x21] sm:$0xff]  ;;  %v1398_v41 = vld [vmem:[#allocation2 + $0x29] sm:$0xff] }
  0x9b   : > { %v1335_v42 = vld [vmem:[#allocation2 + $0x20] sm:$0xff]  ;;  %v1431_v43 = vpack.c.bf16 %v1398_v41, %v1397_v40  ;;  %v1336_v44 = vld [vmem:[#allocation2 + $0x28] sm:$0xff]  ;;  %v618_v5 = vld [vmem:[%s11853_s25 + $0x90] sm:$0xff] }
  0x9c   : > { %10208 = vmatpush3.bf16.msra.mxu0 %v11234_v8  ;;  %v1395_v33 = vld [vmem:[#allocation2 + $0x11] sm:$0xff]  ;;  %v1396_v34 = vld [vmem:[#allocation2 + $0x19] sm:$0xff]  ;;  %v11238_v45 = vld [vmem:[#allocation8 + $0x48] sm:$0xff]   ;;  %v1369_v46 = vpack.c.bf16 %v1336_v44, %v1335_v42  ;;  %620 = vst.msk [vmem:[#allocation2 + $0xb5] sm:$0xff] %vm16237_vm1, %v618_v5 }
  0x9d   : > { %10252 = vmatpush3.bf16.msra.mxu1 %v11235_v9  ;;  %10289 = vmatprep.subr.bf16.mxu0 %v11236_v18  ;;  %v1333_v35 = vld [vmem:[#allocation2 + $0x10] sm:$0xff]  ;;  %v1430_v36 = vpack.c.bf16 %v1396_v34, %v1395_v33  ;;  %v1334_v37 = vld [vmem:[#allocation2 + $0x18] sm:$0xff]  ;;  %v1401_v51 = vld [vmem:[#allocation2 + $0x41] sm:$0xff] }
  0x9e   : > { %v1368_v39 = vpack.c.bf16 %v1334_v37, %v1333_v35  ;;  %v1399_v47 = vld [vmem:[#allocation2 + $0x31] sm:$0xff]  ;;  %v1400_v48 = vld [vmem:[#allocation2 + $0x39] sm:$0xff]  ;;  %v1402_v52 = vld [vmem:[#allocation2 + $0x49] sm:$0xff] }
  0x9f   : > { %10210 = vmatmul.mubr.msk.bf16.vlgmr.msra.gmra.mxu0 %vm16237_vm1, %v1430_v36  ;;  %v1337_v49 = vld [vmem:[#allocation2 + $0x30] sm:$0xff]  ;;  %v1338_v50 = vld [vmem:[#allocation2 + $0x38] sm:$0xff]  ;;  %v1339_v53 = vld [vmem:[#allocation2 + $0x40] sm:$0xff]  ;;  %v1432_v55 = vpack.c.bf16 %v1400_v48, %v1399_v47  ;;  %v1433_v57 = vpack.c.bf16 %v1402_v52, %v1401_v51 }
  0xa0   : > { %10254 = vmatmul.mubr.msk.bf16.vlgmr.msra.gmra.mxu1 %vm16237_vm1, %v1368_v39  ;;  %10290 = vmatpush3.bf16.msra.mxu0 %v11236_v18  ;;  %v1340_v54 = vld [vmem:[#allocation2 + $0x48] sm:$0xff]  ;;  %v1370_v56 = vpack.c.bf16 %v1338_v50, %v1337_v49  ;;  %v1403_v59 = vld [vmem:[#allocation2 + $0x51] sm:$0xff]  ;;  %v1404_v60 = vld [vmem:[#allocation2 + $0x59] sm:$0xff] }
  0xa1   : > { %10213 = vmatprep.mubr.msk.bf16.mxu0 %vm16237_vm1, %v1431_v43  ;;  %10291 = vmatprep.subr.bf16.mxu0 %v11237_v38  ;;  %v1371_v58 = vpack.c.bf16 %v1340_v54, %v1339_v53  ;;  %v1341_v61 = vld [vmem:[#allocation2 + $0x50] sm:$0xff]  ;;  %v1342_v62 = vld [vmem:[#allocation2 + $0x58] sm:$0xff]  ;;  %v1405_v63 = vld [vmem:[#allocation2 + $0x61] sm:$0xff]  ;;  %v1434_v10 = vpack.c.bf16 %v1404_v60, %v1403_v59 }
  0xa2   : > { %10257 = vmatprep.mubr.msk.bf16.mxu1 %vm16237_vm1, %v1369_v46  ;;  %v1406_v0 = vld [vmem:[#allocation2 + $0x69] sm:$0xff]  ;;  %v1343_v1 = vld [vmem:[#allocation2 + $0x60] sm:$0xff]  ;;  %v626_v9 = vld [vmem:[%s11853_s25 + $0xb0] sm:$0xff]  ;;  %v1372_v12 = vpack.c.bf16 %v1342_v62, %v1341_v61 }
  0xa3   : > { %v1344_v2 = vld [vmem:[#allocation2 + $0x68] sm:$0xff]  ;;  %v619_v6 = vld [vmem:[%s11853_s25 + $0x98] sm:$0xff]  ;;  %628 = vst.msk [vmem:[#allocation2 + $0xd9] sm:$0xff] %vm16237_vm1, %v626_v9  ;;  %v1435_v13 = vpack.c.bf16 %v1406_v0, %v1405_v63  ;;  %v634_v18 = vld [vmem:[%s11853_s25 + $0xd0] sm:$0xff] }
  0xa4   : > { %10292 = vmatpush3.bf16.msra.mxu0 %v11237_v38  ;;  %v614_v3 = vld [vmem:[%s11853_s25 + $0x80] sm:$0xff]  ;;  %v615_v4 = vld [vmem:[%s11853_s25 + $0x88] sm:$0xff]  ;;  %621 = vst.msk [vmem:[#allocation2 + $0xbd] sm:$0xff] %vm16237_vm1, %v619_v6  ;;  %v627_v14 = vld [vmem:[%s11853_s25 + $0xb8] sm:$0xff]  ;;  %v1373_v17 = vpack.c.bf16 %v1344_v2, %v1343_v1 }
  0xa5   : > { %10293 = vmatprep.subr.bf16.mxu0 %v11238_v45  ;;  %616 = vst.msk [vmem:[#allocation2 + $0xa3] sm:$0xff] %vm16237_vm1, %v614_v3  ;;  %617 = vst.msk [vmem:[#allocation2 + $0xab] sm:$0xff] %vm16237_vm1, %v615_v4  ;;  %v622_v7 = vld [vmem:[%s11853_s25 + $0xa0] sm:$0xff]  ;;  %v623_v8 = vld [vmem:[%s11853_s25 + $0xa8] sm:$0xff] }
  0xa6   : > { %624 = vst.msk [vmem:[#allocation2 + $0xc7] sm:$0xff] %vm16237_vm1, %v622_v7  ;;  %625 = vst.msk [vmem:[#allocation2 + $0xcf] sm:$0xff] %vm16237_vm1, %v623_v8  ;;  %v11239_v11 = vld [vmem:[#allocation8 + $0x40] sm:$0xff]   ;;  %v631_v16 = vld [vmem:[%s11853_s25 + $0xc8] sm:$0xff] }
  0xa7   : > { %10214 = vmatmul.mubr.msk.bf16.gmra.mxu0 %vm16237_vm1, %v1432_v55  ;;  %v630_v15 = vld [vmem:[%s11853_s25 + $0xc0] sm:$0xff]  ;;  %629 = vst.msk [vmem:[#allocation2 + $0xe1] sm:$0xff] %vm16237_vm1, %v627_v14  ;;  %633 = vst.msk [vmem:[#allocation2 + $0xf3] sm:$0xff] %vm16237_vm1, %v631_v16  ;;  %v1407_v19 = vld [vmem:[#allocation2 + $0x71] sm:$0xff] }
  0xa8   : > { %10258 = vmatmul.mubr.msk.bf16.gmra.mxu1 %vm16237_vm1, %v1370_v56  ;;  %10217 = vmatprep.mubr.msk.bf16.mxu0 %vm16237_vm1, %v1433_v57  ;;  %632 = vst.msk [vmem:[#allocation2 + $0xeb] sm:$0xff] %vm16237_vm1, %v630_v15  ;;  %636 = vst.msk [vmem:[#allocation2 + $0xfd] sm:$0xff] %vm16237_vm1, %v634_v18  ;;  %v11240_v20 = vld [vmem:[#allocation8 + $0x78] sm:$0xff]   ;;  %v11241_v21 = vld [vmem:[#allocation8 + $0x70] sm:$0xff]  }
  0xa9   : > { %10261 = vmatprep.mubr.msk.bf16.mxu1 %vm16237_vm1, %v1371_v58  ;;  %10294 = vmatpush3.bf16.msra.mxu0 %v11238_v45  ;;  %v635_v22 = vld [vmem:[%s11853_s25 + $0xd8] sm:$0xff]  ;;  %v638_v23 = vld [vmem:[%s11853_s25 + $0xe0] sm:$0xff]  ;;  %v1345_v25 = vld [vmem:[#allocation2 + $0x70] sm:$0xff] }
  0xaa   : > { %10295 = vmatprep.subr.bf16.mxu0 %v11239_v11  ;;  %v1408_v24 = vld [vmem:[#allocation2 + $0x79] sm:$0xff]  ;;  %637 = vst.msk [vmem:[#allocation2 + $0x105] sm:$0xff] %vm16237_vm1, %v635_v22  ;;  %640 = vst.msk [vmem:[#allocation2 + $0x10f] sm:$0xff] %vm16237_vm1, %v638_v23  ;;  %v639_v26 = vld [vmem:[%s11853_s25 + $0xe8] sm:$0xff]  ;;  %10333 = vmatprep.subr.bf16.mxu1 %v11240_v20 }
  0xab   : > { %v1346_v27 = vld [vmem:[#allocation2 + $0x78] sm:$0xff]  ;;  %v1409_v28 = vld [vmem:[#allocation2 + $0x81] sm:$0xff]  ;;  %v1410_v29 = vld [vmem:[#allocation2 + $0x89] sm:$0xff]  ;;  %641 = vst.msk [vmem:[#allocation2 + $0x117] sm:$0xff] %vm16237_vm1, %v639_v26  ;;  %10334 = vmatpush3.bf16.msra.mxu1 %v11240_v20  ;;  %v1436_v32 = vpack.c.bf16 %v1408_v24, %v1407_v19 }
  0xac   : > { %v1347_v30 = vld [vmem:[#allocation2 + $0x80] sm:$0xff]  ;;  %v1348_v31 = vld [vmem:[#allocation2 + $0x88] sm:$0xff]  ;;  %10335 = vmatprep.subr.bf16.mxu1 %v11241_v21  ;;  %v1374_v33 = vpack.c.bf16 %v1346_v27, %v1345_v25  ;;  %v1437_v34 = vpack.c.bf16 %v1410_v29, %v1409_v28  ;;  %v1411_v36 = vld [vmem:[#allocation2 + $0x91] sm:$0xff] }
  0xad   : > { %10296 = vmatpush3.bf16.msra.mxu0 %v11239_v11  ;;  %v1375_v35 = vpack.c.bf16 %v1348_v31, %v1347_v30  ;;  %v1412_v37 = vld [vmem:[#allocation2 + $0x99] sm:$0xff]  ;;  %v1349_v38 = vld [vmem:[#allocation2 + $0x90] sm:$0xff]  ;;  %v1413_v40 = vld [vmem:[#allocation2 + $0xa1] sm:$0xff] }
  0xae   : > { %v1350_v39 = vld [vmem:[#allocation2 + $0x98] sm:$0xff]  ;;  %v1414_v41 = vld [vmem:[#allocation2 + $0xa9] sm:$0xff]  ;;  %v1351_v42 = vld [vmem:[#allocation2 + $0xa0] sm:$0xff]  ;;  %v1438_v44 = vpack.c.bf16 %v1412_v37, %v1411_v36 }
  0xaf   : > { %10218 = vmatmul.mubr.msk.bf16.gmra.mxu0 %vm16237_vm1, %v1434_v10  ;;  %10336 = vmatpush3.bf16.msra.mxu1 %v11241_v21  ;;  %v1352_v43 = vld [vmem:[#allocation2 + $0xa8] sm:$0xff]  ;;  %v1376_v46 = vpack.c.bf16 %v1350_v39, %v1349_v38  ;;  %v1439_v47 = vpack.c.bf16 %v1414_v41, %v1413_v40  ;;  %v12110_v50 = vld [vmem:[#allocation8 + $0x98] sm:$0xff]   ;;  %v1415_v51 = vld [vmem:[#allocation2 + $0xb1] sm:$0xff] }
  0xb0   : > { %10262 = vmatmul.mubr.msk.bf16.gmra.mxu1 %vm16237_vm1, %v1372_v12  ;;  %10221 = vmatprep.mubr.msk.bf16.mxu0 %vm16237_vm1, %v1435_v13  ;;  %v11242_v45 = vld [vmem:[#allocation8 + $0x68] sm:$0xff]   ;;  %v11243_v48 = vld [vmem:[#allocation8 + $0x60] sm:$0xff]   ;;  %v1377_v49 = vpack.c.bf16 %v1352_v43, %v1351_v42  ;;  %v1416_v52 = vld [vmem:[#allocation2 + $0xb9] sm:$0xff] }
  0xb1   : > { %10265 = vmatprep.mubr.msk.bf16.mxu1 %vm16237_vm1, %v1373_v17  ;;  %10337 = vmatprep.subr.bf16.mxu1 %v11242_v45  ;;  %v1353_v53 = vld [vmem:[#allocation2 + $0xb0] sm:$0xff]  ;;  %v1354_v54 = vld [vmem:[#allocation2 + $0xb8] sm:$0xff]  ;;  %v1417_v55 = vld [vmem:[#allocation2 + $0xc1] sm:$0xff]  ;;  %v1440_v59 = vpack.c.bf16 %v1416_v52, %v1415_v51 }
  0xb2   : > { %v1418_v56 = vld [vmem:[#allocation2 + $0xc9] sm:$0xff]  ;;  %10377 = vmatprep.subr.bf16.mxu0 %v12110_v50  ;;  %v1355_v57 = vld [vmem:[#allocation2 + $0xc0] sm:$0xff]  ;;  %v1378_v60 = vpack.c.bf16 %v1354_v54, %v1353_v53  ;;  %v1419_v63 = vld [vmem:[#allocation2 + $0xd1] sm:$0xff] }
  0xb3   : > { %10338 = vmatpush3.bf16.msra.mxu1 %v11242_v45  ;;  %v1356_v58 = vld [vmem:[#allocation2 + $0xc8] sm:$0xff]  ;;  %v1441_v61 = vpack.c.bf16 %v1418_v56, %v1417_v55  ;;  %v1420_v0 = vld [vmem:[#allocation2 + $0xd9] sm:$0xff]  ;;  %v1357_v1 = vld [vmem:[#allocation2 + $0xd0] sm:$0xff] }
  0xb4   : > { %10339 = vmatprep.subr.bf16.mxu1 %v11243_v48  ;;  %v1379_v62 = vpack.c.bf16 %v1356_v58, %v1355_v57  ;;  %v1358_v2 = vld [vmem:[#allocation2 + $0xd8] sm:$0xff]  ;;  %v1421_v3 = vld [vmem:[#allocation2 + $0xe1] sm:$0xff]  ;;  %v1422_v4 = vld [vmem:[#allocation2 + $0xe9] sm:$0xff]  ;;  %v1442_v7 = vpack.c.bf16 %v1420_v0, %v1419_v63 }
  0xb5   : > { %v1359_v5 = vld [vmem:[#allocation2 + $0xe0] sm:$0xff]  ;;  %v1360_v6 = vld [vmem:[#allocation2 + $0xe8] sm:$0xff]  ;;  %v1380_v8 = vpack.c.bf16 %v1358_v2, %v1357_v1  ;;  %v1443_v9 = vpack.c.bf16 %v1422_v4, %v1421_v3  ;;  %v1423_v12 = vld [vmem:[#allocation2 + $0xf1] sm:$0xff] }
  0xb6   : > { %v1381_v10 = vpack.c.bf16 %v1360_v6, %v1359_v5  ;;  %v11248_v11 = vld [vmem:[#allocation8 + $0xb8] sm:$0xff]   ;;  %v642_v14 = vld [vmem:[%s11853_s25 + $0xf0] sm:$0xff]  ;;  %v1425_v18 = vld [vmem:[#allocation2 + $0x101] sm:$0xff] }
  0xb7   : > { %10222 = vmatmul.mubr.msk.bf16.gmra.mxu0 %vm16237_vm1, %v1436_v32  ;;  %10340 = vmatpush3.bf16.msra.mxu1 %v11243_v48  ;;  %v1424_v13 = vld [vmem:[#allocation2 + $0xf9] sm:$0xff]  ;;  %644 = vst.msk [vmem:[#allocation2 + $0x121] sm:$0xff] %vm16237_vm1, %v642_v14  ;;  %v1361_v16 = vld [vmem:[#allocation2 + $0xf0] sm:$0xff]  ;;  %v1364_v21 = vld [vmem:[#allocation2 + $0x108] sm:$0xff] }
  0xb8   : > { %10266 = vmatmul.mubr.msk.bf16.gmra.mxu1 %vm16237_vm1, %v1374_v33  ;;  %10225 = vmatprep.mubr.msk.bf16.mxu0 %vm16237_vm1, %v1437_v34  ;;  %v643_v15 = vld [vmem:[%s11853_s25 + $0xf8] sm:$0xff]  ;;  %v1426_v19 = vld [vmem:[#allocation2 + $0x109] sm:$0xff]  ;;  %v1444_v22 = vpack.c.bf16 %v1424_v13, %v1423_v12  ;;  %v1427_v26 = vld [vmem:[#allocation2 + $0x111] sm:$0xff]  ;;  %s16152_s25 = scalar_lea.hbm %s16212_s13, %s9760_s18 }
  0xb9   : > { %10269 = vmatprep.mubr.msk.bf16.mxu1 %vm16237_vm1, %v1375_v35  ;;  %10421 = vmatprep.subr.bf16.mxu1 %v11248_v11  ;;  %645 = vst.msk [vmem:[#allocation2 + $0x129] sm:$0xff] %vm16237_vm1, %v643_v15  ;;  %v1362_v17 = vld [vmem:[#allocation2 + $0xf8] sm:$0xff]  ;;  %v1363_v20 = vld [vmem:[#allocation2 + $0x100] sm:$0xff]  ;;  %v1445_v24 = vpack.c.bf16 %v1426_v19, %v1425_v18  ;;  %v1365_v28 = vld [vmem:[#allocation2 + $0x110] sm:$0xff] }
  0xba   : > { %v1382_v23 = vpack.c.bf16 %v1362_v17, %v1361_v16  ;;  %v1383_v25 = vpack.c.bf16 %v1364_v21, %v1363_v20  ;;  %v1428_v27 = vld [vmem:[#allocation2 + $0x119] sm:$0xff]  ;;  %v1966_v30 = vld [vmem:[#allocation2 + $0x2] sm:$0xff]  ;;  %v1967_v31 = vld [vmem:[#allocation2 + $0xa] sm:$0xff] }
  0xbb   : > { %v1366_v29 = vld [vmem:[#allocation2 + $0x118] sm:$0xff]  ;;  %v1446_v34 = vpack.c.bf16 %v1428_v27, %v1427_v26  ;;  %v2002_v36 = vpack.c.bf16 %v1967_v31, %v1966_v30  ;;  %v2322_v38 = vld [vmem:[#allocation2 + $0x22] sm:$0xff]  ;;  %v2323_v39 = vld [vmem:[#allocation2 + $0x2a] sm:$0xff] }
  0xbc   : > { %v1968_v32 = vld [vmem:[#allocation2 + $0x12] sm:$0xff]  ;;  %v1969_v33 = vld [vmem:[#allocation2 + $0x1a] sm:$0xff]  ;;  %v1384_v35 = vpack.c.bf16 %v1366_v29, %v1365_v28  ;;  %v2357_v42 = vpack.c.bf16 %v2323_v39, %v2322_v38  ;;  %v11246_v48 = vld [vmem:[#allocation8 + $0x88] sm:$0xff]  }
  0xbd   : > { %v2003_v37 = vpack.c.bf16 %v1969_v33, %v1968_v32  ;;  %v1972_v40 = vld [vmem:[#allocation2 + $0x32] sm:$0xff]  ;;  %v1973_v41 = vld [vmem:[#allocation2 + $0x3a] sm:$0xff]  ;;  %v11250_v52 = vld [vmem:[#allocation8 + $0xa8] sm:$0xff]  }
  0xbe   : > { %v2005_v43 = vpack.c.bf16 %v1973_v41, %v1972_v40  ;;  %v11249_v45 = vld [vmem:[#allocation8 + $0xb0] sm:$0xff]   ;;  %v1977_v51 = vld [vmem:[#allocation2 + $0x5a] sm:$0xff]  ;;  %v2330_v55 = vld [vmem:[#allocation2 + $0x62] sm:$0xff] }
  0xbf   : > { %10226 = vmatmul.mubr.msk.bf16.gmra.mxu0 %vm16237_vm1, %v1438_v44  ;;  %v11245_v44 = vld [vmem:[#allocation8 + $0x90] sm:$0xff]   ;;  %v11251_v57 = vld [vmem:[#allocation8 + $0xa0] sm:$0xff]  }
  0xc0   : > { %10270 = vmatmul.mubr.msk.bf16.gmra.mxu1 %vm16237_vm1, %v1376_v46  ;;  %10229 = vmatprep.mubr.msk.bf16.mxu0 %vm16237_vm1, %v1439_v47  ;;  %v2326_v46 = vld [vmem:[#allocation2 + $0x42] sm:$0xff]  ;;  %v2327_v47 = vld [vmem:[#allocation2 + $0x4a] sm:$0xff]  ;;  %v1980_v58 = vld [vmem:[#allocation2 + $0x72] sm:$0xff] }
  0xc1   : > { %10273 = vmatprep.mubr.msk.bf16.mxu1 %vm16237_vm1, %v1377_v49  ;;  %v1976_v49 = vld [vmem:[#allocation2 + $0x52] sm:$0xff]  ;;  %v2359_v53 = vpack.c.bf16 %v2327_v47, %v2326_v46  ;;  %v2331_v56 = vld [vmem:[#allocation2 + $0x6a] sm:$0xff]  ;;  %v2334_v0 = vld [vmem:[#allocation2 + $0x82] sm:$0xff] }
  0xc2   : > { %v2007_v54 = vpack.c.bf16 %v1977_v51, %v1976_v49  ;;  %v2335_v1 = vld [vmem:[#allocation2 + $0x8a] sm:$0xff]  ;;  %v1984_v2 = vld [vmem:[#allocation2 + $0x92] sm:$0xff]  ;;  %v1985_v3 = vld [vmem:[#allocation2 + $0x9a] sm:$0xff] }
  0xc3   : > { %v2363_v4 = vpack.c.bf16 %v2335_v1, %v2334_v0  ;;  %v2011_v5 = vpack.c.bf16 %v1985_v3, %v1984_v2  ;;  %v2338_v6 = vld [vmem:[#allocation2 + $0xa2] sm:$0xff]  ;;  %v2343_v13 = vld [vmem:[#allocation2 + $0xca] sm:$0xff]  ;;  %v1992_v14 = vld [vmem:[#allocation2 + $0xd2] sm:$0xff] }
  0xc4   : > { %v2342_v12 = vld [vmem:[#allocation2 + $0xc2] sm:$0xff]  ;;  %v1993_v15 = vld [vmem:[#allocation2 + $0xda] sm:$0xff]  ;;  %v2347_v19 = vld [vmem:[#allocation2 + $0xea] sm:$0xff] }
  0xc5   : > { %v2367_v16 = vpack.c.bf16 %v2343_v13, %v2342_v12  ;;  %v2015_v17 = vpack.c.bf16 %v1993_v15, %v1992_v14  ;;  %v2346_v18 = vld [vmem:[#allocation2 + $0xe2] sm:$0xff]  ;;  %v1996_v20 = vld [vmem:[#allocation2 + $0xf2] sm:$0xff]  ;;  %v1997_v21 = vld [vmem:[#allocation2 + $0xfa] sm:$0xff] }
  0xc6   : > { %v2000_v26 = vld [vmem:[#allocation2 + $0x112] sm:$0xff]  ;;  %v2001_v27 = vld [vmem:[#allocation2 + $0x11a] sm:$0xff]  ;;  %v2354_v31 = vld [vmem:[#allocation2 + $0x122] sm:$0xff] }
  0xc7   : > { %10230 = vmatmul.mubr.msk.bf16.gmra.mxu0 %vm16237_vm1, %v1440_v59  ;;  %v1981_v59 = vld [vmem:[#allocation2 + $0x7a] sm:$0xff]  ;;  %v2019_v29 = vpack.c.bf16 %v2001_v27, %v2000_v26  ;;  %v2355_v32 = vld [vmem:[#allocation2 + $0x12a] sm:$0xff] }
  0xc8   : > { %10274 = vmatmul.mubr.msk.bf16.gmra.mxu1 %vm16237_vm1, %v1378_v60  ;;  %10233 = vmatprep.mubr.msk.bf16.mxu0 %vm16237_vm1, %v1441_v61  ;;  %v12144_v60 = vld [vmem:[#allocation8 + $0xd8] sm:$0xff]   ;;  %v2009_v63 = vpack.c.bf16 %v1981_v59, %v1980_v58  ;;  %v1297_v39 = vld [vmem:[#allocation2 + $0x23] sm:$0xff]  ;;  %v1298_v40 = vld [vmem:[#allocation2 + $0x2b] sm:$0xff] }
  0xc9   : > { %10277 = vmatprep.mubr.msk.bf16.mxu1 %vm16237_vm1, %v1379_v62  ;;  %v12147_v61 = vld [vmem:[#allocation8 + $0xf8] sm:$0xff]   ;;  %v2361_v62 = vpack.c.bf16 %v2331_v56, %v2330_v55  ;;  %v2994_v41 = vld [vmem:[#allocation2 + $0x24] sm:$0xff]  ;;  %v2675_v47 = vpack.c.bf16 %v1298_v40, %v1297_v39  ;;  %v2999_v56 = vld [vmem:[#allocation2 + $0x4c] sm:$0xff] }
  0xca   : > { %v1295_v30 = vld [vmem:[#allocation2 + $0x13] sm:$0xff]  ;;  %v1296_v33 = vld [vmem:[#allocation2 + $0x1b] sm:$0xff]  ;;  %v2998_v55 = vld [vmem:[#allocation2 + $0x44] sm:$0xff] }
  0xcb   : > { %v2997_v46 = vld [vmem:[#allocation2 + $0x3c] sm:$0xff]  ;;  %v11254_v59 = vld [vmem:[#allocation8 + $0xc8] sm:$0xff]   ;;  %v12191_v1 = vpack.c.bf16 %v2999_v56, %v2998_v55 }
  0xcc   : > { %v1304_v58 = vld [vmem:[#allocation2 + $0x5b] sm:$0xff]  ;;  %v11258_v0 = vld [vmem:[#allocation8 + $0xe8] sm:$0xff]  }
  0xcd   : > { %v3005_v12 = vld [vmem:[#allocation2 + $0x7c] sm:$0xff] }
  0xce   : > { %v12201_v13 = vld [vmem:[#allocation8 + $0x118] sm:$0xff]   ;;  %v1321_v56 = vld [vmem:[#allocation2 + $0xe3] sm:$0xff] }
  0xcf   : > { %10234 = vmatmul.mubr.msk.bf16.gmra.mxu0 %vm16237_vm1, %v1442_v7  ;;  %v2339_v7 = vld [vmem:[#allocation2 + $0xaa] sm:$0xff] }
  0xd0   : > { %10278 = vmatmul.mubr.msk.bf16.gmra.mxu1 %vm16237_vm1, %v1380_v8  ;;  %10237 = vmatprep.mubr.msk.bf16.mxu0 %vm16237_vm1, %v1443_v9  ;;  %v1988_v8 = vld [vmem:[#allocation2 + $0xb2] sm:$0xff]  ;;  %v1989_v9 = vld [vmem:[#allocation2 + $0xba] sm:$0xff] }
  0xd1   : > { %10281 = vmatprep.mubr.msk.bf16.mxu1 %vm16237_vm1, %v1381_v10  ;;  %v2365_v10 = vpack.c.bf16 %v2339_v7, %v2338_v6  ;;  %v1306_v6 = vld [vmem:[#allocation2 + $0x6b] sm:$0xff] }
  0xd2   : > { %v3002_v7 = vld [vmem:[#allocation2 + $0x64] sm:$0xff] }
  0xd7   : > { %10238 = vmatmul.mubr.msk.bf16.gmra.mxu0 %vm16237_vm1, %v1444_v22  ;;  %v2369_v22 = vpack.c.bf16 %v2347_v19, %v2346_v18  ;;  %v1309_v18 = vld [vmem:[#allocation2 + $0x83] sm:$0xff]  ;;  %v1310_v19 = vld [vmem:[#allocation2 + $0x8b] sm:$0xff] }
  0xd8   : > { %10282 = vmatmul.mubr.msk.bf16.gmra.mxu1 %vm16237_vm1, %v1382_v23  ;;  %10241 = vmatprep.mubr.msk.bf16.mxu0 %vm16237_vm1, %v1445_v24  ;;  %v2017_v23 = vpack.c.bf16 %v1997_v21, %v1996_v20  ;;  %v2350_v24 = vld [vmem:[#allocation2 + $0x102] sm:$0xff]  ;;  %v3007_v21 = vld [vmem:[#allocation2 + $0x8c] sm:$0xff]  ;;  %v2681_v26 = vpack.c.bf16 %v1310_v19, %v1309_v18 }
  0xd9   : > { %10285 = vmatprep.mubr.msk.bf16.mxu1 %vm16237_vm1, %v1383_v25  ;;  %v2351_v25 = vld [vmem:[#allocation2 + $0x10a] sm:$0xff]  ;;  %v1328_v18 = vld [vmem:[#allocation2 + $0x11b] sm:$0xff] }
  0xda   : > { %v2371_v28 = vpack.c.bf16 %v2351_v25, %v2350_v24  ;;  %v3006_v20 = vld [vmem:[#allocation2 + $0x84] sm:$0xff]  ;;  %v3008_v24 = vld [vmem:[#allocation2 + $0x94] sm:$0xff]  ;;  %v3009_v25 = vld [vmem:[#allocation2 + $0x9c] sm:$0xff] }
  0xdb   : > { %v12214_v27 = vpack.c.bf16 %v3007_v21, %v3006_v20  ;;  %v3024_v20 = vld [vmem:[#allocation2 + $0x114] sm:$0xff]  ;;  %v3025_v21 = vld [vmem:[#allocation2 + $0x11c] sm:$0xff] }
  0xdf   : > { %10242 = vmatmul.mubr.msk.bf16.gmra.mxu0 %vm16237_vm1, %v1446_v34  ;;  %v2992_v34 = vld [vmem:[#allocation2 + $0x14] sm:$0xff] }
  0xe0   : > { %10286 = vmatmul.mubr.msk.bf16.gmra.mxu1 %vm16237_vm1, %v1384_v35  ;;  %10297 = vmatprep.mubr.msk.bf16.mxu0 %vm16237_vm1, %v2002_v36  ;;  %v2993_v35 = vld [vmem:[#allocation2 + $0x1c] sm:$0xff]  ;;  %v2373_v36 = vpack.c.bf16 %v2355_v32, %v2354_v31  ;;  %v1314_v31 = vld [vmem:[#allocation2 + $0xab] sm:$0xff] }
  0xe1   : > { %10341 = vmatprep.mubr.msk.bf16.mxu1 %vm16237_vm1, %v2003_v37  ;;  %v3028_v38 = vpack.c.bf16 %v2993_v35, %v2992_v34  ;;  %v3010_v32 = vld [vmem:[#allocation2 + $0xa4] sm:$0xff]  ;;  %v1315_v34 = vld [vmem:[#allocation2 + $0xb3] sm:$0xff]  ;;  %v1316_v35 = vld [vmem:[#allocation2 + $0xbb] sm:$0xff] }
  0xe2   : > { %v2684_v40 = vpack.c.bf16 %v1316_v35, %v1315_v34 }
  0xe7   : > { %10298 = vmatmul.mubr.msk.bf16.vlgmr.msra.gmra.mxu0 %vm16237_vm1, %v2003_v37  ;;  %v2674_v37 = vpack.c.bf16 %v1296_v33, %v1295_v30  ;;  %v1313_v30 = vld [vmem:[#allocation2 + $0xa3] sm:$0xff]  ;;  %v3011_v33 = vld [vmem:[#allocation2 + $0xac] sm:$0xff] }
  0xe8   : > { %10378 = vmatpush3.bf16.msra.mxu0 %v12110_v50  ;;  %10342 = vmatmul.mubr.msk.bf16.vlgmr.msra.gmra.mxu1 %vm16237_vm1, %v2357_v42  ;;  %v11247_v50 = vld [vmem:[#allocation8 + $0x80] sm:$0xff]   ;;  %v12224_v39 = vpack.c.bf16 %v3011_v33, %v3010_v32  ;;  %v12262_v32 = vpack.c.bf16 %v3025_v21, %v3024_v20 }
  0xe9   : > { %10301 = vmatprep.mubr.msk.bf16.mxu0 %vm16237_vm1, %v2357_v42  ;;  %10345 = vmatprep.mubr.msk.bf16.mxu1 %vm16237_vm1, %v2005_v43  ;;  %v2995_v42 = vld [vmem:[#allocation2 + $0x2c] sm:$0xff] }
  0xea   : > { %10379 = vmatprep.subr.bf16.mxu0 %v11245_v44  ;;  %10422 = vmatpush3.bf16.msra.mxu1 %v11248_v11  ;;  %v2013_v11 = vpack.c.bf16 %v1989_v9, %v1988_v8  ;;  %v3003_v8 = vld [vmem:[#allocation2 + $0x6c] sm:$0xff] }
  0xeb   : > { %10423 = vmatprep.subr.bf16.mxu1 %v11249_v45  ;;  %v1307_v9 = vld [vmem:[#allocation2 + $0x73] sm:$0xff]  ;;  %v12203_v15 = vpack.c.bf16 %v3003_v8, %v3002_v7  ;;  %v1325_v8 = vld [vmem:[#allocation2 + $0x103] sm:$0xff] }
  0xec   : > { %10380 = vmatpush3.bf16.msra.mxu0 %v11245_v44  ;;  %v1300_v44 = vld [vmem:[#allocation2 + $0x3b] sm:$0xff] }
  0xed   : > { %10381 = vmatprep.subr.bf16.mxu0 %v11246_v48 }
  0xee   : > { %10424 = vmatpush3.bf16.msra.mxu1 %v11249_v45  ;;  %v2996_v45 = vld [vmem:[#allocation2 + $0x34] sm:$0xff] }
  0xef   : > { %10302 = vmatmul.mubr.msk.bf16.gmra.mxu0 %vm16237_vm1, %v2005_v43  ;;  %10425 = vmatprep.subr.bf16.mxu1 %v11250_v52  ;;  %v1299_v43 = vld [vmem:[#allocation2 + $0x33] sm:$0xff]  ;;  %v12181_v51 = vpack.c.bf16 %v2997_v46, %v2996_v45 }
  0xf0   : > { %10346 = vmatmul.mubr.msk.bf16.gmra.mxu1 %vm16237_vm1, %v2359_v53  ;;  %10305 = vmatprep.mubr.msk.bf16.mxu0 %vm16237_vm1, %v2359_v53  ;;  %v2676_v49 = vpack.c.bf16 %v1300_v44, %v1299_v43  ;;  %v1301_v53 = vld [vmem:[#allocation2 + $0x43] sm:$0xff]  ;;  %v1318_v43 = vld [vmem:[#allocation2 + $0xcb] sm:$0xff]  ;;  %v1319_v46 = vld [vmem:[#allocation2 + $0xd3] sm:$0xff] }
  0xf1   : > { %10349 = vmatprep.mubr.msk.bf16.mxu1 %vm16237_vm1, %v2007_v54  ;;  %10382 = vmatpush3.bf16.msra.mxu0 %v11246_v48  ;;  %v12179_v48 = vpack.c.bf16 %v2995_v42, %v2994_v41  ;;  %v1317_v42 = vld [vmem:[#allocation2 + $0xc3] sm:$0xff]  ;;  %v3015_v45 = vld [vmem:[#allocation2 + $0xcc] sm:$0xff] }
  0xf2   : > { %10383 = vmatprep.subr.bf16.mxu0 %v11247_v50  ;;  %10426 = vmatpush3.bf16.msra.mxu1 %v11250_v52  ;;  %v11253_v52 = vld [vmem:[#allocation8 + $0xd0] sm:$0xff]   ;;  %v3014_v44 = vld [vmem:[#allocation2 + $0xc4] sm:$0xff] }
  0xf3   : > { %10427 = vmatprep.subr.bf16.mxu1 %v11251_v57 }
  0xf5   : > { %10384 = vmatpush3.bf16.msra.mxu0 %v11247_v50  ;;  %v1302_v50 = vld [vmem:[#allocation2 + $0x4b] sm:$0xff] }
  0xf6   : > { %10428 = vmatpush3.bf16.msra.mxu1 %v11251_v57  ;;  %10465 = vmatprep.subr.bf16.mxu0 %v12144_v60  ;;  %v1303_v57 = vld [vmem:[#allocation2 + $0x53] sm:$0xff] }
  0xf7   : > { %10306 = vmatmul.mubr.msk.bf16.gmra.mxu0 %vm16237_vm1, %v2007_v54  ;;  %10509 = vmatprep.subr.bf16.mxu1 %v12147_v61  ;;  %v11257_v54 = vld [vmem:[#allocation8 + $0xf0] sm:$0xff]   ;;  %v2678_v2 = vpack.c.bf16 %v1304_v58, %v1303_v57  ;;  %v3018_v58 = vld [vmem:[#allocation2 + $0xe4] sm:$0xff] }
  0xf8   : > { %10350 = vmatmul.mubr.msk.bf16.gmra.mxu1 %vm16237_vm1, %v2361_v62  ;;  %10309 = vmatprep.mubr.msk.bf16.mxu0 %vm16237_vm1, %v2361_v62  ;;  %v3000_v62 = vld [vmem:[#allocation2 + $0x54] sm:$0xff]  ;;  %v1322_v57 = vld [vmem:[#allocation2 + $0xeb] sm:$0xff] }
  0xf9   : > { %10353 = vmatprep.mubr.msk.bf16.mxu1 %vm16237_vm1, %v2009_v63 }
  0xff   : > { %10310 = vmatmul.mubr.msk.bf16.gmra.mxu0 %vm16237_vm1, %v2009_v63  ;;  %v3001_v63 = vld [vmem:[#allocation2 + $0x5c] sm:$0xff] }
 0x100   : > { %10354 = vmatmul.mubr.msk.bf16.gmra.mxu1 %vm16237_vm1, %v2363_v4  ;;  %10313 = vmatprep.mubr.msk.bf16.mxu0 %vm16237_vm1, %v2363_v4  ;;  %v12193_v3 = vpack.c.bf16 %v3001_v63, %v3000_v62  ;;  %v11255_v4 = vld [vmem:[#allocation8 + $0xc0] sm:$0xff]   ;;  %v1323_v62 = vld [vmem:[#allocation2 + $0xf3] sm:$0xff] }
 0x101   : > { %10357 = vmatprep.mubr.msk.bf16.mxu1 %vm16237_vm1, %v2011_v5  ;;  %v1324_v63 = vld [vmem:[#allocation2 + $0xfb] sm:$0xff] }
 0x107   : > { %10314 = vmatmul.mubr.msk.bf16.gmra.mxu0 %vm16237_vm1, %v2011_v5  ;;  %v11259_v5 = vld [vmem:[#allocation8 + $0xe0] sm:$0xff]  }
 0x108   : > { %10358 = vmatmul.mubr.msk.bf16.gmra.mxu1 %vm16237_vm1, %v2365_v10  ;;  %10317 = vmatprep.mubr.msk.bf16.mxu0 %vm16237_vm1, %v2365_v10  ;;  %v1308_v10 = vld [vmem:[#allocation2 + $0x7b] sm:$0xff] }
 0x109   : > { %10361 = vmatprep.mubr.msk.bf16.mxu1 %vm16237_vm1, %v2013_v11 }
 0x10f   : > { %10318 = vmatmul.mubr.msk.bf16.gmra.mxu0 %vm16237_vm1, %v2013_v11  ;;  %v3004_v11 = vld [vmem:[#allocation2 + $0x74] sm:$0xff] }
 0x110   : > { %10362 = vmatmul.mubr.msk.bf16.gmra.mxu1 %vm16237_vm1, %v2367_v16  ;;  %10321 = vmatprep.mubr.msk.bf16.mxu0 %vm16237_vm1, %v2367_v16  ;;  %v2680_v16 = vpack.c.bf16 %v1308_v10, %v1307_v9  ;;  %v1326_v9 = vld [vmem:[#allocation2 + $0x10b] sm:$0xff] }
 0x111   : > { %10365 = vmatprep.mubr.msk.bf16.mxu1 %vm16237_vm1, %v2015_v17  ;;  %v3022_v10 = vld [vmem:[#allocation2 + $0x104] sm:$0xff] }
 0x117   : > { %10322 = vmatmul.mubr.msk.bf16.gmra.mxu0 %vm16237_vm1, %v2015_v17  ;;  %v12205_v17 = vpack.c.bf16 %v3005_v12, %v3004_v11 }
 0x118   : > { %10366 = vmatmul.mubr.msk.bf16.gmra.mxu1 %vm16237_vm1, %v2369_v22  ;;  %10325 = vmatprep.mubr.msk.bf16.mxu0 %vm16237_vm1, %v2369_v22  ;;  %v1311_v22 = vld [vmem:[#allocation2 + $0x93] sm:$0xff] }
 0x119   : > { %10369 = vmatprep.mubr.msk.bf16.mxu1 %vm16237_vm1, %v2017_v23 }
 0x11f   : > { %10326 = vmatmul.mubr.msk.bf16.gmra.mxu0 %vm16237_vm1, %v2017_v23  ;;  %v1312_v23 = vld [vmem:[#allocation2 + $0x9b] sm:$0xff] }
 0x120   : > { %10370 = vmatmul.mubr.msk.bf16.gmra.mxu1 %vm16237_vm1, %v2371_v28  ;;  %10329 = vmatprep.mubr.msk.bf16.mxu0 %vm16237_vm1, %v2371_v28  ;;  %v2682_v28 = vpack.c.bf16 %v1312_v23, %v1311_v22 }
 0x121   : > { %10373 = vmatprep.mubr.msk.bf16.mxu1 %vm16237_vm1, %v2019_v29 }
 0x127   : > { %10330 = vmatmul.mubr.msk.bf16.gmra.mxu0 %vm16237_vm1, %v2019_v29  ;;  %v12216_v29 = vpack.c.bf16 %v3009_v25, %v3008_v24  ;;  %v2689_v24 = vpack.c.bf16 %v1326_v9, %v1325_v8  ;;  %v3704_v9 = vld [vmem:[#allocation2 + $0x45] sm:$0xff] }
 0x128   : > { %10374 = vmatmul.mubr.msk.bf16.gmra.mxu1 %vm16237_vm1, %v2373_v36  ;;  %10385 = vmatprep.mubr.msk.bf16.mxu0 %vm16237_vm1, %v2674_v37  ;;  %v3012_v36 = vld [vmem:[#allocation2 + $0xb4] sm:$0xff]  ;;  %v3013_v37 = vld [vmem:[#allocation2 + $0xbc] sm:$0xff] }
 0x129   : > { %10429 = vmatprep.mubr.msk.bf16.mxu1 %vm16237_vm1, %v3028_v38  ;;  %v2683_v38 = vpack.c.bf16 %v1314_v31, %v1313_v30  ;;  %v12226_v41 = vpack.c.bf16 %v3013_v37, %v3012_v36  ;;  %v1329_v37 = vld [vmem:[#allocation2 + $0x123] sm:$0xff] }
 0x12f   : > { %10386 = vmatmul.mubr.msk.bf16.vlgmr.msra.gmra.mxu0 %vm16237_vm1, %v2675_v47  ;;  %v1320_v47 = vld [vmem:[#allocation2 + $0xdb] sm:$0xff] }
 0x130   : > { %10466 = vmatpush3.bf16.msra.mxu0 %v12144_v60  ;;  %10430 = vmatmul.mubr.msk.bf16.vlgmr.msra.gmra.mxu1 %vm16237_vm1, %v12179_v48  ;;  %v2677_v60 = vpack.c.bf16 %v1302_v50, %v1301_v53  ;;  %v2685_v53 = vpack.c.bf16 %v1318_v43, %v1317_v42  ;;  %v2686_v50 = vpack.c.bf16 %v1320_v47, %v1319_v46  ;;  %v3026_v43 = vld [vmem:[#allocation2 + $0x124] sm:$0xff]  ;;  %v3701_v47 = vld [vmem:[#allocation2 + $0x2d] sm:$0xff] }
 0x131   : > { %10389 = vmatprep.mubr.msk.bf16.mxu0 %vm16237_vm1, %v2676_v49  ;;  %10433 = vmatprep.mubr.msk.bf16.mxu1 %vm16237_vm1, %v12181_v51  ;;  %v3016_v49 = vld [vmem:[#allocation2 + $0xd4] sm:$0xff]  ;;  %v3700_v46 = vld [vmem:[#allocation2 + $0x25] sm:$0xff] }
 0x132   : > { %10467 = vmatprep.subr.bf16.mxu0 %v11253_v52  ;;  %10510 = vmatpush3.bf16.msra.mxu1 %v12147_v61  ;;  %v1305_v61 = vld [vmem:[#allocation2 + $0x63] sm:$0xff] }
 0x133   : > { %10511 = vmatprep.subr.bf16.mxu1 %v11257_v54  ;;  %v2679_v14 = vpack.c.bf16 %v1306_v6, %v1305_v61 }
 0x134   : > { %10468 = vmatpush3.bf16.msra.mxu0 %v11253_v52  ;;  %v3017_v52 = vld [vmem:[#allocation2 + $0xdc] sm:$0xff] }
 0x135   : > { %10469 = vmatprep.subr.bf16.mxu0 %v11254_v59  ;;  %v12236_v55 = vpack.c.bf16 %v3017_v52, %v3016_v49 }
 0x136   : > { %10512 = vmatpush3.bf16.msra.mxu1 %v11257_v54  ;;  %v12234_v54 = vpack.c.bf16 %v3015_v45, %v3014_v44  ;;  %v3027_v44 = vld [vmem:[#allocation2 + $0x12c] sm:$0xff] }
 0x137   : > { %10390 = vmatmul.mubr.msk.bf16.gmra.mxu0 %vm16237_vm1, %v2677_v60  ;;  %10513 = vmatprep.subr.bf16.mxu1 %v11258_v0  ;;  %v3020_v60 = vld [vmem:[#allocation2 + $0xf4] sm:$0xff] }
 0x138   : > { %10434 = vmatmul.mubr.msk.bf16.gmra.mxu1 %vm16237_vm1, %v12191_v1  ;;  %10393 = vmatprep.mubr.msk.bf16.mxu0 %vm16237_vm1, %v2678_v2  ;;  %v2687_v2 = vpack.c.bf16 %v1322_v57, %v1321_v56  ;;  %v12276_v56 = vpack.c.bf16 %v3027_v44, %v3026_v43  ;;  %v3709_v43 = vld [vmem:[#allocation2 + $0x6d] sm:$0xff] }
 0x139   : > { %10437 = vmatprep.mubr.msk.bf16.mxu1 %vm16237_vm1, %v12193_v3  ;;  %10470 = vmatpush3.bf16.msra.mxu0 %v11254_v59  ;;  %v3019_v59 = vld [vmem:[#allocation2 + $0xec] sm:$0xff] }
 0x13a   : > { %10471 = vmatprep.subr.bf16.mxu0 %v11255_v4  ;;  %10514 = vmatpush3.bf16.msra.mxu1 %v11258_v0  ;;  %v3021_v0 = vld [vmem:[#allocation2 + $0xfc] sm:$0xff] }
 0x13b   : > { %10515 = vmatprep.subr.bf16.mxu1 %v11259_v5  ;;  %v12246_v61 = vpack.c.bf16 %v3021_v0, %v3020_v60 }
 0x13d   : > { %10472 = vmatpush3.bf16.msra.mxu0 %v11255_v4  ;;  %v12244_v4 = vpack.c.bf16 %v3019_v59, %v3018_v58  ;;  %v3736_v59 = vpack.c.bf16 %v3701_v47, %v3700_v46 }
 0x13e   : > { %10516 = vmatpush3.bf16.msra.mxu1 %v11259_v5  ;;  %10553 = vmatprep.subr.bf16.mxu0 %v12201_v13  ;;  %v2688_v5 = vpack.c.bf16 %v1324_v63, %v1323_v62 }
 0x13f   : > { %10394 = vmatmul.mubr.msk.bf16.gmra.mxu0 %vm16237_vm1, %v2679_v14  ;;  %v3023_v14 = vld [vmem:[#allocation2 + $0x10c] sm:$0xff] }
 0x140   : > { %10438 = vmatmul.mubr.msk.bf16.gmra.mxu1 %vm16237_vm1, %v12203_v15  ;;  %10397 = vmatprep.mubr.msk.bf16.mxu0 %vm16237_vm1, %v2680_v16  ;;  %v1327_v16 = vld [vmem:[#allocation2 + $0x113] sm:$0xff] }
 0x141   : > { %10441 = vmatprep.mubr.msk.bf16.mxu1 %vm16237_vm1, %v12205_v17 }
 0x147   : > { %10398 = vmatmul.mubr.msk.bf16.gmra.mxu0 %vm16237_vm1, %v2681_v26  ;;  %v12258_v26 = vpack.c.bf16 %v3023_v14, %v3022_v10  ;;  %v3705_v10 = vld [vmem:[#allocation2 + $0x4d] sm:$0xff] }
 0x148   : > { %10442 = vmatmul.mubr.msk.bf16.gmra.mxu1 %vm16237_vm1, %v12214_v27  ;;  %10401 = vmatprep.mubr.msk.bf16.mxu0 %vm16237_vm1, %v2682_v28  ;;  %v2690_v28 = vpack.c.bf16 %v1328_v18, %v1327_v16  ;;  %v3738_v21 = vpack.c.bf16 %v3705_v10, %v3704_v9 }
 0x149   : > { %10445 = vmatprep.mubr.msk.bf16.mxu1 %vm16237_vm1, %v12216_v29 }
 0x14f   : > { %10402 = vmatmul.mubr.msk.bf16.gmra.mxu0 %vm16237_vm1, %v2683_v38  ;;  %v1330_v38 = vld [vmem:[#allocation2 + $0x12b] sm:$0xff] }
 0x150   : > { %10446 = vmatmul.mubr.msk.bf16.gmra.mxu1 %vm16237_vm1, %v12224_v39  ;;  %10405 = vmatprep.mubr.msk.bf16.mxu0 %vm16237_vm1, %v2684_v40 }
 0x151   : > { %10449 = vmatprep.mubr.msk.bf16.mxu1 %vm16237_vm1, %v12226_v41 }
 0x157   : > { %10406 = vmatmul.mubr.msk.bf16.gmra.mxu0 %vm16237_vm1, %v2685_v53  ;;  %v2691_v53 = vpack.c.bf16 %v1330_v38, %v1329_v37  ;;  %v11262_v37 = vld [vmem:[#allocation8 + $0x108] sm:$0xff]  }
 0x158   : > { %10450 = vmatmul.mubr.msk.bf16.gmra.mxu1 %vm16237_vm1, %v12234_v54  ;;  %10409 = vmatprep.mubr.msk.bf16.mxu0 %vm16237_vm1, %v2686_v50 }
 0x159   : > { %10453 = vmatprep.mubr.msk.bf16.mxu1 %vm16237_vm1, %v12236_v55 }
 0x15f   : > { %v10211_v6 = vpop.f32.mrf.mxu0  ;;  %10410 = vmatmul.mubr.msk.bf16.gmra.mxu0 %vm16237_vm1, %v2687_v2 }
 0x160   : > { %v10255_v7 = vpop.f32.mrf.mxu1  ;;  %10454 = vmatmul.mubr.msk.bf16.gmra.mxu1 %vm16237_vm1, %v12244_v4  ;;  %10413 = vmatprep.mubr.msk.bf16.mxu0 %vm16237_vm1, %v2688_v5 }
 0x161   : > { %v12252_v11 = vadd.f32 %v10255_v7, %v10211_v6  ;;  %v1568_v12 = vpop.f32.mrf.mxu0  ;;  %10457 = vmatprep.mubr.msk.bf16.mxu1 %vm16237_vm1, %v12246_v61  ;;  %v3702_v6 = vld [vmem:[#allocation2 + $0x35] sm:$0xff]  ;;  %v3703_v7 = vld [vmem:[#allocation2 + $0x3d] sm:$0xff] }
 0x162   : > { %v1823_v19 = vpop.f32.mrf.mxu1  ;;  %v3737_v18 = vpack.c.bf16 %v3703_v7, %v3702_v6  ;;  %v3712_v7 = vld [vmem:[#allocation2 + $0x85] sm:$0xff] }
 0x163   : > { %v12256_v22 = vadd.f32 %v1823_v19, %v1568_v12  ;;  %v10212_v23 = vpop.f32.mrf.mxu0 }
 0x164   : > { %v10256_v25 = vpop.f32.mrf.mxu1 }
 0x165   : > { %v12260_v30 = vadd.f32 %v10256_v25, %v10212_v23  ;;  %v1571_v31 = vpop.f32.mrf.mxu0  ;;  %v11261_v23 = vld [vmem:[#allocation8 + $0x110] sm:$0xff]  }
 0x166   : > { %v1826_v33 = vpop.f32.mrf.mxu1 }
 0x167   : > { %v12264_v34 = vadd.f32 %v1826_v33, %v1571_v31  ;;  %v10215_v35 = vpop.f32.mrf.mxu0  ;;  %10414 = vmatmul.mubr.msk.bf16.gmra.mxu0 %vm16237_vm1, %v2689_v24 }
 0x168   : > { %v10259_v36 = vpop.f32.mrf.mxu1  ;;  %10458 = vmatmul.mubr.msk.bf16.gmra.mxu1 %vm16237_vm1, %v12258_v26  ;;  %10417 = vmatprep.mubr.msk.bf16.mxu0 %vm16237_vm1, %v2690_v28 }
 0x169   : > { %v12270_v40 = vadd.f32 %v10259_v36, %v10215_v35  ;;  %v1584_v42 = vpop.f32.mrf.mxu0  ;;  %10461 = vmatprep.mubr.msk.bf16.mxu1 %vm16237_vm1, %v12262_v32  ;;  %v3706_v35 = vld [vmem:[#allocation2 + $0x55] sm:$0xff]  ;;  %v3707_v36 = vld [vmem:[#allocation2 + $0x5d] sm:$0xff] }
 0x16a   : > { %v1839_v45 = vpop.f32.mrf.mxu1 }
 0x16b   : > { %v12274_v49 = vadd.f32 %v1839_v45, %v1584_v42  ;;  %v10216_v52 = vpop.f32.mrf.mxu0  ;;  %v3708_v42 = vld [vmem:[#allocation2 + $0x65] sm:$0xff]  ;;  %v3739_v45 = vpack.c.bf16 %v3707_v36, %v3706_v35  ;;  %v3715_v35 = vld [vmem:[#allocation2 + $0x9d] sm:$0xff] }
 0x16c   : > { %v10260_v50 = vpop.f32.mrf.mxu1 }
 0x16d   : > { %v12278_v57 = vadd.f32 %v10260_v50, %v10216_v52  ;;  %v1587_v58 = vpop.f32.mrf.mxu0  ;;  %v3740_v52 = vpack.c.bf16 %v3709_v43, %v3708_v42 }
 0x16e   : > { %v1842_v62 = vpop.f32.mrf.mxu1 }
 0x16f   : > { %v12280_v63 = vadd.f32 %v1842_v62, %v1587_v58  ;;  %v10219_v60 = vpop.f32.mrf.mxu0  ;;  %10418 = vmatmul.mubr.msk.bf16.gmra.mxu0 %vm16237_vm1, %v2691_v53  ;;  %v11263_v53 = vld [vmem:[#allocation8 + $0x100] sm:$0xff]  }
 0x170   : > { %v10263_v0 = vpop.f32.mrf.mxu1  ;;  %10462 = vmatmul.mubr.msk.bf16.gmra.mxu1 %vm16237_vm1, %v12276_v56  ;;  %10473 = vmatprep.mubr.msk.bf16.mxu0 %vm16237_vm1, %v12179_v48 }
 0x171   : > { %v12287_v2 = vadd.f32 %v10263_v0, %v10219_v60  ;;  %v1600_v5 = vpop.f32.mrf.mxu0  ;;  %10517 = vmatprep.mubr.msk.bf16.mxu1 %vm16237_vm1, %v3736_v59  ;;  %v3710_v0 = vld [vmem:[#allocation2 + $0x75] sm:$0xff] }
 0x172   : > { %v1855_v8 = vpop.f32.mrf.mxu1 }
 0x173   : > { %v12290_v12 = vadd.f32 %v1855_v8, %v1600_v5  ;;  %v10220_v14 = vpop.f32.mrf.mxu0  ;;  %v3711_v5 = vld [vmem:[#allocation2 + $0x7d] sm:$0xff]  ;;  %v3713_v8 = vld [vmem:[#allocation2 + $0x8d] sm:$0xff] }
 0x174   : > { %v10264_v16 = vpop.f32.mrf.mxu1 }
 0x175   : > { %v12292_v19 = vadd.f32 %v10264_v16, %v10220_v14  ;;  %v1603_v20 = vpop.f32.mrf.mxu0  ;;  %v3741_v14 = vpack.c.bf16 %v3711_v5, %v3710_v0  ;;  %v3719_v0 = vld [vmem:[#allocation2 + $0xbd] sm:$0xff] }
 0x176   : > { %v1858_v48 = vpop.f32.mrf.mxu1 }
 0x177   : > { %v12294_v24 = vadd.f32 %v1858_v48, %v1603_v20  ;;  %v10223_v25 = vpop.f32.mrf.mxu0  ;;  %10474 = vmatmul.mubr.msk.bf16.vlgmr.msra.gmra.mxu0 %vm16237_vm1, %v12181_v51 }
 0x178   : > { %v10267_v28 = vpop.f32.mrf.mxu1  ;;  %10554 = vmatpush3.bf16.msra.mxu0 %v12201_v13  ;;  %10518 = vmatmul.mubr.msk.bf16.vlgmr.msra.gmra.mxu1 %vm16237_vm1, %v3737_v18  ;;  %v3742_v18 = vpack.c.bf16 %v3713_v8, %v3712_v7  ;;  %v3721_v7 = vld [vmem:[#allocation2 + $0xcd] sm:$0xff] }
 0x179   : > { %v12300_v31 = vadd.f32 %v10267_v28, %v10223_v25  ;;  %v1616_v33 = vpop.f32.mrf.mxu0  ;;  %10477 = vmatprep.mubr.msk.bf16.mxu0 %vm16237_vm1, %v12191_v1  ;;  %10521 = vmatprep.mubr.msk.bf16.mxu1 %vm16237_vm1, %v3738_v21 }
 0x17a   : > { %v1871_v38 = vpop.f32.mrf.mxu1  ;;  %10555 = vmatprep.subr.bf16.mxu0 %v11261_v23 }
 0x17b   : > { %v12305_v51 = vadd.f32 %v1871_v38, %v1616_v33  ;;  %v10224_v13 = vpop.f32.mrf.mxu0  ;;  %v3714_v33 = vld [vmem:[#allocation2 + $0x95] sm:$0xff]  ;;  %v3717_v38 = vld [vmem:[#allocation2 + $0xad] sm:$0xff] }
 0x17c   : > { %v10268_v44 = vpop.f32.mrf.mxu1  ;;  %10556 = vmatpush3.bf16.msra.mxu0 %v11261_v23 }
 0x17d   : > { %v12307_v46 = vadd.f32 %v10268_v44, %v10224_v13  ;;  %v1619_v47 = vpop.f32.mrf.mxu0  ;;  %10557 = vmatprep.subr.bf16.mxu0 %v11262_v37  ;;  %v3743_v13 = vpack.c.bf16 %v3715_v35, %v3714_v33  ;;  %v3722_v35 = vld [vmem:[#allocation2 + $0xd5] sm:$0xff] }
 0x17e   : > { %v1874_v1 = vpop.f32.mrf.mxu1 }
 0x17f   : > { %v12309_v50 = vadd.f32 %v1874_v1, %v1619_v47  ;;  %v10227_v58 = vpop.f32.mrf.mxu0  ;;  %10478 = vmatmul.mubr.msk.bf16.gmra.mxu0 %vm16237_vm1, %v12193_v3 }
 0x180   : > { %v10271_v59 = vpop.f32.mrf.mxu1  ;;  %10522 = vmatmul.mubr.msk.bf16.gmra.mxu1 %vm16237_vm1, %v3739_v45  ;;  %10481 = vmatprep.mubr.msk.bf16.mxu0 %vm16237_vm1, %v12203_v15 }
 0x181   : > { %v12316_v62 = vadd.f32 %v10271_v59, %v10227_v58  ;;  %v1632_v60 = vpop.f32.mrf.mxu0  ;;  %10525 = vmatprep.mubr.msk.bf16.mxu1 %vm16237_vm1, %v3740_v52  ;;  %10558 = vmatpush3.bf16.msra.mxu0 %v11262_v37  ;;  %v3716_v37 = vld [vmem:[#allocation2 + $0xa5] sm:$0xff] }
 0x182   : > { %v1887_v6 = vpop.f32.mrf.mxu1  ;;  %10559 = vmatprep.subr.bf16.mxu0 %v11263_v53  ;;  %v3744_v47 = vpack.c.bf16 %v3717_v38, %v3716_v37  ;;  %v3724_v38 = vld [vmem:[#allocation2 + $0xe5] sm:$0xff] }
 0x183   : > { %v12319_v9 = vadd.f32 %v1887_v6, %v1632_v60  ;;  %v10228_v3 = vpop.f32.mrf.mxu0  ;;  %v3718_v60 = vld [vmem:[#allocation2 + $0xb5] sm:$0xff]  ;;  %v3720_v6 = vld [vmem:[#allocation2 + $0xc5] sm:$0xff] }
 0x184   : > { %v10272_v10 = vpop.f32.mrf.mxu1 }
 0x185   : > { %v12321_v16 = vadd.f32 %v10272_v10, %v10228_v3  ;;  %v1635_v15 = vpop.f32.mrf.mxu0  ;;  %10560 = vmatpush3.bf16.msra.mxu0 %v11263_v53  ;;  %v3745_v10 = vpack.c.bf16 %v3719_v0, %v3718_v60 }
 0x186   : > { %v1890_v20 = vpop.f32.mrf.mxu1 }
 0x187   : > { %v12323_v21 = vadd.f32 %v1890_v20, %v1635_v15  ;;  %v10231_v48 = vpop.f32.mrf.mxu0  ;;  %10482 = vmatmul.mubr.msk.bf16.gmra.mxu0 %vm16237_vm1, %v12205_v17 }
 0x188   : > { %v10275_v23 = vpop.f32.mrf.mxu1  ;;  %10526 = vmatmul.mubr.msk.bf16.gmra.mxu1 %vm16237_vm1, %v3741_v14  ;;  %10485 = vmatprep.mubr.msk.bf16.mxu0 %vm16237_vm1, %v12214_v27 }
 0x189   : > { %v12330_v25 = vadd.f32 %v10275_v23, %v10231_v48  ;;  %v1648_v28 = vpop.f32.mrf.mxu0  ;;  %10529 = vmatprep.mubr.msk.bf16.mxu1 %vm16237_vm1, %v3742_v18  ;;  %v3746_v18 = vpack.c.bf16 %v3721_v7, %v3720_v6  ;;  %v3726_v6 = vld [vmem:[#allocation2 + $0xf5] sm:$0xff]  ;;  %v3727_v7 = vld [vmem:[#allocation2 + $0xfd] sm:$0xff] }
 0x18a   : > { %v1903_v36 = vpop.f32.mrf.mxu1 }
 0x18b   : > { %v12333_v42 = vadd.f32 %v1903_v36, %v1648_v28  ;;  %v10232_v43 = vpop.f32.mrf.mxu0  ;;  %v3723_v36 = vld [vmem:[#allocation2 + $0xdd] sm:$0xff] }
 0x18c   : > { %v10276_v17 = vpop.f32.mrf.mxu1 }
 0x18d   : > { %v12335_v44 = vadd.f32 %v10276_v17, %v10232_v43  ;;  %v1651_v45 = vpop.f32.mrf.mxu0  ;;  %v3725_v43 = vld [vmem:[#allocation2 + $0xed] sm:$0xff] }
 0x18e   : > { %v1906_v27 = vpop.f32.mrf.mxu1 }
 0x18f   : > { %v12337_v52 = vadd.f32 %v1906_v27, %v1651_v45  ;;  %v10235_v1 = vpop.f32.mrf.mxu0  ;;  %10486 = vmatmul.mubr.msk.bf16.gmra.mxu0 %vm16237_vm1, %v12216_v29  ;;  %v3747_v45 = vpack.c.bf16 %v3723_v36, %v3722_v35 }
 0x190   : > { %v10279_v53 = vpop.f32.mrf.mxu1  ;;  %10530 = vmatmul.mubr.msk.bf16.gmra.mxu1 %vm16237_vm1, %v3743_v13  ;;  %10489 = vmatprep.mubr.msk.bf16.mxu0 %vm16237_vm1, %v12224_v39 }
 0x191   : > { %v12344_v58 = vadd.f32 %v10279_v53, %v10235_v1  ;;  %v1664_v59 = vpop.f32.mrf.mxu0  ;;  %10533 = vmatprep.mubr.msk.bf16.mxu1 %vm16237_vm1, %v3744_v47  ;;  %v3748_v1 = vpack.c.bf16 %v3725_v43, %v3724_v38  ;;  %v3730_v43 = vld [vmem:[#allocation2 + $0x115] sm:$0xff] }
 0x192   : > { %v1919_v5 = vpop.f32.mrf.mxu1 }
 0x193   : > { %v12347_v8 = vadd.f32 %v1919_v5, %v1664_v59  ;;  %v10236_v3 = vpop.f32.mrf.mxu0 }
 0x194   : > { %v10280_v29 = vpop.f32.mrf.mxu1 }
 0x195   : > { %v12349_v14 = vadd.f32 %v10280_v29, %v10236_v3  ;;  %v1667_v15 = vpop.f32.mrf.mxu0  ;;  %v3728_v29 = vld [vmem:[#allocation2 + $0x105] sm:$0xff] }
 0x196   : > { %v1922_v39 = vpop.f32.mrf.mxu1 }
 0x197   : > { %v12351_v20 = vadd.f32 %v1922_v39, %v1667_v15  ;;  %v10239_v48 = vpop.f32.mrf.mxu0  ;;  %10490 = vmatmul.mubr.msk.bf16.gmra.mxu0 %vm16237_vm1, %v12226_v41  ;;  %v3749_v39 = vpack.c.bf16 %v3727_v7, %v3726_v6 }
 0x198   : > { %v10283_v23 = vpop.f32.mrf.mxu1  ;;  %10534 = vmatmul.mubr.msk.bf16.gmra.mxu1 %vm16237_vm1, %v3745_v10  ;;  %10493 = vmatprep.mubr.msk.bf16.mxu0 %vm16237_vm1, %v12234_v54  ;;  %v3729_v10 = vld [vmem:[#allocation2 + $0x10d] sm:$0xff] }
 0x199   : > { %v12358_v28 = vadd.f32 %v10283_v23, %v10239_v48  ;;  %v1680_v33 = vpop.f32.mrf.mxu0  ;;  %10537 = vmatprep.mubr.msk.bf16.mxu1 %vm16237_vm1, %v3746_v18 }
 0x19a   : > { %v1935_v37 = vpop.f32.mrf.mxu1 }
 0x19b   : > { %v12361_v17 = vadd.f32 %v1935_v37, %v1680_v33  ;;  %v10240_v13 = vpop.f32.mrf.mxu0 }
 0x19c   : > { %v10284_v41 = vpop.f32.mrf.mxu1 }
 0x19d   : > { %v12363_v47 = vadd.f32 %v10284_v41, %v10240_v13  ;;  %v1683_v27 = vpop.f32.mrf.mxu0  ;;  %v3731_v13 = vld [vmem:[#allocation2 + $0x11d] sm:$0xff] }
 0x19e   : > { %v1938_v54 = vpop.f32.mrf.mxu1 }
 0x19f   : > { %v12365_v53 = vadd.f32 %v1938_v54, %v1683_v27  ;;  %v10243_v59 = vpop.f32.mrf.mxu0  ;;  %10494 = vmatmul.mubr.msk.bf16.gmra.mxu0 %vm16237_vm1, %v12236_v55 }
 0x1a0   : > { %v10287_v60 = vpop.f32.mrf.mxu1  ;;  %10538 = vmatmul.mubr.msk.bf16.gmra.mxu1 %vm16237_vm1, %v3747_v45  ;;  %10497 = vmatprep.mubr.msk.bf16.mxu0 %vm16237_vm1, %v12244_v4  ;;  %v3750_v4 = vpack.c.bf16 %v3729_v10, %v3728_v29 }
 0x1a1   : > { %v12372_v0 = vadd.f32 %v10287_v60, %v10243_v59  ;;  %v1696_v5 = vpop.f32.mrf.mxu0  ;;  %10541 = vmatprep.mubr.msk.bf16.mxu1 %vm16237_vm1, %v3748_v1  ;;  %v3732_v1 = vld [vmem:[#allocation2 + $0x125] sm:$0xff] }
 0x1a2   : > { %v1951_v3 = vpop.f32.mrf.mxu1 }
 0x1a3   : > { %v12375_v15 = vadd.f32 %v1951_v3, %v1696_v5  ;;  %v10244_v18 = vpop.f32.mrf.mxu0  ;;  %v3751_v5 = vpack.c.bf16 %v3731_v13, %v3730_v43 }
 0x1a4   : > { %v10288_v55 = vpop.f32.mrf.mxu1 }
 0x1a5   : > { %v12377_v48 = vadd.f32 %v10288_v55, %v10244_v18  ;;  %v12379_v23 = vpop.f32.mrf.mxu0  ;;  %v3380_v18 = vld [vmem:[#allocation2 + $0x134] sm:$0xff]  ;;  %v3381_v55 = vld [vmem:[#allocation2 + $0x13c] sm:$0xff] }
 0x1a6   : > { %v12381_v33 = vpop.f32.mrf.mxu1  ;;  %v3399_v43 = vpack.c.bf16 %v3381_v55, %v3380_v18 }
 0x1a7   : > { %v10299_v35 = vpop.f32.mrf.mxu0  ;;  %10498 = vmatmul.mubr.msk.bf16.gmra.mxu0 %vm16237_vm1, %v12246_v61  ;;  %v3733_v61 = vld [vmem:[#allocation2 + $0x12d] sm:$0xff] }
 0x1a8   : > { %v2286_v36 = vadd.f32 %v10299_v35, %v12252_v11  ;;  %v10343_v37 = vpop.f32.mrf.mxu1  ;;  %10542 = vmatmul.mubr.msk.bf16.gmra.mxu1 %vm16237_vm1, %v3749_v39  ;;  %10501 = vmatprep.mubr.msk.bf16.mxu0 %vm16237_vm1, %v12258_v26  ;;  %v3752_v6 = vpack.c.bf16 %v3733_v61, %v3732_v1  ;;  %v4054_v35 = vld [vmem:[#allocation2 + $0x26] sm:$0xff] }
 0x1a9   : > { %v2141_v38 = vpop.f32.mrf.mxu0  ;;  %10545 = vmatprep.mubr.msk.bf16.mxu1 %vm16237_vm1, %v3750_v4  ;;  %v3735_v4 = vld [vmem:[#allocation2 + $0x13d] sm:$0xff] }
 0x1aa   : > { %v2284_v41 = vadd.f32 %v2141_v38, %v12256_v22  ;;  %v12391_v45 = vadd.f32 %v10343_v37, %v2286_v36  ;;  %v2495_v27 = vpop.f32.mrf.mxu1  ;;  %v4055_v36 = vld [vmem:[#allocation2 + $0x2e] sm:$0xff] }
 0x1ab   : > { %v10300_v54 = vpop.f32.mrf.mxu0  ;;  %v4090_v1 = vpack.c.bf16 %v4055_v36, %v4054_v35 }
 0x1ac   : > { %v2287_v11 = vadd.f32 %v10300_v54, %v12260_v30  ;;  %v12394_v59 = vadd.f32 %v2495_v27, %v2284_v41  ;;  %v10344_v60 = vpop.f32.mrf.mxu1 }
 0x1ad   : > { %v2144_v26 = vpop.f32.mrf.mxu0 }
 0x1ae   : > { %v12397_v7 = vadd.f32 %v2144_v26, %v12264_v34  ;;  %v12399_v3 = vadd.f32 %v10344_v60, %v2287_v11  ;;  %v12401_v22 = vpop.f32.mrf.mxu1  ;;  %v3734_v34 = vld [vmem:[#allocation2 + $0x135] sm:$0xff] }
 0x1af   : > { %v10303_v29 = vpop.f32.mrf.mxu0  ;;  %10502 = vmatmul.mubr.msk.bf16.gmra.mxu0 %vm16237_vm1, %v12262_v32  ;;  %v3753_v27 = vpack.c.bf16 %v3735_v4, %v3734_v34 }
 0x1b0   : > { %v2290_v10 = vadd.f32 %v10303_v29, %v12270_v40  ;;  %v10347_v30 = vpop.f32.mrf.mxu1  ;;  %10546 = vmatmul.mubr.msk.bf16.gmra.mxu1 %vm16237_vm1, %v3751_v5  ;;  %10505 = vmatprep.mubr.msk.bf16.mxu0 %vm16237_vm1, %v12276_v56 }
 0x1b1   : > { %v2157_v39 = vpop.f32.mrf.mxu0  ;;  %10549 = vmatprep.mubr.msk.bf16.mxu1 %vm16237_vm1, %v3752_v6  ;;  %v4057_v6 = vld [vmem:[#allocation2 + $0x3e] sm:$0xff] }
 0x1b2   : > { %v2288_v37 = vadd.f32 %v2157_v39, %v12274_v49  ;;  %v12411_v32 = vadd.f32 %v10347_v30, %v2290_v10  ;;  %v2511_v40 = vpop.f32.mrf.mxu1  ;;  %v4058_v10 = vld [vmem:[#allocation2 + $0x46] sm:$0xff] }
 0x1b3   : > { %v10304_v38 = vpop.f32.mrf.mxu0 }
 0x1b4   : > { %v2291_v13 = vadd.f32 %v10304_v38, %v12278_v57  ;;  %v12414_v41 = vadd.f32 %v2511_v40, %v2288_v37  ;;  %v10348_v56 = vpop.f32.mrf.mxu1  ;;  %v4056_v57 = vld [vmem:[#allocation2 + $0x36] sm:$0xff] }
 0x1b5   : > { %v2160_v61 = vpop.f32.mrf.mxu0  ;;  %v4091_v39 = vpack.c.bf16 %v4057_v6, %v4056_v57 }
 0x1b6   : > { %v12417_v54 = vadd.f32 %v2160_v61, %v12280_v63  ;;  %v12419_v11 = vadd.f32 %v10348_v56, %v2291_v13  ;;  %v12421_v60 = vpop.f32.mrf.mxu1  ;;  %v4059_v63 = vld [vmem:[#allocation2 + $0x4e] sm:$0xff]  ;;  %v4062_v61 = vld [vmem:[#allocation2 + $0x66] sm:$0xff] }
 0x1b7   : > { %v10307_v49 = vpop.f32.mrf.mxu0  ;;  %10506 = vmatmul.mubr.msk.bf16.gmra.mxu0 %vm16237_vm1, %v3399_v43  ;;  %v4092_v36 = vpack.c.bf16 %v4059_v63, %v4058_v10 }
 0x1b8   : > { %v2294_v5 = vadd.f32 %v10307_v49, %v12287_v2  ;;  %v10351_v26 = vpop.f32.mrf.mxu1  ;;  %10550 = vmatmul.mubr.msk.bf16.gmra.mxu1 %vm16237_vm1, %v3753_v27  ;;  %10561 = vmatprep.mubr.msk.bf16.mxu0 %vm16237_vm1, %v4090_v1  ;;  %v4061_v27 = vld [vmem:[#allocation2 + $0x5e] sm:$0xff]  ;;  %v4063_v49 = vld [vmem:[#allocation2 + $0x6e] sm:$0xff] }
 0x1b9   : > { %v2173_v29 = vpop.f32.mrf.mxu0  ;;  %v4094_v63 = vpack.c.bf16 %v4063_v49, %v4062_v61 }
 0x1ba   : > { %v2292_v30 = vadd.f32 %v2173_v29, %v12290_v12  ;;  %v12428_v18 = vadd.f32 %v10351_v26, %v2294_v5  ;;  %v2527_v55 = vpop.f32.mrf.mxu1 }
 0x1bb   : > { %v10308_v34 = vpop.f32.mrf.mxu0 }
 0x1bc   : > { %v2295_v4 = vadd.f32 %v10308_v34, %v12292_v19  ;;  %v12431_v2 = vadd.f32 %v2527_v55, %v2292_v30  ;;  %v10352_v35 = vpop.f32.mrf.mxu1  ;;  %v4060_v19 = vld [vmem:[#allocation2 + $0x56] sm:$0xff] }
 0x1bd   : > { %v2176_v37 = vpop.f32.mrf.mxu0  ;;  %v4093_v6 = vpack.c.bf16 %v4061_v27, %v4060_v19 }
 0x1be   : > { %v12434_v40 = vadd.f32 %v2176_v37, %v12294_v24  ;;  %v12436_v38 = vadd.f32 %v10352_v35, %v2295_v4  ;;  %v12438_v43 = vpop.f32.mrf.mxu1 }
 0x1bf   : > { %v10311_v12 = vpop.f32.mrf.mxu0  ;;  %10562 = vmatmul.mubr.msk.bf16.vlgmr.msra.gmra.mxu0 %vm16237_vm1, %v4091_v39 }
 0x1c0   : > { %v2298_v13 = vadd.f32 %v10311_v12, %v12300_v31  ;;  %v10355_v56 = vpop.f32.mrf.mxu1  ;;  %10565 = vmatprep.mubr.msk.bf16.mxu0 %vm16237_vm1, %v4092_v36  ;;  %v4065_v36 = vld [vmem:[#allocation2 + $0x7e] sm:$0xff]  ;;  %v4066_v12 = vld [vmem:[#allocation2 + $0x86] sm:$0xff] }
 0x1c1   : > { %v2189_v1 = vpop.f32.mrf.mxu0 }
 0x1c2   : > { %v2296_v24 = vadd.f32 %v2189_v1, %v12305_v51  ;;  %v12444_v5 = vadd.f32 %v10355_v56, %v2298_v13  ;;  %v2543_v26 = vpop.f32.mrf.mxu1  ;;  %v4067_v13 = vld [vmem:[#allocation2 + $0x8e] sm:$0xff] }
 0x1c3   : > { %v10312_v57 = vpop.f32.mrf.mxu0 }
 0x1c4   : > { %v2299_v29 = vadd.f32 %v10312_v57, %v12307_v46  ;;  %v12447_v10 = vadd.f32 %v2543_v26, %v2296_v24  ;;  %v10356_v31 = vpop.f32.mrf.mxu1  ;;  %v4064_v46 = vld [vmem:[#allocation2 + $0x76] sm:$0xff]  ;;  %v4096_v24 = vpack.c.bf16 %v4067_v13, %v4066_v12 }
 0x1c5   : > { %v2192_v30 = vpop.f32.mrf.mxu0  ;;  %v4095_v1 = vpack.c.bf16 %v4065_v36, %v4064_v46 }
 0x1c6   : > { %v12450_v55 = vadd.f32 %v2192_v30, %v12309_v50  ;;  %v12452_v34 = vadd.f32 %v10356_v31, %v2299_v29  ;;  %v12454_v39 = vpop.f32.mrf.mxu1  ;;  %v4069_v30 = vld [vmem:[#allocation2 + $0x9e] sm:$0xff] }
 0x1c7   : > { %v10315_v51 = vpop.f32.mrf.mxu0  ;;  %10566 = vmatmul.mubr.msk.bf16.gmra.mxu0 %vm16237_vm1, %v4093_v6 }
 0x1c8   : > { %v2302_v4 = vadd.f32 %v10315_v51, %v12316_v62  ;;  %v10359_v35 = vpop.f32.mrf.mxu1  ;;  %10569 = vmatprep.mubr.msk.bf16.mxu0 %vm16237_vm1, %v4094_v63 }
 0x1c9   : > { %v2205_v37 = vpop.f32.mrf.mxu0 }
 0x1ca   : > { %v2300_v50 = vadd.f32 %v2205_v37, %v12319_v9  ;;  %v12460_v56 = vadd.f32 %v10359_v35, %v2302_v4  ;;  %v2559_v19 = vpop.f32.mrf.mxu1  ;;  %v4070_v4 = vld [vmem:[#allocation2 + $0xa6] sm:$0xff]  ;;  %v4071_v35 = vld [vmem:[#allocation2 + $0xae] sm:$0xff]  ;;  %v11264_v37 = vld [vmem:[#allocation10 + $0x38] sm:$0xff]  }
 0x1cb   : > { %v10316_v27 = vpop.f32.mrf.mxu0  ;;  %10597 = vmatprep.subr.bf16.mxu1 %v11264_v37 }
 0x1cc   : > { %v2303_v61 = vadd.f32 %v10316_v27, %v12321_v16  ;;  %v12463_v49 = vadd.f32 %v2559_v19, %v2300_v50  ;;  %v10360_v62 = vpop.f32.mrf.mxu1  ;;  %v4068_v16 = vld [vmem:[#allocation2 + $0x96] sm:$0xff]  ;;  %v4098_v27 = vpack.c.bf16 %v4071_v35, %v4070_v4  ;;  %10598 = vmatpush3.bf16.msra.mxu1 %v11264_v37 }
 0x1cd   : > { %v2208_v26 = vpop.f32.mrf.mxu0  ;;  %v4097_v13 = vpack.c.bf16 %v4069_v30, %v4068_v16  ;;  %v4074_v16 = vld [vmem:[#allocation2 + $0xc6] sm:$0xff]  ;;  %v4075_v30 = vld [vmem:[#allocation2 + $0xce] sm:$0xff] }
 0x1ce   : > { %v12466_v57 = vadd.f32 %v2208_v26, %v12323_v21  ;;  %v12468_v6 = vadd.f32 %v10360_v62, %v2303_v61  ;;  %v12470_v29 = vpop.f32.mrf.mxu1 }
 0x1cf   : > { %v10319_v9 = vpop.f32.mrf.mxu0  ;;  %10570 = vmatmul.mubr.msk.bf16.gmra.mxu0 %vm16237_vm1, %v4095_v1 }
 0x1d0   : > { %v2306_v31 = vadd.f32 %v10319_v9, %v12330_v25  ;;  %v10363_v63 = vpop.f32.mrf.mxu1  ;;  %10573 = vmatprep.mubr.msk.bf16.mxu0 %vm16237_vm1, %v4096_v24  ;;  %v4072_v9 = vld [vmem:[#allocation2 + $0xb6] sm:$0xff] }
 0x1d1   : > { %v2221_v51 = vpop.f32.mrf.mxu0 }
 0x1d2   : > { %v2304_v21 = vadd.f32 %v2221_v51, %v12333_v42  ;;  %v12476_v46 = vadd.f32 %v10363_v63, %v2306_v31  ;;  %v2575_v36 = vpop.f32.mrf.mxu1  ;;  %v4073_v31 = vld [vmem:[#allocation2 + $0xbe] sm:$0xff] }
 0x1d3   : > { %v10320_v12 = vpop.f32.mrf.mxu0 }
 0x1d4   : > { %v2307_v50 = vadd.f32 %v10320_v12, %v12335_v44  ;;  %v12479_v19 = vadd.f32 %v2575_v36, %v2304_v21  ;;  %v10364_v25 = vpop.f32.mrf.mxu1  ;;  %v4099_v21 = vpack.c.bf16 %v4073_v31, %v4072_v9  ;;  %v4100_v12 = vpack.c.bf16 %v4075_v30, %v4074_v16  ;;  %v4078_v9 = vld [vmem:[#allocation2 + $0xe6] sm:$0xff]  ;;  %v4079_v31 = vld [vmem:[#allocation2 + $0xee] sm:$0xff] }
 0x1d5   : > { %v2224_v1 = vpop.f32.mrf.mxu0 }
 0x1d6   : > { %v12482_v61 = vadd.f32 %v2224_v1, %v12337_v52  ;;  %v12484_v62 = vadd.f32 %v10364_v25, %v2307_v50  ;;  %v12486_v42 = vpop.f32.mrf.mxu1 }
 0x1d7   : > { %v10323_v24 = vpop.f32.mrf.mxu0  ;;  %10574 = vmatmul.mubr.msk.bf16.gmra.mxu0 %vm16237_vm1, %v4097_v13 }
 0x1d8   : > { %v2310_v26 = vadd.f32 %v10323_v24, %v12344_v58  ;;  %v10367_v44 = vpop.f32.mrf.mxu1  ;;  %10577 = vmatprep.mubr.msk.bf16.mxu0 %vm16237_vm1, %v4098_v27 }
 0x1d9   : > { %v2237_v63 = vpop.f32.mrf.mxu0 }
 0x1da   : > { %v2308_v52 = vadd.f32 %v2237_v63, %v12347_v8  ;;  %v12492_v51 = vadd.f32 %v10367_v44, %v2310_v26  ;;  %v2591_v4 = vpop.f32.mrf.mxu1  ;;  %v4077_v26 = vld [vmem:[#allocation2 + $0xde] sm:$0xff] }
 0x1db   : > { %v10324_v35 = vpop.f32.mrf.mxu0 }
 0x1dc   : > { %v2311_v36 = vadd.f32 %v10324_v35, %v12349_v14  ;;  %v12495_v37 = vadd.f32 %v2591_v4, %v2308_v52  ;;  %v10368_v58 = vpop.f32.mrf.mxu1  ;;  %v4076_v14 = vld [vmem:[#allocation2 + $0xd6] sm:$0xff] }
 0x1dd   : > { %v2240_v13 = vpop.f32.mrf.mxu0  ;;  %v4101_v52 = vpack.c.bf16 %v4077_v26, %v4076_v14  ;;  %v4081_v14 = vld [vmem:[#allocation2 + $0xfe] sm:$0xff] }
 0x1de   : > { %v12498_v50 = vadd.f32 %v2240_v13, %v12351_v20  ;;  %v12500_v25 = vadd.f32 %v10368_v58, %v2311_v36  ;;  %v12502_v27 = vpop.f32.mrf.mxu1  ;;  %v11265_v36 = vld [vmem:[#allocation10 + $0x30] sm:$0xff]  }
 0x1df   : > { %v10327_v8 = vpop.f32.mrf.mxu0  ;;  %10578 = vmatmul.mubr.msk.bf16.gmra.mxu0 %vm16237_vm1, %v4099_v21  ;;  %v4102_v21 = vpack.c.bf16 %v4079_v31, %v4078_v9  ;;  %10599 = vmatprep.subr.bf16.mxu1 %v11265_v36 }
 0x1e0   : > { %v2314_v1 = vadd.f32 %v10327_v8, %v12358_v28  ;;  %v10371_v24 = vpop.f32.mrf.mxu1  ;;  %10581 = vmatprep.mubr.msk.bf16.mxu0 %vm16237_vm1, %v4100_v12  ;;  %10600 = vmatpush3.bf16.msra.mxu1 %v11265_v36 }
 0x1e1   : > { %v2253_v44 = vpop.f32.mrf.mxu0 }
 0x1e2   : > { %v2312_v20 = vadd.f32 %v2253_v44, %v12361_v17  ;;  %v12508_v63 = vadd.f32 %v10371_v24, %v2314_v1  ;;  %v2607_v16 = vpop.f32.mrf.mxu1  ;;  %v4080_v24 = vld [vmem:[#allocation2 + $0xf6] sm:$0xff]  ;;  %v4082_v44 = vld [vmem:[#allocation2 + $0x106] sm:$0xff] }
 0x1e3   : > { %v10328_v30 = vpop.f32.mrf.mxu0 }
 0x1e4   : > { %v2315_v4 = vadd.f32 %v10328_v30, %v12363_v47  ;;  %v12511_v35 = vadd.f32 %v2607_v16, %v2312_v20  ;;  %v10372_v28 = vpop.f32.mrf.mxu1  ;;  %v4103_v30 = vpack.c.bf16 %v4081_v14, %v4080_v24  ;;  %v4086_v14 = vld [vmem:[#allocation2 + $0x126] sm:$0xff] }
 0x1e5   : > { %v2256_v58 = vpop.f32.mrf.mxu0 }
 0x1e6   : > { %v12514_v12 = vadd.f32 %v2256_v58, %v12365_v53  ;;  %v12516_v13 = vadd.f32 %v10372_v28, %v2315_v4  ;;  %v12518_v8 = vpop.f32.mrf.mxu1  ;;  %v4083_v53 = vld [vmem:[#allocation2 + $0x10e] sm:$0xff] }
 0x1e7   : > { %v10331_v17 = vpop.f32.mrf.mxu0  ;;  %10582 = vmatmul.mubr.msk.bf16.gmra.mxu0 %vm16237_vm1, %v4101_v52  ;;  %v4104_v28 = vpack.c.bf16 %v4083_v53, %v4082_v44 }
 0x1e8   : > { %v2318_v47 = vadd.f32 %v10331_v17, %v12372_v0  ;;  %v10375_v1 = vpop.f32.mrf.mxu1  ;;  %10585 = vmatprep.mubr.msk.bf16.mxu0 %vm16237_vm1, %v4102_v21 }
 0x1e9   : > { %v2269_v26 = vpop.f32.mrf.mxu0 }
 0x1ea   : > { %v2316_v9 = vadd.f32 %v2269_v26, %v12375_v15  ;;  %v12524_v31 = vadd.f32 %v10375_v1, %v2318_v47  ;;  %v2623_v20 = vpop.f32.mrf.mxu1  ;;  %v4084_v1 = vld [vmem:[#allocation2 + $0x116] sm:$0xff]  ;;  %v4087_v26 = vld [vmem:[#allocation2 + $0x12e] sm:$0xff] }
 0x1eb   : > { %v10332_v16 = vpop.f32.mrf.mxu0 }
 0x1ec   : > { %16416 = vst [vmem:[#allocation19_spill] sm:$0xff] %v12524_v31  ;;  %v2319_v52 = vadd.f32 %v10332_v16, %v12377_v48  ;;  %v12527_v4 = vadd.f32 %v2623_v20, %v2316_v9  ;;  %v10376_v0 = vpop.f32.mrf.mxu1  ;;  %v4085_v48 = vld [vmem:[#allocation2 + $0x11e] sm:$0xff] }
 0x1ed   : > { %v12529_v36 = vpop.f32.mrf.mxu0  ;;  %v4105_v16 = vpack.c.bf16 %v4085_v48, %v4084_v1 }
 0x1ee   : > { %16417 = vst [vmem:[#allocation20_spill] sm:$0xff] %v12527_v4  ;;  %v12531_v21 = vadd.f32 %v10376_v0, %v2319_v52  ;;  %v12533_v58 = vpop.f32.mrf.mxu1  ;;  %v4106_v0 = vpack.c.bf16 %v4087_v26, %v4086_v14  ;;  %v11266_v4 = vld [vmem:[#allocation10 + $0x28] sm:$0xff]  }
 0x1ef   : > { %v10387_v17 = vpop.f32.mrf.mxu0  ;;  %10586 = vmatmul.mubr.msk.bf16.gmra.mxu0 %vm16237_vm1, %v4103_v30  ;;  %10601 = vmatprep.subr.bf16.mxu1 %v11266_v4 }
 0x1f0   : > { %16418 = vst [vmem:[#allocation21_spill] sm:$0xff] %v12531_v21  ;;  %v2958_v15 = vadd.f32 %v10387_v17, %v12391_v45  ;;  %v10431_v47 = vpop.f32.mrf.mxu1  ;;  %10589 = vmatprep.mubr.msk.bf16.mxu0 %vm16237_vm1, %v4104_v28  ;;  %10602 = vmatpush3.bf16.msra.mxu1 %v11266_v4 }
 0x1f1   : > { %v2813_v24 = vpop.f32.mrf.mxu0 }
 0x1f2   : > { %v2956_v44 = vadd.f32 %v2813_v24, %v12394_v59  ;;  %v12539_v53 = vadd.f32 %v10431_v47, %v2958_v15  ;;  %v3167_v9 = vpop.f32.mrf.mxu1  ;;  %v4089_v47 = vld [vmem:[#allocation2 + $0x13e] sm:$0xff] }
 0x1f3   : > { %v10388_v20 = vpop.f32.mrf.mxu0 }
 0x1f4   : > { %v2959_v52 = vadd.f32 %v10388_v20, %v12399_v3  ;;  %v12542_v30 = vadd.f32 %v3167_v9, %v2956_v44  ;;  %v10432_v45 = vpop.f32.mrf.mxu1  ;;  %v4088_v3 = vld [vmem:[#allocation2 + $0x136] sm:$0xff] }
 0x1f5   : > { %v12544_v17 = vpop.f32.mrf.mxu0  ;;  %v4107_v44 = vpack.c.bf16 %v4089_v47, %v4088_v3 }
 0x1f6   : > { %v12546_v28 = vadd.f32 %v10432_v45, %v2959_v52  ;;  %v12548_v21 = vpop.f32.mrf.mxu1 }
 0x1f7   : > { %v10391_v31 = vpop.f32.mrf.mxu0  ;;  %10590 = vmatmul.mubr.msk.bf16.gmra.mxu0 %vm16237_vm1, %v4105_v16 }
 0x1f8   : > { %v2962_v59 = vadd.f32 %v10391_v31, %v12411_v32  ;;  %v10435_v15 = vpop.f32.mrf.mxu1  ;;  %10593 = vmatprep.mubr.msk.bf16.mxu0 %vm16237_vm1, %v4106_v0 }
 0x1f9   : > { %v2829_v1 = vpop.f32.mrf.mxu0 }
 0x1fa   : > { %v2960_v48 = vadd.f32 %v2829_v1, %v12414_v41  ;;  %v12554_v24 = vadd.f32 %v10435_v15, %v2962_v59  ;;  %v3183_v14 = vpop.f32.mrf.mxu1 }
 0x1fb   : > { %v10392_v26 = vpop.f32.mrf.mxu0 }
 0x1fc   : > { %v2963_v9 = vadd.f32 %v10392_v26, %v12419_v11  ;;  %v12557_v20 = vadd.f32 %v3183_v14, %v2960_v48  ;;  %v10436_v32 = vpop.f32.mrf.mxu1 }
 0x1fd   : > { %v12559_v31 = vpop.f32.mrf.mxu0 }
 0x1fe   : > { %16419 = vst [vmem:[#allocation22_spill] sm:$0xff] %v12557_v20  ;;  %v12561_v16 = vadd.f32 %v10436_v32, %v2963_v9  ;;  %v12563_v52 = vpop.f32.mrf.mxu1 }
 0x1ff   : > { %v10395_v45 = vpop.f32.mrf.mxu0  ;;  %10594 = vmatmul.mubr.msk.bf16.gmra.mxu0 %vm16237_vm1, %v4107_v44 }
 0x200   : > { %16420 = vst [vmem:[#allocation23_spill] sm:$0xff] %v12561_v16  ;;  %v2966_v41 = vadd.f32 %v10395_v45, %v12428_v18  ;;  %v10439_v4 = vpop.f32.mrf.mxu1 }
 0x201   : > { %v2845_v0 = vpop.f32.mrf.mxu0 }
 0x202   : > { %v2964_v59 = vadd.f32 %v2845_v0, %v12431_v2  ;;  %v12568_v15 = vadd.f32 %v10439_v4, %v2966_v41  ;;  %v3199_v11 = vpop.f32.mrf.mxu1  ;;  %v11268_v2 = vld [vmem:[#allocation10 + $0x18] sm:$0xff]  }
 0x203   : > { %v10396_v3 = vpop.f32.mrf.mxu0  ;;  %10641 = vmatprep.subr.bf16.mxu0 %v11268_v2 }
 0x204   : > { %16421 = vst [vmem:[#allocation24_spill] sm:$0xff] %v12568_v15  ;;  %v2967_v47 = vadd.f32 %v10396_v3, %v12436_v38  ;;  %v12571_v1 = vadd.f32 %v3199_v11, %v2964_v59  ;;  %v10440_v48 = vpop.f32.mrf.mxu1  ;;  %10642 = vmatpush3.bf16.msra.mxu0 %v11268_v2 }
 0x205   : > { %v12573_v14 = vpop.f32.mrf.mxu0 }
 0x206   : > { %16422 = vst [vmem:[#allocation25_spill] sm:$0xff] %v12571_v1  ;;  %v12575_v26 = vadd.f32 %v10440_v48, %v2967_v47  ;;  %v12577_v44 = vpop.f32.mrf.mxu1  ;;  %v646_v47 = vlaneseq  ;;  %v11269_v48 = vld [vmem:[#allocation10 + $0x10] sm:$0xff]  }
 0x207   : > { %v10399_v18 = vpop.f32.mrf.mxu0  ;;  %10643 = vmatprep.subr.bf16.mxu0 %v11269_v48 }
 0x208   : > { %16423 = vst [vmem:[#allocation26_spill] sm:$0xff] %v12575_v26  ;;  %v2970_v9 = vadd.f32 %v10399_v18, %v12444_v5  ;;  %v10443_v32 = vpop.f32.mrf.mxu1  ;;  %10644 = vmatpush3.bf16.msra.mxu0 %v11269_v48  ;;  %v12593_v2 = vshrl.u32 %v646_v47, 7  ;;  %v11271_v47 = vld [vmem:[#allocation10] sm:$0xff]  }
 0x209   : > { %v2861_v45 = vpop.f32.mrf.mxu0 }
 0x20a   : > { %v2968_v41 = vadd.f32 %v2861_v45, %v12447_v10  ;;  %v12581_v4 = vadd.f32 %v10443_v32, %v2970_v9  ;;  %v3215_v38 = vpop.f32.mrf.mxu1  ;;  %16427 = vst [vmem:[#allocation30_spill] sm:$0xff] %v12593_v2  ;;  %v12633_v16 = vadd.s32 8, %v12593_v2 }
 0x20b   : > { %v10400_v0 = vpop.f32.mrf.mxu0 }
 0x20c   : > { %16424 = vst [vmem:[#allocation27_spill] sm:$0xff] %v12581_v4  ;;  %v2971_v59 = vadd.f32 %v10400_v0, %v12452_v34  ;;  %v12584_v11 = vadd.f32 %v3215_v38, %v2968_v41  ;;  %v10444_v3 = vpop.f32.mrf.mxu1  ;;  %v11270_v34 = vld [vmem:[#allocation10 + $0x8] sm:$0xff]   ;;  %v4730_v4 = vld [vmem:[#allocation3 + $0x9] sm:$0xff] }
 0x20d   : > { %v12586_v26 = vpop.f32.mrf.mxu0  ;;  %10645 = vmatprep.subr.bf16.mxu0 %v11270_v34 }
 0x20e   : > { %16425 = vst [vmem:[#allocation28_spill] sm:$0xff] %v12584_v11  ;;  %v12588_v5 = vadd.f32 %v10444_v3, %v2971_v59  ;;  %v12590_v18 = vpop.f32.mrf.mxu1  ;;  %v11267_v11 = vld [vmem:[#allocation10 + $0x20] sm:$0xff]   ;;  %10646 = vmatpush3.bf16.msra.mxu0 %v11270_v34  ;;  %v12611_v34 = vadd.s32 24, %v12593_v2 }
 0x20f   : > { %v10403_v10 = vpop.f32.mrf.mxu0  ;;  %10603 = vmatprep.subr.bf16.mxu1 %v11267_v11  ;;  %10647 = vmatprep.subr.bf16.mxu0 %v11271_v47 }
 0x210   : > { %16426 = vst [vmem:[#allocation29_spill] sm:$0xff] %v12588_v5  ;;  %v2974_v9 = vadd.f32 %v10403_v10, %v12460_v56  ;;  %v10447_v32 = vpop.f32.mrf.mxu1  ;;  %v12602_v56 = vadd.s32 16, %v12593_v2  ;;  %10604 = vmatpush3.bf16.msra.mxu1 %v11267_v11 }
 0x211   : > { %v2877_v45 = vpop.f32.mrf.mxu0 }
 0x212   : > { %v2972_v41 = vadd.f32 %v2877_v45, %v12463_v49  ;;  %v12596_v38 = vadd.f32 %v10447_v32, %v2974_v9  ;;  %v3231_v0 = vpop.f32.mrf.mxu1  ;;  %10648 = vmatpush3.bf16.msra.mxu0 %v11271_v47 }
 0x213   : > { %v10404_v59 = vpop.f32.mrf.mxu0 }
 0x214   : > { %16428 = vst [vmem:[#allocation31_spill] sm:$0xff] %v12596_v38  ;;  %v2975_v3 = vadd.f32 %v10404_v59, %v12468_v6  ;;  %v12599_v5 = vadd.f32 %v3231_v0, %v2972_v41  ;;  %v10448_v48 = vpop.f32.mrf.mxu1  ;;  %v12615_v41 = vmul.u32.u64.low 3817748708, %v12602_v56  ;;  %v12616_v0 = vmul.u32.u64.high 3817748708, %v12602_v56, %v12615_v41  ;;  %v4729_v38 = vld [vmem:[#allocation3 + $0x1] sm:$0xff] }
 0x215   : > { %v12604_v10 = vpop.f32.mrf.mxu0 }
 0x216   : > { %16429 = vst [vmem:[#allocation32_spill] sm:$0xff] %v12599_v5  ;;  %v12606_v49 = vadd.f32 %v10448_v48, %v2975_v3  ;;  %v12608_v9 = vpop.f32.mrf.mxu1  ;;  %v12619_v11 = vmul.u32.u64.low 3817748708, %v12593_v2  ;;  %v12620_v3 = vmul.u32.u64.high 3817748708, %v12593_v2, %v12619_v11 }
 0x217   : > { %16431 = vst [vmem:[#allocation34_spill] sm:$0xff] %v12608_v9  ;;  %v10407_v32 = vpop.f32.mrf.mxu0  ;;  %v4667_v11 = vld [vmem:[#allocation3] sm:$0xff] }
 0x218   : > { %16430 = vst [vmem:[#allocation33_spill] sm:$0xff] %v12606_v49  ;;  %v2978_v6 = vadd.f32 %v10407_v32, %v12476_v46  ;;  %v10451_v45 = vpop.f32.mrf.mxu1  ;;  %v12626_v46 = vmul.u32.u64.low 3817748708, %v12611_v34  ;;  %v12627_v32 = vmul.u32.u64.high 3817748708, %v12611_v34, %v12626_v46 }
 0x219   : > { %v2893_v59 = vpop.f32.mrf.mxu0 }
 0x21a   : > { %v2976_v48 = vadd.f32 %v2893_v59, %v12479_v19  ;;  %v12623_v49 = vadd.f32 %v10451_v45, %v2978_v6  ;;  %v3247_v5 = vpop.f32.mrf.mxu1  ;;  %v4668_v19 = vld [vmem:[#allocation3 + $0x8] sm:$0xff]  ;;  %v4765_v45 = vpack.c.bf16 %v4730_v4, %v4729_v38  ;;  %v689_v4 = vshrl.u32 %v12620_v3, 4 }
 0x21b   : > { %v10408_v47 = vpop.f32.mrf.mxu0  ;;  %v4703_v46 = vpack.c.bf16 %v4668_v19, %v4667_v11  ;;  %v2643_v11 = vadd.f32 %v12421_v60, %v12417_v54  ;;  %v11272_v19 = vld [vmem:[#allocation10 + $0x58] sm:$0xff]   ;;  %v12679_v54 = vadd.f32 %v12454_v39, %v12450_v55  ;;  %v12700_v39 = vadd.f32 %v12502_v27, %v12498_v50 }
 0x21c   : > { %16432 = vst [vmem:[#allocation35_spill] sm:$0xff] %v12623_v49  ;;  %v2979_v1 = vadd.f32 %v10408_v47, %v12484_v62  ;;  %v12630_v41 = vadd.f32 %v3247_v5, %v2976_v48  ;;  %v10452_v15 = vpop.f32.mrf.mxu1  ;;  %10605 = vmatprep.mubr.msk.bf16.mxu1 %vm16237_vm1, %v4765_v45  ;;  %v711_v48 = vshrl.u32 %v12616_v0, 4  ;;  %v2639_v0 = vadd.f32 %v12401_v22, %v12397_v7 }
 0x21d   : > { %v12635_v6 = vpop.f32.mrf.mxu0  ;;  %10649 = vmatprep.mubr.msk.bf16.mxu0 %vm16237_vm1, %v4703_v46  ;;  %v12673_v7 = vadd.s32 32, %v12593_v2  ;;  %10685 = vmatprep.subr.bf16.mxu1 %v11272_v19  ;;  %v2647_v22 = vadd.f32 %v12438_v43, %v12434_v40 }
 0x21e   : > { %16433 = vst [vmem:[#allocation36_spill] sm:$0xff] %v12630_v41  ;;  %v12637_v59 = vadd.f32 %v10452_v15, %v2979_v1  ;;  %v12639_v49 = vpop.f32.mrf.mxu1  ;;  %v12645_v47 = vmul.u32.u64.low 3817748708, %v12633_v16  ;;  %v12646_v41 = vmul.u32.u64.high 3817748708, %v12633_v16, %v12645_v47  ;;  %v12650_v15 = vadd.s32 48, %v12593_v2 }
 0x21f   : > { %v10411_v9 = vpop.f32.mrf.mxu0  ;;  %v2957_v43 = vadd.f32 %v12544_v17, %v2639_v0 }
 0x220   : > { %v2982_v62 = vadd.f32 %v10411_v9, %v12492_v51  ;;  %v10455_v5 = vpop.f32.mrf.mxu1  ;;  %v1955_v9 = vadd.f32 %v12381_v33, %v12379_v23  ;;  %v12669_v23 = vmul.u32.u64.low 3817748708, %v12650_v15  ;;  %v12670_v33 = vmul.u32.u64.high 3817748708, %v12650_v15, %v12669_v23 }
 0x221   : > { %v2909_v20 = vpop.f32.mrf.mxu0  ;;  %v12729_v0 = vadd.f32 %v12548_v21, %v2957_v43  ;;  %v12744_v21 = vadd.s32 40, %v12593_v2 }
 0x222   : > { %v2980_v1 = vadd.f32 %v2909_v20, %v12495_v37  ;;  %v12654_v38 = vadd.f32 %v10455_v5, %v2982_v62  ;;  %v3263_v51 = vpop.f32.mrf.mxu1  ;;  %v712_v37 = vmul.u32 18, %v711_v48  ;;  %v722_v20 = vshrl.u32 %v12627_v32, 4 }
 0x223   : > { %v10412_v3 = vpop.f32.mrf.mxu0  ;;  %v690_v5 = vmul.u32 18, %v689_v4  ;;  %v12686_v32 = vadd.s32 56, %v12593_v2  ;;  %v12690_v48 = vadd.f32 %v12470_v29, %v12466_v57  ;;  %v12694_v4 = vadd.f32 %v12486_v42, %v12482_v61 }
 0x224   : > { %16434 = vst [vmem:[#allocation37_spill] sm:$0xff] %v12654_v38  ;;  %v2983_v45 = vadd.f32 %v10412_v3, %v12500_v25  ;;  %v12663_v47 = vadd.f32 %v3263_v51, %v2980_v1  ;;  %v10456_v46 = vpop.f32.mrf.mxu1  ;;  %v2317_v40 = vadd.f32 %v12529_v36, %v1955_v9  ;;  %v723_v3 = vmul.u32 18, %v722_v20 }
 0x225   : > { %v12666_v62 = vpop.f32.mrf.mxu0  ;;  %v700_v57 = vshrl.u32 %v12646_v41, 4  ;;  %v12705_v19 = vsub.s32 %v12602_v56, %v712_v37  ;;  %v12708_v61 = vsub.s32 %v12593_v2, %v690_v5  ;;  %v12723_v56 = vadd.f32 %v12518_v8, %v12514_v12 }
 0x226   : > { %16435 = vst [vmem:[#allocation38_spill] sm:$0xff] %v12663_v47  ;;  %v12681_v60 = vadd.f32 %v10456_v46, %v2983_v45  ;;  %v12683_v25 = vpop.f32.mrf.mxu1  ;;  %v12711_v42 = vmul.u32.u64.low 3817748708, %v12673_v7  ;;  %v12712_v36 = vmul.u32.u64.high 3817748708, %v12673_v7, %v12711_v42  ;;  %v12726_v41 = vadd.f32 %v12533_v58, %v2317_v40  ;;  %v16488_v47 = vld [vmem:[#allocation23_spill] sm:$0xff] }
 0x227   : > { %v10415_v55 = vpop.f32.mrf.mxu0  ;;  %16437 = vst [vmem:[#allocation40_spill] sm:$0xff] %v12705_v19  ;;  %16438 = vst [vmem:[#allocation41_spill] sm:$0xff] %v12708_v61  ;;  %v12718_v17 = vmul.u32.u64.low 3817748708, %v12686_v32  ;;  %v12719_v9 = vmul.u32.u64.high 3817748708, %v12686_v32, %v12718_v17  ;;  %v2961_v45 = vadd.f32 %v12559_v31, %v2643_v11  ;;  %v12736_v5 = vsub.s32 %v12611_v34, %v723_v3 }
 0x228   : > { %16436 = vst [vmem:[#allocation39_spill] sm:$0xff] %v12681_v60  ;;  %v2986_v1 = vadd.f32 %v10415_v55, %v12508_v63  ;;  %v10459_v51 = vpop.f32.mrf.mxu1  ;;  %v701_v23 = vmul.u32 18, %v700_v57  ;;  %vm1081_vm2 = vcmp.ne.s32.totalorder %v12705_v19, 0  ;;  %vm1117_vm3 = vcmp.lt.s32.totalorder %v12705_v19, 0 }
 0x229   : > { %v2925_v29 = vpop.f32.mrf.mxu0  ;;  %16441 = vst [vmem:[#allocation44_spill] sm:$0xff] %v12736_v5  ;;  %v755_v8 = vshrl.u32 %v12670_v33, 4  ;;  %v12752_v34 = vadd.s32 18, %v12705_v19  ;;  %vm1079_vm4 = vcmp.ne.s32.totalorder %v12708_v61, 0  ;;  %vm1115_vm5 = vcmp.lt.s32.totalorder %v12708_v61, 0  ;;  %vm12798_vm8 = vmand %vm1117_vm3, %vm1081_vm2 }
 0x22a   : > { %v2984_v50 = vadd.f32 %v2925_v29, %v12511_v35  ;;  %v12715_v27 = vadd.f32 %v10459_v51, %v2986_v1  ;;  %v3279_v63 = vpop.f32.mrf.mxu1  ;;  %v12757_v40 = vadd.s32 18, %v12708_v61  ;;  %v12760_v33 = vadd.s32 80, %v12593_v2  ;;  %vm12810_vm11 = vmand %vm1115_vm5, %vm1079_vm4 }
 0x22b   : > { %v10416_v35 = vpop.f32.mrf.mxu0  ;;  %16443 = vst [vmem:[#allocation46_spill] sm:$0xff] %v12752_v34  ;;  %vm1082_vm6 = vcmp.ne.s32.totalorder %v12736_v5, 0  ;;  %vm1118_vm7 = vcmp.lt.s32.totalorder %v12736_v5, 0  ;;  %v12769_v1 = vsub.s32 %v12633_v16, %v701_v23  ;;  %v756_v3 = vmul.u32 18, %v755_v8 }
 0x22c   : > { %16439 = vst [vmem:[#allocation42_spill] sm:$0xff] %v12715_v27  ;;  %v2987_v46 = vadd.f32 %v10416_v35, %v12516_v13  ;;  %v12733_v37 = vadd.f32 %v3279_v63, %v2984_v50  ;;  %v10460_v20 = vpop.f32.mrf.mxu1  ;;  %v2965_v13 = vadd.f32 %v12573_v14, %v2647_v22  ;;  %16444 = vst [vmem:[#allocation47_spill] sm:$0xff] %v12757_v40  ;;  %v12763_v14 = vadd.s32 64, %v12593_v2  ;;  %v16445_v22 = vld [vmem:[#allocation19_spill] sm:$0xff]  ;;  %v16447_v50 = vld [vmem:[#allocation20_spill] sm:$0xff] }
 0x22d   : > { %v12738_v12 = vpop.f32.mrf.mxu0  ;;  %16446 = vst [vmem:[#allocation19_spill] sm:$0xff] %v12769_v1  ;;  %v733_v57 = vshrl.u32 %v12712_v36, 4  ;;  %v12773_v29 = vmul.u32.u64.low 3817748708, %v12744_v21  ;;  %v12774_v42 = vmul.u32.u64.high 3817748708, %v12744_v21, %v12773_v29  ;;  %vm1080_vm9 = vcmp.ne.s32.totalorder %v12769_v1, 0  ;;  %vm12831_vm12 = vmand %vm1118_vm7, %vm1082_vm6 }
 0x22e   : > { %16440 = vst [vmem:[#allocation43_spill] sm:$0xff] %v12733_v37  ;;  %v12747_v58 = vadd.f32 %v10460_v20, %v2987_v46  ;;  %v12749_v31 = vpop.f32.mrf.mxu1  ;;  %v766_v46 = vshrl.u32 %v12719_v9, 4  ;;  %v12781_v20 = vadd.s32 88, %v12593_v2  ;;  %v16451_v9 = vmov 0 }
 0x22f   : > { %v10419_v11 = vpop.f32.mrf.mxu0  ;;  %v12784_v23 = vmul.u32.u64.low 3817748708, %v12760_v33  ;;  %v12785_v8 = vmul.u32.u64.high 3817748708, %v12760_v33, %v12784_v23  ;;  %v16452_v9 = vsel %vm12798_vm8, 4294967295, %v16451_v9  ;;  %vm1116_vm10 = vcmp.lt.s32.totalorder %v12769_v1, 0 }
 0x230   : > { %16442 = vst [vmem:[#allocation45_spill] sm:$0xff] %v12747_v58  ;;  %v2990_v43 = vadd.f32 %v10419_v11, %v16445_v22  ;;  %v10463_v55 = vpop.f32.mrf.mxu1  ;;  %v12788_v36 = vmul.u32.u64.low 3817748708, %v12763_v14  ;;  %v12789_v11 = vmul.u32.u64.high 3817748708, %v12763_v14, %v12788_v36  ;;  %v16449_v22 = vld [vmem:[#allocation21_spill] sm:$0xff]  ;;  %16453 = vst [vmem:[#allocation48_spill] sm:$0xff] %v16452_v9  ;;  %v12821_v23 = vadd.s32 72, %v12593_v2 }
 0x231   : > { %v2941_v51 = vpop.f32.mrf.mxu0  ;;  %v12836_v58 = vmul.u32.u64.low 3817748708, %v12781_v20  ;;  %v12837_v37 = vmul.u32.u64.high 3817748708, %v12781_v20, %v12836_v58  ;;  %vm12853_vm13 = vmand %vm1116_vm10, %vm1080_vm9  ;;  %v16482_v9 = vmov 0 }
 0x232   : > { %v2988_v63 = vadd.f32 %v2941_v51, %v16447_v50  ;;  %v12777_v17 = vadd.f32 %v10463_v55, %v2990_v43  ;;  %v3295_v35 = vpop.f32.mrf.mxu1  ;;  %v16454_v50 = vmov 0  ;;  %v799_v58 = vshrl.u32 %v12785_v8, 4 }
 0x233   : > { %v10420_v16 = vpop.f32.mrf.mxu0  ;;  %v16455_v50 = vsel %vm12810_vm11, 4294967295, %v16454_v50 }
 0x234   : > { %16448 = vst [vmem:[#allocation20_spill] sm:$0xff] %v12777_v17  ;;  %v2991_v29 = vadd.f32 %v10420_v16, %v16449_v22  ;;  %v12792_v51 = vadd.f32 %v3295_v35, %v2988_v63  ;;  %v10464_v43 = vpop.f32.mrf.mxu1  ;;  %16456 = vst [vmem:[#allocation49_spill] sm:$0xff] %v16455_v50  ;;  %v12815_v63 = vadd.s32 18, %v12736_v5  ;;  %v12818_v35 = vadd.s32 18, %v12769_v1 }
 0x235   : > { %v12804_v55 = vpop.f32.mrf.mxu0  ;;  %v734_v16 = vmul.u32 18, %v733_v57  ;;  %v767_v17 = vmul.u32 18, %v766_v46  ;;  %v12840_v57 = vadd.f32 %v12563_v52, %v2961_v45  ;;  %v16464_v46 = vmov 0 }
 0x236   : > { %16450 = vst [vmem:[#allocation21_spill] sm:$0xff] %v12792_v51  ;;  %16457 = vst [vmem:[#allocation50_spill] sm:$0xff] %v12815_v63  ;;  %v12823_v36 = vadd.f32 %v10464_v43, %v2991_v29  ;;  %v12825_v22 = vpop.f32.mrf.mxu1  ;;  %v16460_v51 = vmov 0  ;;  %v12843_v29 = vadd.f32 %v12577_v44, %v2965_v13  ;;  %v16465_v46 = vsel %vm12853_vm13, 4294967295, %v16464_v46 }
 0x237   : > { %16458 = vst [vmem:[#allocation51_spill] sm:$0xff] %v12818_v35  ;;  %v16461_v51 = vsel %vm12831_vm12, 4294967295, %v16460_v51  ;;  %v10475_v43 = vpop.f32.mrf.mxu0  ;;  %16466 = vst [vmem:[#allocation55_spill] sm:$0xff] %v16465_v46  ;;  %v12858_v52 = vadd.s32 112, %v12593_v2  ;;  %v2969_v44 = vadd.f32 %v12586_v26, %v12679_v54  ;;  %v744_v26 = vshrl.u32 %v12774_v42, 4 }
 0x238   : > { %16459 = vst [vmem:[#allocation52_spill] sm:$0xff] %v12823_v36  ;;  %16462 = vst [vmem:[#allocation53_spill] sm:$0xff] %v16461_v51  ;;  %v12863_v45 = vadd.f32 %v10475_v43, %v12539_v53  ;;  %v12865_v13 = vpop.f32.mrf.mxu1  ;;  %v12872_v36 = vsub.s32 %v12650_v15, %v756_v3  ;;  %v12880_v53 = vmul.u32.u64.low 3817748708, %v12821_v23  ;;  %v12881_v54 = vmul.u32.u64.high 3817748708, %v12821_v23, %v12880_v53  ;;  %v16481_v51 = vld [vmem:[#allocation22_spill] sm:$0xff] }
 0x239   : > { %16463 = vst [vmem:[#allocation54_spill] sm:$0xff] %v12843_v29  ;;  %v3521_v19 = vpop.f32.mrf.mxu0  ;;  %v12893_v3 = vsub.s32 %v12673_v7, %v734_v16  ;;  %v12896_v34 = vsub.s32 %v12686_v32, %v767_v17  ;;  %v777_v53 = vshrl.u32 %v12789_v11, 4  ;;  %v12905_v5 = vadd.f32 %v12590_v18, %v2969_v44 }
 0x23a   : > { %16467 = vst [vmem:[#allocation56_spill] sm:$0xff] %v12872_v36  ;;  %v12884_v43 = vadd.f32 %v3521_v19, %v12542_v30  ;;  %v12886_v50 = vpop.f32.mrf.mxu1  ;;  %v12901_v30 = vmul.u32.u64.low 3817748708, %v12858_v52  ;;  %v12902_v19 = vmul.u32.u64.high 3817748708, %v12858_v52, %v12901_v30  ;;  %vm1085_vm14 = vcmp.ne.s32.totalorder %v12872_v36, 0 }
 0x23b   : > { %16468 = vst [vmem:[#allocation57_spill] sm:$0xff] %v12893_v3  ;;  %16469 = vst [vmem:[#allocation58_spill] sm:$0xff] %v12896_v34  ;;  %v10476_v42 = vpop.f32.mrf.mxu0  ;;  %v12914_v32 = vadd.s32 96, %v12593_v2  ;;  %v2973_v17 = vadd.f32 %v12604_v10, %v12690_v48  ;;  %vm1121_vm15 = vcmp.lt.s32.totalorder %v12872_v36, 0  ;;  %v12922_v18 = vadd.s32 18, %v12872_v36 }
 0x23c   : > { %16470 = vst [vmem:[#allocation59_spill] sm:$0xff] %v12905_v5  ;;  %v12908_v15 = vadd.f32 %v10476_v42, %v12546_v28  ;;  %v12910_v7 = vpop.f32.mrf.mxu1  ;;  %v745_v11 = vmul.u32 18, %v744_v26  ;;  %vm1083_vm0 = vcmp.ne.s32.totalorder %v12893_v3, 0  ;;  %vm1119_vm2 = vcmp.lt.s32.totalorder %v12893_v3, 0  ;;  %vm12943_vm5 = vmand %vm1121_vm15, %vm1085_vm14 }
 0x23d   : > { %v12918_v8 = vpop.f32.mrf.mxu0  ;;  %16471 = vst [vmem:[#allocation60_spill] sm:$0xff] %v12922_v18  ;;  %v810_v16 = vshrl.u32 %v12837_v37, 4  ;;  %v12930_v44 = vadd.s32 120, %v12593_v2  ;;  %vm1086_vm3 = vcmp.ne.s32.totalorder %v12896_v34, 0  ;;  %vm1122_vm4 = vcmp.lt.s32.totalorder %v12896_v34, 0  ;;  %vm12958_vm6 = vmand %vm1119_vm2, %vm1083_vm0 }
 0x23e   : > { %v12924_v28 = vpop.f32.mrf.mxu1  ;;  %v800_v48 = vmul.u32 18, %v799_v58  ;;  %v778_v42 = vmul.u32 18, %v777_v53  ;;  %v16472_v37 = vmov 0  ;;  %v12952_v58 = vadd.s32 104, %v12593_v2  ;;  %vm12981_vm7 = vmand %vm1122_vm4, %vm1086_vm3 }
 0x23f   : > { %v10479_v10 = vpop.f32.mrf.mxu0  ;;  %v16473_v37 = vsel %vm12943_vm5, 4294967295, %v16472_v37  ;;  %v12948_v1 = vmul.u32.u64.low 3817748708, %v12914_v32  ;;  %v12949_v35 = vmul.u32.u64.high 3817748708, %v12914_v32, %v12948_v1  ;;  %v12966_v46 = vadd.s32 18, %v12896_v34 }
 0x240   : > { %v12935_v26 = vadd.f32 %v10479_v10, %v12554_v24  ;;  %v12937_v30 = vpop.f32.mrf.mxu1  ;;  %16474 = vst [vmem:[#allocation61_spill] sm:$0xff] %v16473_v37  ;;  %v16475_v24 = vmov 0  ;;  %v12963_v10 = vadd.s32 18, %v12893_v3  ;;  %v12969_v1 = vsub.s32 %v12744_v21, %v745_v11  ;;  %v16485_v11 = vld [vmem:[#allocation34_spill] sm:$0xff] }
 0x241   : > { %v3537_v53 = vpop.f32.mrf.mxu0  ;;  %v16476_v24 = vsel %vm12958_vm6, 4294967295, %v16475_v24  ;;  %16479 = vst [vmem:[#allocation64_spill] sm:$0xff] %v12966_v46  ;;  %v788_v63 = vshrl.u32 %v12881_v54, 4  ;;  %v16483_v9 = vsel %vm12981_vm7, 4294967295, %v16482_v9  ;;  %v811_v5 = vmul.u32 18, %v810_v16  ;;  %v16496_v46 = vld [vmem:[#allocation25_spill] sm:$0xff] }
 0x242   : > { %16477 = vst [vmem:[#allocation62_spill] sm:$0xff] %v16476_v24  ;;  %16478 = vst [vmem:[#allocation63_spill] sm:$0xff] %v12963_v10  ;;  %v12973_v61 = vadd.f32 %v3537_v53, %v16481_v51  ;;  %v12975_v40 = vpop.f32.mrf.mxu1  ;;  %v12986_v27 = vmul.u32.u64.low 3817748708, %v12930_v44  ;;  %v12987_v21 = vmul.u32.u64.high 3817748708, %v12930_v44, %v12986_v27  ;;  %v12990_v54 = vadd.f32 %v16485_v11, %v2973_v17  ;;  %v16504_v10 = vld [vmem:[#allocation26_spill] sm:$0xff] }
 0x243   : > { %16480 = vst [vmem:[#allocation65_spill] sm:$0xff] %v12969_v1  ;;  %16484 = vst [vmem:[#allocation22_spill] sm:$0xff] %v16483_v9  ;;  %v10480_v51 = vpop.f32.mrf.mxu0  ;;  %v12997_v29 = vsub.s32 %v12760_v33, %v800_v48  ;;  %v843_v60 = vshrl.u32 %v12902_v19, 4  ;;  %v13006_v27 = vsub.s32 %v12763_v14, %v778_v42  ;;  %vm1084_vm9 = vcmp.ne.s32.totalorder %v12969_v1, 0 }
 0x244   : > { %16486 = vst [vmem:[#allocation34_spill] sm:$0xff] %v12990_v54  ;;  %v13001_v16 = vadd.f32 %v10480_v51, %v16488_v47  ;;  %v13003_v38 = vpop.f32.mrf.mxu1  ;;  %v13009_v17 = vmul.u32.u64.low 3817748708, %v12952_v58  ;;  %v13010_v11 = vmul.u32.u64.high 3817748708, %v12952_v58, %v13009_v17  ;;  %v789_v14 = vmul.u32 18, %v788_v63 }
 0x245   : > { %16487 = vst [vmem:[#allocation66_spill] sm:$0xff] %v12997_v29  ;;  %16489 = vst [vmem:[#allocation23_spill] sm:$0xff] %v13006_v27  ;;  %v13012_v54 = vpop.f32.mrf.mxu0  ;;  %v2977_v19 = vadd.f32 %v12635_v6, %v12694_v4  ;;  %vm1120_vm10 = vcmp.lt.s32.totalorder %v12969_v1, 0  ;;  %v13029_v42 = vadd.s32 18, %v12969_v1  ;;  %v13032_v51 = vsub.s32 %v12781_v20, %v811_v5  ;;  %v16492_v6 = vld [vmem:[#allocation24_spill] sm:$0xff] }
 0x246   : > { %v13025_v48 = vpop.f32.mrf.mxu1  ;;  %vm1089_vm14 = vcmp.ne.s32.totalorder %v12997_v29, 0  ;;  %vm1125_vm15 = vcmp.lt.s32.totalorder %v12997_v29, 0  ;;  %v844_v47 = vmul.u32 18, %v843_v60  ;;  %v13037_v63 = vadd.s32 144, %v12593_v2  ;;  %vm13070_vm3 = vmand %vm1120_vm10, %vm1084_vm9 }
 0x247   : > { %16490 = vst [vmem:[#allocation67_spill] sm:$0xff] %v13029_v42  ;;  %16491 = vst [vmem:[#allocation68_spill] sm:$0xff] %v13032_v51  ;;  %v10483_v17 = vpop.f32.mrf.mxu0  ;;  %v13045_v53 = vadd.s32 18, %v12997_v29  ;;  %vm1087_vm0 = vcmp.ne.s32.totalorder %v13006_v27, 0  ;;  %v821_v5 = vshrl.u32 %v12949_v35, 4  ;;  %v13051_v60 = vadd.s32 18, %v13006_v27 }
 0x248   : > { %v13040_v4 = vadd.f32 %v10483_v17, %v16492_v6  ;;  %v13042_v33 = vpop.f32.mrf.mxu1  ;;  %v13054_v34 = vsub.s32 %v12821_v23, %v789_v14  ;;  %v13057_v17 = vadd.s32 128, %v12593_v2  ;;  %v2981_v6 = vadd.f32 %v12666_v62, %v12700_v39  ;;  %vm13080_vm1 = vmand %vm1125_vm15, %vm1089_vm14  ;;  %v16516_v29 = vld [vmem:[#allocation27_spill] sm:$0xff] }
 0x249   : > { %16493 = vst [vmem:[#allocation24_spill] sm:$0xff] %v13045_v53  ;;  %v3553_v20 = vpop.f32.mrf.mxu0  ;;  %16494 = vst [vmem:[#allocation69_spill] sm:$0xff] %v13051_v60  ;;  %v16497_v35 = vmov 0  ;;  %vm1090_vm4 = vcmp.ne.s32.totalorder %v13032_v51, 0  ;;  %v854_v23 = vshrl.u32 %v12987_v21, 4  ;;  %v16500_v62 = vmov 0 }
 0x24a   : > { %16495 = vst [vmem:[#allocation70_spill] sm:$0xff] %v13054_v34  ;;  %v13062_v9 = vadd.f32 %v3553_v20, %v16496_v46  ;;  %v13064_v3 = vpop.f32.mrf.mxu1  ;;  %v16498_v35 = vsel %vm13070_vm3, 4294967295, %v16497_v35  ;;  %v16501_v62 = vsel %vm13080_vm1, 4294967295, %v16500_v62  ;;  %vm1126_vm2 = vcmp.lt.s32.totalorder %v13032_v51, 0 }
 0x24b   : > { %16499 = vst [vmem:[#allocation25_spill] sm:$0xff] %v16498_v35  ;;  %v10484_v14 = vpop.f32.mrf.mxu0  ;;  %16502 = vst [vmem:[#allocation71_spill] sm:$0xff] %v16501_v62  ;;  %v13086_v39 = vsub.s32 %v12858_v52, %v844_v47  ;;  %v13089_v46 = vmul.u32.u64.low 3817748708, %v13037_v63  ;;  %v13090_v20 = vmul.u32.u64.high 3817748708, %v13037_v63, %v13089_v46  ;;  %vm16506_vm9 = vcmp.lt.s32.totalorder %v13006_v27, 0  ;;  %v16522_v35 = vld [vmem:[#allocation28_spill] sm:$0xff] }
 0x24c   : > { %v13093_v21 = vadd.f32 %v10484_v14, %v16504_v10  ;;  %v13095_v24 = vpop.f32.mrf.mxu1  ;;  %vm13101_vm10 = vmand %vm16506_vm9, %vm1087_vm0  ;;  %v16507_v36 = vmov 0  ;;  %v13106_v52 = vadd.s32 18, %v13032_v51  ;;  %v822_v47 = vmul.u32 18, %v821_v5 }
 0x24d   : > { %16503 = vst [vmem:[#allocation72_spill] sm:$0xff] %v13086_v39  ;;  %16505 = vst [vmem:[#allocation26_spill] sm:$0xff] %v13095_v24  ;;  %v16508_v36 = vsel %vm13101_vm10, 4294967295, %v16507_v36  ;;  %v832_v18 = vshrl.u32 %v13010_v11, 4  ;;  %v13109_v46 = vpop.f32.mrf.mxu0  ;;  %vm1088_vm14 = vcmp.ne.s32.totalorder %v13054_v34, 0  ;;  %vm1124_vm15 = vcmp.lt.s32.totalorder %v13054_v34, 0 }
 0x24e   : > { %16509 = vst [vmem:[#allocation73_spill] sm:$0xff] %v16508_v36  ;;  %16510 = vst [vmem:[#allocation74_spill] sm:$0xff] %v13106_v52  ;;  %v13114_v10 = vmul.u32.u64.low 3817748708, %v13057_v17  ;;  %v13115_v14 = vmul.u32.u64.high 3817748708, %v13057_v17, %v13114_v10  ;;  %v13118_v37 = vadd.f32 %v12639_v49, %v2977_v19  ;;  %v13120_v24 = vpop.f32.mrf.mxu1  ;;  %v855_v49 = vmul.u32 18, %v854_v23  ;;  %v16529_v36 = vld [vmem:[#allocation29_spill] sm:$0xff] }
 0x24f   : > { %vm13134_vm0 = vmand %vm1126_vm2, %vm1090_vm4  ;;  %v16512_v10 = vmov 0  ;;  %v10487_v19 = vpop.f32.mrf.mxu0  ;;  %v13143_v1 = vadd.s32 18, %v13054_v34  ;;  %vm1093_vm9 = vcmp.ne.s32.totalorder %v13086_v39, 0  ;;  %v13147_v5 = vadd.s32 152, %v12593_v2 }
 0x250   : > { %16511 = vst [vmem:[#allocation75_spill] sm:$0xff] %v13118_v37  ;;  %v16513_v10 = vsel %vm13134_vm0, 4294967295, %v16512_v10  ;;  %v13150_v53 = vadd.f32 %v10487_v19, %v16516_v29  ;;  %v13152_v62 = vpop.f32.mrf.mxu1  ;;  %vm13158_vm2 = vmand %vm1124_vm15, %vm1088_vm14  ;;  %v16517_v23 = vmov 0  ;;  %vm1129_vm4 = vcmp.lt.s32.totalorder %v13086_v39, 0 }
 0x251   : > { %16514 = vst [vmem:[#allocation76_spill] sm:$0xff] %v16513_v10  ;;  %16515 = vst [vmem:[#allocation77_spill] sm:$0xff] %v13143_v1  ;;  %v16518_v23 = vsel %vm13158_vm2, 4294967295, %v16517_v23  ;;  %v13164_v11 = vsub.s32 %v12914_v32, %v822_v47  ;;  %v833_v27 = vmul.u32 18, %v832_v18  ;;  %v13167_v60 = vadd.f32 %v12683_v25, %v2981_v6  ;;  %v3569_v19 = vpop.f32.mrf.mxu0 }
 0x252   : > { %16519 = vst [vmem:[#allocation27_spill] sm:$0xff] %v16518_v23  ;;  %v2985_v29 = vadd.f32 %v12738_v12, %v12723_v56  ;;  %v13176_v42 = vadd.s32 136, %v12593_v2  ;;  %v13179_v37 = vadd.f32 %v3569_v19, %v16522_v35  ;;  %v13181_v32 = vpop.f32.mrf.mxu1  ;;  %v13184_v25 = vadd.s32 18, %v13086_v39  ;;  %vm13200_vm14 = vmand %vm1129_vm4, %vm1093_vm9  ;;  %v13209_v19 = vld [vmem:[#allocation10 + $0x78] sm:$0xff]  }
 0x253   : > { %16520 = vst [vmem:[#allocation78_spill] sm:$0xff] %v13164_v11  ;;  %16521 = vst [vmem:[#allocation79_spill] sm:$0xff] %v13167_v60  ;;  %v13187_v18 = vsub.s32 %v12930_v44, %v855_v49  ;;  %v13190_v56 = vadd.s32 176, %v12593_v2  ;;  %v10488_v12 = vpop.f32.mrf.mxu0  ;;  %v16525_v35 = vmov 0  ;;  %v887_v44 = vshrl.u32 %v13090_v20, 4  ;;  %10729 = vmatprep.subr.bf16.mxu0 %v13209_v19 }
 0x254   : > { %16523 = vst [vmem:[#allocation28_spill] sm:$0xff] %v13184_v25  ;;  %v16526_v35 = vsel %vm13200_vm14, 4294967295, %v16525_v35  ;;  %v13206_v47 = vmul.u32.u64.low 3817748708, %v13147_v5  ;;  %v13207_v49 = vmul.u32.u64.high 3817748708, %v13147_v5, %v13206_v47  ;;  %16528 = vst [vmem:[#allocation82_spill] sm:$0xff] %v13209_v19  ;;  %v13212_v51 = vadd.f32 %v10488_v12, %v16529_v36  ;;  %v13214_v6 = vpop.f32.mrf.mxu1 }
 0x255   : > { %16524 = vst [vmem:[#allocation80_spill] sm:$0xff] %v13187_v18  ;;  %16527 = vst [vmem:[#allocation81_spill] sm:$0xff] %v16526_v35  ;;  %vm1091_vm15 = vcmp.ne.s32.totalorder %v13164_v11, 0  ;;  %vm1127_vm9 = vcmp.lt.s32.totalorder %v13164_v11, 0  ;;  %v13219_v34 = vsub.s32 %v12952_v58, %v833_v27  ;;  %v13222_v20 = vadd.f32 %v12749_v31, %v2985_v29  ;;  %v13224_v1 = vpop.f32.mrf.mxu0  ;;  %v16536_v31 = vld [vmem:[#allocation31_spill] sm:$0xff] }
 0x256   : > { %v865_v47 = vshrl.u32 %v13115_v14, 4  ;;  %v13228_v23 = vadd.s32 160, %v12593_v2  ;;  %v13231_v36 = vadd.s32 184, %v12593_v2  ;;  %v2989_v12 = vadd.f32 %v12804_v55, %v12726_v41  ;;  %v13236_v58 = vpop.f32.mrf.mxu1  ;;  %vm13248_vm2 = vmand %vm1127_vm9, %vm1091_vm15 }
 0x257   : > { %16530 = vst [vmem:[#allocation29_spill] sm:$0xff] %v13219_v34  ;;  %16531 = vst [vmem:[#allocation83_spill] sm:$0xff] %v13222_v20  ;;  %v13243_v27 = vadd.s32 18, %v13164_v11  ;;  %v10491_v14 = vpop.f32.mrf.mxu0  ;;  %v16533_v29 = vmov 0  ;;  %vm1130_vm0 = vcmp.lt.s32.totalorder %v13187_v18, 0  ;;  %v888_v41 = vmul.u32 18, %v887_v44 }
 0x258   : > { %v16534_v29 = vsel %vm13248_vm2, 4294967295, %v16533_v29  ;;  %v13254_v55 = vmul.u32.u64.low 3817748708, %v13176_v42  ;;  %v13255_v19 = vmul.u32.u64.high 3817748708, %v13176_v42, %v13254_v55  ;;  %v13258_v39 = vadd.f32 %v10491_v14, %v16536_v31  ;;  %v13260_v25 = vpop.f32.mrf.mxu1  ;;  %v16540_v14 = vld [vmem:[#allocation32_spill] sm:$0xff] }
 0x259   : > { %16532 = vst [vmem:[#allocation84_spill] sm:$0xff] %v13243_v27  ;;  %16535 = vst [vmem:[#allocation85_spill] sm:$0xff] %v16534_v29  ;;  %vm1092_vm4 = vcmp.ne.s32.totalorder %v13219_v34, 0  ;;  %vm1128_vm14 = vcmp.lt.s32.totalorder %v13219_v34, 0  ;;  %v13265_v35 = vadd.s32 168, %v12593_v2  ;;  %v3585_v52 = vpop.f32.mrf.mxu0  ;;  %v13268_v10 = vadd.s32 18, %v13187_v18 }
 0x25a   : > { %16537 = vst [vmem:[#allocation31_spill] sm:$0xff] %v13258_v39  ;;  %16538 = vst [vmem:[#allocation86_spill] sm:$0xff] %v13260_v25  ;;  %v866_v44 = vmul.u32 18, %v865_v47  ;;  %v13271_v20 = vmul.u32.u64.low 3817748708, %v13190_v56  ;;  %v13272_v55 = vmul.u32.u64.high 3817748708, %v13190_v56, %v13271_v20  ;;  %v3665_v31 = vadd.f32 %v12918_v8, %v12729_v0  ;;  %v13279_v25 = vpop.f32.mrf.mxu1 }
 0x25b   : > { %16539 = vst [vmem:[#allocation87_spill] sm:$0xff] %v13268_v10  ;;  %v13277_v60 = vadd.f32 %v3585_v52, %v16540_v14  ;;  %vm16541_vm15 = vcmp.ne.s32.totalorder %v13187_v18, 0  ;;  %v16542_v47 = vmov 0  ;;  %v13294_v0 = vadd.s32 18, %v13219_v34  ;;  %v10492_v52 = vpop.f32.mrf.mxu0  ;;  %vm13301_vm10 = vmand %vm1128_vm14, %vm1092_vm4 }
 0x25c   : > { %vm13289_vm9 = vmand %vm1130_vm0, %vm16541_vm15  ;;  %v13297_v8 = vadd.f32 %v12825_v22, %v2989_v12  ;;  %v16547_v20 = vmov 0  ;;  %v13306_v14 = vsub.s32 %v13037_v63, %v888_v41  ;;  %v898_v39 = vshrl.u32 %v13207_v49, 4  ;;  %v16551_v22 = vld [vmem:[#allocation33_spill] sm:$0xff] }
 0x25d   : > { %v16543_v47 = vsel %vm13289_vm9, 4294967295, %v16542_v47  ;;  %16545 = vst [vmem:[#allocation88_spill] sm:$0xff] %v13294_v0  ;;  %v16548_v20 = vsel %vm13301_vm10, 4294967295, %v16547_v20  ;;  %v13310_v11 = vadd.s32 208, %v12593_v2  ;;  %v13314_v27 = vadd.f32 %v12865_v13, %v12863_v45  ;;  %v13329_v49 = vpop.f32.mrf.mxu0 }
 0x25e   : > { %16544 = vst [vmem:[#allocation32_spill] sm:$0xff] %v16543_v47  ;;  %16546 = vst [vmem:[#allocation89_spill] sm:$0xff] %v13297_v8  ;;  %v13317_v12 = vadd.f32 %v10492_v52, %v16551_v22  ;;  %v13320_v8 = vadd.s32 192, %v12593_v2  ;;  %v13323_v29 = vadd.s32 216, %v12593_v2  ;;  %v13327_v63 = vadd.f32 %v12886_v50, %v12884_v43  ;;  %v13348_v43 = vpop.f32.mrf.mxu1 }
 0x25f   : > { %16549 = vst [vmem:[#allocation90_spill] sm:$0xff] %v16548_v20  ;;  %16550 = vst [vmem:[#allocation91_spill] sm:$0xff] %v13306_v14  ;;  %v13336_v13 = vsub.s32 %v13057_v17, %v866_v44  ;;  %v13339_v41 = vadd.s32 200, %v12593_v2  ;;  %v13343_v52 = vadd.f32 %v12910_v7, %v12908_v15  ;;  %v13346_v50 = vadd.f32 %v12924_v28, %v3665_v31  ;;  %v10495_v44 = vpop.f32.mrf.mxu0  ;;  %v16556_v28 = vld [vmem:[#allocation35_spill] sm:$0xff] }
 0x260   : > { %16552 = vst [vmem:[#allocation33_spill] sm:$0xff] %v13327_v63  ;;  %v13355_v17 = vadd.s32 240, %v12593_v2  ;;  %vm1097_vm0 = vcmp.ne.s32.totalorder %v13306_v14, 0  ;;  %vm1133_vm14 = vcmp.lt.s32.totalorder %v13306_v14, 0  ;;  %v899_v15 = vmul.u32 18, %v898_v39 }
 0x261   : > { %16553 = vst [vmem:[#allocation92_spill] sm:$0xff] %v13336_v13  ;;  %16554 = vst [vmem:[#allocation93_spill] sm:$0xff] %v13343_v52  ;;  %v876_v7 = vshrl.u32 %v13255_v19, 4  ;;  %v13361_v31 = vadd.f32 %v10495_v44, %v16556_v28  ;;  %v13364_v45 = vadd.s32 18, %v13306_v14  ;;  %v13372_v34 = vadd.f32 %v12937_v30, %v12935_v26  ;;  %v3601_v0 = vpop.f32.mrf.mxu0  ;;  %v13379_v44 = vpop.f32.mrf.mxu1  ;;  %v16559_v28 = vld [vmem:[#allocation36_spill] sm:$0xff] }
 0x262   : > { %16555 = vst [vmem:[#allocation94_spill] sm:$0xff] %v13346_v50  ;;  %v13367_v20 = vmul.u32.u64.low 3817748708, %v13228_v23  ;;  %v13368_v22 = vmul.u32.u64.high 3817748708, %v13228_v23, %v13367_v20  ;;  %vm1095_vm4 = vcmp.ne.s32.totalorder %v13336_v13, 0  ;;  %v931_v39 = vshrl.u32 %v13272_v55, 4  ;;  %vm13384_vm15 = vmand %vm1133_vm14, %vm1097_vm0 }
 0x263   : > { %16557 = vst [vmem:[#allocation35_spill] sm:$0xff] %v13364_v45  ;;  %16558 = vst [vmem:[#allocation95_spill] sm:$0xff] %v13372_v34  ;;  %v13377_v19 = vadd.s32 224, %v12593_v2  ;;  %v13382_v18 = vadd.f32 %v3601_v0, %v16559_v28  ;;  %v16560_v10 = vmov 0  ;;  %vm1131_vm10 = vcmp.lt.s32.totalorder %v13336_v13, 0  ;;  %v10496_v20 = vpop.f32.mrf.mxu0 }
 0x264   : > { %v16561_v10 = vsel %vm13384_vm15, 4294967295, %v16560_v10  ;;  %v13390_v26 = vmul.u32.u64.low 3817748708, %v13231_v36  ;;  %v13391_v30 = vmul.u32.u64.high 3817748708, %v13231_v36, %v13390_v26  ;;  %v13394_v55 = vsub.s32 %v13147_v5, %v899_v15  ;;  %vm13422_vm0 = vmand %vm1131_vm10, %vm1095_vm4 }
 0x265   : > { %16562 = vst [vmem:[#allocation36_spill] sm:$0xff] %v16561_v10  ;;  %v877_v47 = vmul.u32 18, %v876_v7  ;;  %v13397_v34 = vmul.u32.u64.low 3817748708, %v13265_v35  ;;  %v13398_v50 = vmul.u32.u64.high 3817748708, %v13265_v35, %v13397_v34  ;;  %v13401_v0 = vadd.f32 %v10496_v20, %v12637_v59  ;;  %v13414_v5 = vpop.f32.mrf.mxu0 }
 0x266   : > { %16563 = vst [vmem:[#allocation96_spill] sm:$0xff] %v13394_v55  ;;  %v13404_v28 = vadd.s32 18, %v13336_v13  ;;  %v13407_v52 = vmul.u32.u64.low 3817748708, %v13310_v11  ;;  %v13408_v63 = vmul.u32.u64.high 3817748708, %v13310_v11, %v13407_v52  ;;  %v13412_v26 = vadd.f32 %v12975_v40, %v12973_v61  ;;  %v13431_v40 = vpop.f32.mrf.mxu1 }
 0x267   : > { %v16566_v59 = vmov 0  ;;  %v932_v15 = vmul.u32 18, %v931_v39  ;;  %v13427_v52 = vadd.s32 248, %v12593_v2  ;;  %v3669_v61 = vadd.f32 %v13012_v54, %v12840_v57  ;;  %v10499_v39 = vpop.f32.mrf.mxu0  ;;  %v16571_v54 = vld [vmem:[#allocation37_spill] sm:$0xff] }
 0x268   : > { %16564 = vst [vmem:[#allocation97_spill] sm:$0xff] %v13404_v28  ;;  %16565 = vst [vmem:[#allocation98_spill] sm:$0xff] %v13412_v26  ;;  %v16567_v59 = vsel %vm13422_vm0, 4294967295, %v16566_v59  ;;  %v13434_v7 = vmul.u32.u64.low 3817748708, %v13320_v8  ;;  %v13435_v20 = vmul.u32.u64.high 3817748708, %v13320_v8, %v13434_v7  ;;  %v13438_v34 = vadd.s32 232, %v12593_v2 }
 0x269   : > { %16568 = vst [vmem:[#allocation99_spill] sm:$0xff] %v16567_v59  ;;  %v13442_v14 = vadd.f32 %v13003_v38, %v13001_v16  ;;  %vm1098_vm10 = vcmp.ne.s32.totalorder %v13394_v55, 0  ;;  %vm1134_vm14 = vcmp.lt.s32.totalorder %v13394_v55, 0  ;;  %v13447_v57 = vsub.s32 %v13176_v42, %v877_v47  ;;  %v3617_v16 = vpop.f32.mrf.mxu0  ;;  %v13473_v7 = vpop.f32.mrf.mxu1 }
 0x26a   : > { %16569 = vst [vmem:[#allocation100_spill] sm:$0xff] %v13438_v34  ;;  %v13450_v45 = vadd.f32 %v10499_v39, %v16571_v54  ;;  %v909_v10 = vshrl.u32 %v13368_v22, 4  ;;  %v13458_v38 = vadd.s32 272, %v12593_v2  ;;  %v13464_v42 = vsub.s32 %v13190_v56, %v932_v15  ;;  %v16576_v22 = vld [vmem:[#allocation38_spill] sm:$0xff]  ;;  %vm13482_vm4 = vmand %vm1134_vm14, %vm1098_vm10  ;;  %v16598_v34 = vld [vmem:[#allocation43_spill] sm:$0xff] }
 0x26b   : > { %16570 = vst [vmem:[#allocation101_spill] sm:$0xff] %v13442_v14  ;;  %v13461_v14 = vadd.s32 18, %v13394_v55  ;;  %v13467_v47 = vmul.u32.u64.low 3817748708, %v13323_v29  ;;  %v13468_v39 = vmul.u32.u64.high 3817748708, %v13323_v29, %v13467_v47  ;;  %v13471_v54 = vadd.f32 %v13025_v48, %v3669_v61  ;;  %v10500_v61 = vpop.f32.mrf.mxu0 }
 0x26c   : > { %16572 = vst [vmem:[#allocation37_spill] sm:$0xff] %v13458_v38  ;;  %16574 = vst [vmem:[#allocation103_spill] sm:$0xff] %v13464_v42  ;;  %v13476_v13 = vadd.f32 %v3617_v16, %v16576_v22  ;;  %v16577_v28 = vmov 0  ;;  %v942_v56 = vshrl.u32 %v13391_v30, 4  ;;  %v13488_v15 = vadd.s32 256, %v12593_v2  ;;  %v16583_v22 = vld [vmem:[#allocation39_spill] sm:$0xff] }
 0x26d   : > { %16573 = vst [vmem:[#allocation102_spill] sm:$0xff] %v13461_v14  ;;  %16575 = vst [vmem:[#allocation104_spill] sm:$0xff] %v13471_v54  ;;  %v16578_v28 = vsel %vm13482_vm4, 4294967295, %v16577_v28  ;;  %v13492_v48 = vadd.f32 %v13042_v33, %v13040_v4  ;;  %v920_v16 = vshrl.u32 %v13398_v50, 4  ;;  %v13497_v47 = vadd.s32 280, %v12593_v2  ;;  %v13508_v4 = vpop.f32.mrf.mxu0 }
 0x26e   : > { %16579 = vst [vmem:[#allocation38_spill] sm:$0xff] %v16578_v28  ;;  %16580 = vst [vmem:[#allocation105_spill] sm:$0xff] %v13488_v15  ;;  %v13500_v59 = vadd.f32 %v10500_v61, %v16583_v22  ;;  %v910_v30 = vmul.u32 18, %v909_v10  ;;  %v975_v15 = vshrl.u32 %v13408_v63, 4  ;;  %v13506_v33 = vadd.f32 %v13064_v3, %v13062_v9  ;;  %v16585_v61 = vld [vmem:[#allocation54_spill] sm:$0xff]  ;;  %v13518_v22 = vpop.f32.mrf.mxu1 }
 0x26f   : > { %16581 = vst [vmem:[#allocation106_spill] sm:$0xff] %v13492_v48  ;;  %16582 = vst [vmem:[#allocation107_spill] sm:$0xff] %v13497_v47  ;;  %vm1101_vm14 = vcmp.ne.s32.totalorder %v13464_v42, 0  ;;  %vm1137_vm0 = vcmp.lt.s32.totalorder %v13464_v42, 0  ;;  %v3673_v10 = vadd.f32 %v13109_v46, %v16585_v61  ;;  %v13521_v63 = vadd.s32 18, %v13447_v57  ;;  %v10503_v47 = vpop.f32.mrf.mxu0 }
 0x270   : > { %16584 = vst [vmem:[#allocation39_spill] sm:$0xff] %v13506_v33  ;;  %v943_v9 = vmul.u32 18, %v942_v56  ;;  %v953_v3 = vshrl.u32 %v13435_v20, 4  ;;  %vm16586_vm10 = vcmp.ne.s32.totalorder %v13447_v57, 0  ;;  %vm16587_vm4 = vcmp.lt.s32.totalorder %v13447_v57, 0  ;;  %v16591_v56 = vld [vmem:[#allocation42_spill] sm:$0xff]  ;;  %vm13542_vm9 = vmand %vm1137_vm0, %vm1101_vm14 }
 0x271   : > { %vm13528_vm15 = vmand %vm16587_vm4, %vm16586_vm10  ;;  %v16588_v50 = vmov 0  ;;  %v13533_v55 = vadd.s32 18, %v13464_v42  ;;  %v921_v46 = vmul.u32 18, %v920_v16  ;;  %v13540_v28 = vadd.f32 %v10503_v47, %v16591_v56  ;;  %v16597_v16 = vld [vmem:[#allocation26_spill] sm:$0xff]  ;;  %v3633_v26 = vpop.f32.mrf.mxu0 }
 0x272   : > { %v16589_v50 = vsel %vm13528_vm15, 4294967295, %v16588_v50  ;;  %v13536_v61 = vmul.u32.u64.low 3817748708, %v13339_v41  ;;  %v13537_v14 = vmul.u32.u64.high 3817748708, %v13339_v41, %v13536_v61  ;;  %v16593_v20 = vmov 0 }
 0x273   : > { %16590 = vst [vmem:[#allocation54_spill] sm:$0xff] %v13533_v55  ;;  %16592 = vst [vmem:[#allocation42_spill] sm:$0xff] %v13540_v28  ;;  %v16594_v20 = vsel %vm13542_vm9, 4294967295, %v16593_v20  ;;  %v13547_v38 = vsub.s32 %v13228_v23, %v910_v30  ;;  %v976_v33 = vmul.u32 18, %v975_v15  ;;  %v13550_v48 = vadd.s32 264, %v12593_v2  ;;  %v13561_v28 = vpop.f32.mrf.mxu1 }
 0x274   : > { %v13554_v54 = vadd.f32 %v16597_v16, %v13093_v21  ;;  %v986_v61 = vshrl.u32 %v13468_v39, 4  ;;  %v13558_v47 = vmul.u32.u64.low 3817748708, %v13355_v17  ;;  %v13559_v56 = vmul.u32.u64.high 3817748708, %v13355_v17, %v13558_v47 }
 0x275   : > { %16595 = vst [vmem:[#allocation108_spill] sm:$0xff] %v13547_v38  ;;  %16596 = vst [vmem:[#allocation109_spill] sm:$0xff] %v13550_v48  ;;  %v13564_v23 = vadd.f32 %v3633_v26, %v16598_v34  ;;  %v13571_v21 = vsub.s32 %v13231_v36, %v943_v9  ;;  %v954_v30 = vmul.u32 18, %v953_v3  ;;  %v13574_v39 = vadd.f32 %v13120_v24, %v3673_v10  ;;  %v10504_v47 = vpop.f32.mrf.mxu0  ;;  %v16601_v9 = vld [vmem:[#allocation45_spill] sm:$0xff]  ;;  %v16616_v26 = vld [vmem:[#allocation34_spill] sm:$0xff] }
 0x276   : > { %v13578_v16 = vadd.f32 %v13152_v62, %v13150_v53  ;;  %v13585_v34 = vsub.s32 %v13265_v35, %v921_v46  ;;  %v13589_v36 = vadd.f32 %v13181_v32, %v13179_v37  ;;  %v13592_v24 = vadd.f32 %v10504_v47, %v16601_v9  ;;  %v16603_v62 = vld [vmem:[#allocation59_spill] sm:$0xff]  ;;  %v13610_v46 = vpop.f32.mrf.mxu1  ;;  %v16617_v48 = vld [vmem:[#allocation21_spill] sm:$0xff] }
 0x277   : > { %16599 = vst [vmem:[#allocation26_spill] sm:$0xff] %v13571_v21  ;;  %v13596_v53 = vsub.s32 %v13310_v11, %v976_v33  ;;  %v3677_v10 = vadd.f32 %v13224_v1, %v16603_v62  ;;  %v13600_v3 = vpop.f32.mrf.mxu0  ;;  %v13604_v35 = vadd.s32 18, %v13547_v38  ;;  %v987_v37 = vmul.u32 18, %v986_v61 }
 0x278   : > { %16600 = vst [vmem:[#allocation43_spill] sm:$0xff] %v13585_v34  ;;  %v13608_v32 = vadd.f32 %v13214_v6, %v13212_v51  ;;  %vm1102_vm10 = vcmp.ne.s32.totalorder %v13571_v21, 0  ;;  %vm1138_vm14 = vcmp.lt.s32.totalorder %v13571_v21, 0  ;;  %v13615_v1 = vsub.s32 %v13320_v8, %v954_v30  ;;  %v16606_v6 = vld [vmem:[#allocation20_spill] sm:$0xff]  ;;  %v3971_v2 = vpop.f32.mrf.mxu1 }
 0x279   : > { %16602 = vst [vmem:[#allocation45_spill] sm:$0xff] %v13596_v53  ;;  %v10507_v11 = vpop.f32.mrf.mxu0  ;;  %v13618_v33 = vadd.s32 18, %v13571_v21  ;;  %v964_v51 = vshrl.u32 %v13537_v14, 4  ;;  %vm16607_vm9 = vcmp.ne.s32.totalorder %v13547_v38, 0  ;;  %vm16608_vm15 = vcmp.lt.s32.totalorder %v13547_v38, 0  ;;  %vm13639_vm1 = vmand %vm1138_vm14, %vm1102_vm10 }
 0x27a   : > { %16604 = vst [vmem:[#allocation59_spill] sm:$0xff] %v13615_v1  ;;  %v13624_v61 = vadd.f32 %v10507_v11, %v16606_v6  ;;  %vm13630_vm2 = vmand %vm16608_vm15, %vm16607_vm9  ;;  %v16609_v8 = vmov 0  ;;  %v13635_v30 = vadd.s32 18, %v13585_v34  ;;  %vm1105_vm4 = vcmp.ne.s32.totalorder %v13596_v53, 0 }
 0x27b   : > { %16605 = vst [vmem:[#allocation110_spill] sm:$0xff] %v13618_v33  ;;  %v16610_v8 = vsel %vm13630_vm2, 4294967295, %v16609_v8  ;;  %v3649_v47 = vpop.f32.mrf.mxu0  ;;  %v16612_v14 = vmov 0  ;;  %v13644_v9 = vsub.s32 %v13323_v29, %v987_v37  ;;  %v1019_v62 = vshrl.u32 %v13559_v56, 4  ;;  %v16635_v56 = vld [vmem:[#allocation40_spill] sm:$0xff] }
 0x27c   : > { %16611 = vst [vmem:[#allocation20_spill] sm:$0xff] %v13635_v30  ;;  %v16613_v14 = vsel %vm13639_vm1, 4294967295, %v16612_v14  ;;  %v13648_v11 = vmul.u32.u64.low 3817748708, %v13377_v19  ;;  %v13649_v6 = vmul.u32.u64.high 3817748708, %v13377_v19, %v13648_v11  ;;  %v3681_v15 = vadd.f32 %v13329_v49, %v16616_v26 }
 0x27d   : > { %16614 = vst [vmem:[#allocation111_spill] sm:$0xff] %v16613_v14  ;;  %16615 = vst [vmem:[#allocation112_spill] sm:$0xff] %v13644_v9  ;;  %v13654_v42 = vadd.f32 %v3649_v47, %v16617_v48  ;;  %vm1103_vm9 = vcmp.ne.s32.totalorder %v13615_v1, 0  ;;  %v13659_v29 = vadd.f32 %v13236_v58, %v3677_v10  ;;  %v10508_v37 = vpop.f32.mrf.mxu0  ;;  %vm16618_vm10 = vcmp.ne.s32.totalorder %v13585_v34, 0  ;;  %v16623_v58 = vld [vmem:[#allocation31_spill] sm:$0xff]  ;;  %v16624_v10 = vld [vmem:[#allocation86_spill] sm:$0xff] }
 0x27e   : > { %vm16619_vm14 = vcmp.lt.s32.totalorder %v13585_v34, 0  ;;  %v13674_v48 = vadd.s32 18, %v13596_v53  ;;  %v965_v26 = vmul.u32 18, %v964_v51  ;;  %v13678_v47 = vadd.f32 %v16624_v10, %v16623_v58  ;;  %v16625_v11 = vld [vmem:[#allocation52_spill] sm:$0xff]  ;;  %v16712_v34 = vld [vmem:[#allocation42_spill] sm:$0xff] }
 0x27f   : > { %vm13669_vm0 = vmand %vm16619_vm14, %vm16618_vm10  ;;  %v13681_v55 = vadd.f32 %v10508_v37, %v16625_v11  ;;  %vm16627_vm10 = vcmp.lt.s32.totalorder %v13596_v53, 0  ;;  %v16628_v38 = vmov 0  ;;  %v13696_v51 = vadd.s32 18, %v13615_v1  ;;  %v13702_v58 = vpop.f32.mrf.mxu0  ;;  %v16634_v11 = vld [vmem:[#allocation46_spill] sm:$0xff]  ;;  %v16669_v53 = vld [vmem:[#allocation51_spill] sm:$0xff] }
 0x280   : > { %16622 = vst [vmem:[#allocation34_spill] sm:$0xff] %v13674_v48  ;;  %vm13691_vm14 = vmand %vm16627_vm10, %vm1105_vm4  ;;  %v13700_v37 = vadd.f32 %v13279_v25, %v13277_v60  ;;  %v16637_v21 = vmov 0  ;;  %vm16640_vm4 = vcmp.lt.s32.totalorder %v13615_v1, 0  ;;  %v16641_v33 = vmov 0 }
 0x281   : > { %16626 = vst [vmem:[#allocation21_spill] sm:$0xff] %v13681_v55  ;;  %v16629_v38 = vsel %vm13691_vm14, 4294967295, %v16628_v38  ;;  %16631 = vst [vmem:[#allocation86_spill] sm:$0xff] %v13696_v51  ;;  %v16636_v55 = vsel %vm12798_vm8, %v16634_v11, %v16635_v56  ;;  %vm1106_vm1 = vcmp.ne.s32.totalorder %v13644_v9, 0  ;;  %vm1142_vm2 = vcmp.lt.s32.totalorder %v13644_v9, 0  ;;  %v16644_v56 = vld [vmem:[#allocation75_spill] sm:$0xff]  ;;  %v10544_v11 = vpop.f32.mrf.mxu1 }
 0x282   : > { %16630 = vst [vmem:[#allocation31_spill] sm:$0xff] %v16629_v38  ;;  %16632 = vst [vmem:[#allocation52_spill] sm:$0xff] %v13702_v58  ;;  %vm13709_vm15 = vcmp.lt.s32.totalorder %v16636_v55, 16  ;;  %v1020_v60 = vmul.u32 18, %v1019_v62  ;;  %v13725_v25 = vadd.f32 %v13348_v43, %v13317_v12  ;;  %v13728_v55 = vadd.f32 %v13379_v44, %v3681_v15  ;;  %v10563_v62 = vpop.f32.mrf.mxu0  ;;  %v13743_v12 = vld [vmem:[%s16201_s2] ss:$0 sm:$0xff] }
 0x283   : > { %v16638_v21 = vsel %vm13709_vm15, 4294967295, %v16637_v21  ;;  %vm13717_vm10 = vmand %vm16640_vm4, %vm1103_vm9  ;;  %v3685_v10 = vadd.f32 %v13414_v5, %v16644_v56  ;;  %v13738_v14 = vadd.f32 %v13431_v40, %v13361_v31  ;;  %v16646_v44 = vld [vmem:[#allocation47_spill] sm:$0xff]  ;;  %v16647_v5 = vld [vmem:[#allocation41_spill] sm:$0xff]  ;;  %v16649_v56 = vmov 0 }
 0x284   : > { %16639 = vst [vmem:[#allocation48_spill] sm:$0xff] %v16638_v21  ;;  %v16642_v33 = vsel %vm13717_vm10, 4294967295, %v16641_v33  ;;  %v16648_v15 = vsel %vm12810_vm11, %v16646_v44, %v16647_v5  ;;  %v13759_v40 = vadd.s32 18, %v13644_v9  ;;  %v13762_v58 = vsub.s32 %v13339_v41, %v965_v26  ;;  %vm13781_vm11 = vmand %vm1142_vm2, %vm1106_vm1  ;;  %v16679_v9 = vld [vmem:[#allocation60_spill] sm:$0xff] }
 0x285   : > { %16643 = vst [vmem:[#allocation46_spill] sm:$0xff] %v16642_v33  ;;  %vm13750_vm8 = vcmp.lt.s32.totalorder %v16648_v15, 16  ;;  %v13766_v43 = vadd.f32 %v13473_v7, %v13382_v18  ;;  %v13770_v44 = vadd.f32 %v13518_v22, %v13401_v0  ;;  %v4374_v5 = vadd.f32 %v10563_v62, %v13314_v27  ;;  %v4229_v18 = vpop.f32.mrf.mxu0  ;;  %v16658_v0 = vld [vmem:[#allocation50_spill] sm:$0xff]  ;;  %v16659_v22 = vld [vmem:[#allocation44_spill] sm:$0xff] }
 0x286   : > { %v16650_v56 = vsel %vm13750_vm8, 4294967295, %v16649_v56  ;;  %16652 = vst [vmem:[#allocation75_spill] sm:$0xff] %v13759_v40  ;;  %v16654_v41 = vmov 0  ;;  %v16660_v26 = vsel %vm12831_vm12, %v16658_v0, %v16659_v22  ;;  %v16661_v27 = vmov 0  ;;  %v3974_v0 = vpop.f32.mrf.mxu1  ;;  %v16680_v40 = vld [vmem:[#allocation56_spill] sm:$0xff] }
 0x287   : > { %16651 = vst [vmem:[#allocation40_spill] sm:$0xff] %v16650_v56  ;;  %16653 = vst [vmem:[#allocation49_spill] sm:$0xff] %v13770_v44  ;;  %v16655_v41 = vsel %vm13781_vm11, 4294967295, %v16654_v41  ;;  %vm13790_vm9 = vcmp.lt.s32.totalorder %v16660_v26, 16  ;;  %v13795_v62 = vsub.s32 %v13355_v17, %v1020_v60  ;;  %v997_v15 = vshrl.u32 %v13649_v6, 4  ;;  %v16666_v26 = vld [vmem:[#allocation33_spill] sm:$0xff]  ;;  %v10564_v6 = vpop.f32.mrf.mxu0 }
 0x288   : > { %16656 = vst [vmem:[#allocation47_spill] sm:$0xff] %v16655_v41  ;;  %v16662_v27 = vsel %vm13790_vm9, 4294967295, %v16661_v27  ;;  %v13799_v31 = vmul.u32.u64.low 3817748708, %v13427_v52  ;;  %v13800_v1 = vmul.u32.u64.high 3817748708, %v13427_v52, %v13799_v31  ;;  %v13803_v51 = vadd.f32 %v13561_v28, %v3685_v10  ;;  %v10547_v60 = vpop.f32.mrf.mxu1  ;;  %v16716_v56 = vld [vmem:[#allocation65_spill] sm:$0xff] }
 0x289   : > { %16663 = vst [vmem:[#allocation41_spill] sm:$0xff] %v16662_v27  ;;  %v13807_v7 = vadd.f32 %v13610_v46, %v13450_v45  ;;  %v4417_v22 = vadd.f32 %v13743_v12, %v4374_v5  ;;  %v4372_v33 = vadd.f32 %v4229_v18, %v16666_v26  ;;  %v13812_v17 = vadd.f32 %v3971_v2, %v13476_v13  ;;  %v16670_v31 = vld [vmem:[#allocation19_spill] sm:$0xff]  ;;  %v16675_v46 = vld [vmem:[#allocation93_spill] sm:$0xff]  ;;  %v4232_v18 = vpop.f32.mrf.mxu0 }
 0x28a   : > { %16664 = vst [vmem:[#allocation53_spill] sm:$0xff] %v13803_v51  ;;  %v16671_v48 = vsel %vm12853_vm13, %v16669_v53, %v16670_v31  ;;  %v16672_v28 = vmov 0  ;;  %vm1104_vm12 = vcmp.ne.s32.totalorder %v13762_v58, 0  ;;  %v4375_v10 = vadd.f32 %v10564_v6, %v16675_v46  ;;  %v11448_v31 = vld [vmem:[#allocation2 + $0x23] sm:$0xff] }
 0x28b   : > { %16665 = vst [vmem:[#allocation50_spill] sm:$0xff] %v13807_v7  ;;  %16667 = vst [vmem:[#allocation44_spill] sm:$0xff] %v13812_v17  ;;  %vm13819_vm1 = vcmp.lt.s32.totalorder %v16671_v48, 16  ;;  %v4453_v2 = vmax.f32 %v4417_v22, 0.0  ;;  %v4415_v13 = vadd.f32 %v13743_v12, %v4372_v33  ;;  %v13832_v53 = vadd.s32 18, %v13762_v58  ;;  %v16676_v48 = vld [vmem:[#allocation79_spill] sm:$0xff] }
 0x28c   : > { %v16673_v28 = vsel %vm13819_vm1, 4294967295, %v16672_v28  ;;  %v3689_v5 = vadd.f32 %v13508_v4, %v16676_v48  ;;  %v998_v26 = vmul.u32 18, %v997_v15  ;;  %v4418_v33 = vadd.f32 %v13743_v12, %v4375_v10  ;;  %v16677_v17 = vld [vmem:[#allocation94_spill] sm:$0xff]  ;;  %v16690_v10 = vld [vmem:[#allocation63_spill] sm:$0xff] }
 0x28d   : > { %16674 = vst [vmem:[#allocation33_spill] sm:$0xff] %v16673_v28  ;;  %v4489_v45 = vadd.f32 %v11448_v31, %v4453_v2  ;;  %v4451_v22 = vmax.f32 %v4415_v13, 0.0  ;;  %v4373_v6 = vadd.f32 %v4232_v18, %v16677_v17  ;;  %v16681_v41 = vsel %vm12943_vm5, %v16679_v9, %v16680_v40  ;;  %v10567_v17 = vpop.f32.mrf.mxu0  ;;  %v16691_v9 = vld [vmem:[#allocation57_spill] sm:$0xff]  ;;  %v16696_v18 = vld [vmem:[#allocation100_spill] sm:$0xff]  ;;  %v16739_v28 = vld [vmem:[#allocation23_spill] sm:$0xff] }
 0x28e   : > { %vm13845_vm2 = vcmp.lt.s32.totalorder %v16681_v41, 16  ;;  %v16682_v4 = vmov 0  ;;  %vm16685_vm4 = vcmp.lt.s32.totalorder %v13762_v58, 0  ;;  %v13858_v2 = vadd.f32 %v10544_v11, %v13500_v59  ;;  %v11449_v11 = vld [vmem:[#allocation2 + $0x13] sm:$0xff] }
 0x28f   : > { %v16683_v4 = vsel %vm13845_vm2, 4294967295, %v16682_v4  ;;  %vm13853_vm13 = vmand %vm16685_vm4, %vm1104_vm12  ;;  %v16692_v40 = vsel %vm12958_vm6, %v16690_v10, %v16691_v9  ;;  %v16693_v41 = vmov 0  ;;  %v13870_v48 = vadd.s32 18, %v13795_v62  ;;  %v16702_v9 = vld [vmem:[#allocation95_spill] sm:$0xff]  ;;  %v16883_v49 = vld [vmem:[#allocation49_spill] sm:$0xff] }
 0x290   : > { %16684 = vst [vmem:[#allocation55_spill] sm:$0xff] %v16683_v4  ;;  %16688 = vst [vmem:[#allocation51_spill] sm:$0xff] %v13858_v2  ;;  %vm13865_vm5 = vcmp.lt.s32.totalorder %v16692_v40, 16  ;;  %v13873_v31 = vmul.u32.u64.low 3817748708, %v16696_v18  ;;  %v13874_v46 = vmul.u32.u64.high 3817748708, %v16696_v18, %v13873_v31  ;;  %v4597_v59 = vsel %vm13709_vm15, %v4489_v45, 0.0 }
 0x291   : > { %v16694_v41 = vsel %vm13865_vm5, 4294967295, %v16693_v41  ;;  %v4487_v2 = vadd.f32 %v11449_v11, %v4451_v22  ;;  %v4454_v13 = vmax.f32 %v4418_v33, 0.0  ;;  %v4416_v7 = vadd.f32 %v13743_v12, %v4373_v6  ;;  %v4245_v31 = vpop.f32.mrf.mxu0  ;;  %v16704_v45 = vld [vmem:[#allocation64_spill] sm:$0xff]  ;;  %v16705_v22 = vld [vmem:[#allocation58_spill] sm:$0xff]  ;;  %v16715_v11 = vld [vmem:[#allocation67_spill] sm:$0xff] }
 0x292   : > { %16695 = vst [vmem:[#allocation19_spill] sm:$0xff] %v16694_v41  ;;  %vm16697_vm6 = vcmp.ne.s32.totalorder %v13795_v62, 0  ;;  %vm16698_vm12 = vcmp.lt.s32.totalorder %v13795_v62, 0  ;;  %v16699_v10 = vmov 0  ;;  %vm16701_vm11 = vcmask 523264   ;;  %v16773_v41 = vld [vmem:[#allocation28_spill] sm:$0xff] }
 0x293   : > { %vm13883_vm4 = vmand %vm16698_vm12, %vm16697_vm6  ;;  %4633 = vst.msk [vmem:[#allocation3 + $0x23] sm:$0xff] %vm16701_vm11, %v4597_v59  ;;  %v4378_v40 = vadd.f32 %v10567_v17, %v16702_v9  ;;  %v16706_v33 = vsel %vm12981_vm7, %v16704_v45, %v16705_v22  ;;  %v16707_v6 = vmov 0  ;;  %v13903_v38 = vsub.s32 %v13377_v19, %v998_v26  ;;  %v3987_v59 = vpop.f32.mrf.mxu1  ;;  %v11450_v9 = vld [vmem:[#allocation2 + $0x2b] sm:$0xff]  ;;  %v10568_v26 = vpop.f32.mrf.mxu0 }
 0x294   : > { %v16700_v10 = vsel %vm13883_vm4, 4294967295, %v16699_v10  ;;  %vm13894_vm15 = vcmp.lt.s32.totalorder %v16706_v33, 16  ;;  %v1030_v17 = vshrl.u32 %v13800_v1, 4  ;;  %v4595_v21 = vsel %vm13750_vm8, %v4487_v2, 0.0  ;;  %v16711_v33 = vld [vmem:[#allocation98_spill] sm:$0xff]  ;;  %vm16713_vm7 = vmmov %vm16701_vm11 }
 0x295   : > { %v16708_v6 = vsel %vm13894_vm15, 4294967295, %v16707_v6  ;;  %16710 = vst [vmem:[#allocation79_spill] sm:$0xff] %v13903_v38  ;;  %v4490_v45 = vadd.f32 %v11450_v9, %v4454_v13  ;;  %v4452_v22 = vmax.f32 %v4416_v7, 0.0  ;;  %v4376_v51 = vadd.f32 %v4245_v31, %v16711_v33  ;;  %4631 = vst.msk [vmem:[#allocation3 + $0x13] sm:$0xff] %vm16713_vm7, %v4595_v21  ;;  %v16723_v21 = vld [vmem:[#allocation71_spill] sm:$0xff]  ;;  %v16725_v9 = vld [vmem:[#allocation24_spill] sm:$0xff] }
 0x296   : > { %16709 = vst [vmem:[#allocation93_spill] sm:$0xff] %v16708_v6  ;;  %v13909_v44 = vadd.f32 %v3974_v0, %v3689_v5  ;;  %v13912_v30 = vadd.f32 %v10547_v60, %v16712_v34  ;;  %v4421_v19 = vadd.f32 %v13743_v12, %v4378_v40  ;;  %v16717_v2 = vsel %vm13070_vm3, %v16715_v11, %v16716_v56  ;;  %v11451_v0 = vld [vmem:[#allocation2 + $0x1b] sm:$0xff]  ;;  %v16721_v40 = vld [vmem:[#allocation101_spill] sm:$0xff]  ;;  %vm16722_vm6 = vmmov %vm16713_vm7  ;;  %v4248_v11 = vpop.f32.mrf.mxu0 }
 0x297   : > { %vm13921_vm11 = vcmp.lt.s32.totalorder %v16717_v2, 16  ;;  %v16718_v13 = vmov 0  ;;  %v4598_v7 = vsel %vm13790_vm9, %v4490_v45, 0.0  ;;  %v4488_v5 = vadd.f32 %v11451_v0, %v4452_v22  ;;  %v16726_v33 = vld [vmem:[#allocation66_spill] sm:$0xff]  ;;  %v10548_v45 = vpop.f32.mrf.mxu1 }
 0x298   : > { %v16719_v13 = vsel %vm13921_vm11, 4294967295, %v16718_v13  ;;  %v4419_v60 = vadd.f32 %v13743_v12, %v4376_v51  ;;  %v4379_v31 = vadd.f32 %v10568_v26, %v16721_v40  ;;  %4634 = vst.msk [vmem:[#allocation3 + $0x2b] sm:$0xff] %vm16722_vm6, %v4598_v7  ;;  %v4457_v56 = vmax.f32 %v4421_v19, 0.0  ;;  %v16731_v7 = vld [vmem:[#allocation104_spill] sm:$0xff] }
 0x299   : > { %16720 = vst [vmem:[#allocation94_spill] sm:$0xff] %v16719_v13  ;;  %vm16724_vm3 = vnez %v16723_v21  ;;  %v16728_v2 = vmov 0  ;;  %vm1107_vm7 = vcmp.ne.s32.totalorder %v13903_v38, 0  ;;  %v1031_v51 = vmul.u32 18, %v1030_v17  ;;  %v16733_v21 = vld [vmem:[#allocation83_spill] sm:$0xff]  ;;  %v10571_v17 = vpop.f32.mrf.mxu0 }
 0x29a   : > { %v16727_v1 = vsel %vm16724_vm3, %v16725_v9, %v16726_v33  ;;  %v4596_v22 = vsel %vm13819_vm1, %v4488_v5, 0.0  ;;  %v4455_v19 = vmax.f32 %v4419_v60, 0.0  ;;  %v4422_v26 = vadd.f32 %v13743_v12, %v4379_v31  ;;  %v11452_v33 = vld [vmem:[#allocation2 + $0x43] sm:$0xff]  ;;  %v11453_v5 = vld [vmem:[#allocation2 + $0x33] sm:$0xff] }
 0x29b   : > { %vm13939_vm12 = vcmp.lt.s32.totalorder %v16727_v1, 16  ;;  %v4377_v0 = vadd.f32 %v4248_v11, %v16731_v7  ;;  %v13950_v40 = vadd.f32 %v3987_v59, %v13564_v23  ;;  %v3693_v9 = vadd.f32 %v13600_v3, %v16733_v21  ;;  %4632 = vst.msk [vmem:[#allocation3 + $0x1b] sm:$0xff] %vm16722_vm6, %v4596_v22  ;;  %v16735_v11 = vld [vmem:[#allocation106_spill] sm:$0xff]  ;;  %v16736_v23 = vld [vmem:[#allocation73_spill] sm:$0xff] }
 0x29c   : > { %v16729_v2 = vsel %vm13939_vm12, 4294967295, %v16728_v2  ;;  %v4493_v1 = vadd.f32 %v11452_v33, %v4457_v56  ;;  %v13956_v34 = vadd.s32 18, %v13903_v38  ;;  %v4491_v60 = vadd.f32 %v11453_v5, %v4455_v19  ;;  %v16738_v59 = vld [vmem:[#allocation69_spill] sm:$0xff]  ;;  %v16751_v21 = vld [vmem:[#allocation74_spill] sm:$0xff]  ;;  %v16752_v33 = vld [vmem:[#allocation68_spill] sm:$0xff] }
 0x29d   : > { %16730 = vst [vmem:[#allocation61_spill] sm:$0xff] %v16729_v2  ;;  %16732 = vst [vmem:[#allocation60_spill] sm:$0xff] %v13950_v40  ;;  %v4458_v27 = vmax.f32 %v4422_v26, 0.0  ;;  %v4420_v31 = vadd.f32 %v13743_v12, %v4377_v0  ;;  %v4382_v7 = vadd.f32 %v10571_v17, %v16735_v11  ;;  %vm16737_vm3 = vnez %v16736_v23  ;;  %v4261_v0 = vpop.f32.mrf.mxu0  ;;  %v16782_v40 = vld [vmem:[#allocation78_spill] sm:$0xff] }
 0x29e   : > { %16734 = vst [vmem:[#allocation56_spill] sm:$0xff] %v13956_v34  ;;  %v16740_v3 = vsel %vm16737_vm3, %v16738_v59, %v16739_v28  ;;  %v16741_v22 = vmov 0  ;;  %vm16744_vm6 = vcmp.lt.s32.totalorder %v13903_v38, 0  ;;  %v16745_v56 = vmov 0  ;;  %v16749_v28 = vld [vmem:[#allocation76_spill] sm:$0xff] }
 0x29f   : > { %vm13965_vm9 = vcmp.lt.s32.totalorder %v16740_v3, 16  ;;  %vm13973_vm1 = vmand %vm16744_vm6, %vm1107_vm7  ;;  %v13978_v19 = vadd.f32 %v10548_v45, %v13592_v24  ;;  %v4601_v26 = vsel %vm13845_vm2, %v4493_v1, 0.0  ;;  %vm16750_vm3 = vnez %v16749_v28  ;;  %v3990_v24 = vpop.f32.mrf.mxu1  ;;  %v11454_v1 = vld [vmem:[#allocation2 + $0x4b] sm:$0xff] }
 0x2a0   : > { %v16742_v22 = vsel %vm13965_vm9, 4294967295, %v16741_v22  ;;  %v16746_v56 = vsel %vm13973_vm1, 4294967295, %v16745_v56  ;;  %v16753_v17 = vsel %vm16750_vm3, %v16751_v21, %v16752_v33  ;;  %v16754_v5 = vmov 0  ;;  %v16759_v21 = vld [vmem:[#allocation39_spill] sm:$0xff] }
 0x2a1   : > { %16743 = vst [vmem:[#allocation62_spill] sm:$0xff] %v16742_v22  ;;  %16747 = vst [vmem:[#allocation63_spill] sm:$0xff] %v16746_v56  ;;  %vm13987_vm8 = vcmp.lt.s32.totalorder %v16753_v17, 16  ;;  %v13992_v11 = vsub.s32 %v13427_v52, %v1031_v51  ;;  %v1008_v23 = vshrl.u32 %v13874_v46, 4  ;;  %vm16757_vm7 = vcmask 523264   ;;  %v10572_v17 = vpop.f32.mrf.mxu0  ;;  %v16760_v52 = vld [vmem:[#allocation27_spill] sm:$0xff]  ;;  %v10551_v13 = vpop.f32.mrf.mxu1 }
 0x2a2   : > { %16748 = vst [vmem:[#allocation57_spill] sm:$0xff] %v13978_v19  ;;  %v16755_v5 = vsel %vm13987_vm8, 4294967295, %v16754_v5  ;;  %4637 = vst.msk [vmem:[#allocation3 + $0x43] sm:$0xff] %vm16757_vm7, %v4601_v26  ;;  %v4599_v45 = vsel %vm13865_vm5, %v4491_v60, 0.0  ;;  %v4494_v59 = vadd.f32 %v11454_v1, %v4458_v27  ;;  %v4456_v3 = vmax.f32 %v4420_v31, 0.0  ;;  %v16762_v51 = vld [vmem:[#allocation77_spill] sm:$0xff] }
 0x2a3   : > { %16756 = vst [vmem:[#allocation100_spill] sm:$0xff] %v16755_v5  ;;  %v4425_v28 = vadd.f32 %v13743_v12, %v4382_v7  ;;  %vm16758_vm6 = vmmov %vm16757_vm7  ;;  %v4380_v33 = vadd.f32 %v4261_v0, %v16759_v21  ;;  %vm16761_vm3 = vnez %v16760_v52  ;;  %v16763_v46 = vld [vmem:[#allocation70_spill] sm:$0xff]  ;;  %v16765_v26 = vmov 0  ;;  %v16768_v60 = vld [vmem:[#allocation37_spill] sm:$0xff] }
 0x2a4   : > { %4635 = vst.msk [vmem:[#allocation3 + $0x33] sm:$0xff] %vm16758_vm6, %v4599_v45  ;;  %v16764_v4 = vsel %vm16761_vm3, %v16762_v51, %v16763_v46  ;;  %v14015_v31 = vmul.u32.u64.low 3817748708, %v16768_v60  ;;  %v14016_v7 = vmul.u32.u64.high 3817748708, %v16768_v60, %v14015_v31  ;;  %v4602_v0 = vsel %vm13894_vm15, %v4494_v59, 0.0  ;;  %v11455_v45 = vld [vmem:[#allocation2 + $0x3b] sm:$0xff]  ;;  %vm16770_vm7 = vmmov %vm16758_vm6  ;;  %v4264_v46 = vpop.f32.mrf.mxu0  ;;  %v16771_v27 = vld [vmem:[#allocation81_spill] sm:$0xff] }
 0x2a5   : > { %vm14006_vm2 = vcmp.lt.s32.totalorder %v16764_v4, 16  ;;  %v4492_v1 = vadd.f32 %v11455_v45, %v4456_v3  ;;  %v4461_v21 = vmax.f32 %v4425_v28, 0.0  ;;  %v4383_v4 = vadd.f32 %v10572_v17, %v13554_v54  ;;  %4638 = vst.msk [vmem:[#allocation3 + $0x4b] sm:$0xff] %vm16770_vm7, %v4602_v0  ;;  %v16774_v19 = vld [vmem:[#allocation72_spill] sm:$0xff]  ;;  %v4731_v59 = vld [vmem:[#allocation3 + $0x11] sm:$0xff]  ;;  %v4734_v28 = vld [vmem:[#allocation3 + $0x29] sm:$0xff] }
 0x2a6   : > { %v16766_v26 = vsel %vm14006_vm2, 4294967295, %v16765_v26  ;;  %v14021_v52 = vadd.f32 %v3990_v24, %v3693_v9  ;;  %v4423_v51 = vadd.f32 %v13743_v12, %v4380_v33  ;;  %vm16772_vm6 = vnez %v16771_v27  ;;  %v4669_v3 = vld [vmem:[#allocation3 + $0x10] sm:$0xff]  ;;  %v4670_v17 = vld [vmem:[#allocation3 + $0x18] sm:$0xff]  ;;  %v4733_v27 = vld [vmem:[#allocation3 + $0x21] sm:$0xff]  ;;  %v10575_v45 = vpop.f32.mrf.mxu0 }
 0x2a7   : > { %16767 = vst [vmem:[#allocation95_spill] sm:$0xff] %v16766_v26  ;;  %v16775_v31 = vsel %vm16772_vm6, %v16773_v41, %v16774_v19  ;;  %v16776_v6 = vmov 0  ;;  %v4600_v54 = vsel %vm13921_vm11, %v4492_v1, 0.0  ;;  %v11456_v9 = vld [vmem:[#allocation2 + $0x63] sm:$0xff]  ;;  %v4426_v33 = vadd.f32 %v13743_v12, %v4383_v4  ;;  %v4672_v56 = vld [vmem:[#allocation3 + $0x28] sm:$0xff] }
 0x2a8   : > { %16769 = vst [vmem:[#allocation22_spill] sm:$0xff] %v14021_v52  ;;  %vm14030_vm3 = vcmp.lt.s32.totalorder %v16775_v31, 16  ;;  %v4497_v24 = vadd.f32 %v11456_v9, %v4461_v21  ;;  %v4381_v41 = vadd.f32 %v4264_v46, %v13574_v39  ;;  %v4732_v19 = vld [vmem:[#allocation3 + $0x19] sm:$0xff]  ;;  %4636 = vst.msk [vmem:[#allocation3 + $0x3b] sm:$0xff] %vm16770_vm7, %v4600_v54  ;;  %v4459_v0 = vmax.f32 %v4423_v51, 0.0  ;;  %v16779_v31 = vld [vmem:[#allocation85_spill] sm:$0xff] }
 0x2a9   : > { %v16777_v6 = vsel %vm14030_vm3, 4294967295, %v16776_v6  ;;  %vm16780_vm6 = vnez %v16779_v31  ;;  %v16781_v52 = vld [vmem:[#allocation84_spill] sm:$0xff]  ;;  %v16784_v1 = vmov 0  ;;  %v4766_v21 = vpack.c.bf16 %v4732_v19, %v4731_v59  ;;  %v11273_v46 = vld [vmem:[#allocation10 + $0x50] sm:$0xff]  }
 0x2aa   : > { %16778 = vst [vmem:[#allocation64_spill] sm:$0xff] %v16777_v6  ;;  %v16783_v38 = vsel %vm16780_vm6, %v16781_v52, %v16782_v40  ;;  %v4704_v4 = vpack.c.bf16 %v4670_v17, %v4669_v3  ;;  %v4767_v9 = vpack.c.bf16 %v4734_v28, %v4733_v27  ;;  %v4671_v39 = vld [vmem:[#allocation3 + $0x20] sm:$0xff]  ;;  %v4605_v54 = vsel %vm13939_vm12, %v4497_v24, 0.0  ;;  %v4277_v52 = vpop.f32.mrf.mxu0  ;;  %vm16786_vm6 = vmmov %vm16770_vm7  ;;  %v11459_v27 = vld [vmem:[#allocation10 + $0x58] sm:$0xff]  }
 0x2ab   : > { %vm14046_vm5 = vcmp.lt.s32.totalorder %v16783_v38, 16  ;;  %v4462_v51 = vmax.f32 %v4426_v33, 0.0  ;;  %v4424_v34 = vadd.f32 %v13743_v12, %v4381_v41  ;;  %v4386_v31 = vadd.f32 %v10575_v45, %v13578_v16  ;;  %4641 = vst.msk [vmem:[#allocation3 + $0x63] sm:$0xff] %vm16770_vm7, %v4605_v54  ;;  %v11457_v38 = vld [vmem:[#allocation2 + $0x53] sm:$0xff]  ;;  %10606 = vmatmul.mubr.msk.bf16.vlgmr.msra.gmra.mxu1 %vm16786_vm6, %v4766_v21  ;;  %vm16787_vm15 = vmmov %vm16786_vm6  ;;  %v11458_v33 = vld [vmem:[#allocation2 + $0x6b] sm:$0xff] }
 0x2ac   : > { %v16785_v1 = vsel %vm14046_vm5, 4294967295, %v16784_v1  ;;  %v4495_v40 = vadd.f32 %v11457_v38, %v4459_v0  ;;  %10650 = vmatmul.mubr.msk.bf16.vlgmr.msra.gmra.mxu0 %vm16787_vm15, %v4704_v4  ;;  %v4705_v59 = vpack.c.bf16 %v4672_v56, %v4671_v39  ;;  %v14058_v3 = vadd.s32 18, %v13992_v11  ;;  %v14060_v24 = vld [vmem:[#allocation10 + $0x70] sm:$0xff]   ;;  %vm16788_vm7 = vmmov %vm16786_vm6  ;;  %10686 = vmatpush3.bf16.msra.mxu1 %v11459_v27  ;;  %v16789_v0 = vld [vmem:[#allocation32_spill] sm:$0xff] }
 0x2ad   : > { %v1009_v28 = vmul.u32 18, %v1008_v23  ;;  %v4498_v41 = vadd.f32 %v11458_v33, %v4462_v51  ;;  %v4460_v16 = vmax.f32 %v4424_v34, 0.0  ;;  %v4429_v19 = vadd.f32 %v13743_v12, %v4386_v31  ;;  %10609 = vmatprep.mubr.msk.bf16.mxu1 %vm16788_vm7, %v4767_v9  ;;  %v16791_v56 = vld [vmem:[#allocation87_spill] sm:$0xff]  ;;  %v16792_v45 = vld [vmem:[#allocation80_spill] sm:$0xff]  ;;  %v10576_v9 = vpop.f32.mrf.mxu0  ;;  %v16801_v39 = vld [vmem:[#allocation90_spill] sm:$0xff]  ;;  %10687 = vmatprep.subr.bf16.mxu1 %v11273_v46 }
 0x2ae   : > { %v4384_v17 = vadd.f32 %v4277_v52, %v13589_v36  ;;  %vm16790_vm15 = vnez %v16789_v0  ;;  %v16794_v23 = vmov 0  ;;  %vm16797_vm12 = vcmp.ne.s32.totalorder %v13992_v11, 0  ;;  %10653 = vmatprep.mubr.msk.bf16.mxu0 %vm16788_vm7, %v4705_v59  ;;  %v16803_v54 = vld [vmem:[#allocation88_spill] sm:$0xff]  ;;  %v16804_v51 = vld [vmem:[#allocation29_spill] sm:$0xff]  ;;  %v11460_v59 = vld [vmem:[#allocation2 + $0x5b] sm:$0xff] }
 0x2af   : > { %v16793_v21 = vsel %vm16790_vm15, %v16791_v56, %v16792_v45  ;;  %vm16798_vm11 = vcmp.lt.s32.totalorder %v13992_v11, 0  ;;  %v14083_v36 = vadd.f32 %v10551_v13, %v13624_v61  ;;  %v4603_v4 = vsel %vm13965_vm9, %v4495_v40, 0.0  ;;  %v14097_v52 = vld [vmem:[#allocation10 + $0x48] sm:$0xff]   ;;  %v16809_v61 = vld [vmem:[#allocation105_spill] sm:$0xff]  ;;  %v16811_v45 = vld [vmem:[#allocation82_spill] sm:$0xff] }
 0x2b0   : > { %vm14070_vm6 = vcmp.lt.s32.totalorder %v16793_v21, 16  ;;  %vm14078_vm1 = vmand %vm16798_vm11, %vm16797_vm12  ;;  %vm16802_vm15 = vnez %v16801_v39  ;;  %v16806_v38 = vmov 0  ;;  %v4606_v40 = vsel %vm13987_vm8, %v4498_v41, 0.0  ;;  %10730 = vmatpush3.bf16.msra.mxu0 %v16811_v45  ;;  %v4280_v39 = vpop.f32.mrf.mxu0  ;;  %v4735_v41 = vld [vmem:[#allocation3 + $0x31] sm:$0xff]  ;;  %v4737_v2 = vld [vmem:[#allocation3 + $0x41] sm:$0xff]  ;;  %10688 = vmatpush3.bf16.msra.mxu1 %v11273_v46 }
 0x2b1   : > { %v16795_v23 = vsel %vm14070_vm6, 4294967295, %v16794_v23  ;;  %v16805_v31 = vsel %vm16802_vm15, %v16803_v54, %v16804_v51  ;;  %v14100_v13 = vmul.u32.u64.low 3817748708, %v16809_v61  ;;  %v14101_v33 = vmul.u32.u64.high 3817748708, %v16809_v61, %v14100_v13  ;;  %vm16810_vm11 = vmmov %vm16788_vm7  ;;  %v16813_v54 = vld [vmem:[#allocation36_spill] sm:$0xff]  ;;  %v16815_v51 = vld [vmem:[#allocation35_spill] sm:$0xff]  ;;  %10731 = vmatprep.subr.bf16.mxu0 %v14060_v24  ;;  %10689 = vmatprep.subr.bf16.mxu1 %v14097_v52 }
 0x2b2   : > { %16796 = vst [vmem:[#allocation58_spill] sm:$0xff] %v16795_v23  ;;  %vm14093_vm4 = vcmp.lt.s32.totalorder %v16805_v31, 16  ;;  %4639 = vst.msk [vmem:[#allocation3 + $0x53] sm:$0xff] %vm16810_vm11, %v4603_v4  ;;  %v4496_v27 = vadd.f32 %v11460_v59, %v4460_v16  ;;  %v4465_v0 = vmax.f32 %v4429_v19, 0.0  ;;  %v4427_v56 = vadd.f32 %v13743_v12, %v4384_v17  ;;  %v16816_v31 = vld [vmem:[#allocation91_spill] sm:$0xff]  ;;  %v4738_v19 = vld [vmem:[#allocation3 + $0x49] sm:$0xff] }
 0x2b3   : > { %v16807_v38 = vsel %vm14093_vm4, 4294967295, %v16806_v38  ;;  %vm16812_vm12 = vmmov %vm16788_vm7  ;;  %v4387_v21 = vadd.f32 %v10576_v9, %v13608_v32  ;;  %vm16814_vm7 = vnez %v16813_v54  ;;  %v16818_v13 = vmov 0  ;;  %v4673_v16 = vld [vmem:[#allocation3 + $0x30] sm:$0xff]  ;;  %v4674_v5 = vld [vmem:[#allocation3 + $0x38] sm:$0xff] }
 0x2b4   : > { %16808 = vst [vmem:[#allocation98_spill] sm:$0xff] %v16807_v38  ;;  %4642 = vst.msk [vmem:[#allocation3 + $0x6b] sm:$0xff] %vm16812_vm12, %v4606_v40  ;;  %v16817_v4 = vsel %vm16814_vm7, %v16815_v51, %v16816_v31  ;;  %v14124_v32 = vsub.s32 %v16696_v18, %v1009_v28  ;;  %v1063_v9 = vshrl.u32 %v14016_v7, 4  ;;  %v4003_v40 = vpop.f32.mrf.mxu1  ;;  %v4604_v59 = vsel %vm14006_vm2, %v4496_v27, 0.0  ;;  %v11461_v45 = vld [vmem:[#allocation2 + $0x83] sm:$0xff]  ;;  %v10579_v7 = vpop.f32.mrf.mxu0  ;;  %v16823_v17 = vld [vmem:[#allocation97_spill] sm:$0xff]  ;;  %10732 = vmatpush3.bf16.msra.mxu0 %v14060_v24 }
 0x2b5   : > { %vm14115_vm15 = vcmp.lt.s32.totalorder %v16817_v4, 16  ;;  %v4501_v54 = vadd.f32 %v11461_v45, %v4465_v0  ;;  %v4463_v51 = vmax.f32 %v4427_v56, 0.0  ;;  %v4385_v31 = vadd.f32 %v4280_v39, %v13659_v29  ;;  %v4736_v4 = vld [vmem:[#allocation3 + $0x39] sm:$0xff]  ;;  %4640 = vst.msk [vmem:[#allocation3 + $0x5b] sm:$0xff] %vm16810_vm11, %v4604_v59  ;;  %v16821_v28 = vld [vmem:[#allocation99_spill] sm:$0xff]  ;;  %v11462_v59 = vld [vmem:[#allocation2 + $0x73] sm:$0xff]  ;;  %10690 = vmatpush3.bf16.msra.mxu1 %v14097_v52 }
 0x2b6   : > { %v16819_v13 = vsel %vm14115_vm15, 4294967295, %v16818_v13  ;;  %v4430_v18 = vadd.f32 %v13743_v12, %v4387_v21  ;;  %vm16822_vm12 = vnez %v16821_v28  ;;  %v16824_v22 = vld [vmem:[#allocation92_spill] sm:$0xff]  ;;  %v16826_v27 = vmov 0  ;;  %v11275_v46 = vld [vmem:[#allocation10 + $0x40] sm:$0xff]  }
 0x2b7   : > { %16820 = vst [vmem:[#allocation42_spill] sm:$0xff] %v16819_v13  ;;  %v16825_v26 = vsel %vm16822_vm12, %v16823_v17, %v16824_v22  ;;  %v4768_v0 = vpack.c.bf16 %v4736_v4, %v4735_v41  ;;  %v4706_v29 = vpack.c.bf16 %v4674_v5, %v4673_v16  ;;  %v4769_v56 = vpack.c.bf16 %v4738_v19, %v4737_v2  ;;  %v4675_v39 = vld [vmem:[#allocation3 + $0x40] sm:$0xff]  ;;  %v4293_v41 = vpop.f32.mrf.mxu0  ;;  %vm16829_vm12 = vmmov %vm16810_vm11  ;;  %v16831_v19 = vld [vmem:[#allocation38_spill] sm:$0xff] }
 0x2b8   : > { %vm14138_vm7 = vcmp.lt.s32.totalorder %v16825_v26, 16  ;;  %v4609_v21 = vsel %vm14030_vm3, %v4501_v54, 0.0  ;;  %v4499_v45 = vadd.f32 %v11462_v59, %v4463_v51  ;;  %v4428_v28 = vadd.f32 %v13743_v12, %v4385_v31  ;;  %v4676_v26 = vld [vmem:[#allocation3 + $0x48] sm:$0xff]  ;;  %v11278_v17 = vld [vmem:[#allocation10 + $0x68] sm:$0xff]   ;;  %vm16830_vm3 = vmmov %vm16810_vm11  ;;  %10691 = vmatprep.subr.bf16.mxu1 %v11275_v46 }
 0x2b9   : > { %v16827_v27 = vsel %vm14138_vm7, 4294967295, %v16826_v27  ;;  %v4390_v22 = vadd.f32 %v10579_v7, %v13678_v47  ;;  %v14149_v5 = vadd.f32 %v4003_v40, %v13654_v42  ;;  %4645 = vst.msk [vmem:[#allocation3 + $0x83] sm:$0xff] %vm16810_vm11, %v4609_v21  ;;  %v4466_v2 = vmax.f32 %v4430_v18, 0.0  ;;  %10610 = vmatmul.mubr.msk.bf16.gmra.mxu1 %vm16829_vm12, %v4768_v0  ;;  %10654 = vmatmul.mubr.msk.bf16.gmra.mxu0 %vm16830_vm3, %v4706_v29  ;;  %v16833_v54 = vld [vmem:[#allocation102_spill] sm:$0xff]  ;;  %v16834_v47 = vld [vmem:[#allocation96_spill] sm:$0xff]  ;;  %v14169_v7 = vld [vmem:[#allocation10 + $0x60] sm:$0xff]  }
 0x2ba   : > { %16828 = vst [vmem:[#allocation25_spill] sm:$0xff] %v16827_v27  ;;  %v4707_v16 = vpack.c.bf16 %v4676_v26, %v4675_v39  ;;  %vm16832_vm8 = vnez %v16831_v19  ;;  %v16836_v24 = vmov 0  ;;  %v1064_v42 = vmul.u32 18, %v1063_v9  ;;  %10613 = vmatprep.mubr.msk.bf16.mxu1 %vm16830_vm3, %v4769_v56  ;;  %v11463_v0 = vld [vmem:[#allocation2 + $0x8b] sm:$0xff]  ;;  %vm16840_vm11 = vmmov %vm16830_vm3  ;;  %v10580_v9 = vpop.f32.mrf.mxu0  ;;  %v16841_v21 = vld [vmem:[#allocation107_spill] sm:$0xff]  ;;  %10733 = vmatprep.subr.bf16.mxu0 %v11278_v17 }
 0x2bb   : > { %v16835_v51 = vsel %vm16832_vm8, %v16833_v54, %v16834_v47  ;;  %v4607_v40 = vsel %vm14046_vm5, %v4499_v45, 0.0  ;;  %v4464_v31 = vmax.f32 %v4428_v28, 0.0  ;;  %v4433_v4 = vadd.f32 %v13743_v12, %v4390_v22  ;;  %vm16839_vm8 = vmmov %vm16830_vm3  ;;  %v11464_v56 = vld [vmem:[#allocation2 + $0x7b] sm:$0xff]  ;;  %10734 = vmatpush3.bf16.msra.mxu0 %v11278_v17  ;;  %10692 = vmatpush3.bf16.msra.mxu1 %v11275_v46  ;;  %v16954_v34 = vld [vmem:[#allocation60_spill] sm:$0xff] }
 0x2bc   : > { %vm14159_vm2 = vcmp.lt.s32.totalorder %v16835_v51, 16  ;;  %v4388_v18 = vadd.f32 %v4293_v41, %v13700_v37  ;;  %4643 = vst.msk [vmem:[#allocation3 + $0x73] sm:$0xff] %vm16839_vm8, %v4607_v40  ;;  %v4502_v29 = vadd.f32 %v11463_v0, %v4466_v2  ;;  %10657 = vmatprep.mubr.msk.bf16.mxu0 %vm16840_vm11, %v4707_v16  ;;  %v1041_v39 = vshrl.u32 %v14101_v33, 4  ;;  %v14178_v37 = vld [vmem:[#allocation10 + $0x98] sm:$0xff]   ;;  %v4296_v16 = vpop.f32.mrf.mxu0  ;;  %v16849_v54 = vld [vmem:[#allocation103_spill] sm:$0xff]  ;;  %v16854_v40 = vld [vmem:[#allocation109_spill] sm:$0xff]  ;;  %10735 = vmatprep.subr.bf16.mxu0 %v14169_v7 }
 0x2bd   : > { %v16837_v24 = vsel %vm14159_vm2, 4294967295, %v16836_v24  ;;  %v14175_v59 = vmul.u32.u64.low 3817748708, %v16841_v21  ;;  %v14176_v45 = vmul.u32.u64.high 3817748708, %v16841_v21, %v14175_v59  ;;  %v4500_v52 = vadd.f32 %v11464_v56, %v4464_v31  ;;  %v16848_v19 = vld [vmem:[#allocation54_spill] sm:$0xff]  ;;  %v4678_v56 = vld [vmem:[#allocation3 + $0x58] sm:$0xff]  ;;  %v4679_v46 = vld [vmem:[#allocation3 + $0x60] sm:$0xff]  ;;  %10773 = vmatprep.subr.bf16.mxu1 %v14178_v37 }
 0x2be   : > { %16838 = vst [vmem:[#allocation67_spill] sm:$0xff] %v16837_v24  ;;  %v4469_v28 = vmax.f32 %v4433_v4, 0.0  ;;  %v4431_v22 = vadd.f32 %v13743_v12, %v4388_v18  ;;  %v4391_v26 = vadd.f32 %v10580_v9, %v13725_v25  ;;  %vm16842_vm12 = vnez %v16589_v50  ;;  %v4739_v50 = vld [vmem:[#allocation3 + $0x51] sm:$0xff]  ;;  %v4740_v59 = vld [vmem:[#allocation3 + $0x59] sm:$0xff]  ;;  %v10583_v17 = vpop.f32.mrf.mxu0 }
 0x2bf   : > { %v16843_v2 = vsel %vm16842_vm12, %v13521_v63, %v13447_v57  ;;  %v16844_v33 = vmov 0  ;;  %v4610_v41 = vsel %vm14070_vm6, %v4502_v29, 0.0  ;;  %vm16847_vm8 = vnez %v16594_v20  ;;  %v4677_v57 = vld [vmem:[#allocation3 + $0x50] sm:$0xff]  ;;  %10736 = vmatpush3.bf16.msra.mxu0 %v14169_v7 }
 0x2c0   : > { %vm14187_vm3 = vcmp.lt.s32.totalorder %v16843_v2, 16  ;;  %v16850_v47 = vsel %vm16847_vm8, %v16848_v19, %v16849_v54  ;;  %v16851_v25 = vmov 0  ;;  %v4742_v63 = vld [vmem:[#allocation3 + $0x69] sm:$0xff]  ;;  %v14203_v51 = vsub.s32 %v16768_v60, %v1064_v42  ;;  %v11465_v18 = vld [vmem:[#allocation2 + $0xa3] sm:$0xff]  ;;  %v4741_v2 = vld [vmem:[#allocation3 + $0x61] sm:$0xff] }
 0x2c1   : > { %v16845_v33 = vsel %vm14187_vm3, 4294967295, %v16844_v33  ;;  %vm14198_vm11 = vcmp.lt.s32.totalorder %v16850_v47, 16  ;;  %v14206_v31 = vmul.u32.u64.low 3817748708, %v16854_v40  ;;  %v14207_v4 = vmul.u32.u64.high 3817748708, %v16854_v40, %v14206_v31  ;;  %v16858_v42 = vld [vmem:[#allocation108_spill] sm:$0xff]  ;;  %v14228_v19 = vld [vmem:[#allocation10 + $0xb8] sm:$0xff]  }
 0x2c2   : > { %16846 = vst [vmem:[#allocation65_spill] sm:$0xff] %v16845_v33  ;;  %v16852_v25 = vsel %vm14198_vm11, 4294967295, %v16851_v25  ;;  %vm16855_vm12 = vcmask 523264   ;;  %v4608_v20 = vsel %vm14093_vm4, %v4500_v52, 0.0  ;;  %v4505_v0 = vadd.f32 %v11465_v18, %v4469_v28  ;;  %v4680_v47 = vld [vmem:[#allocation3 + $0x68] sm:$0xff]  ;;  %v16865_v31 = vld [vmem:[#allocation111_spill] sm:$0xff]  ;;  %10817 = vmatprep.subr.bf16.mxu0 %v14228_v19 }
 0x2c3   : > { %16853 = vst [vmem:[#allocation101_spill] sm:$0xff] %v16852_v25  ;;  %4646 = vst.msk [vmem:[#allocation3 + $0x8b] sm:$0xff] %vm16855_vm12, %v4610_v41  ;;  %v4467_v29 = vmax.f32 %v4431_v22, 0.0  ;;  %v4434_v9 = vadd.f32 %v13743_v12, %v4391_v26  ;;  %v4389_v60 = vadd.f32 %v4296_v16, %v13728_v55  ;;  %v16860_v28 = vmov 0  ;;  %v11466_v16 = vld [vmem:[#allocation2 + $0x93] sm:$0xff]  ;;  %v6752_v24 = vld [vmem:[#allocation3 + $0x134] sm:$0xff] }
 0x2c4   : > { %vm16856_vm5 = vmmov %vm16855_vm12  ;;  %vm16857_vm12 = vnez %v16610_v8  ;;  %v4770_v22 = vpack.c.bf16 %v4740_v59, %v4739_v50  ;;  %v4708_v26 = vpack.c.bf16 %v4678_v56, %v4677_v57  ;;  %v4771_v41 = vpack.c.bf16 %v4742_v63, %v4741_v2  ;;  %v4309_v57 = vpop.f32.mrf.mxu0  ;;  %v16868_v18 = vld [vmem:[#allocation26_spill] sm:$0xff]  ;;  %v11467_v56 = vld [vmem:[#allocation2 + $0xab] sm:$0xff] }
 0x2c5   : > { %4644 = vst.msk [vmem:[#allocation3 + $0x7b] sm:$0xff] %vm16856_vm5, %v4608_v20  ;;  %v16859_v52 = vsel %vm16857_vm12, %v13604_v35, %v16858_v42  ;;  %v4613_v55 = vsel %vm14115_vm15, %v4505_v0, 0.0  ;;  %v4503_v8 = vadd.f32 %v11466_v16, %v4467_v29  ;;  %v4470_v54 = vmax.f32 %v4434_v9, 0.0  ;;  %vm16863_vm12 = vmmov %vm16856_vm5  ;;  %v16867_v20 = vld [vmem:[#allocation110_spill] sm:$0xff]  ;;  %v16874_v42 = vld [vmem:[#allocation89_spill] sm:$0xff] }
 0x2c6   : > { %vm14223_vm4 = vcmp.lt.s32.totalorder %v16859_v52, 16  ;;  %v4394_v35 = vadd.f32 %v10583_v17, %v13738_v14  ;;  %4649 = vst.msk [vmem:[#allocation3 + $0xa3] sm:$0xff] %vm16856_vm5, %v4613_v55  ;;  %v4432_v50 = vadd.f32 %v13743_v12, %v4389_v60  ;;  %10614 = vmatmul.mubr.msk.bf16.gmra.mxu1 %vm16863_vm12, %v4770_v22  ;;  %vm16864_vm6 = vmmov %vm16856_vm5  ;;  %v4709_v63 = vpack.c.bf16 %v4680_v47, %v4679_v46  ;;  %v16875_v52 = vld [vmem:[#allocation52_spill] sm:$0xff]  ;;  %v16878_v55 = vld [vmem:[#allocation43_spill] sm:$0xff] }
 0x2c7   : > { %v16861_v28 = vsel %vm14223_vm4, 4294967295, %v16860_v28  ;;  %10658 = vmatmul.mubr.msk.bf16.gmra.mxu0 %vm16864_vm6, %v4708_v26  ;;  %vm16866_vm8 = vnez %v16865_v31  ;;  %v16870_v29 = vmov 0  ;;  %v14247_v14 = vadd.s32 18, %v14124_v32  ;;  %vm16873_vm6 = vmmov %vm16856_vm5  ;;  %v10584_v26 = vpop.f32.mrf.mxu0  ;;  %v16877_v46 = vld [vmem:[#allocation20_spill] sm:$0xff]  ;;  %v7426_v33 = vld [vmem:[#allocation3 + $0x26] sm:$0xff] }
 0x2c8   : > { %16862 = vst [vmem:[#allocation71_spill] sm:$0xff] %v16861_v28  ;;  %v16869_v0 = vsel %vm16866_vm8, %v16867_v20, %v16868_v18  ;;  %v1042_v9 = vmul.u32 18, %v1041_v39  ;;  %v4611_v59 = vsel %vm14138_vm7, %v4503_v8, 0.0  ;;  %v4506_v2 = vadd.f32 %v11467_v56, %v4470_v54  ;;  %10617 = vmatprep.mubr.msk.bf16.mxu1 %vm16873_vm6, %v4771_v41  ;;  %vm16876_vm8 = vmmov %vm16856_vm5  ;;  %10661 = vmatprep.mubr.msk.bf16.mxu0 %vm16856_vm5, %v4709_v63  ;;  %v4681_v63 = vld [vmem:[#allocation3 + $0x70] sm:$0xff] }
 0x2c9   : > { %vm14242_vm15 = vcmp.lt.s32.totalorder %v16869_v0, 16  ;;  %v4437_v60 = vadd.f32 %v13743_v12, %v4394_v35  ;;  %v4392_v17 = vadd.f32 %v4309_v57, %v13766_v43  ;;  %v14257_v22 = vadd.f32 %v16875_v52, %v16874_v42  ;;  %4647 = vst.msk [vmem:[#allocation3 + $0x93] sm:$0xff] %vm16876_vm8, %v4611_v59  ;;  %vm16884_vm8 = vmmov %vm16856_vm5  ;;  %v11468_v35 = vld [vmem:[#allocation2 + $0x9b] sm:$0xff]  ;;  %v11469_v59 = vld [vmem:[#allocation2 + $0xc3] sm:$0xff] }
 0x2ca   : > { %v16871_v29 = vsel %vm14242_vm15, 4294967295, %v16870_v29  ;;  %v4468_v39 = vmax.f32 %v4432_v50, 0.0  ;;  %v16879_v16 = vsel %vm13669_vm0, %v16877_v46, %v16878_v55  ;;  %v16880_v43 = vmov 0  ;;  %v4312_v50 = vpop.f32.mrf.mxu0  ;;  %v4743_v57 = vld [vmem:[#allocation3 + $0x71] sm:$0xff]  ;;  %v4746_v31 = vld [vmem:[#allocation3 + $0x89] sm:$0xff]  ;;  %vm16904_vm7 = vmmov %vm16873_vm6 }
 0x2cb   : > { %16872 = vst [vmem:[#allocation24_spill] sm:$0xff] %v16871_v29  ;;  %vm14266_vm12 = vcmp.lt.s32.totalorder %v16879_v16, 16  ;;  %v4614_v7 = vsel %vm14159_vm2, %v4506_v2, 0.0  ;;  %v4473_v41 = vmax.f32 %v4437_v60, 0.0  ;;  %v4435_v8 = vadd.f32 %v13743_v12, %v4392_v17  ;;  %v16885_v17 = vld [vmem:[#allocation53_spill] sm:$0xff] }
 0x2cc   : > { %v16881_v43 = vsel %vm14266_vm12, 4294967295, %v16880_v43  ;;  %v4395_v54 = vadd.f32 %v10584_v26, %v16883_v49  ;;  %4650 = vst.msk [vmem:[#allocation3 + $0xab] sm:$0xff] %vm16884_vm8, %v4614_v7  ;;  %v4504_v47 = vadd.f32 %v11468_v35, %v4468_v39  ;;  %v14279_v20 = vsub.s32 %v16809_v61, %v1042_v9  ;;  %v16887_v39 = vld [vmem:[#allocation34_spill] sm:$0xff]  ;;  %v16888_v26 = vld [vmem:[#allocation45_spill] sm:$0xff]  ;;  %v4744_v61 = vld [vmem:[#allocation3 + $0x79] sm:$0xff]  ;;  %v10587_v16 = vpop.f32.mrf.mxu0 }
 0x2cd   : > { %16882 = vst [vmem:[#allocation66_spill] sm:$0xff] %v16881_v43  ;;  %v1074_v18 = vshrl.u32 %v14176_v45, 4  ;;  %v1052_v0 = vshrl.u32 %v14207_v4, 4  ;;  %v4509_v56 = vadd.f32 %v11469_v59, %v4473_v41  ;;  %v4471_v2 = vmax.f32 %v4435_v8, 0.0  ;;  %v4682_v45 = vld [vmem:[#allocation3 + $0x78] sm:$0xff]  ;;  %v4745_v9 = vld [vmem:[#allocation3 + $0x81] sm:$0xff]  ;;  %vm16903_vm8 = vmmov %vm16873_vm6 }
 0x2ce   : > { %v4438_v60 = vadd.f32 %v13743_v12, %v4395_v54  ;;  %v4393_v42 = vadd.f32 %v4312_v50, %v16885_v17  ;;  %v16889_v46 = vsel %vm13691_vm14, %v16887_v39, %v16888_v26  ;;  %v16890_v55 = vmov 0  ;;  %v16894_v41 = vld [vmem:[#allocation86_spill] sm:$0xff]  ;;  %v16895_v8 = vld [vmem:[#allocation59_spill] sm:$0xff]  ;;  %v4683_v17 = vld [vmem:[#allocation3 + $0x80] sm:$0xff] }
 0x2cf   : > { %vm14290_vm0 = vcmp.lt.s32.totalorder %v16889_v46, 16  ;;  %v4612_v4 = vsel %vm14187_vm3, %v4504_v47, 0.0  ;;  %v16896_v49 = vsel %vm13717_vm10, %v16894_v41, %v16895_v8  ;;  %v16897_v54 = vmov 0  ;;  %vm16900_vm14 = vmmov %vm16873_vm6  ;;  %v11470_v47 = vld [vmem:[#allocation2 + $0xb3] sm:$0xff] }
 0x2d0   : > { %v16891_v55 = vsel %vm14290_vm0, 4294967295, %v16890_v55  ;;  %vm14301_vm5 = vcmp.lt.s32.totalorder %v16896_v49, 16  ;;  %v4772_v35 = vpack.c.bf16 %v4744_v61, %v4743_v57  ;;  %v4710_v50 = vpack.c.bf16 %v4682_v45, %v4681_v63  ;;  %4648 = vst.msk [vmem:[#allocation3 + $0x9b] sm:$0xff] %vm16900_vm14, %v4612_v4  ;;  %v4684_v7 = vld [vmem:[#allocation3 + $0x88] sm:$0xff]  ;;  %vm16901_vm10 = vmmov %vm16873_vm6  ;;  %v4325_v49 = vpop.f32.mrf.mxu0  ;;  %v16905_v63 = vld [vmem:[#allocation47_spill] sm:$0xff]  ;;  %v10552_v45 = vpop.f32.mrf.mxu1 }
 0x2d1   : > { %16892 = vst [vmem:[#allocation104_spill] sm:$0xff] %v16891_v55  ;;  %v16898_v54 = vsel %vm14301_vm5, 4294967295, %v16897_v54  ;;  %v4773_v59 = vpack.c.bf16 %v4746_v31, %v4745_v9  ;;  %v4617_v52 = vsel %vm14198_vm11, %v4509_v56, 0.0  ;;  %v4507_v39 = vadd.f32 %v11470_v47, %v4471_v2  ;;  %v16902_v41 = vld [vmem:[#allocation50_spill] sm:$0xff]  ;;  %v16907_v31 = vld [vmem:[#allocation75_spill] sm:$0xff]  ;;  %v16908_v56 = vld [vmem:[#allocation112_spill] sm:$0xff] }
 0x2d2   : > { %16899 = vst [vmem:[#allocation83_spill] sm:$0xff] %v16898_v54  ;;  %v4474_v26 = vmax.f32 %v4438_v60, 0.0  ;;  %v4436_v46 = vadd.f32 %v13743_v12, %v4393_v42  ;;  %4653 = vst.msk [vmem:[#allocation3 + $0xc3] sm:$0xff] %vm16901_vm10, %v4617_v52  ;;  %v4398_v8 = vadd.f32 %v10587_v16, %v16902_v41  ;;  %10618 = vmatmul.mubr.msk.bf16.gmra.mxu1 %vm16903_vm8, %v4772_v35  ;;  %10662 = vmatmul.mubr.msk.bf16.gmra.mxu0 %vm16904_vm7, %v4710_v50  ;;  %v16910_v2 = vmov 0  ;;  %v11471_v4 = vld [vmem:[#allocation2 + $0xcb] sm:$0xff] }
 0x2d3   : > { %v4711_v57 = vpack.c.bf16 %v4684_v7, %v4683_v17  ;;  %vm16906_vm14 = vnez %v16905_v63  ;;  %vm16913_vm11 = vcmp.ne.s32.totalorder %v14124_v32, 0  ;;  %vm16914_vm10 = vcmp.lt.s32.totalorder %v14124_v32, 0  ;;  %v16917_v50 = vld [vmem:[#allocation44_spill] sm:$0xff]  ;;  %vm16918_vm8 = vmmov %vm16904_vm7  ;;  %v16928_v63 = vld [vmem:[#allocation51_spill] sm:$0xff] }
 0x2d4   : > { %v16909_v61 = vsel %vm16906_vm14, %v16907_v31, %v16908_v56  ;;  %vm14326_vm2 = vmand %vm16914_vm10, %vm16913_vm11  ;;  %v14331_v42 = vadd.s32 18, %v14203_v51  ;;  %v4615_v9 = vsel %vm14223_vm4, %v4507_v39, 0.0  ;;  %v4510_v16 = vadd.f32 %v11471_v4, %v4474_v26  ;;  %10621 = vmatprep.mubr.msk.bf16.mxu1 %vm16918_vm8, %v4773_v59  ;;  %v10588_v39 = vpop.f32.mrf.mxu0  ;;  %v16929_v31 = vld [vmem:[#allocation21_spill] sm:$0xff]  ;;  %v4747_v4 = vld [vmem:[#allocation3 + $0x91] sm:$0xff] }
 0x2d5   : > { %vm14318_vm6 = vcmp.lt.s32.totalorder %v16909_v61, 16  ;;  %v4472_v35 = vmax.f32 %v4436_v46, 0.0  ;;  %v4396_v17 = vadd.f32 %v4325_v49, %v16917_v50  ;;  %vm16919_vm11 = vcmp.ne.s32.totalorder %v14203_v51, 0  ;;  %4651 = vst.msk [vmem:[#allocation3 + $0xb3] sm:$0xff] %vm16904_vm7, %v4615_v9  ;;  %vm16923_vm4 = vmmov %vm16904_vm7 }
 0x2d6   : > { %v16911_v2 = vsel %vm14318_vm6, 4294967295, %v16910_v2  ;;  %vm16920_vm14 = vcmp.lt.s32.totalorder %v14203_v51, 0  ;;  %v4441_v47 = vadd.f32 %v13743_v12, %v4398_v8  ;;  %10665 = vmatprep.mubr.msk.bf16.mxu0 %vm16923_vm4, %v4711_v57  ;;  %v16924_v59 = vsel %vm13853_vm13, %v13832_v53, %v13762_v58  ;;  %v11472_v8 = vld [vmem:[#allocation2 + $0xbb] sm:$0xff]  ;;  %vm16930_vm13 = vmmov %vm16923_vm4  ;;  %v4328_v53 = vpop.f32.mrf.mxu0 }
 0x2d7   : > { %16912 = vst [vmem:[#allocation106_spill] sm:$0xff] %v16911_v2  ;;  %vm14342_vm10 = vmand %vm16920_vm14, %vm16919_vm11  ;;  %vm14354_vm8 = vcmp.lt.s32.totalorder %v16924_v59, 16  ;;  %v16925_v26 = vmov 0  ;;  %vm1147_vm11 = vcmp.lt.s32.totalorder %v14279_v20, 0  ;;  %v1075_v46 = vmul.u32 18, %v1074_v18  ;;  %v4749_v59 = vld [vmem:[#allocation3 + $0xa1] sm:$0xff] }
 0x2d8   : > { %v16926_v26 = vsel %vm14354_vm8, 4294967295, %v16925_v26  ;;  %v1053_v7 = vmul.u32 18, %v1052_v0  ;;  %v4618_v41 = vsel %vm14242_vm15, %v4510_v16, 0.0  ;;  %v4508_v49 = vadd.f32 %v11472_v8, %v4472_v35  ;;  %v11473_v35 = vld [vmem:[#allocation2 + $0xe3] sm:$0xff] }
 0x2d9   : > { %16927 = vst [vmem:[#allocation73_spill] sm:$0xff] %v16926_v26  ;;  %v4439_v57 = vadd.f32 %v13743_v12, %v4396_v17  ;;  %v4399_v15 = vadd.f32 %v10588_v39, %v16928_v63  ;;  %v14364_v56 = vadd.f32 %v10552_v45, %v16929_v31  ;;  %4654 = vst.msk [vmem:[#allocation3 + $0xcb] sm:$0xff] %vm16930_vm13, %v4618_v41  ;;  %v4477_v58 = vmax.f32 %v4441_v47, 0.0  ;;  %v10591_v17 = vpop.f32.mrf.mxu0  ;;  %v4748_v47 = vld [vmem:[#allocation3 + $0x99] sm:$0xff] }
 0x2da   : > { %vm16931_vm4 = vnez %v16700_v10  ;;  %v16933_v0 = vmov 0  ;;  %v1252_v61 = vsel %vm14326_vm2, %v14247_v14, %v14124_v32  ;;  %v1257_v45 = vsel %vm14342_vm10, %v14331_v42, %v14203_v51  ;;  %v4686_v39 = vld [vmem:[#allocation3 + $0x98] sm:$0xff]  ;;  %v11480_v14 = vld [vmem:[#allocation2 + $0xfb] sm:$0xff] }
 0x2db   : > { %v16932_v18 = vsel %vm16931_vm4, %v13870_v48, %v13795_v62  ;;  %v4616_v10 = vsel %vm14266_vm12, %v4508_v49, 0.0  ;;  %v4475_v9 = vmax.f32 %v4439_v57, 0.0  ;;  %v4442_v62 = vadd.f32 %v13743_v12, %v4399_v15  ;;  %v11474_v49 = vld [vmem:[#allocation2 + $0xd3] sm:$0xff] }
 0x2dc   : > { %vm14372_vm7 = vcmp.lt.s32.totalorder %v16932_v18, 16  ;;  %v4397_v48 = vadd.f32 %v4328_v53, %v13909_v44  ;;  %vm16936_vm14 = vcmp.ne.s32.totalorder %v14279_v20, 0  ;;  %vm16939_vm4 = vcmask 523264   ;;  %v16942_v53 = vld [vmem:[#allocation56_spill] sm:$0xff]  ;;  %v16943_v18 = vld [vmem:[#allocation79_spill] sm:$0xff] }
 0x2dd   : > { %v16934_v0 = vsel %vm14372_vm7, 4294967295, %v16933_v0  ;;  %vm14392_vm13 = vmand %vm1147_vm11, %vm16936_vm14  ;;  %4652 = vst.msk [vmem:[#allocation3 + $0xbb] sm:$0xff] %vm16939_vm4, %v4616_v10  ;;  %v4513_v50 = vadd.f32 %v11473_v35, %v4477_v58  ;;  %v14398_v41 = vadd.s32 18, %v14279_v20  ;;  %v14401_v44 = vsub.s32 %v16841_v21, %v1075_v46  ;;  %v16940_v58 = vld [vmem:[#allocation63_spill] sm:$0xff]  ;;  %v4750_v46 = vld [vmem:[#allocation3 + $0xa9] sm:$0xff] }
 0x2de   : > { %16935 = vst [vmem:[#allocation69_spill] sm:$0xff] %v16934_v0  ;;  %v14404_v8 = vsub.s32 %v16854_v40, %v1053_v7  ;;  %v4511_v57 = vadd.f32 %v11474_v49, %v4475_v9  ;;  %v4478_v63 = vmax.f32 %v4442_v62, 0.0  ;;  %v4440_v15 = vadd.f32 %v13743_v12, %v4397_v48  ;;  %v4685_v21 = vld [vmem:[#allocation3 + $0x90] sm:$0xff]  ;;  %v4687_v40 = vld [vmem:[#allocation3 + $0xa0] sm:$0xff]  ;;  %v4341_v9 = vpop.f32.mrf.mxu0 }
 0x2df   : > { %v4402_v31 = vadd.f32 %v10591_v17, %v13912_v30  ;;  %vm16941_vm11 = vnez %v16940_v58  ;;  %v16945_v35 = vmov 0  ;;  %v4621_v7 = vsel %vm14290_vm0, %v4513_v50, 0.0 }
 0x2e0   : > { %v16944_v10 = vsel %vm16941_vm11, %v16942_v53, %v16943_v18  ;;  %v4774_v62 = vpack.c.bf16 %v4748_v47, %v4747_v4  ;;  %v4712_v48 = vpack.c.bf16 %v4686_v39, %v4685_v21  ;;  %v4775_v49 = vpack.c.bf16 %v4750_v46, %v4749_v59  ;;  %v11475_v53 = vld [vmem:[#allocation2 + $0xeb] sm:$0xff]  ;;  %v4688_v47 = vld [vmem:[#allocation3 + $0xa8] sm:$0xff] }
 0x2e1   : > { %vm14413_vm14 = vcmp.lt.s32.totalorder %v16944_v10, 16  ;;  %v16948_v30 = vsel %vm14078_vm1, %v14058_v3, %v13992_v11  ;;  %v16949_v17 = vmov 0  ;;  %vm16952_vm11 = vcmask 523264   ;;  %v10592_v3 = vpop.f32.mrf.mxu0  ;;  %v16957_v10 = vld [vmem:[#allocation57_spill] sm:$0xff] }
 0x2e2   : > { %v16946_v35 = vsel %vm14413_vm14, 4294967295, %v16945_v35  ;;  %vm14424_vm4 = vcmp.lt.s32.totalorder %v16948_v30, 16  ;;  %4657 = vst.msk [vmem:[#allocation3 + $0xe3] sm:$0xff] %vm16952_vm11, %v4621_v7  ;;  %v4619_v58 = vsel %vm14301_vm5, %v4511_v57, 0.0  ;;  %v4514_v50 = vadd.f32 %v11475_v53, %v4478_v63  ;;  %vm16953_vm0 = vmmov %vm16952_vm11  ;;  %v11476_v63 = vld [vmem:[#allocation2 + $0xdb] sm:$0xff] }
 0x2e3   : > { %16947 = vst [vmem:[#allocation23_spill] sm:$0xff] %v16946_v35  ;;  %v16950_v17 = vsel %vm14424_vm4, 4294967295, %v16949_v17  ;;  %v4476_v18 = vmax.f32 %v4440_v15, 0.0  ;;  %v4445_v4 = vadd.f32 %v13743_v12, %v4402_v31  ;;  %4655 = vst.msk [vmem:[#allocation3 + $0xd3] sm:$0xff] %vm16953_vm0, %v4619_v58  ;;  %v4400_v39 = vadd.f32 %v4341_v9, %v16954_v34  ;;  %v4751_v7 = vld [vmem:[#allocation3 + $0xb1] sm:$0xff]  ;;  %v16960_v53 = vld [vmem:[#allocation22_spill] sm:$0xff] }
 0x2e4   : > { %16951 = vst [vmem:[#allocation76_spill] sm:$0xff] %v16950_v17  ;;  %vm16955_vm1 = vmmov %vm16953_vm0  ;;  %v4713_v11 = vpack.c.bf16 %v4688_v47, %v4687_v40  ;;  %v4622_v57 = vsel %vm14318_vm6, %v4514_v50, 0.0  ;;  %v4403_v21 = vadd.f32 %v10592_v3, %v16957_v10  ;;  %v4344_v40 = vpop.f32.mrf.mxu0  ;;  %v4689_v9 = vld [vmem:[#allocation3 + $0xb0] sm:$0xff]  ;;  %vm1150_vm11 = vcmp.lt.s32.totalorder %v14401_v44, 0  ;;  %v4753_v47 = vld [vmem:[#allocation3 + $0xc1] sm:$0xff]  ;;  %v4006_v10 = vpop.f32.mrf.mxu1 }
 0x2e5   : > { %10622 = vmatmul.mubr.msk.bf16.gmra.mxu1 %vm16955_vm1, %v4774_v62  ;;  %vm16956_vm15 = vmmov %vm16953_vm0  ;;  %v4512_v15 = vadd.f32 %v11476_v63, %v4476_v18  ;;  %v4481_v31 = vmax.f32 %v4445_v4, 0.0  ;;  %v4443_v46 = vadd.f32 %v13743_v12, %v4400_v39  ;;  %v4754_v62 = vld [vmem:[#allocation3 + $0xc9] sm:$0xff]  ;;  %vm1112_vm6 = vcmp.ne.s32.totalorder %v14404_v8, 0  ;;  %v4752_v18 = vld [vmem:[#allocation3 + $0xb9] sm:$0xff] }
 0x2e6   : > { %10666 = vmatmul.mubr.msk.bf16.gmra.mxu0 %vm16956_vm15, %v4712_v48  ;;  %10625 = vmatprep.mubr.msk.bf16.mxu1 %vm16953_vm0, %v4775_v49  ;;  %vm16958_vm15 = vmmov %vm16953_vm0  ;;  %vm1148_vm5 = vcmp.lt.s32.totalorder %v14404_v8, 0  ;;  %v11477_v49 = vld [vmem:[#allocation2 + $0x103] sm:$0xff]  ;;  %v4446_v58 = vadd.f32 %v13743_v12, %v4403_v21  ;;  %v4401_v50 = vadd.f32 %v4344_v40, %v16960_v53  ;;  %v10595_v39 = vpop.f32.mrf.mxu0  ;;  %v4691_v63 = vld [vmem:[#allocation3 + $0xc0] sm:$0xff]  ;;  %v16979_v51 = vsel %vm14392_vm13, %v14398_v41, %v14279_v20 }
 0x2e7   : > { %4658 = vst.msk [vmem:[#allocation3 + $0xeb] sm:$0xff] %vm16958_vm15, %v4622_v57  ;;  %vm16959_vm1 = vmmov %vm16953_vm0  ;;  %v4620_v48 = vsel %vm14354_vm8, %v4512_v15, 0.0  ;;  %v4517_v30 = vadd.f32 %v11477_v49, %v4481_v31  ;;  %v4690_v4 = vld [vmem:[#allocation3 + $0xb8] sm:$0xff]  ;;  %v4479_v34 = vmax.f32 %v4443_v46, 0.0  ;;  %v4777_v57 = vpack.c.bf16 %v4754_v62, %v4753_v47  ;;  %v4692_v49 = vld [vmem:[#allocation3 + $0xc8] sm:$0xff] }
 0x2e8   : > { %10669 = vmatprep.mubr.msk.bf16.mxu0 %vm16959_vm1, %v4713_v11  ;;  %4656 = vst.msk [vmem:[#allocation3 + $0xdb] sm:$0xff] %vm16953_vm0, %v4620_v48  ;;  %v4776_v11 = vpack.c.bf16 %v4752_v18, %v4751_v7  ;;  %v4714_v3 = vpack.c.bf16 %v4690_v4, %v4689_v9  ;;  %v4482_v31 = vmax.f32 %v4446_v58, 0.0  ;;  %v4444_v21 = vadd.f32 %v13743_v12, %v4401_v50  ;;  %vm16961_vm15 = vmmov %vm16953_vm0  ;;  %v11478_v53 = vld [vmem:[#allocation2 + $0xf3] sm:$0xff]  ;;  %v4357_v46 = vpop.f32.mrf.mxu0  ;;  %v11481_v41 = vld [vmem:[#allocation2 + $0x123] sm:$0xff] }
 0x2e9   : > { %v4625_v15 = vsel %vm14372_vm7, %v4517_v30, 0.0  ;;  %v4406_v40 = vadd.f32 %v10595_v39, %v14083_v36  ;;  %v4515_v48 = vadd.f32 %v11478_v53, %v4479_v34  ;;  %v4715_v59 = vpack.c.bf16 %v4692_v49, %v4691_v63  ;;  %v11479_v36 = vld [vmem:[#allocation2 + $0x10b] sm:$0xff]  ;;  %v7080_v17 = vld [vmem:[#allocation3 + $0x65] sm:$0xff] }
 0x2ea   : > { %4661 = vst.msk [vmem:[#allocation3 + $0x103] sm:$0xff] %vm16961_vm15, %v4625_v15  ;;  %vm16962_vm1 = vcmp.ne.s32.totalorder %v14401_v44, 0  ;;  %v1222_v9 = vadd.s32 18, %v14401_v44  ;;  %v1220_v62 = vadd.s32 18, %v14404_v8  ;;  %v4518_v30 = vadd.f32 %v11479_v36, %v4482_v31  ;;  %vm14477_vm15 = vmand %vm1148_vm5, %vm1112_vm6  ;;  %v4693_v16 = vld [vmem:[#allocation3 + $0xd0] sm:$0xff] }
 0x2eb   : > { %vm14465_vm0 = vmand %vm1150_vm11, %vm16962_vm1  ;;  %v4480_v58 = vmax.f32 %v4444_v21, 0.0  ;;  %v4449_v50 = vadd.f32 %v13743_v12, %v4406_v40  ;;  %v4404_v18 = vadd.f32 %v4357_v46, %v14149_v5  ;;  %v4051_v47 = vadd.f32 %v4006_v10, %v14257_v22  ;;  %v10596_v22 = vpop.f32.mrf.mxu0  ;;  %v11483_v36 = vld [vmem:[%s16201_s2] ss:$0 sm:$0xff] }
 0x2ec   : > { %v4623_v34 = vsel %vm14413_vm14, %v4515_v48, 0.0  ;;  %vm14489_vm11 = vcmp.lt.s32.totalorder %v1252_v61, 16  ;;  %v16967_v5 = vmov 0  ;;  %vm14498_vm6 = vcmp.lt.s32.totalorder %v1257_v45, 16 }
 0x2ed   : > { %v16968_v5 = vsel %vm14489_vm11, 4294967295, %v16967_v5  ;;  %v16970_v39 = vmov 0  ;;  %vm16973_vm5 = vcmask 523264   ;;  %v4626_v32 = vsel %vm14424_vm4, %v4518_v30, 0.0 }
 0x2ee   : > { %16969 = vst [vmem:[#allocation74_spill] sm:$0xff] %v16968_v5  ;;  %v16971_v39 = vsel %vm14498_vm6, 4294967295, %v16970_v39  ;;  %10626 = vmatmul.mubr.msk.bf16.gmra.mxu1 %vm16973_vm5, %v4776_v11  ;;  %vm16974_vm1 = vmmov %vm16973_vm5  ;;  %v4516_v60 = vadd.f32 %v11480_v14, %v4480_v58  ;;  %v4485_v52 = vmax.f32 %v4449_v50, 0.0  ;;  %v4447_v61 = vadd.f32 %v13743_v12, %v4404_v18  ;;  %v4758_v63 = vld [vmem:[#allocation3 + $0xe9] sm:$0xff] }
 0x2ef   : > { %16972 = vst [vmem:[#allocation68_spill] sm:$0xff] %v16971_v39  ;;  %10670 = vmatmul.mubr.msk.bf16.gmra.mxu0 %vm16974_vm1, %v4714_v3  ;;  %vm16975_vm7 = vmmov %vm16974_vm1  ;;  %v16980_v42 = vmov 0  ;;  %v1258_v45 = vsel %vm14465_vm0, %v1222_v9, %v14401_v44  ;;  %v4407_v11 = vadd.f32 %v10596_v22, %v14364_v56  ;;  %v4360_v3 = vpop.f32.mrf.mxu0  ;;  %v4756_v21 = vld [vmem:[#allocation3 + $0xd9] sm:$0xff]  ;;  %v4757_v44 = vld [vmem:[#allocation3 + $0xe1] sm:$0xff]  ;;  %v16985_v18 = vmov 0 }
 0x2f0   : > { %4659 = vst.msk [vmem:[#allocation3 + $0xf3] sm:$0xff] %vm16975_vm7, %v4623_v34  ;;  %vm16976_vm2 = vmmov %vm16974_vm1  ;;  %vm14516_vm7 = vcmp.lt.s32.totalorder %v16979_v51, 16  ;;  %v4624_v20 = vsel %vm14489_vm11, %v4516_v60, 0.0  ;;  %v4521_v10 = vadd.f32 %v11481_v41, %v4485_v52  ;;  %v4483_v15 = vmax.f32 %v4447_v61, 0.0  ;;  %v4694_v40 = vld [vmem:[#allocation3 + $0xd8] sm:$0xff]  ;;  %v4695_v48 = vld [vmem:[#allocation3 + $0xe0] sm:$0xff] }
 0x2f1   : > { %10629 = vmatprep.mubr.msk.bf16.mxu1 %vm16976_vm2, %v4777_v57  ;;  %vm16977_vm10 = vmmov %vm16974_vm1  ;;  %v16981_v42 = vsel %vm14516_vm7, 4294967295, %v16980_v42  ;;  %v4755_v57 = vld [vmem:[#allocation3 + $0xd1] sm:$0xff]  ;;  %v4405_v31 = vadd.f32 %v4360_v3, %v4051_v47  ;;  %v4450_v56 = vadd.f32 %v13743_v12, %v4407_v11  ;;  %v4779_v53 = vpack.c.bf16 %v4758_v63, %v4757_v44  ;;  %v4696_v46 = vld [vmem:[#allocation3 + $0xe8] sm:$0xff] }
 0x2f2   : > { %10673 = vmatprep.mubr.msk.bf16.mxu0 %vm16977_vm10, %v4715_v59  ;;  %vm16978_vm14 = vmmov %vm16974_vm1  ;;  %16982 = vst [vmem:[#allocation39_spill] sm:$0xff] %v16981_v42  ;;  %v1256_v59 = vsel %vm14477_vm15, %v1220_v62, %v14404_v8  ;;  %v4778_v49 = vpack.c.bf16 %v4756_v21, %v4755_v57  ;;  %v4716_v8 = vpack.c.bf16 %v4694_v40, %v4693_v16  ;;  %v4629_v7 = vsel %vm14498_vm6, %v4521_v10, 0.0  ;;  %v11482_v9 = vld [vmem:[#allocation2 + $0x113] sm:$0xff]  ;;  %v11484_v47 = vld [vmem:[#allocation2 + $0x12b] sm:$0xff] }
 0x2f3   : > { %4662 = vst.msk [vmem:[#allocation3 + $0x10b] sm:$0xff] %vm16978_vm14, %v4626_v32  ;;  %vm16983_vm13 = vmmov %vm16974_vm1  ;;  %v4519_v62 = vadd.f32 %v11482_v9, %v4483_v15  ;;  %v4448_v30 = vadd.f32 %v11483_v36, %v4405_v31  ;;  %v4717_v58 = vpack.c.bf16 %v4696_v46, %v4695_v48  ;;  %v4486_v50 = vmax.f32 %v4450_v56, 0.0  ;;  %v11485_v32 = vld [vmem:[#allocation2 + $0x11b] sm:$0xff]  ;;  %v5302_v31 = vld [vmem:[#allocation3 + $0x2] sm:$0xff] }
 0x2f4   : > { %4660 = vst.msk [vmem:[#allocation3 + $0xfb] sm:$0xff] %vm16983_vm13, %v4624_v20  ;;  %vm16984_vm14 = vmmov %vm16974_vm1  ;;  %vm14539_vm0 = vcmp.lt.s32.totalorder %v1258_v45, 16  ;;  %vm14544_vm5 = vcmp.lt.s32.totalorder %v1256_v59, 16  ;;  %v16989_v22 = vmov 0  ;;  %v5303_v21 = vld [vmem:[#allocation3 + $0xa] sm:$0xff]  ;;  %v5656_v46 = vld [vmem:[#allocation3 + $0x12] sm:$0xff] }
 0x2f5   : > { %4665 = vst.msk [vmem:[#allocation3 + $0x123] sm:$0xff] %vm16984_vm14, %v4629_v7  ;;  %v4627_v12 = vsel %vm14516_vm7, %v4519_v62, 0.0  ;;  %v16986_v18 = vsel %vm14539_vm0, 4294967295, %v16985_v18  ;;  %v4484_v4 = vmax.f32 %v4448_v30, 0.0  ;;  %vm16988_vm15 = vmmov %vm16974_vm1  ;;  %v4522_v34 = vadd.f32 %v11484_v47, %v4486_v50  ;;  %v5658_v9 = vld [vmem:[#allocation3 + $0x22] sm:$0xff]  ;;  %v5661_v62 = vld [vmem:[#allocation3 + $0x3a] sm:$0xff] }
 0x2f6   : > { %16987 = vst [vmem:[#allocation27_spill] sm:$0xff] %v16986_v18  ;;  %4663 = vst.msk [vmem:[#allocation3 + $0x113] sm:$0xff] %vm16988_vm15, %v4627_v12  ;;  %v16990_v22 = vsel %vm14544_vm5, 4294967295, %v16989_v22  ;;  %10630 = vmatmul.mubr.msk.bf16.gmra.mxu1 %vm16974_vm1, %v4778_v49  ;;  %v5338_v48 = vpack.c.bf16 %v5303_v21, %v5302_v31  ;;  %v5659_v36 = vld [vmem:[#allocation3 + $0x2a] sm:$0xff]  ;;  %v11281_v12 = vld [vmem:[#allocation10 + $0x90] sm:$0xff]  }
 0x2f7   : > { %16991 = vst [vmem:[#allocation77_spill] sm:$0xff] %v16990_v22  ;;  %vm16992_vm2 = vmmov %vm16974_vm1  ;;  %v4520_v14 = vadd.f32 %v11485_v32, %v4484_v4  ;;  %v4630_v60 = vsel %vm14539_vm0, %v4522_v34, 0.0  ;;  %v4759_v52 = vld [vmem:[#allocation3 + $0xf1] sm:$0xff]  ;;  %v5693_v30 = vpack.c.bf16 %v5659_v36, %v5658_v9  ;;  %v11285_v4 = vld [vmem:[#allocation10 + $0xb0] sm:$0xff]  }
 0x2f8   : > { %10674 = vmatmul.mubr.msk.bf16.gmra.mxu0 %vm16992_vm2, %v4716_v8  ;;  %vm16993_vm10 = vmmov %vm16974_vm1  ;;  %v4697_v61 = vld [vmem:[#allocation3 + $0xf0] sm:$0xff]  ;;  %v5662_v47 = vld [vmem:[#allocation3 + $0x42] sm:$0xff] }
 0x2f9   : > { %10633 = vmatprep.mubr.msk.bf16.mxu1 %vm16993_vm10, %v4779_v53  ;;  %vm16994_vm13 = vmmov %vm16974_vm1  ;;  %v4628_v51 = vsel %vm14544_vm5, %v4520_v14, 0.0  ;;  %v5657_v53 = vld [vmem:[#allocation3 + $0x1a] sm:$0xff]  ;;  %v5672_v21 = vld [vmem:[#allocation3 + $0x92] sm:$0xff] }
 0x2fa   : > { %10677 = vmatprep.mubr.msk.bf16.mxu0 %vm16994_vm13, %v4717_v58  ;;  %vm16995_vm14 = vmmov %vm16974_vm1  ;;  %v4762_v16 = vld [vmem:[#allocation3 + $0x109] sm:$0xff]  ;;  %v5692_v7 = vpack.c.bf16 %v5657_v53, %v5656_v46  ;;  %v5660_v58 = vld [vmem:[#allocation3 + $0x32] sm:$0xff] }
 0x2fb   : > { %4666 = vst.msk [vmem:[#allocation3 + $0x12b] sm:$0xff] %vm16995_vm14, %v4630_v60  ;;  %v4760_v45 = vld [vmem:[#allocation3 + $0xf9] sm:$0xff]  ;;  %v4761_v59 = vld [vmem:[#allocation3 + $0x101] sm:$0xff]  ;;  %vm16996_vm15 = vmmov %vm16974_vm1  ;;  %v5694_v50 = vpack.c.bf16 %v5661_v62, %v5660_v58 }
 0x2fc   : > { %v4698_v11 = vld [vmem:[#allocation3 + $0xf8] sm:$0xff]  ;;  %4664 = vst.msk [vmem:[#allocation3 + $0x11b] sm:$0xff] %vm16996_vm15, %v4628_v51  ;;  %v4780_v3 = vpack.c.bf16 %v4760_v45, %v4759_v52  ;;  %v4699_v63 = vld [vmem:[#allocation3 + $0x100] sm:$0xff]  ;;  %v4700_v20 = vld [vmem:[#allocation3 + $0x108] sm:$0xff]  ;;  %v4781_v41 = vpack.c.bf16 %v4762_v16, %v4761_v59 }
 0x2fd   : > { %v4718_v57 = vpack.c.bf16 %v4698_v11, %v4697_v61  ;;  %v4719_v10 = vpack.c.bf16 %v4700_v20, %v4699_v63  ;;  %vm16997_vm2 = vmmov %vm16974_vm1  ;;  %v4763_v15 = vld [vmem:[#allocation3 + $0x111] sm:$0xff]  ;;  %v11282_v34 = vld [vmem:[#allocation10 + $0x88] sm:$0xff]  }
 0x2fe   : > { %10634 = vmatmul.mubr.msk.bf16.gmra.mxu1 %vm16974_vm1, %v4780_v3  ;;  %vm16998_vm10 = vmmov %vm16974_vm1  ;;  %v4701_v44 = vld [vmem:[#allocation3 + $0x110] sm:$0xff]  ;;  %v11286_v32 = vld [vmem:[#allocation10 + $0xa8] sm:$0xff]  }
 0x2ff   : > { %10637 = vmatprep.mubr.msk.bf16.mxu1 %vm16998_vm10, %v4781_v41  ;;  %vm16999_vm13 = vmmov %vm16974_vm1  ;;  %v5665_v14 = vld [vmem:[#allocation3 + $0x5a] sm:$0xff]  ;;  %v5663_v60 = vld [vmem:[#allocation3 + $0x4a] sm:$0xff] }
 0x300   : > { %10678 = vmatmul.mubr.msk.bf16.gmra.mxu0 %vm16997_vm2, %v4718_v57  ;;  %vm17000_vm14 = vmmov %vm16974_vm1  ;;  %v5695_v52 = vpack.c.bf16 %v5663_v60, %v5662_v47  ;;  %v5664_v61 = vld [vmem:[#allocation3 + $0x52] sm:$0xff]  ;;  %v14578_v59 = vld [vmem:[#allocation10 + $0xf8] sm:$0xff]  }
 0x301   : > { %10681 = vmatprep.mubr.msk.bf16.mxu0 %vm16999_vm13, %v4719_v10  ;;  %vm17001_vm15 = vmmov %vm16974_vm1  ;;  %v5696_v51 = vpack.c.bf16 %v5665_v14, %v5664_v61  ;;  %v11283_v45 = vld [vmem:[#allocation10 + $0x80] sm:$0xff]   ;;  %v5669_v3 = vld [vmem:[#allocation3 + $0x7a] sm:$0xff] }
 0x302   : > { %vm17002_vm2 = vmmov %vm16974_vm1  ;;  %v11287_v11 = vld [vmem:[#allocation10 + $0xa0] sm:$0xff]   ;;  %v5670_v41 = vld [vmem:[#allocation3 + $0x82] sm:$0xff] }
 0x303   : > { %v4764_v40 = vld [vmem:[#allocation3 + $0x119] sm:$0xff]  ;;  %vm17003_vm10 = vmmov %vm16974_vm1  ;;  %v5667_v57 = vld [vmem:[#allocation3 + $0x6a] sm:$0xff] }
 0x304   : > { %v4702_v56 = vld [vmem:[#allocation3 + $0x118] sm:$0xff]  ;;  %v4782_v49 = vpack.c.bf16 %v4764_v40, %v4763_v15  ;;  %vm17004_vm13 = vmmov %vm16974_vm1  ;;  %v5671_v15 = vld [vmem:[#allocation3 + $0x8a] sm:$0xff] }
 0x305   : > { %v4720_v8 = vpack.c.bf16 %v4702_v56, %v4701_v44  ;;  %vm17005_vm0 = vmmov %vm16974_vm1  ;;  %v5668_v63 = vld [vmem:[#allocation3 + $0x72] sm:$0xff]  ;;  %v5673_v10 = vld [vmem:[#allocation3 + $0x9a] sm:$0xff]  ;;  %v5699_v31 = vpack.c.bf16 %v5671_v15, %v5670_v41 }
 0x306   : > { %10638 = vmatmul.mubr.msk.bf16.gmra.mxu1 %vm17000_vm14, %v4782_v49  ;;  %vm17006_vm14 = vmmov %vm17005_vm0  ;;  %v5698_v20 = vpack.c.bf16 %v5669_v3, %v5668_v63  ;;  %v5700_v40 = vpack.c.bf16 %v5673_v10, %v5672_v21  ;;  %v5674_v44 = vld [vmem:[#allocation3 + $0xa2] sm:$0xff]  ;;  %v5677_v56 = vld [vmem:[#allocation3 + $0xba] sm:$0xff] }
 0x307   : > { %10693 = vmatprep.mubr.msk.bf16.mxu1 %vm17002_vm2, %v5338_v48  ;;  %vm17009_vm2 = vmmov %vm17005_vm0  ;;  %v5675_v49 = vld [vmem:[#allocation3 + $0xaa] sm:$0xff]  ;;  %v5676_v53 = vld [vmem:[#allocation3 + $0xb2] sm:$0xff] }
 0x308   : > { %10682 = vmatmul.mubr.msk.bf16.gmra.mxu0 %vm17001_vm15, %v4720_v8  ;;  %vm17007_vm15 = vmmov %vm17005_vm0  ;;  %v5701_v8 = vpack.c.bf16 %v5675_v49, %v5674_v44  ;;  %v5702_v48 = vpack.c.bf16 %v5677_v56, %v5676_v53  ;;  %v5678_v46 = vld [vmem:[#allocation3 + $0xc2] sm:$0xff]  ;;  %v5679_v9 = vld [vmem:[#allocation3 + $0xca] sm:$0xff] }
 0x309   : > { %10737 = vmatprep.mubr.msk.bf16.mxu0 %vm16974_vm1, %v5692_v7  ;;  %vm17008_vm1 = vmmov %vm17005_vm0  ;;  %v5703_v62 = vpack.c.bf16 %v5679_v9, %v5678_v46  ;;  %v5680_v36 = vld [vmem:[#allocation3 + $0xd2] sm:$0xff]  ;;  %v5682_v58 = vld [vmem:[#allocation3 + $0xe2] sm:$0xff] }
 0x30a   : > { %vm17016_vm5 = vmmov %vm17005_vm0  ;;  %v5684_v47 = vld [vmem:[#allocation3 + $0xf2] sm:$0xff]  ;;  %v5689_v14 = vld [vmem:[#allocation3 + $0x11a] sm:$0xff] }
 0x30b   : > { %v5687_v60 = vld [vmem:[#allocation3 + $0x10a] sm:$0xff]  ;;  %v5688_v61 = vld [vmem:[#allocation3 + $0x112] sm:$0xff]  ;;  %v6365_v3 = vld [vmem:[#allocation3 + $0x1c] sm:$0xff] }
 0x30c   : > { %v6010_v63 = vld [vmem:[#allocation3 + $0x13] sm:$0xff]  ;;  %v6013_v10 = vld [vmem:[#allocation3 + $0x2b] sm:$0xff]  ;;  %v6012_v44 = vld [vmem:[#allocation3 + $0x23] sm:$0xff] }
 0x30d   : > { %v6367_v15 = vld [vmem:[#allocation3 + $0x2c] sm:$0xff]  ;;  %v6368_v21 = vld [vmem:[#allocation3 + $0x34] sm:$0xff]  ;;  %v6366_v56 = vld [vmem:[#allocation3 + $0x24] sm:$0xff]  ;;  %v6047_v49 = vpack.c.bf16 %v6013_v10, %v6012_v44 }
 0x30e   : > { %10694 = vmatmul.mubr.msk.bf16.vlgmr.msra.gmra.mxu1 %vm17003_vm10, %v5692_v7  ;;  %vm17010_vm10 = vmmov %vm17005_vm0  ;;  %v5681_v7 = vld [vmem:[#allocation3 + $0xda] sm:$0xff]  ;;  %v7076_v42 = vld [vmem:[#allocation3 + $0x45] sm:$0xff] }
 0x30f   : > { %10697 = vmatprep.mubr.msk.bf16.mxu1 %vm17005_vm0, %v5693_v30  ;;  %10774 = vmatpush3.bf16.msra.mxu1 %v14178_v37  ;;  %v5666_v37 = vld [vmem:[#allocation3 + $0x62] sm:$0xff]  ;;  %v6014_v53 = vld [vmem:[#allocation3 + $0x33] sm:$0xff] }
 0x310   : > { %10738 = vmatmul.mubr.msk.bf16.vlgmr.msra.gmra.mxu0 %vm17004_vm13, %v5693_v30  ;;  %10775 = vmatprep.subr.bf16.mxu1 %v11281_v12  ;;  %v5697_v16 = vpack.c.bf16 %v5667_v57, %v5666_v37  ;;  %vm17011_vm13 = vmmov %vm17005_vm0  ;;  %v5704_v30 = vpack.c.bf16 %v5681_v7, %v5680_v36  ;;  %v6364_v37 = vld [vmem:[#allocation3 + $0x14] sm:$0xff]  ;;  %v5691_v57 = vld [vmem:[#allocation3 + $0x12a] sm:$0xff] }
 0x311   : > { %10741 = vmatprep.mubr.msk.bf16.mxu0 %vm17006_vm14, %v5694_v50  ;;  %10818 = vmatpush3.bf16.msra.mxu0 %v14228_v19  ;;  %v14576_v19 = vld [vmem:[#allocation10 + $0xd8] sm:$0xff]   ;;  %vm17012_vm14 = vmmov %vm17005_vm0  ;;  %v6400_v41 = vpack.c.bf16 %v6365_v3, %v6364_v37  ;;  %v11289_v7 = vld [vmem:[#allocation10 + $0xd0] sm:$0xff]  }
 0x312   : > { %10819 = vmatprep.subr.bf16.mxu0 %v11285_v4  ;;  %v11293_v9 = vld [vmem:[#allocation10 + $0xf0] sm:$0xff]   ;;  %v6371_v36 = vld [vmem:[#allocation3 + $0x4c] sm:$0xff]  ;;  %v6376_v3 = vld [vmem:[#allocation3 + $0x74] sm:$0xff] }
 0x313   : > { %10776 = vmatpush3.bf16.msra.mxu1 %v11281_v12  ;;  %v5683_v12 = vld [vmem:[#allocation3 + $0xea] sm:$0xff]  ;;  %v6023_v37 = vld [vmem:[#allocation3 + $0x7b] sm:$0xff]  ;;  %v6022_v10 = vld [vmem:[#allocation3 + $0x73] sm:$0xff] }
 0x314   : > { %10777 = vmatprep.subr.bf16.mxu1 %v11282_v34  ;;  %v6027_v44 = vld [vmem:[#allocation3 + $0x9b] sm:$0xff]  ;;  %v7084_v5 = vld [vmem:[#allocation3 + $0x85] sm:$0xff]  ;;  %v7105_v25 = vld [vmem:[#allocation3 + $0x12d] sm:$0xff] }
 0x315   : > { %10820 = vmatpush3.bf16.msra.mxu0 %v11285_v4  ;;  %v5705_v4 = vpack.c.bf16 %v5683_v12, %v5682_v58  ;;  %v11294_v58 = vld [vmem:[#allocation10 + $0xe8] sm:$0xff]  }
 0x316   : > { %10821 = vmatprep.subr.bf16.mxu0 %v11286_v32  ;;  %10698 = vmatmul.mubr.msk.bf16.gmra.mxu1 %vm17005_vm0, %v5694_v50  ;;  %v5685_v50 = vld [vmem:[#allocation3 + $0xfa] sm:$0xff] }
 0x317   : > { %10701 = vmatprep.mubr.msk.bf16.mxu1 %vm17008_vm1, %v5695_v52  ;;  %10778 = vmatpush3.bf16.msra.mxu1 %v11282_v34  ;;  %vm17014_vm1 = vmmov %vm17005_vm0  ;;  %v5706_v34 = vpack.c.bf16 %v5685_v50, %v5684_v47  ;;  %v6019_v50 = vld [vmem:[#allocation3 + $0x5b] sm:$0xff]  ;;  %v6016_v47 = vld [vmem:[#allocation3 + $0x43] sm:$0xff] }
 0x318   : > { %10742 = vmatmul.mubr.msk.bf16.gmra.mxu0 %vm17007_vm15, %v5695_v52  ;;  %10779 = vmatprep.subr.bf16.mxu1 %v11283_v45  ;;  %vm17013_vm15 = vmmov %vm17005_vm0  ;;  %v6372_v12 = vld [vmem:[#allocation3 + $0x54] sm:$0xff] }
 0x319   : > { %10745 = vmatprep.mubr.msk.bf16.mxu0 %vm17009_vm2, %v5696_v51  ;;  %10822 = vmatpush3.bf16.msra.mxu0 %v11286_v32  ;;  %vm17015_vm2 = vmmov %vm17005_vm0  ;;  %v5686_v32 = vld [vmem:[#allocation3 + $0x102] sm:$0xff] }
 0x31a   : > { %10823 = vmatprep.subr.bf16.mxu0 %v11287_v11  ;;  %v5707_v52 = vpack.c.bf16 %v5687_v60, %v5686_v32  ;;  %v6018_v60 = vld [vmem:[#allocation3 + $0x53] sm:$0xff] }
 0x31b   : > { %10780 = vmatpush3.bf16.msra.mxu1 %v11283_v45  ;;  %v5690_v45 = vld [vmem:[#allocation3 + $0x122] sm:$0xff] }
 0x31c   : > { %10861 = vmatprep.subr.bf16.mxu1 %v14576_v19 }
 0x31d   : > { %10824 = vmatpush3.bf16.msra.mxu0 %v11287_v11  ;;  %v6011_v11 = vld [vmem:[#allocation3 + $0x1b] sm:$0xff] }
 0x31e   : > { %10905 = vmatprep.subr.bf16.mxu0 %v14578_v59  ;;  %10702 = vmatmul.mubr.msk.bf16.gmra.mxu1 %vm17010_vm10, %v5696_v51  ;;  %vm17017_vm10 = vmmov %vm17005_vm0  ;;  %v5708_v51 = vpack.c.bf16 %v5689_v14, %v5688_v61  ;;  %v11295_v61 = vld [vmem:[#allocation10 + $0xe0] sm:$0xff]  }
 0x31f   : > { %10705 = vmatprep.mubr.msk.bf16.mxu1 %vm17012_vm14, %v5697_v16  ;;  %vm17019_vm14 = vmmov %vm17005_vm0 }
 0x320   : > { %10746 = vmatmul.mubr.msk.bf16.gmra.mxu0 %vm17011_vm13, %v5697_v16  ;;  %vm17018_vm13 = vmmov %vm17005_vm0  ;;  %v5709_v16 = vpack.c.bf16 %v5691_v57, %v5690_v45  ;;  %v6375_v45 = vld [vmem:[#allocation3 + $0x6c] sm:$0xff]  ;;  %v6377_v57 = vld [vmem:[#allocation3 + $0x7c] sm:$0xff] }
 0x321   : > { %10749 = vmatprep.mubr.msk.bf16.mxu0 %vm17005_vm0, %v5698_v20 }
 0x326   : > { %10706 = vmatmul.mubr.msk.bf16.gmra.mxu1 %vm17013_vm15, %v5698_v20  ;;  %vm17021_vm15 = vmmov %vm17005_vm0  ;;  %v6046_v20 = vpack.c.bf16 %v6011_v11, %v6010_v63  ;;  %v14632_v11 = vld [vmem:[#allocation10 + $0x118] sm:$0xff]  }
 0x327   : > { %10709 = vmatprep.mubr.msk.bf16.mxu1 %vm17015_vm2, %v5699_v31  ;;  %vm17023_vm2 = vmmov %vm17005_vm0  ;;  %v6374_v63 = vld [vmem:[#allocation3 + $0x64] sm:$0xff] }
 0x328   : > { %10750 = vmatmul.mubr.msk.bf16.gmra.mxu0 %vm17014_vm1, %v5699_v31  ;;  %vm17022_vm1 = vmmov %vm17005_vm0  ;;  %v6015_v31 = vld [vmem:[#allocation3 + $0x3b] sm:$0xff] }
 0x329   : > { %10753 = vmatprep.mubr.msk.bf16.mxu0 %vm17016_vm5, %v5700_v40  ;;  %vm17020_vm5 = vmmov %vm17005_vm0 }
 0x32e   : > { %10710 = vmatmul.mubr.msk.bf16.gmra.mxu1 %vm17017_vm10, %v5700_v40  ;;  %vm17024_vm10 = vmmov %vm17005_vm0  ;;  %v6369_v40 = vld [vmem:[#allocation3 + $0x3c] sm:$0xff] }
 0x32f   : > { %10713 = vmatprep.mubr.msk.bf16.mxu1 %vm17019_vm14, %v5701_v8  ;;  %vm17026_vm14 = vmmov %vm17005_vm0  ;;  %v14612_v46 = vpack.c.bf16 %v6369_v40, %v6368_v21  ;;  %v6025_v21 = vld [vmem:[#allocation3 + $0x8b] sm:$0xff] }
 0x330   : > { %10754 = vmatmul.mubr.msk.bf16.gmra.mxu0 %vm17018_vm13, %v5701_v8  ;;  %vm17025_vm13 = vmmov %vm17005_vm0  ;;  %v14610_v8 = vpack.c.bf16 %v6367_v15, %v6366_v56  ;;  %v6052_v15 = vpack.c.bf16 %v6023_v37, %v6022_v10  ;;  %v6379_v40 = vld [vmem:[#allocation3 + $0x8c] sm:$0xff]  ;;  %v6380_v56 = vld [vmem:[#allocation3 + $0x94] sm:$0xff] }
 0x331   : > { %10757 = vmatprep.mubr.msk.bf16.mxu0 %vm17005_vm0, %v5702_v48  ;;  %v6387_v37 = vld [vmem:[#allocation3 + $0xcc] sm:$0xff] }
 0x336   : > { %10714 = vmatmul.mubr.msk.bf16.gmra.mxu1 %vm17020_vm5, %v5702_v48  ;;  %vm17027_vm5 = vmmov %vm17005_vm0  ;;  %v6048_v48 = vpack.c.bf16 %v6015_v31, %v6014_v53  ;;  %v14636_v31 = vpack.c.bf16 %v6377_v57, %v6376_v3  ;;  %v6024_v53 = vld [vmem:[#allocation3 + $0x83] sm:$0xff]  ;;  %v6035_v3 = vld [vmem:[#allocation3 + $0xdb] sm:$0xff] }
 0x337   : > { %10717 = vmatprep.mubr.msk.bf16.mxu1 %vm17022_vm1, %v5703_v62  ;;  %vm17029_vm1 = vmmov %vm17005_vm0  ;;  %v6388_v57 = vld [vmem:[#allocation3 + $0xd4] sm:$0xff] }
 0x338   : > { %10758 = vmatmul.mubr.msk.bf16.gmra.mxu0 %vm17021_vm15, %v5703_v62  ;;  %vm17028_vm15 = vmmov %vm17005_vm0  ;;  %v6017_v62 = vld [vmem:[#allocation3 + $0x4b] sm:$0xff] }
 0x339   : > { %10761 = vmatprep.mubr.msk.bf16.mxu0 %vm17023_vm2, %v5704_v30  ;;  %vm17030_vm2 = vmmov %vm17005_vm0  ;;  %v6049_v32 = vpack.c.bf16 %v6017_v62, %v6016_v47  ;;  %v6026_v62 = vld [vmem:[#allocation3 + $0x93] sm:$0xff]  ;;  %v6385_v47 = vld [vmem:[#allocation3 + $0xbc] sm:$0xff] }
 0x33e   : > { %10718 = vmatmul.mubr.msk.bf16.gmra.mxu1 %vm17024_vm10, %v5704_v30  ;;  %vm17031_vm10 = vmmov %vm17005_vm0  ;;  %v11290_v30 = vld [vmem:[#allocation10 + $0xc8] sm:$0xff]  }
 0x33f   : > { %10721 = vmatprep.mubr.msk.bf16.mxu1 %vm17026_vm14, %v5705_v4  ;;  %vm17033_vm14 = vmmov %vm17005_vm0 }
 0x340   : > { %10762 = vmatmul.mubr.msk.bf16.gmra.mxu0 %vm17025_vm13, %v5705_v4  ;;  %vm17032_vm13 = vmmov %vm17005_vm0  ;;  %v6373_v4 = vld [vmem:[#allocation3 + $0x5c] sm:$0xff] }
 0x341   : > { %10765 = vmatprep.mubr.msk.bf16.mxu0 %vm17005_vm0, %v5706_v34 }
 0x346   : > { %10722 = vmatmul.mubr.msk.bf16.gmra.mxu1 %vm17027_vm5, %v5706_v34  ;;  %vm17034_vm5 = vmmov %vm17005_vm0  ;;  %v6370_v34 = vld [vmem:[#allocation3 + $0x44] sm:$0xff] }
 0x347   : > { %10725 = vmatprep.mubr.msk.bf16.mxu1 %vm17029_vm1, %v5707_v52  ;;  %vm17036_vm1 = vmmov %vm17005_vm0  ;;  %v14622_v14 = vpack.c.bf16 %v6371_v36, %v6370_v34  ;;  %v6054_v36 = vpack.c.bf16 %v6027_v44, %v6026_v62  ;;  %v6028_v34 = vld [vmem:[#allocation3 + $0xa3] sm:$0xff] }
 0x348   : > { %10766 = vmatmul.mubr.msk.bf16.gmra.mxu0 %vm17028_vm15, %v5707_v52  ;;  %vm17035_vm15 = vmmov %vm17005_vm0  ;;  %v14624_v52 = vpack.c.bf16 %v6373_v4, %v6372_v12  ;;  %v6031_v12 = vld [vmem:[#allocation3 + $0xbb] sm:$0xff]  ;;  %v6036_v62 = vld [vmem:[#allocation3 + $0xe3] sm:$0xff] }
 0x349   : > { %10769 = vmatprep.mubr.msk.bf16.mxu0 %vm17030_vm2, %v5708_v51  ;;  %vm17037_vm2 = vmmov %vm17005_vm0  ;;  %v6384_v4 = vld [vmem:[#allocation3 + $0xb4] sm:$0xff] }
 0x34e   : > { %10726 = vmatmul.mubr.msk.bf16.gmra.mxu1 %vm17031_vm10, %v5708_v51  ;;  %vm17038_vm10 = vmmov %vm17005_vm0  ;;  %v6021_v51 = vld [vmem:[#allocation3 + $0x6b] sm:$0xff] }
 0x34f   : > { %10781 = vmatprep.mubr.msk.bf16.mxu1 %vm17033_vm14, %v6046_v20  ;;  %vm17040_vm14 = vmmov %vm17005_vm0 }
 0x350   : > { %10770 = vmatmul.mubr.msk.bf16.gmra.mxu0 %vm17032_vm13, %v5709_v16  ;;  %vm17039_vm13 = vmmov %vm17005_vm0  ;;  %v6020_v16 = vld [vmem:[#allocation3 + $0x63] sm:$0xff] }
 0x351   : > { %10825 = vmatprep.mubr.msk.bf16.mxu0 %vm17005_vm0, %v6400_v41  ;;  %v6051_v20 = vpack.c.bf16 %v6021_v51, %v6020_v16  ;;  %v14634_v41 = vpack.c.bf16 %v6375_v45, %v6374_v63  ;;  %v14657_v51 = vpack.c.bf16 %v6385_v47, %v6384_v4  ;;  %v6033_v45 = vld [vmem:[#allocation3 + $0xcb] sm:$0xff]  ;;  %v6389_v16 = vld [vmem:[#allocation3 + $0xdc] sm:$0xff]  ;;  %v6038_v47 = vld [vmem:[#allocation3 + $0xf3] sm:$0xff] }
 0x352   : > { %v6032_v63 = vld [vmem:[#allocation3 + $0xc3] sm:$0xff]  ;;  %v14667_v44 = vpack.c.bf16 %v6389_v16, %v6388_v57  ;;  %v6041_v16 = vld [vmem:[#allocation3 + $0x10b] sm:$0xff] }
 0x353   : > { %v6057_v10 = vpack.c.bf16 %v6033_v45, %v6032_v63  ;;  %v6395_v63 = vld [vmem:[#allocation3 + $0x10c] sm:$0xff] }
 0x356   : > { %10782 = vmatmul.mubr.msk.bf16.vlgmr.msra.gmra.mxu1 %vm17034_vm5, %v6047_v49  ;;  %vm17041_vm5 = vmmov %vm17005_vm0  ;;  %v6381_v49 = vld [vmem:[#allocation3 + $0x9c] sm:$0xff] }
 0x357   : > { %10785 = vmatprep.mubr.msk.bf16.mxu1 %vm17036_vm1, %v6048_v48  ;;  %10862 = vmatpush3.bf16.msra.mxu1 %v14576_v19  ;;  %v6050_v19 = vpack.c.bf16 %v6019_v50, %v6018_v60  ;;  %vm17043_vm1 = vmmov %vm17005_vm0  ;;  %v6378_v48 = vld [vmem:[#allocation3 + $0x84] sm:$0xff]  ;;  %v6383_v50 = vld [vmem:[#allocation3 + $0xac] sm:$0xff] }
 0x358   : > { %10826 = vmatmul.mubr.msk.bf16.vlgmr.msra.gmra.mxu0 %vm17035_vm15, %v14610_v8  ;;  %10863 = vmatprep.subr.bf16.mxu1 %v11289_v7  ;;  %vm17042_vm15 = vmmov %vm17005_vm0 }
 0x359   : > { %10829 = vmatprep.mubr.msk.bf16.mxu0 %vm17037_vm2, %v14612_v46  ;;  %10906 = vmatpush3.bf16.msra.mxu0 %v14578_v59  ;;  %v11291_v59 = vld [vmem:[#allocation10 + $0xc0] sm:$0xff]   ;;  %vm17044_vm2 = vmmov %vm17005_vm0 }
 0x35a   : > { %10907 = vmatprep.subr.bf16.mxu0 %v11293_v9 }
 0x35b   : > { %10864 = vmatpush3.bf16.msra.mxu1 %v11289_v7  ;;  %v6053_v7 = vpack.c.bf16 %v6025_v21, %v6024_v53  ;;  %v6034_v21 = vld [vmem:[#allocation3 + $0xd3] sm:$0xff]  ;;  %v6039_v53 = vld [vmem:[#allocation3 + $0xfb] sm:$0xff] }
 0x35c   : > { %10865 = vmatprep.subr.bf16.mxu1 %v11290_v30 }
 0x35d   : > { %10908 = vmatpush3.bf16.msra.mxu0 %v11293_v9  ;;  %v14645_v9 = vpack.c.bf16 %v6379_v40, %v6378_v48  ;;  %v6058_v40 = vpack.c.bf16 %v6035_v3, %v6034_v21  ;;  %v6392_v48 = vld [vmem:[#allocation3 + $0xf4] sm:$0xff] }
 0x35e   : > { %10909 = vmatprep.subr.bf16.mxu0 %v11294_v58  ;;  %10786 = vmatmul.mubr.msk.bf16.gmra.mxu1 %vm17038_vm10, %v6049_v32  ;;  %vm17045_vm10 = vmmov %vm17005_vm0  ;;  %v6382_v32 = vld [vmem:[#allocation3 + $0xa4] sm:$0xff]  ;;  %v6043_v21 = vld [vmem:[#allocation3 + $0x11b] sm:$0xff] }
 0x35f   : > { %10789 = vmatprep.mubr.msk.bf16.mxu1 %vm17040_vm14, %v6050_v19  ;;  %10866 = vmatpush3.bf16.msra.mxu1 %v11290_v30  ;;  %v14647_v30 = vpack.c.bf16 %v6381_v49, %v6380_v56  ;;  %vm17047_vm14 = vmmov %vm17005_vm0  ;;  %v14655_v19 = vpack.c.bf16 %v6383_v50, %v6382_v32  ;;  %v6037_v56 = vld [vmem:[#allocation3 + $0xeb] sm:$0xff]  ;;  %v6060_v32 = vpack.c.bf16 %v6039_v53, %v6038_v47  ;;  %v6040_v53 = vld [vmem:[#allocation3 + $0x103] sm:$0xff] }
 0x360   : > { %10830 = vmatmul.mubr.msk.bf16.gmra.mxu0 %vm17039_vm13, %v14622_v14  ;;  %10867 = vmatprep.subr.bf16.mxu1 %v11291_v59  ;;  %vm17046_vm13 = vmmov %vm17005_vm0  ;;  %v6391_v49 = vld [vmem:[#allocation3 + $0xec] sm:$0xff] }
 0x361   : > { %10833 = vmatprep.mubr.msk.bf16.mxu0 %vm17005_vm0, %v14624_v52  ;;  %10910 = vmatpush3.bf16.msra.mxu0 %v11294_v58  ;;  %v6029_v58 = vld [vmem:[#allocation3 + $0xab] sm:$0xff] }
 0x362   : > { %10911 = vmatprep.subr.bf16.mxu0 %v11295_v61  ;;  %v6055_v60 = vpack.c.bf16 %v6029_v58, %v6028_v34 }
 0x363   : > { %10868 = vmatpush3.bf16.msra.mxu1 %v11291_v59  ;;  %v6030_v59 = vld [vmem:[#allocation3 + $0xb3] sm:$0xff] }
 0x364   : > { %10949 = vmatprep.subr.bf16.mxu1 %v14632_v11 }
 0x365   : > { %10912 = vmatpush3.bf16.msra.mxu0 %v11295_v61  ;;  %v6056_v61 = vpack.c.bf16 %v6031_v12, %v6030_v59  ;;  %v6059_v12 = vpack.c.bf16 %v6037_v56, %v6036_v62  ;;  %v6397_v56 = vld [vmem:[#allocation3 + $0x11c] sm:$0xff] }
 0x366   : > { %10790 = vmatmul.mubr.msk.bf16.gmra.mxu1 %vm17041_vm5, %v6051_v20  ;;  %vm17048_vm5 = vmmov %vm17005_vm0  ;;  %v6386_v20 = vld [vmem:[#allocation3 + $0xc4] sm:$0xff] }
 0x367   : > { %10793 = vmatprep.mubr.msk.bf16.mxu1 %vm17043_vm1, %v6052_v15  ;;  %vm17050_vm1 = vmmov %vm17005_vm0  ;;  %v14665_v15 = vpack.c.bf16 %v6387_v37, %v6386_v20 }
 0x368   : > { %10834 = vmatmul.mubr.msk.bf16.gmra.mxu0 %vm17042_vm15, %v14634_v41  ;;  %vm17049_vm15 = vmmov %vm17005_vm0 }
 0x369   : > { %10837 = vmatprep.mubr.msk.bf16.mxu0 %vm17044_vm2, %v14636_v31  ;;  %vm17051_vm2 = vmmov %vm17005_vm0 }
 0x36b   : > { %v10607_v58 = vpop.f32.mrf.mxu1 }
 0x36c   : > { %v10651_v50 = vpop.f32.mrf.mxu0 }
 0x36d   : > { %v14677_v34 = vadd.f32 %v10651_v50, %v10607_v58  ;;  %v4904_v59 = vpop.f32.mrf.mxu1  ;;  %v6042_v50 = vld [vmem:[#allocation3 + $0x113] sm:$0xff] }
 0x36e   : > { %10794 = vmatmul.mubr.msk.bf16.gmra.mxu1 %vm17045_vm10, %v6053_v7  ;;  %vm17052_vm10 = vmmov %vm17005_vm0  ;;  %v6393_v7 = vld [vmem:[#allocation3 + $0xfc] sm:$0xff]  ;;  %v6062_v47 = vpack.c.bf16 %v6043_v21, %v6042_v50  ;;  %v6399_v21 = vld [vmem:[#allocation3 + $0x12c] sm:$0xff] }
 0x36f   : > { %10797 = vmatprep.mubr.msk.bf16.mxu1 %vm17047_vm14, %v6054_v36  ;;  %vm17054_vm14 = vmmov %vm17005_vm0  ;;  %v6390_v36 = vld [vmem:[#allocation3 + $0xe4] sm:$0xff]  ;;  %v10608_v37 = vpop.f32.mrf.mxu1 }
 0x370   : > { %10838 = vmatmul.mubr.msk.bf16.gmra.mxu0 %vm17046_vm13, %v14645_v9  ;;  %vm17053_vm13 = vmmov %vm17005_vm0  ;;  %v14675_v4 = vpack.c.bf16 %v6391_v49, %v6390_v36  ;;  %v6061_v36 = vpack.c.bf16 %v6041_v16, %v6040_v53  ;;  %v7073_v53 = vld [vmem:[#allocation3 + $0x2d] sm:$0xff] }
 0x371   : > { %10841 = vmatprep.mubr.msk.bf16.mxu0 %vm17005_vm0, %v14647_v30  ;;  %v4907_v20 = vpop.f32.mrf.mxu1 }
 0x376   : > { %10798 = vmatmul.mubr.msk.bf16.gmra.mxu1 %vm17048_vm5, %v6055_v60  ;;  %v14679_v60 = vpack.c.bf16 %v6393_v7, %v6392_v48  ;;  %vm17055_vm5 = vmmov %vm17005_vm0  ;;  %v6394_v48 = vld [vmem:[#allocation3 + $0x104] sm:$0xff] }
 0x377   : > { %10801 = vmatprep.mubr.msk.bf16.mxu1 %vm17050_vm1, %v6056_v61  ;;  %v5159_v61 = vpop.f32.mrf.mxu0  ;;  %vm17057_vm1 = vmmov %vm17005_vm0  ;;  %v14693_v58 = vpack.c.bf16 %v6395_v63, %v6394_v48 }
 0x378   : > { %10842 = vmatmul.mubr.msk.bf16.gmra.mxu0 %vm17049_vm15, %v14655_v19  ;;  %vm17056_vm15 = vmmov %vm17005_vm0  ;;  %v14687_v45 = vadd.f32 %v5159_v61, %v4904_v59 }
 0x379   : > { %10845 = vmatprep.mubr.msk.bf16.mxu0 %vm17051_vm2, %v14657_v51  ;;  %vm17058_vm2 = vmmov %vm17005_vm0  ;;  %v10652_v3 = vpop.f32.mrf.mxu0  ;;  %v10611_v7 = vpop.f32.mrf.mxu1 }
 0x37a   : > { %v14689_v57 = vadd.f32 %v10652_v3, %v10608_v37 }
 0x37b   : > { %v4920_v59 = vpop.f32.mrf.mxu1 }
 0x37d   : > { %v10612_v3 = vpop.f32.mrf.mxu1 }
 0x37e   : > { %10802 = vmatmul.mubr.msk.bf16.gmra.mxu1 %vm17052_vm10, %v6057_v10  ;;  %v5162_v10 = vpop.f32.mrf.mxu0  ;;  %vm17059_vm10 = vmmov %vm17005_vm0 }
 0x37f   : > { %10805 = vmatprep.mubr.msk.bf16.mxu1 %vm17054_vm14, %v6058_v40  ;;  %v6396_v40 = vld [vmem:[#allocation3 + $0x114] sm:$0xff]  ;;  %v14691_v49 = vadd.f32 %v5162_v10, %v4907_v20  ;;  %vm17061_vm14 = vmmov %vm17005_vm0  ;;  %v6045_v20 = vld [vmem:[#allocation3 + $0x12b] sm:$0xff] }
 0x380   : > { %10846 = vmatmul.mubr.msk.bf16.gmra.mxu0 %vm17053_vm13, %v14665_v15  ;;  %v10655_v62 = vpop.f32.mrf.mxu0  ;;  %vm17060_vm13 = vmmov %vm17005_vm0  ;;  %v6398_v10 = vld [vmem:[#allocation3 + $0x124] sm:$0xff] }
 0x381   : > { %10849 = vmatprep.mubr.msk.bf16.mxu0 %vm17005_vm0, %v14667_v44 }
 0x382   : > { %v5175_v61 = vpop.f32.mrf.mxu0 }
 0x383   : > { %v14705_v37 = vadd.f32 %v5175_v61, %v4920_v59  ;;  %v7072_v59 = vld [vmem:[#allocation3 + $0x25] sm:$0xff] }
 0x384   : > { %v10656_v16 = vpop.f32.mrf.mxu0  ;;  %v7108_v18 = vpack.c.bf16 %v7073_v53, %v7072_v59  ;;  %v7075_v53 = vld [vmem:[#allocation3 + $0x3d] sm:$0xff] }
 0x385   : > { %v14707_v63 = vadd.f32 %v10656_v16, %v10612_v3 }
 0x386   : > { %10806 = vmatmul.mubr.msk.bf16.gmra.mxu1 %vm17055_vm5, %v6059_v12  ;;  %v14695_v12 = vadd.f32 %v10655_v62, %v10611_v7  ;;  %v6044_v7 = vld [vmem:[#allocation3 + $0x123] sm:$0xff]  ;;  %vm17062_vm5 = vmmov %vm17005_vm0 }
 0x387   : > { %10809 = vmatprep.mubr.msk.bf16.mxu1 %vm17057_vm1, %v6060_v32  ;;  %v14697_v32 = vpack.c.bf16 %v6397_v56, %v6396_v40  ;;  %v4923_v40 = vpop.f32.mrf.mxu1  ;;  %v5178_v56 = vpop.f32.mrf.mxu0  ;;  %v6063_v50 = vpack.c.bf16 %v6045_v20, %v6044_v7  ;;  %vm17064_vm1 = vmmov %vm17005_vm0 }
 0x388   : > { %10850 = vmatmul.mubr.msk.bf16.gmra.mxu0 %vm17056_vm15, %v14675_v4  ;;  %v14709_v48 = vadd.f32 %v5178_v56, %v4923_v40  ;;  %vm17063_vm15 = vmmov %vm17005_vm0  ;;  %v7074_v56 = vld [vmem:[#allocation3 + $0x35] sm:$0xff] }
 0x389   : > { %10853 = vmatprep.mubr.msk.bf16.mxu0 %vm17058_vm2, %v14679_v60  ;;  %v10615_v62 = vpop.f32.mrf.mxu1  ;;  %vm17065_vm2 = vmmov %vm17005_vm0  ;;  %v7109_v39 = vpack.c.bf16 %v7075_v53, %v7074_v56  ;;  %v7078_v53 = vld [vmem:[#allocation3 + $0x55] sm:$0xff] }
 0x38b   : > { %v4936_v3 = vpop.f32.mrf.mxu1 }
 0x38d   : > { %v10616_v20 = vpop.f32.mrf.mxu1 }
 0x38e   : > { %10810 = vmatmul.mubr.msk.bf16.gmra.mxu1 %vm17059_vm10, %v6061_v36  ;;  %v10659_v36 = vpop.f32.mrf.mxu0  ;;  %vm17066_vm10 = vmmov %vm17005_vm0 }
 0x38f   : > { %10813 = vmatprep.mubr.msk.bf16.mxu1 %vm17061_vm14, %v6062_v47  ;;  %v14711_v47 = vpack.c.bf16 %v6399_v21, %v6398_v10  ;;  %v14713_v61 = vadd.f32 %v10659_v36, %v10615_v62  ;;  %v4939_v7 = vpop.f32.mrf.mxu1  ;;  %v7077_v36 = vld [vmem:[#allocation3 + $0x4d] sm:$0xff]  ;;  %vm17068_vm14 = vmmov %vm17005_vm0 }
 0x390   : > { %10854 = vmatmul.mubr.msk.bf16.gmra.mxu0 %vm17060_vm13, %v14693_v58  ;;  %v5191_v16 = vpop.f32.mrf.mxu0  ;;  %vm17067_vm13 = vmmov %vm17005_vm0 }
 0x391   : > { %10857 = vmatprep.mubr.msk.bf16.mxu0 %vm17005_vm0, %v14697_v32  ;;  %v14721_v40 = vadd.f32 %v5191_v16, %v4936_v3  ;;  %v11297_v3 = vld [vmem:[#allocation10 + $0x110] sm:$0xff]  }
 0x392   : > { %v10660_v10 = vpop.f32.mrf.mxu0  ;;  %v10619_v59 = vpop.f32.mrf.mxu1 }
 0x393   : > { %v14723_v21 = vadd.f32 %v10660_v10, %v10616_v20 }
 0x394   : > { %v5194_v62 = vpop.f32.mrf.mxu0  ;;  %v4952_v16 = vpop.f32.mrf.mxu1 }
 0x396   : > { %10814 = vmatmul.mubr.msk.bf16.gmra.mxu1 %vm17062_vm5, %v6063_v50  ;;  %v14725_v50 = vadd.f32 %v5194_v62, %v4939_v7  ;;  %v10663_v22 = vpop.f32.mrf.mxu0  ;;  %v7079_v7 = vld [vmem:[#allocation3 + $0x5d] sm:$0xff]  ;;  %vm17069_vm5 = vmmov %vm17005_vm0 }
 0x397   : > { %10869 = vmatprep.mubr.msk.bf16.mxu1 %vm17064_vm1, %v14610_v8  ;;  %v14727_v8 = vadd.f32 %v10663_v22, %v10619_v59  ;;  %v10620_v22 = vpop.f32.mrf.mxu1  ;;  %vm17071_vm1 = vmmov %vm17005_vm0 }
 0x398   : > { %10858 = vmatmul.mubr.msk.bf16.gmra.mxu0 %vm17063_vm15, %v14711_v47  ;;  %v5207_v20 = vpop.f32.mrf.mxu0  ;;  %vm17070_vm15 = vmmov %vm17005_vm0 }
 0x399   : > { %10913 = vmatprep.mubr.msk.bf16.mxu0 %vm17065_vm2, %v7108_v18  ;;  %v7110_v18 = vpack.c.bf16 %v7077_v36, %v7076_v42  ;;  %v14735_v10 = vadd.f32 %v5207_v20, %v4952_v16  ;;  %v7081_v36 = vld [vmem:[#allocation3 + $0x6d] sm:$0xff]  ;;  %vm17072_vm2 = vmmov %vm17005_vm0 }
 0x39a   : > { %v10664_v56 = vpop.f32.mrf.mxu0  ;;  %v11299_v16 = vld [vmem:[#allocation10 + $0x100] sm:$0xff]  }
 0x39b   : > { %v14738_v42 = vadd.f32 %v10664_v56, %v10620_v22 }
 0x39c   : > { %v5210_v62 = vpop.f32.mrf.mxu0 }
 0x39e   : > { %10870 = vmatmul.mubr.msk.bf16.vlgmr.msra.gmra.mxu1 %vm17066_vm10, %v14612_v46  ;;  %v11298_v46 = vld [vmem:[#allocation10 + $0x108] sm:$0xff]   ;;  %vm17073_vm10 = vmmov %vm17005_vm0 }
 0x39f   : > { %10873 = vmatprep.mubr.msk.bf16.mxu1 %vm17068_vm14, %v14622_v14  ;;  %10950 = vmatpush3.bf16.msra.mxu1 %v14632_v11  ;;  %v7111_v14 = vpack.c.bf16 %v7079_v7, %v7078_v53  ;;  %v7083_v7 = vld [vmem:[#allocation3 + $0x7d] sm:$0xff]  ;;  %vm17075_vm14 = vmmov %vm17005_vm0 }
 0x3a0   : > { %10914 = vmatmul.mubr.msk.bf16.vlgmr.msra.gmra.mxu0 %vm17067_vm13, %v7109_v39  ;;  %10951 = vmatprep.subr.bf16.mxu1 %v11297_v3  ;;  %v4955_v39 = vpop.f32.mrf.mxu1  ;;  %vm17074_vm13 = vmmov %vm17005_vm0 }
 0x3a1   : > { %10917 = vmatprep.mubr.msk.bf16.mxu0 %vm17005_vm0, %v7110_v18  ;;  %v14740_v59 = vadd.f32 %v5210_v62, %v4955_v39  ;;  %v7112_v18 = vpack.c.bf16 %v7081_v36, %v7080_v17 }
 0x3a3   : > { %10952 = vmatpush3.bf16.msra.mxu1 %v11297_v3  ;;  %v7082_v3 = vld [vmem:[#allocation3 + $0x75] sm:$0xff] }
 0x3a4   : > { %10953 = vmatprep.subr.bf16.mxu1 %v11298_v46 }
 0x3a5   : > { %v10623_v11 = vpop.f32.mrf.mxu1 }
 0x3a6   : > { %v10667_v20 = vpop.f32.mrf.mxu0  ;;  %10874 = vmatmul.mubr.msk.bf16.gmra.mxu1 %vm17069_vm5, %v14624_v52  ;;  %v7085_v52 = vld [vmem:[#allocation3 + $0x8d] sm:$0xff]  ;;  %vm17076_vm5 = vmmov %vm17005_vm0 }
 0x3a7   : > { %v14745_v22 = vadd.f32 %v10667_v20, %v10623_v11  ;;  %10877 = vmatprep.mubr.msk.bf16.mxu1 %vm17071_vm1, %v14634_v41  ;;  %v4968_v56 = vpop.f32.mrf.mxu1  ;;  %10954 = vmatpush3.bf16.msra.mxu1 %v11298_v46  ;;  %v7113_v20 = vpack.c.bf16 %v7083_v7, %v7082_v3  ;;  %v7086_v7 = vld [vmem:[#allocation3 + $0x95] sm:$0xff]  ;;  %vm17078_vm1 = vmmov %vm17005_vm0 }
 0x3a8   : > { %10918 = vmatmul.mubr.msk.bf16.gmra.mxu0 %vm17070_vm15, %v7111_v14  ;;  %v5223_v53 = vpop.f32.mrf.mxu0  ;;  %10955 = vmatprep.subr.bf16.mxu1 %v11299_v16  ;;  %vm17077_vm15 = vmmov %vm17005_vm0 }
 0x3a9   : > { %10921 = vmatprep.mubr.msk.bf16.mxu0 %vm17072_vm2, %v7112_v18  ;;  %v14750_v17 = vadd.f32 %v5223_v53, %v4968_v56  ;;  %v10624_v39 = vpop.f32.mrf.mxu1  ;;  %v7114_v18 = vpack.c.bf16 %v7085_v52, %v7084_v5  ;;  %v7087_v5 = vld [vmem:[#allocation3 + $0x9d] sm:$0xff]  ;;  %v7089_v52 = vld [vmem:[#allocation3 + $0xad] sm:$0xff]  ;;  %vm17079_vm2 = vmmov %vm17005_vm0 }
 0x3aa   : > { %v10668_v62 = vpop.f32.mrf.mxu0 }
 0x3ab   : > { %v14752_v36 = vadd.f32 %v10668_v62, %v10624_v39  ;;  %v4971_v14 = vpop.f32.mrf.mxu1  ;;  %10956 = vmatpush3.bf16.msra.mxu1 %v11299_v16 }
 0x3ac   : > { %v5226_v11 = vpop.f32.mrf.mxu0 }
 0x3ad   : > { %v14754_v41 = vadd.f32 %v5226_v11, %v4971_v14 }
 0x3ae   : > { %v10627_v0 = vpop.f32.mrf.mxu1  ;;  %10878 = vmatmul.mubr.msk.bf16.gmra.mxu1 %vm17073_vm10, %v14636_v31  ;;  %vm17080_vm10 = vmmov %vm17005_vm0 }
 0x3af   : > { %v10671_v46 = vpop.f32.mrf.mxu0  ;;  %10881 = vmatprep.mubr.msk.bf16.mxu1 %vm17075_vm14, %v14645_v9  ;;  %vm17082_vm14 = vmmov %vm17005_vm0 }
 0x3b0   : > { %10922 = vmatmul.mubr.msk.bf16.gmra.mxu0 %vm17074_vm13, %v7113_v20  ;;  %v14759_v56 = vadd.f32 %v10671_v46, %v10627_v0  ;;  %v4984_v53 = vpop.f32.mrf.mxu1  ;;  %v7115_v0 = vpack.c.bf16 %v7087_v5, %v7086_v7  ;;  %v7088_v20 = vld [vmem:[#allocation3 + $0xa5] sm:$0xff]  ;;  %vm17081_vm13 = vmmov %vm17005_vm0 }
 0x3b1   : > { %10925 = vmatprep.mubr.msk.bf16.mxu0 %vm17005_vm0, %v7114_v18  ;;  %v5239_v3 = vpop.f32.mrf.mxu0  ;;  %v7116_v9 = vpack.c.bf16 %v7089_v52, %v7088_v20 }
 0x3b2   : > { %v14764_v16 = vadd.f32 %v5239_v3, %v4984_v53  ;;  %v10628_v39 = vpop.f32.mrf.mxu1 }
 0x3b3   : > { %v10672_v62 = vpop.f32.mrf.mxu0 }
 0x3b4   : > { %v14766_v14 = vadd.f32 %v10672_v62, %v10628_v39  ;;  %v4987_v31 = vpop.f32.mrf.mxu1  ;;  %v7090_v39 = vld [vmem:[#allocation3 + $0xb5] sm:$0xff]  ;;  %v7091_v62 = vld [vmem:[#allocation3 + $0xbd] sm:$0xff] }
 0x3b5   : > { %v5242_v11 = vpop.f32.mrf.mxu0 }
 0x3b6   : > { %v14768_v46 = vadd.f32 %v5242_v11, %v4987_v31  ;;  %v10631_v35 = vpop.f32.mrf.mxu1  ;;  %10882 = vmatmul.mubr.msk.bf16.gmra.mxu1 %vm17076_vm5, %v14647_v30  ;;  %v7093_v11 = vld [vmem:[#allocation3 + $0xcd] sm:$0xff]  ;;  %vm17083_vm5 = vmmov %vm17005_vm0 }
 0x3b7   : > { %10885 = vmatprep.mubr.msk.bf16.mxu1 %vm17078_vm1, %v14655_v19  ;;  %vm17085_vm1 = vmmov %vm17005_vm0 }
 0x3b8   : > { %v10675_v18 = vpop.f32.mrf.mxu0  ;;  %10926 = vmatmul.mubr.msk.bf16.gmra.mxu0 %vm17077_vm15, %v7115_v0  ;;  %v5000_v3 = vpop.f32.mrf.mxu1  ;;  %vm17084_vm15 = vmmov %vm17005_vm0 }
 0x3b9   : > { %v14773_v53 = vadd.f32 %v10675_v18, %v10631_v35  ;;  %10929 = vmatprep.mubr.msk.bf16.mxu0 %vm17079_vm2, %v7116_v9  ;;  %v7117_v35 = vpack.c.bf16 %v7091_v62, %v7090_v39  ;;  %v7092_v18 = vld [vmem:[#allocation3 + $0xc5] sm:$0xff]  ;;  %vm17086_vm2 = vmmov %vm17005_vm0 }
 0x3ba   : > { %v5255_v7 = vpop.f32.mrf.mxu0  ;;  %v10632_v52 = vpop.f32.mrf.mxu1  ;;  %v7118_v19 = vpack.c.bf16 %v7093_v11, %v7092_v18 }
 0x3bb   : > { %v14778_v5 = vadd.f32 %v5255_v7, %v5000_v3 }
 0x3bc   : > { %v10676_v31 = vpop.f32.mrf.mxu0  ;;  %v5003_v30 = vpop.f32.mrf.mxu1 }
 0x3bd   : > { %v14780_v20 = vadd.f32 %v10676_v31, %v10632_v52  ;;  %v7094_v52 = vld [vmem:[#allocation3 + $0xd5] sm:$0xff]  ;;  %v7095_v31 = vld [vmem:[#allocation3 + $0xdd] sm:$0xff] }
 0x3be   : > { %v5258_v0 = vpop.f32.mrf.mxu0  ;;  %v10635_v26 = vpop.f32.mrf.mxu1  ;;  %10886 = vmatmul.mubr.msk.bf16.gmra.mxu1 %vm17080_vm10, %v14657_v51  ;;  %vm17087_vm10 = vmmov %vm17005_vm0 }
 0x3bf   : > { %v14782_v2 = vadd.f32 %v5258_v0, %v5003_v30  ;;  %10889 = vmatprep.mubr.msk.bf16.mxu1 %vm17082_vm14, %v14665_v15  ;;  %v7097_v0 = vld [vmem:[#allocation3 + $0xed] sm:$0xff]  ;;  %vm17089_vm14 = vmmov %vm17005_vm0 }
 0x3c0   : > { %v10679_v9 = vpop.f32.mrf.mxu0  ;;  %10930 = vmatmul.mubr.msk.bf16.gmra.mxu0 %vm17081_vm13, %v7117_v35  ;;  %v5016_v7 = vpop.f32.mrf.mxu1  ;;  %vm17088_vm13 = vmmov %vm17005_vm0 }
 0x3c1   : > { %v14787_v3 = vadd.f32 %v10679_v9, %v10635_v26  ;;  %10933 = vmatprep.mubr.msk.bf16.mxu0 %vm17005_vm0, %v7118_v19  ;;  %v7119_v26 = vpack.c.bf16 %v7095_v31, %v7094_v52  ;;  %v7096_v9 = vld [vmem:[#allocation3 + $0xe5] sm:$0xff]  ;;  %v7098_v31 = vld [vmem:[#allocation3 + $0xf5] sm:$0xff] }
 0x3c2   : > { %v5271_v39 = vpop.f32.mrf.mxu0  ;;  %v10636_v11 = vpop.f32.mrf.mxu1  ;;  %v7120_v15 = vpack.c.bf16 %v7097_v0, %v7096_v9  ;;  %v7100_v9 = vld [vmem:[#allocation3 + $0x105] sm:$0xff] }
 0x3c3   : > { %v14792_v62 = vadd.f32 %v5271_v39, %v5016_v7 }
 0x3c4   : > { %v10680_v30 = vpop.f32.mrf.mxu0  ;;  %v5019_v51 = vpop.f32.mrf.mxu1 }
 0x3c5   : > { %v14794_v18 = vadd.f32 %v10680_v30, %v10636_v11  ;;  %v7099_v11 = vld [vmem:[#allocation3 + $0xfd] sm:$0xff] }
 0x3c6   : > { %v5274_v35 = vpop.f32.mrf.mxu0  ;;  %v10639_v54 = vpop.f32.mrf.mxu1  ;;  %10890 = vmatmul.mubr.msk.bf16.gmra.mxu1 %vm17083_vm5, %v14667_v44  ;;  %vm17090_vm5 = vmmov %vm17005_vm0 }
 0x3c7   : > { %v14796_v55 = vadd.f32 %v5274_v35, %v5019_v51  ;;  %10893 = vmatprep.mubr.msk.bf16.mxu1 %vm17085_vm1, %v14675_v4  ;;  %v7101_v51 = vld [vmem:[#allocation3 + $0x10d] sm:$0xff]  ;;  %vm17092_vm1 = vmmov %vm17005_vm0 }
 0x3c8   : > { %v10683_v19 = vpop.f32.mrf.mxu0  ;;  %10934 = vmatmul.mubr.msk.bf16.gmra.mxu0 %vm17084_vm15, %v7119_v26  ;;  %v14806_v39 = vpop.f32.mrf.mxu1  ;;  %v7121_v26 = vpack.c.bf16 %v7099_v11, %v7098_v31  ;;  %v7122_v4 = vpack.c.bf16 %v7101_v51, %v7100_v9  ;;  %v7102_v51 = vld [vmem:[#allocation3 + $0x115] sm:$0xff]  ;;  %v7103_v9 = vld [vmem:[#allocation3 + $0x11d] sm:$0xff]  ;;  %vm17091_vm15 = vmmov %vm17005_vm0 }
 0x3c9   : > { %v14801_v7 = vadd.f32 %v10683_v19, %v10639_v54  ;;  %10937 = vmatprep.mubr.msk.bf16.mxu0 %vm17086_vm2, %v7120_v15  ;;  %vm17093_vm2 = vmmov %vm17005_vm0 }
 0x3ca   : > { %v14808_v52 = vpop.f32.mrf.mxu0  ;;  %v10640_v30 = vpop.f32.mrf.mxu1 }
 0x3cc   : > { %v10684_v0 = vpop.f32.mrf.mxu0  ;;  %v14812_v44 = vpop.f32.mrf.mxu1 }
 0x3cd   : > { %v14810_v35 = vadd.f32 %v10684_v0, %v10640_v30 }
 0x3ce   : > { %v14814_v54 = vpop.f32.mrf.mxu0  ;;  %v10695_v19 = vpop.f32.mrf.mxu1  ;;  %10894 = vmatmul.mubr.msk.bf16.gmra.mxu1 %vm17087_vm10, %v14679_v60  ;;  %vm17094_vm10 = vmmov %vm17005_vm0 }
 0x3cf   : > { %v5622_v29 = vadd.f32 %v10695_v19, %v14677_v34  ;;  %10897 = vmatprep.mubr.msk.bf16.mxu1 %vm17089_vm14, %v14693_v58  ;;  %vm17096_vm14 = vmmov %vm17005_vm0 }
 0x3d0   : > { %v10739_v15 = vpop.f32.mrf.mxu0  ;;  %10938 = vmatmul.mubr.msk.bf16.gmra.mxu0 %vm17088_vm13, %v7121_v26  ;;  %v5477_v30 = vpop.f32.mrf.mxu1  ;;  %v7104_v26 = vld [vmem:[#allocation3 + $0x125] sm:$0xff]  ;;  %vm17095_vm13 = vmmov %vm17005_vm0 }
 0x3d1   : > { %10941 = vmatprep.mubr.msk.bf16.mxu0 %vm17005_vm0, %v7122_v4  ;;  %v14825_v31 = vadd.f32 %v10739_v15, %v5622_v29  ;;  %v14828_v11 = vadd.f32 %v5477_v30, %v14687_v45  ;;  %v7123_v4 = vpack.c.bf16 %v7103_v9, %v7102_v51  ;;  %v7124_v15 = vpack.c.bf16 %v7105_v25, %v7104_v26  ;;  %v7106_v51 = vld [vmem:[#allocation3 + $0x135] sm:$0xff] }
 0x3d2   : > { %v14823_v0 = vpop.f32.mrf.mxu0  ;;  %v10696_v60 = vpop.f32.mrf.mxu1 }
 0x3d3   : > { %v5623_v34 = vadd.f32 %v10696_v60, %v14689_v57 }
 0x3d4   : > { %v10740_v43 = vpop.f32.mrf.mxu0  ;;  %v5480_v19 = vpop.f32.mrf.mxu1 }
 0x3d5   : > { %v14833_v28 = vadd.f32 %v10740_v43, %v5623_v34  ;;  %v14836_v29 = vadd.f32 %v5480_v19, %v14691_v49  ;;  %v6753_v43 = vld [vmem:[#allocation3 + $0x13c] sm:$0xff] }
 0x3d6   : > { %v14831_v58 = vpop.f32.mrf.mxu0  ;;  %v10699_v45 = vpop.f32.mrf.mxu1  ;;  %10898 = vmatmul.mubr.msk.bf16.gmra.mxu1 %vm17090_vm5, %v14697_v32  ;;  %v7107_v49 = vld [vmem:[#allocation3 + $0x13d] sm:$0xff]  ;;  %v6771_v19 = vpack.c.bf16 %v6753_v43, %v6752_v24  ;;  %vm17097_vm5 = vmmov %vm17005_vm0 }
 0x3d7   : > { %v5626_v57 = vadd.f32 %v10699_v45, %v14695_v12  ;;  %10901 = vmatprep.mubr.msk.bf16.mxu1 %vm17092_vm1, %v14711_v47  ;;  %v7427_v12 = vld [vmem:[#allocation3 + $0x2e] sm:$0xff]  ;;  %vm17099_vm1 = vmmov %vm17005_vm0 }
 0x3d8   : > { %v10743_v30 = vpop.f32.mrf.mxu0  ;;  %10942 = vmatmul.mubr.msk.bf16.gmra.mxu0 %vm17091_vm15, %v7123_v4  ;;  %v5493_v9 = vpop.f32.mrf.mxu1  ;;  %v7125_v4 = vpack.c.bf16 %v7107_v49, %v7106_v51  ;;  %vm17098_vm15 = vmmov %vm17005_vm0 }
 0x3d9   : > { %10945 = vmatprep.mubr.msk.bf16.mxu0 %vm17093_vm2, %v7124_v15  ;;  %v14847_v60 = vadd.f32 %v10743_v30, %v5626_v57  ;;  %v14850_v32 = vadd.f32 %v5493_v9, %v14705_v37  ;;  %v7462_v30 = vpack.c.bf16 %v7427_v12, %v7426_v33  ;;  %v7429_v33 = vld [vmem:[#allocation3 + $0x3e] sm:$0xff]  ;;  %vm17100_vm2 = vmmov %vm17005_vm0 }
 0x3da   : > { %v14845_v25 = vpop.f32.mrf.mxu0  ;;  %v10700_v26 = vpop.f32.mrf.mxu1 }
 0x3db   : > { %v5627_v47 = vadd.f32 %v10700_v26, %v14707_v63 }
 0x3dc   : > { %v10744_v34 = vpop.f32.mrf.mxu0  ;;  %v5496_v45 = vpop.f32.mrf.mxu1 }
 0x3dd   : > { %v14855_v13 = vadd.f32 %v10744_v34, %v5627_v47  ;;  %v14858_v27 = vadd.f32 %v5496_v45, %v14709_v48  ;;  %v7428_v48 = vld [vmem:[#allocation3 + $0x36] sm:$0xff]  ;;  %v7431_v34 = vld [vmem:[#allocation3 + $0x4e] sm:$0xff]  ;;  %v7430_v47 = vld [vmem:[#allocation3 + $0x46] sm:$0xff] }
 0x3de   : > { %v14853_v15 = vpop.f32.mrf.mxu0  ;;  %v10703_v57 = vpop.f32.mrf.mxu1  ;;  %10902 = vmatmul.mubr.msk.bf16.gmra.mxu1 %vm17094_vm10, %v6771_v19  ;;  %vm17101_vm10 = vmmov %vm17005_vm0 }
 0x3df   : > { %v5630_v24 = vadd.f32 %v10703_v57, %v14713_v61  ;;  %10957 = vmatprep.mubr.msk.bf16.mxu1 %vm17096_vm14, %v7462_v30  ;;  %v7463_v61 = vpack.c.bf16 %v7429_v33, %v7428_v48  ;;  %v7464_v57 = vpack.c.bf16 %v7431_v34, %v7430_v47  ;;  %v7432_v33 = vld [vmem:[#allocation3 + $0x56] sm:$0xff]  ;;  %vm17103_vm14 = vmmov %vm17005_vm0 }
 0x3e0   : > { %v10747_v37 = vpop.f32.mrf.mxu0  ;;  %10946 = vmatmul.mubr.msk.bf16.gmra.mxu0 %vm17095_vm13, %v7125_v4  ;;  %v5509_v63 = vpop.f32.mrf.mxu1  ;;  %vm17102_vm13 = vmmov %vm17005_vm0 }
 0x3e1   : > { %v14866_v51 = vadd.f32 %v10747_v37, %v5630_v24  ;;  %v14869_v49 = vadd.f32 %v5509_v63, %v14721_v40 }
 0x3e2   : > { %v14864_v43 = vpop.f32.mrf.mxu0  ;;  %v10704_v9 = vpop.f32.mrf.mxu1 }
 0x3e3   : > { %v5631_v19 = vadd.f32 %v10704_v9, %v14723_v21 }
 0x3e4   : > { %v10748_v26 = vpop.f32.mrf.mxu0  ;;  %v5512_v12 = vpop.f32.mrf.mxu1 }
 0x3e5   : > { %v14874_v45 = vadd.f32 %v10748_v26, %v5631_v19  ;;  %v14877_v30 = vadd.f32 %v5512_v12, %v14725_v50  ;;  %v7433_v50 = vld [vmem:[#allocation3 + $0x5e] sm:$0xff]  ;;  %v7435_v19 = vld [vmem:[#allocation3 + $0x6e] sm:$0xff] }
 0x3e6   : > { %v14872_v4 = vpop.f32.mrf.mxu0  ;;  %v10707_v40 = vpop.f32.mrf.mxu1  ;;  %10958 = vmatmul.mubr.msk.bf16.vlgmr.msra.gmra.mxu1 %vm17005_vm0, %v7463_v61 }
 0x3e7   : > { %v5634_v24 = vadd.f32 %v10707_v40, %v14727_v8  ;;  %10961 = vmatprep.mubr.msk.bf16.mxu1 %vm17097_vm5, %v7464_v57  ;;  %v7465_v8 = vpack.c.bf16 %v7433_v50, %v7432_v33  ;;  %v7434_v40 = vld [vmem:[#allocation3 + $0x66] sm:$0xff]  ;;  %v7436_v50 = vld [vmem:[#allocation3 + $0x76] sm:$0xff]  ;;  %vm17104_vm5 = vmmov %vm17005_vm0 }
 0x3e8   : > { %v10751_v37 = vpop.f32.mrf.mxu0  ;;  %v5525_v21 = vpop.f32.mrf.mxu1 }
 0x3e9   : > { %v14884_v9 = vadd.f32 %v10751_v37, %v5634_v24  ;;  %v14887_v48 = vadd.f32 %v5525_v21, %v14735_v10  ;;  %v7466_v37 = vpack.c.bf16 %v7435_v19, %v7434_v40  ;;  %v7438_v40 = vld [vmem:[#allocation3 + $0x86] sm:$0xff] }
 0x3ea   : > { %v14882_v63 = vpop.f32.mrf.mxu0  ;;  %v10708_v26 = vpop.f32.mrf.mxu1 }
 0x3eb   : > { %v5635_v12 = vadd.f32 %v10708_v26, %v14738_v42 }
 0x3ec   : > { %v10752_v34 = vpop.f32.mrf.mxu0  ;;  %v5528_v61 = vpop.f32.mrf.mxu1 }
 0x3ed   : > { %v14890_v57 = vadd.f32 %v10752_v34, %v5635_v12  ;;  %v5633_v23 = vadd.f32 %v5528_v61, %v14740_v59  ;;  %v7437_v34 = vld [vmem:[#allocation3 + $0x7e] sm:$0xff]  ;;  %v7439_v12 = vld [vmem:[#allocation3 + $0x8e] sm:$0xff] }
 0x3ee   : > { %v5882_v47 = vpop.f32.mrf.mxu0  ;;  %v10711_v24 = vpop.f32.mrf.mxu1  ;;  %10962 = vmatmul.mubr.msk.bf16.gmra.mxu1 %vm17098_vm15, %v7465_v8  ;;  %vm17105_vm15 = vmmov %vm17005_vm0 }
 0x3ef   : > { %v14894_v10 = vadd.f32 %v5882_v47, %v5633_v23  ;;  %v5638_v21 = vadd.f32 %v10711_v24, %v14745_v22  ;;  %10965 = vmatprep.mubr.msk.bf16.mxu1 %vm17099_vm1, %v7466_v37  ;;  %v7467_v22 = vpack.c.bf16 %v7437_v34, %v7436_v50  ;;  %v7468_v24 = vpack.c.bf16 %v7439_v12, %v7438_v40  ;;  %v7440_v34 = vld [vmem:[#allocation3 + $0x96] sm:$0xff]  ;;  %vm17106_vm1 = vmmov %vm17005_vm0 }
 0x3f0   : > { %v10755_v38 = vpop.f32.mrf.mxu0  ;;  %v5541_v42 = vpop.f32.mrf.mxu1 }
 0x3f1   : > { %v14898_v6 = vadd.f32 %v10755_v38, %v5638_v21  ;;  %v5636_v33 = vadd.f32 %v5541_v42, %v14750_v17 }
 0x3f2   : > { %v5895_v26 = vpop.f32.mrf.mxu0  ;;  %v10712_v59 = vpop.f32.mrf.mxu1 }
 0x3f3   : > { %v14901_v61 = vadd.f32 %v5895_v26, %v5636_v33  ;;  %v5639_v23 = vadd.f32 %v10712_v59, %v14752_v36 }
 0x3f4   : > { %v10756_v19 = vpop.f32.mrf.mxu0  ;;  %v5544_v47 = vpop.f32.mrf.mxu1 }
 0x3f5   : > { %v14904_v37 = vadd.f32 %v10756_v19, %v5639_v23  ;;  %v5637_v38 = vadd.f32 %v5544_v47, %v14754_v41  ;;  %v7441_v19 = vld [vmem:[#allocation3 + $0x9e] sm:$0xff]  ;;  %v7443_v23 = vld [vmem:[#allocation3 + $0xae] sm:$0xff] }
 0x3f6   : > { %v5898_v8 = vpop.f32.mrf.mxu0  ;;  %v10715_v21 = vpop.f32.mrf.mxu1  ;;  %10966 = vmatmul.mubr.msk.bf16.gmra.mxu1 %vm17100_vm2, %v7467_v22  ;;  %vm17107_vm2 = vmmov %vm17005_vm0 }
 0x3f7   : > { %v14908_v42 = vadd.f32 %v5898_v8, %v5637_v38  ;;  %v5642_v26 = vadd.f32 %v10715_v21, %v14759_v56  ;;  %10969 = vmatprep.mubr.msk.bf16.mxu1 %vm17101_vm10, %v7468_v24  ;;  %v7469_v56 = vpack.c.bf16 %v7441_v19, %v7440_v34  ;;  %v7442_v38 = vld [vmem:[#allocation3 + $0xa6] sm:$0xff]  ;;  %v7444_v19 = vld [vmem:[#allocation3 + $0xb6] sm:$0xff]  ;;  %vm17108_vm10 = vmmov %vm17005_vm0 }
 0x3f8   : > { %v10759_v17 = vpop.f32.mrf.mxu0  ;;  %v5557_v36 = vpop.f32.mrf.mxu1 }
 0x3f9   : > { %v14912_v59 = vadd.f32 %v10759_v17, %v5642_v26  ;;  %v5640_v50 = vadd.f32 %v5557_v36, %v14764_v16  ;;  %v7470_v17 = vpack.c.bf16 %v7443_v23, %v7442_v38 }
 0x3fa   : > { %v5911_v33 = vpop.f32.mrf.mxu0  ;;  %v10716_v41 = vpop.f32.mrf.mxu1 }
 0x3fb   : > { %v14915_v47 = vadd.f32 %v5911_v33, %v5640_v50  ;;  %v5643_v8 = vadd.f32 %v10716_v41, %v14766_v14 }
 0x3fc   : > { %v10760_v12 = vpop.f32.mrf.mxu0  ;;  %v5560_v22 = vpop.f32.mrf.mxu1 }
 0x3fd   : > { %v14918_v24 = vadd.f32 %v10760_v12, %v5643_v8  ;;  %v5641_v21 = vadd.f32 %v5560_v22, %v14768_v46  ;;  %v7445_v12 = vld [vmem:[#allocation3 + $0xbe] sm:$0xff]  ;;  %v7447_v8 = vld [vmem:[#allocation3 + $0xce] sm:$0xff] }
 0x3fe   : > { %v5914_v40 = vpop.f32.mrf.mxu0  ;;  %v10719_v26 = vpop.f32.mrf.mxu1  ;;  %10970 = vmatmul.mubr.msk.bf16.gmra.mxu1 %vm17102_vm13, %v7469_v56  ;;  %vm17109_vm13 = vmmov %vm17005_vm0 }
 0x3ff   : > { %v14922_v36 = vadd.f32 %v5914_v40, %v5641_v21  ;;  %v5646_v33 = vadd.f32 %v10719_v26, %v14773_v53  ;;  %10973 = vmatprep.mubr.msk.bf16.mxu1 %vm17103_vm14, %v7470_v17  ;;  %v7471_v53 = vpack.c.bf16 %v7445_v12, %v7444_v19  ;;  %v7446_v21 = vld [vmem:[#allocation3 + $0xc6] sm:$0xff]  ;;  %v7448_v12 = vld [vmem:[#allocation3 + $0xd6] sm:$0xff]  ;;  %vm17110_vm14 = vmmov %vm17005_vm0 }
 0x400   : > { %v10763_v16 = vpop.f32.mrf.mxu0  ;;  %v5573_v14 = vpop.f32.mrf.mxu1 }
 0x401   : > { %v14926_v41 = vadd.f32 %v10763_v16, %v5646_v33  ;;  %v5644_v34 = vadd.f32 %v5573_v14, %v14778_v5  ;;  %v7472_v16 = vpack.c.bf16 %v7447_v8, %v7446_v21 }
 0x402   : > { %v5927_v50 = vpop.f32.mrf.mxu0  ;;  %v10720_v46 = vpop.f32.mrf.mxu1 }
 0x403   : > { %v14929_v22 = vadd.f32 %v5927_v50, %v5644_v34  ;;  %v5647_v40 = vadd.f32 %v10720_v46, %v14780_v20 }
 0x404   : > { %v10764_v23 = vpop.f32.mrf.mxu0  ;;  %v5576_v56 = vpop.f32.mrf.mxu1 }
 0x405   : > { %v14932_v17 = vadd.f32 %v10764_v23, %v5647_v40  ;;  %v5645_v26 = vadd.f32 %v5576_v56, %v14782_v2  ;;  %v7449_v23 = vld [vmem:[#allocation3 + $0xde] sm:$0xff]  ;;  %v7451_v40 = vld [vmem:[#allocation3 + $0xee] sm:$0xff] }
 0x406   : > { %v5930_v38 = vpop.f32.mrf.mxu0  ;;  %v10723_v33 = vpop.f32.mrf.mxu1  ;;  %10974 = vmatmul.mubr.msk.bf16.gmra.mxu1 %vm17005_vm0, %v7471_v53 }
 0x407   : > { %v14936_v14 = vadd.f32 %v5930_v38, %v5645_v26  ;;  %v5650_v50 = vadd.f32 %v10723_v33, %v14787_v3  ;;  %10977 = vmatprep.mubr.msk.bf16.mxu1 %vm17104_vm5, %v7472_v16  ;;  %v7473_v3 = vpack.c.bf16 %v7449_v23, %v7448_v12  ;;  %v7450_v26 = vld [vmem:[#allocation3 + $0xe6] sm:$0xff] }
 0x408   : > { %v10767_v5 = vpop.f32.mrf.mxu0  ;;  %v5589_v20 = vpop.f32.mrf.mxu1 }
 0x409   : > { %v14940_v46 = vadd.f32 %v10767_v5, %v5650_v50  ;;  %v5648_v19 = vadd.f32 %v5589_v20, %v14792_v62  ;;  %v7474_v5 = vpack.c.bf16 %v7451_v40, %v7450_v26  ;;  %v5288_v20 = vadd.f32 %v14808_v52, %v14806_v39 }
 0x40a   : > { %v5943_v34 = vpop.f32.mrf.mxu0  ;;  %v10724_v2 = vpop.f32.mrf.mxu1 }
 0x40b   : > { %v14943_v56 = vadd.f32 %v5943_v34, %v5648_v19  ;;  %v5651_v38 = vadd.f32 %v10724_v2, %v14794_v18 }
 0x40c   : > { %v10768_v8 = vpop.f32.mrf.mxu0  ;;  %v5592_v53 = vpop.f32.mrf.mxu1 }
 0x40d   : > { %v14946_v16 = vadd.f32 %v10768_v8, %v5651_v38  ;;  %v5649_v33 = vadd.f32 %v5592_v53, %v14796_v55  ;;  %v7452_v55 = vld [vmem:[#allocation3 + $0xf6] sm:$0xff]  ;;  %v7453_v8 = vld [vmem:[#allocation3 + $0xfe] sm:$0xff]  ;;  %v7455_v53 = vld [vmem:[#allocation3 + $0x10e] sm:$0xff] }
 0x40e   : > { %v5946_v21 = vpop.f32.mrf.mxu0  ;;  %v10727_v50 = vpop.f32.mrf.mxu1  ;;  %10978 = vmatmul.mubr.msk.bf16.gmra.mxu1 %vm17105_vm15, %v7473_v3  ;;  %v5291_v3 = vadd.f32 %v14814_v54, %v14812_v44  ;;  %v7475_v26 = vpack.c.bf16 %v7453_v8, %v7452_v55  ;;  %v7456_v8 = vld [vmem:[#allocation3 + $0x116] sm:$0xff] }
 0x40f   : > { %v14952_v34 = vadd.f32 %v5946_v21, %v5649_v33  ;;  %v5654_v18 = vadd.f32 %v10727_v50, %v14801_v7  ;;  %10981 = vmatprep.mubr.msk.bf16.mxu1 %vm17106_vm1, %v7474_v5  ;;  %v7454_v33 = vld [vmem:[#allocation3 + $0x106] sm:$0xff] }
 0x410   : > { %v10771_v62 = vpop.f32.mrf.mxu0  ;;  %v5605_v19 = vpop.f32.mrf.mxu1 }
 0x411   : > { %v14956_v23 = vadd.f32 %v10771_v62, %v5654_v18  ;;  %v5652_v2 = vadd.f32 %v5605_v19, %v5288_v20  ;;  %v7476_v62 = vpack.c.bf16 %v7455_v53, %v7454_v33  ;;  %v5974_v19 = vadd.f32 %v14823_v0, %v14828_v11 }
 0x412   : > { %v5959_v12 = vpop.f32.mrf.mxu0  ;;  %v10728_v40 = vpop.f32.mrf.mxu1  ;;  %v5975_v0 = vadd.f32 %v14831_v58, %v14836_v29  ;;  %v7461_v29 = vld [vmem:[#allocation3 + $0x13e] sm:$0xff] }
 0x413   : > { %v14960_v39 = vadd.f32 %v5959_v12, %v5652_v2  ;;  %v5655_v52 = vadd.f32 %v10728_v40, %v14810_v35  ;;  %v7457_v40 = vld [vmem:[#allocation3 + $0x11e] sm:$0xff] }
 0x414   : > { %v10772_v38 = vpop.f32.mrf.mxu0  ;;  %v5608_v7 = vpop.f32.mrf.mxu1 }
 0x415   : > { %v14963_v5 = vadd.f32 %v10772_v38, %v5655_v52  ;;  %v5653_v50 = vadd.f32 %v5608_v7, %v5291_v3  ;;  %v7458_v3 = vld [vmem:[#allocation3 + $0x126] sm:$0xff]  ;;  %v7459_v52 = vld [vmem:[#allocation3 + $0x12e] sm:$0xff] }
 0x416   : > { %v5962_v21 = vpop.f32.mrf.mxu0  ;;  %v10783_v20 = vpop.f32.mrf.mxu1  ;;  %10982 = vmatmul.mubr.msk.bf16.gmra.mxu1 %vm17107_vm2, %v7475_v26  ;;  %v7477_v26 = vpack.c.bf16 %v7457_v40, %v7456_v8  ;;  %vm17121_vm2 = vmmov %vm17005_vm0 }
 0x417   : > { %v14968_v44 = vadd.f32 %v5962_v21, %v5653_v50  ;;  %v6330_v54 = vadd.f32 %v10783_v20, %v14825_v31  ;;  %10985 = vmatprep.mubr.msk.bf16.mxu1 %vm17108_vm10, %v7476_v62  ;;  %v7478_v62 = vpack.c.bf16 %v7459_v52, %v7458_v3  ;;  %v5979_v3 = vadd.f32 %v14853_v15, %v14858_v27  ;;  %vm17122_vm10 = vmmov %vm17005_vm0 }
 0x418   : > { %v10827_v18 = vpop.f32.mrf.mxu0  ;;  %v6185_v35 = vpop.f32.mrf.mxu1 }
 0x419   : > { %v14972_v2 = vadd.f32 %v10827_v18, %v6330_v54  ;;  %v6328_v55 = vadd.f32 %v6185_v35, %v5974_v19  ;;  %v5978_v19 = vadd.f32 %v14845_v25, %v14850_v32 }
 0x41a   : > { %v6539_v12 = vpop.f32.mrf.mxu0  ;;  %v10784_v38 = vpop.f32.mrf.mxu1 }
 0x41b   : > { %v14976_v11 = vadd.f32 %v6539_v12, %v6328_v55  ;;  %v6331_v31 = vadd.f32 %v10784_v38, %v14833_v28  ;;  %v7460_v28 = vld [vmem:[#allocation3 + $0x136] sm:$0xff] }
 0x41c   : > { %v10828_v53 = vpop.f32.mrf.mxu0  ;;  %v6188_v7 = vpop.f32.mrf.mxu1 }
 0x41d   : > { %v14979_v33 = vadd.f32 %v10828_v53, %v6331_v31  ;;  %v6329_v50 = vadd.f32 %v6188_v7, %v5975_v0  ;;  %v7479_v53 = vpack.c.bf16 %v7461_v29, %v7460_v28 }
 0x41e   : > { %v6542_v21 = vpop.f32.mrf.mxu0  ;;  %v10787_v20 = vpop.f32.mrf.mxu1  ;;  %10986 = vmatmul.mubr.msk.bf16.gmra.mxu1 %vm17109_vm13, %v7477_v26  ;;  %v5982_v26 = vadd.f32 %v14864_v43, %v14869_v49 }
 0x41f   : > { %v14984_v54 = vadd.f32 %v6542_v21, %v6329_v50  ;;  %v6334_v58 = vadd.f32 %v10787_v20, %v14847_v60  ;;  %10989 = vmatprep.mubr.msk.bf16.mxu1 %vm17110_vm14, %v7478_v62  ;;  %vm17125_vm14 = vmmov %vm17005_vm0 }
 0x420   : > { %v10831_v18 = vpop.f32.mrf.mxu0  ;;  %v6201_v35 = vpop.f32.mrf.mxu1 }
 0x421   : > { %v14988_v55 = vadd.f32 %v10831_v18, %v6334_v58  ;;  %v6332_v8 = vadd.f32 %v6201_v35, %v5978_v19  ;;  %v5983_v58 = vadd.f32 %v14872_v4, %v14877_v30 }
 0x422   : > { %v6555_v12 = vpop.f32.mrf.mxu0  ;;  %v10788_v40 = vpop.f32.mrf.mxu1 }
 0x423   : > { %v14992_v25 = vadd.f32 %v6555_v12, %v6332_v8  ;;  %v6335_v32 = vadd.f32 %v10788_v40, %v14855_v13  ;;  %v5986_v40 = vadd.f32 %v14882_v63, %v14887_v48 }
 0x424   : > { %v10832_v38 = vpop.f32.mrf.mxu0  ;;  %v6204_v60 = vpop.f32.mrf.mxu1 }
 0x425   : > { %v14995_v0 = vadd.f32 %v10832_v38, %v6335_v32  ;;  %v6333_v31 = vadd.f32 %v6204_v60, %v5979_v3 }
 0x426   : > { %v6558_v52 = vpop.f32.mrf.mxu0  ;;  %v10791_v7 = vpop.f32.mrf.mxu1  ;;  %10990 = vmatmul.mubr.msk.bf16.gmra.mxu1 %vm17005_vm0, %v7479_v53 }
 0x427   : > { %v15000_v50 = vadd.f32 %v6558_v52, %v6333_v31  ;;  %v6338_v27 = vadd.f32 %v10791_v7, %v14866_v51 }
 0x428   : > { %v10835_v21 = vpop.f32.mrf.mxu0  ;;  %v6217_v15 = vpop.f32.mrf.mxu1 }
 0x429   : > { %v15003_v20 = vadd.f32 %v10835_v21, %v6338_v27  ;;  %v6336_v13 = vadd.f32 %v6217_v15, %v5982_v26 }
 0x42a   : > { %v6571_v62 = vpop.f32.mrf.mxu0  ;;  %v10792_v18 = vpop.f32.mrf.mxu1 }
 0x42b   : > { %v15007_v28 = vadd.f32 %v6571_v62, %v6336_v13  ;;  %v6339_v29 = vadd.f32 %v10792_v18, %v14874_v45 }
 0x42c   : > { %v10836_v19 = vpop.f32.mrf.mxu0  ;;  %v6220_v35 = vpop.f32.mrf.mxu1 }
 0x42d   : > { %v15010_v49 = vadd.f32 %v10836_v19, %v6339_v29  ;;  %v6337_v12 = vadd.f32 %v6220_v35, %v5983_v58 }
 0x42e   : > { %v6574_v43 = vpop.f32.mrf.mxu0  ;;  %v10795_v51 = vpop.f32.mrf.mxu1 }
 0x42f   : > { %v15014_v38 = vadd.f32 %v6574_v43, %v6337_v12  ;;  %v6342_v53 = vadd.f32 %v10795_v51, %v14884_v9 }
 0x430   : > { %v10839_v8 = vpop.f32.mrf.mxu0  ;;  %v6233_v3 = vpop.f32.mrf.mxu1 }
 0x431   : > { %v15017_v30 = vadd.f32 %v10839_v8, %v6342_v53  ;;  %v6340_v32 = vadd.f32 %v6233_v3, %v5986_v40 }
 0x432   : > { %v6587_v4 = vpop.f32.mrf.mxu0  ;;  %v10796_v45 = vpop.f32.mrf.mxu1 }
 0x433   : > { %v15019_v52 = vadd.f32 %v6587_v4, %v6340_v32  ;;  %v6343_v31 = vadd.f32 %v10796_v45, %v14890_v57 }
 0x434   : > { %v10840_v60 = vpop.f32.mrf.mxu0  ;;  %v6236_v7 = vpop.f32.mrf.mxu1 }
 0x435   : > { %v15022_v26 = vadd.f32 %v10840_v60, %v6343_v31  ;;  %v6341_v63 = vadd.f32 %v6236_v7, %v14894_v10 }
 0x436   : > { %v6590_v21 = vpop.f32.mrf.mxu0  ;;  %v10799_v48 = vpop.f32.mrf.mxu1 }
 0x437   : > { %v15025_v9 = vadd.f32 %v6590_v21, %v6341_v63  ;;  %v6346_v15 = vadd.f32 %v10799_v48, %v14898_v6 }
 0x438   : > { %v10843_v27 = vpop.f32.mrf.mxu0  ;;  %v6249_v62 = vpop.f32.mrf.mxu1 }
 0x439   : > { %v15028_v18 = vadd.f32 %v10843_v27, %v6346_v15  ;;  %v6344_v19 = vadd.f32 %v6249_v62, %v14901_v61 }
 0x43a   : > { %v6603_v13 = vpop.f32.mrf.mxu0  ;;  %v10800_v58 = vpop.f32.mrf.mxu1 }
 0x43b   : > { %v15031_v29 = vadd.f32 %v6603_v13, %v6344_v19  ;;  %v6347_v35 = vadd.f32 %v10800_v58, %v14904_v37 }
 0x43c   : > { %v10844_v57 = vpop.f32.mrf.mxu0  ;;  %v6252_v43 = vpop.f32.mrf.mxu1 }
 0x43d   : > { %v15034_v12 = vadd.f32 %v10844_v57, %v6347_v35  ;;  %v6345_v51 = vadd.f32 %v6252_v43, %v14908_v42 }
 0x43e   : > { %v6606_v10 = vpop.f32.mrf.mxu0  ;;  %v10803_v8 = vpop.f32.mrf.mxu1 }
 0x43f   : > { %v15037_v40 = vadd.f32 %v6606_v10, %v6345_v51  ;;  %v6350_v53 = vadd.f32 %v10803_v8, %v14912_v59 }
 0x440   : > { %v10847_v6 = vpop.f32.mrf.mxu0  ;;  %v6265_v3 = vpop.f32.mrf.mxu1 }
 0x441   : > { %v15040_v4 = vadd.f32 %v10847_v6, %v6350_v53  ;;  %v6348_v32 = vadd.f32 %v6265_v3, %v14915_v47 }
 0x442   : > { %v6619_v61 = vpop.f32.mrf.mxu0  ;;  %v10804_v45 = vpop.f32.mrf.mxu1 }
 0x443   : > { %v15043_v60 = vadd.f32 %v6619_v61, %v6348_v32  ;;  %v6351_v31 = vadd.f32 %v10804_v45, %v14918_v24 }
 0x444   : > { %v10848_v37 = vpop.f32.mrf.mxu0  ;;  %v6268_v7 = vpop.f32.mrf.mxu1 }
 0x445   : > { %v15046_v21 = vadd.f32 %v10848_v37, %v6351_v31  ;;  %v6349_v63 = vadd.f32 %v6268_v7, %v14922_v36 }
 0x446   : > { %v6622_v42 = vpop.f32.mrf.mxu0  ;;  %v10807_v48 = vpop.f32.mrf.mxu1 }
 0x447   : > { %v15049_v27 = vadd.f32 %v6622_v42, %v6349_v63  ;;  %v6354_v15 = vadd.f32 %v10807_v48, %v14926_v41 }
 0x448   : > { %v10851_v59 = vpop.f32.mrf.mxu0  ;;  %v6281_v62 = vpop.f32.mrf.mxu1 }
 0x449   : > { %v15052_v13 = vadd.f32 %v10851_v59, %v6354_v15  ;;  %v6352_v19 = vadd.f32 %v6281_v62, %v14929_v22 }
 0x44a   : > { %v6635_v47 = vpop.f32.mrf.mxu0  ;;  %v10808_v58 = vpop.f32.mrf.mxu1 }
 0x44b   : > { %v15055_v57 = vadd.f32 %v6635_v47, %v6352_v19  ;;  %v6355_v35 = vadd.f32 %v10808_v58, %v14932_v17 }
 0x44c   : > { %v10852_v24 = vpop.f32.mrf.mxu0  ;;  %v6284_v43 = vpop.f32.mrf.mxu1 }
 0x44d   : > { %v15058_v10 = vadd.f32 %v10852_v24, %v6355_v35  ;;  %v6353_v51 = vadd.f32 %v6284_v43, %v14936_v14 }
 0x44e   : > { %v6638_v36 = vpop.f32.mrf.mxu0  ;;  %v10811_v8 = vpop.f32.mrf.mxu1 }
 0x44f   : > { %v15061_v6 = vadd.f32 %v6638_v36, %v6353_v51  ;;  %v6358_v53 = vadd.f32 %v10811_v8, %v14940_v46 }
 0x450   : > { %v10855_v41 = vpop.f32.mrf.mxu0  ;;  %v6297_v3 = vpop.f32.mrf.mxu1 }
 0x451   : > { %v15064_v61 = vadd.f32 %v10855_v41, %v6358_v53  ;;  %v6356_v32 = vadd.f32 %v6297_v3, %v14943_v56 }
 0x452   : > { %v6651_v22 = vpop.f32.mrf.mxu0  ;;  %v10812_v45 = vpop.f32.mrf.mxu1 }
 0x453   : > { %v15067_v37 = vadd.f32 %v6651_v22, %v6356_v32  ;;  %v6359_v31 = vadd.f32 %v10812_v45, %v14946_v16 }
 0x454   : > { %v10856_v17 = vpop.f32.mrf.mxu0  ;;  %v6300_v7 = vpop.f32.mrf.mxu1 }
 0x455   : > { %v15070_v42 = vadd.f32 %v10856_v17, %v6359_v31  ;;  %v6357_v63 = vadd.f32 %v6300_v7, %v14952_v34 }
 0x456   : > { %v6654_v14 = vpop.f32.mrf.mxu0  ;;  %v10815_v48 = vpop.f32.mrf.mxu1 }
 0x457   : > { %v15073_v59 = vadd.f32 %v6654_v14, %v6357_v63  ;;  %v6362_v15 = vadd.f32 %v10815_v48, %v14956_v23 }
 0x458   : > { %v10859_v46 = vpop.f32.mrf.mxu0  ;;  %v6313_v62 = vpop.f32.mrf.mxu1 }
 0x459   : > { %v15076_v47 = vadd.f32 %v10859_v46, %v6362_v15  ;;  %v6360_v19 = vadd.f32 %v6313_v62, %v14960_v39 }
 0x45a   : > { %v6667_v56 = vpop.f32.mrf.mxu0  ;;  %v10816_v58 = vpop.f32.mrf.mxu1 }
 0x45b   : > { %v15079_v24 = vadd.f32 %v6667_v56, %v6360_v19  ;;  %v6363_v35 = vadd.f32 %v10816_v58, %v14963_v5 }
 0x45c   : > { %v10860_v16 = vpop.f32.mrf.mxu0  ;;  %v6316_v43 = vpop.f32.mrf.mxu1 }
 0x45d   : > { %v15082_v36 = vadd.f32 %v10860_v16, %v6363_v35  ;;  %v6361_v51 = vadd.f32 %v6316_v43, %v14968_v44 }
 0x45e   : > { %v6670_v34 = vpop.f32.mrf.mxu0  ;;  %v10871_v8 = vpop.f32.mrf.mxu1 }
 0x45f   : > { %v15087_v41 = vadd.f32 %v6670_v34, %v6361_v51  ;;  %v15090_v53 = vadd.f32 %v10871_v8, %v14972_v2 }
 0x460   : > { %v15085_v23 = vpop.f32.mrf.mxu0  ;;  %v6893_v39 = vpop.f32.mrf.mxu1 }
 0x461   : > { %v15093_v3 = vadd.f32 %v6893_v39, %v14976_v11 }
 0x462   : > { %v15095_v22 = vpop.f32.mrf.mxu0  ;;  %v10872_v5 = vpop.f32.mrf.mxu1 }
 0x463   : > { %v15098_v32 = vadd.f32 %v10872_v5, %v14979_v33 }
 0x464   : > { %v6896_v45 = vpop.f32.mrf.mxu1  ;;  %v15100_v44 = vpop.f32.mrf.mxu0 }
 0x465   : > { %v15103_v17 = vadd.f32 %v6896_v45, %v14984_v54 }
 0x466   : > { %v10875_v31 = vpop.f32.mrf.mxu1  ;;  %v15108_v14 = vpop.f32.mrf.mxu0 }
 0x467   : > { %v15106_v2 = vadd.f32 %v10875_v31, %v14988_v55 }
 0x468   : > { %v6909_v7 = vpop.f32.mrf.mxu1  ;;  %v15116_v46 = vpop.f32.mrf.mxu0 }
 0x469   : > { %v15111_v11 = vadd.f32 %v6909_v7, %v14992_v25 }
 0x46a   : > { %v10876_v63 = vpop.f32.mrf.mxu1  ;;  %v15124_v56 = vpop.f32.mrf.mxu0 }
 0x46b   : > { %v15114_v33 = vadd.f32 %v10876_v63, %v14995_v0 }
 0x46c   : > { %v6912_v48 = vpop.f32.mrf.mxu1  ;;  %v15132_v16 = vpop.f32.mrf.mxu0 }
 0x46d   : > { %v15119_v54 = vadd.f32 %v6912_v48, %v15000_v50 }
 0x46e   : > { %v10879_v15 = vpop.f32.mrf.mxu1  ;;  %v15140_v34 = vpop.f32.mrf.mxu0 }
 0x46f   : > { %v15122_v55 = vadd.f32 %v10879_v15, %v15003_v20 }
 0x470   : > { %v6925_v62 = vpop.f32.mrf.mxu1  ;;  %v15148_v39 = vpop.f32.mrf.mxu0 }
 0x471   : > { %v15127_v25 = vadd.f32 %v6925_v62, %v15007_v28 }
 0x472   : > { %v10880_v19 = vpop.f32.mrf.mxu1  ;;  %v15156_v31 = vpop.f32.mrf.mxu0 }
 0x473   : > { %v15130_v0 = vadd.f32 %v10880_v19, %v15010_v49 }
 0x474   : > { %v6928_v58 = vpop.f32.mrf.mxu1  ;;  %v15164_v48 = vpop.f32.mrf.mxu0 }
 0x475   : > { %v15135_v50 = vadd.f32 %v6928_v58, %v15014_v38 }
 0x476   : > { %v10883_v35 = vpop.f32.mrf.mxu1  ;;  %v15172_v19 = vpop.f32.mrf.mxu0 }
 0x477   : > { %v15138_v20 = vadd.f32 %v10883_v35, %v15017_v30 }
 0x478   : > { %v6941_v43 = vpop.f32.mrf.mxu1 }
 0x479   : > { %v15143_v28 = vadd.f32 %v6941_v43, %v15019_v52  ;;  %v15180_v43 = vpop.f32.mrf.mxu0 }
 0x47a   : > { %v10884_v51 = vpop.f32.mrf.mxu1 }
 0x47b   : > { %v15146_v49 = vadd.f32 %v10884_v51, %v15022_v26 }
 0x47c   : > { %v6944_v8 = vpop.f32.mrf.mxu1 }
 0x47d   : > { %v15151_v38 = vadd.f32 %v6944_v8, %v15025_v9 }
 0x47e   : > { %v10887_v5 = vpop.f32.mrf.mxu1 }
 0x47f   : > { %v15154_v30 = vadd.f32 %v10887_v5, %v15028_v18  ;;  %v15188_v5 = vpop.f32.mrf.mxu0 }
 0x480   : > { %v6957_v45 = vpop.f32.mrf.mxu1 }
 0x481   : > { %v15159_v52 = vadd.f32 %v6957_v45, %v15031_v29 }
 0x482   : > { %v10888_v7 = vpop.f32.mrf.mxu1 }
 0x483   : > { %v15162_v26 = vadd.f32 %v10888_v7, %v15034_v12 }
 0x484   : > { %v6960_v63 = vpop.f32.mrf.mxu1 }
 0x485   : > { %v15167_v9 = vadd.f32 %v6960_v63, %v15037_v40  ;;  %v15196_v63 = vpop.f32.mrf.mxu0 }
 0x486   : > { %v10891_v15 = vpop.f32.mrf.mxu1 }
 0x487   : > { %v15170_v18 = vadd.f32 %v10891_v15, %v15040_v4 }
 0x488   : > { %v6973_v62 = vpop.f32.mrf.mxu1 }
 0x489   : > { %v15175_v29 = vadd.f32 %v6973_v62, %v15043_v60 }
 0x48a   : > { %v10892_v58 = vpop.f32.mrf.mxu1 }
 0x48b   : > { %v15178_v12 = vadd.f32 %v10892_v58, %v15046_v21  ;;  %v15204_v58 = vpop.f32.mrf.mxu0 }
 0x48c   : > { %v6976_v35 = vpop.f32.mrf.mxu1 }
 0x48d   : > { %v15183_v40 = vadd.f32 %v6976_v35, %v15049_v27 }
 0x48e   : > { %v10895_v51 = vpop.f32.mrf.mxu1 }
 0x48f   : > { %v15186_v4 = vadd.f32 %v10895_v51, %v15052_v13 }
 0x490   : > { %v6989_v8 = vpop.f32.mrf.mxu1 }
 0x491   : > { %v15191_v60 = vadd.f32 %v6989_v8, %v15055_v57  ;;  %v15212_v8 = vpop.f32.mrf.mxu0 }
 0x492   : > { %v10896_v45 = vpop.f32.mrf.mxu1 }
 0x493   : > { %v15194_v21 = vadd.f32 %v10896_v45, %v15058_v10 }
 0x494   : > { %v6992_v7 = vpop.f32.mrf.mxu1 }
 0x495   : > { %v15199_v27 = vadd.f32 %v6992_v7, %v15061_v6 }
 0x496   : > { %v10899_v15 = vpop.f32.mrf.mxu1 }
 0x497   : > { %v15202_v13 = vadd.f32 %v10899_v15, %v15064_v61  ;;  %v15220_v15 = vpop.f32.mrf.mxu0 }
 0x498   : > { %v7005_v62 = vpop.f32.mrf.mxu1 }
 0x499   : > { %v15207_v57 = vadd.f32 %v7005_v62, %v15067_v37 }
 0x49a   : > { %v10900_v35 = vpop.f32.mrf.mxu1 }
 0x49b   : > { %v15210_v10 = vadd.f32 %v10900_v35, %v15070_v42 }
 0x49c   : > { %v7008_v51 = vpop.f32.mrf.mxu1 }
 0x49d   : > { %17111 = vst [vmem:[#allocation70_spill] sm:$0xff] %v15210_v10  ;;  %v15215_v6 = vadd.f32 %v7008_v51, %v15073_v59  ;;  %v15228_v10 = vpop.f32.mrf.mxu0 }
 0x49e   : > { %v10903_v45 = vpop.f32.mrf.mxu1 }
 0x49f   : > { %v15218_v61 = vadd.f32 %v10903_v45, %v15076_v47  ;;  %v7392_v47 = vadd.f32 %v15085_v23, %v15090_v53  ;;  %v7390_v45 = vadd.f32 %v15095_v22, %v15093_v3  ;;  %v7391_v23 = vadd.f32 %v15108_v14, %v15103_v17  ;;  %v17115_v17 = vld [vmem:[#allocation40_spill] sm:$0xff] }
 0x4a0   : > { %v7021_v7 = vpop.f32.mrf.mxu1  ;;  %vm17116_vm5 = vnez %v17115_v17 }
 0x4a1   : > { %17112 = vst [vmem:[#allocation37_spill] sm:$0xff] %v15218_v61  ;;  %v15223_v37 = vadd.f32 %v7021_v7, %v15079_v24  ;;  %v7393_v24 = vadd.f32 %v15100_v44, %v15098_v32  ;;  %v15239_v7 = vpop.f32.mrf.mxu0 }
 0x4a2   : > { %v10904_v62 = vpop.f32.mrf.mxu1 }
 0x4a3   : > { %v15226_v42 = vadd.f32 %v10904_v62, %v15082_v36 }
 0x4a4   : > { %v7024_v35 = vpop.f32.mrf.mxu1 }
 0x4a5   : > { %v15231_v59 = vadd.f32 %v7024_v35, %v15087_v41  ;;  %v15244_v41 = vld [vmem:[%s16203_s4] ss:$0 sm:$0xff] }
 0x4a6   : > { %v10959_v51 = vpop.f32.mrf.mxu1 }
 0x4a7   : > { %17113 = vst [vmem:[#allocation81_spill] sm:$0xff] %v15231_v59  ;;  %v7746_v36 = vadd.f32 %v10959_v51, %v7392_v47  ;;  %v15251_v59 = vpop.f32.mrf.mxu0  ;;  %v7394_v47 = vadd.f32 %v15124_v56, %v15111_v11  ;;  %v17119_v56 = vld [vmem:[#allocation33_spill] sm:$0xff] }
 0x4a8   : > { %v7601_v61 = vpop.f32.mrf.mxu1  ;;  %vm17120_vm1 = vnez %v17119_v56 }
 0x4a9   : > { %v7744_v62 = vadd.f32 %v7601_v61, %v7390_v45  ;;  %v15254_v32 = vadd.f32 %v15244_v41, %v7746_v36  ;;  %v7396_v61 = vadd.f32 %v15116_v46, %v15106_v2  ;;  %v15271_v2 = vpop.f32.mrf.mxu0  ;;  %v17117_v46 = vld [vmem:[#allocation48_spill] sm:$0xff] }
 0x4aa   : > { %v10960_v35 = vpop.f32.mrf.mxu1  ;;  %vm17118_vm15 = vnez %v17117_v46 }
 0x4ab   : > { %v15249_v53 = vadd.f32 %v15244_v41, %v7744_v62  ;;  %v7747_v3 = vadd.f32 %v10960_v35, %v7393_v24  ;;  %17114 = vst [vmem:[#allocation28_spill] sm:$0xff] %v15254_v32  ;;  %v7397_v35 = vadd.f32 %v15132_v16, %v15114_v33  ;;  %v7825_v11 = vsel %vm17118_vm15, %v15254_v32, 0.0  ;;  %v17123_v33 = vld [vmem:[#allocation41_spill] sm:$0xff] }
 0x4ac   : > { %v7604_v22 = vpop.f32.mrf.mxu1  ;;  %vm17124_vm13 = vnez %v17123_v33  ;;  %v7862_v56 = vsel %vm17125_vm14, %v7825_v11, 0.0  ;;  %v7398_v11 = vadd.f32 %v15156_v31, %v15127_v25  ;;  %v17132_v31 = vld [vmem:[#allocation94_spill] sm:$0xff] }
 0x4ad   : > { %v7745_v44 = vadd.f32 %v7604_v22, %v7391_v23  ;;  %v7823_v14 = vsel %vm17116_vm5, %v15249_v53, 0.0  ;;  %v15264_v45 = vadd.f32 %v15244_v41, %v7747_v3  ;;  %v7395_v22 = vadd.f32 %v15140_v34, %v15119_v54  ;;  %v15293_v34 = vpop.f32.mrf.mxu0  ;;  %vm17128_vm5 = vmmov %vm17121_vm2 }
 0x4ae   : > { %v10963_v51 = vpop.f32.mrf.mxu1 }
 0x4af   : > { %v15267_v24 = vadd.f32 %v15244_v41, %v7745_v44  ;;  %v7750_v36 = vadd.f32 %v10963_v51, %v7396_v61  ;;  %v7859_v44 = vsel %vm17121_vm2, %v7823_v14, 0.0  ;;  %v7826_v16 = vsel %vm17124_vm13, %v15264_v45, 0.0 }
 0x4b0   : > { %v7617_v62 = vpop.f32.mrf.mxu1 }
 0x4b1   : > { %v7824_v23 = vsel %vm17120_vm1, %v15267_v24, 0.0  ;;  %v7748_v3 = vadd.f32 %v7617_v62, %v7394_v47  ;;  %v15291_v47 = vadd.f32 %v15244_v41, %v7750_v36  ;;  %v17126_v62 = vld [vmem:[#allocation19_spill] sm:$0xff]  ;;  %vm17131_vm1 = vmmov %vm17121_vm2  ;;  %vm17133_vm2 = vnez %v17132_v31 }
 0x4b2   : > { %v7860_v61 = vsel %vm17122_vm10, %v7824_v23, 0.0  ;;  %v10964_v51 = vpop.f32.mrf.mxu1  ;;  %vm17127_vm0 = vnez %v17126_v62  ;;  %v7399_v62 = vadd.f32 %v15172_v19, %v15135_v50  ;;  %vm17134_vm10 = vmmov %vm17131_vm1 }
 0x4b3   : > { %v7861_v17 = vadd.f32 %v7860_v61, %v7859_v44  ;;  %v15287_v46 = vadd.f32 %v15244_v41, %v7748_v3  ;;  %v7751_v32 = vadd.f32 %v10964_v51, %v7397_v35  ;;  %v7400_v44 = vadd.f32 %v15148_v39, %v15122_v55  ;;  %vm17137_vm14 = vmmov %vm17131_vm1 }
 0x4b4   : > { %v7620_v54 = vpop.f32.mrf.mxu1  ;;  %v7864_v3 = vsel %vm17128_vm5, %v7826_v16, 0.0 }
 0x4b5   : > { %v7863_v14 = vadd.f32 %v7862_v56, %v7861_v17  ;;  %v7827_v23 = vsel %vm17127_vm0, %v15287_v46, 0.0  ;;  %v7749_v33 = vadd.f32 %v7620_v54, %v7395_v22  ;;  %v15304_v61 = vadd.f32 %v15244_v41, %v7751_v32  ;;  %v17129_v22 = vld [vmem:[#allocation55_spill] sm:$0xff]  ;;  %v15315_v56 = vpop.f32.mrf.mxu0  ;;  %vm17139_vm0 = vmmov %vm17131_vm1 }
 0x4b6   : > { %v10967_v35 = vpop.f32.mrf.mxu1  ;;  %v7401_v17 = vadd.f32 %v15164_v48, %v15130_v0  ;;  %vm17130_vm15 = vnez %v17129_v22  ;;  %v7866_v39 = vsel %vm17131_vm1, %v7827_v23, 0.0  ;;  %vm17145_vm1 = vmmov %vm17139_vm0 }
 0x4b7   : > { %v7865_v36 = vadd.f32 %v7864_v3, %v7863_v14  ;;  %v15307_v51 = vadd.f32 %v15244_v41, %v7749_v33  ;;  %v7829_v55 = vsel %vm17130_vm15, %v15291_v47, 0.0  ;;  %v7754_v54 = vadd.f32 %v10967_v35, %v7400_v44  ;;  %v17135_v33 = vld [vmem:[#allocation93_spill] sm:$0xff]  ;;  %v15330_v44 = vpop.f32.mrf.mxu0 }
 0x4b8   : > { %v7633_v16 = vpop.f32.mrf.mxu1  ;;  %vm17136_vm13 = vnez %v17135_v33 }
 0x4b9   : > { %v7867_v25 = vadd.f32 %v7866_v39, %v7865_v36  ;;  %v7828_v32 = vsel %vm17133_vm2, %v15307_v51, 0.0  ;;  %v7752_v14 = vadd.f32 %v7633_v16, %v7398_v11  ;;  %v7830_v23 = vsel %vm17136_vm13, %v15304_v61, 0.0 }
 0x4ba   : > { %v7868_v0 = vsel %vm17134_vm10, %v7828_v32, 0.0  ;;  %v10968_v48 = vpop.f32.mrf.mxu1  ;;  %v7870_v39 = vsel %vm17137_vm14, %v7829_v55, 0.0  ;;  %v15333_v50 = vadd.f32 %v15244_v41, %v7754_v54  ;;  %v7872_v32 = vsel %vm17139_vm0, %v7830_v23, 0.0  ;;  %v17141_v23 = vld [vmem:[#allocation61_spill] sm:$0xff]  ;;  %vm17148_vm10 = vmmov %vm17139_vm0 }
 0x4bb   : > { %v7869_v3 = vadd.f32 %v7868_v0, %v7867_v25  ;;  %v15327_v22 = vadd.f32 %v15244_v41, %v7752_v14  ;;  %v7755_v36 = vadd.f32 %v10968_v48, %v7401_v17  ;;  %v7404_v25 = vadd.f32 %v15180_v43, %v15138_v20  ;;  %v15352_v43 = vpop.f32.mrf.mxu0  ;;  %vm17150_vm14 = vmmov %vm17139_vm0 }
 0x4bc   : > { %v7636_v31 = vpop.f32.mrf.mxu1  ;;  %v7402_v55 = vadd.f32 %v15188_v5, %v15143_v28  ;;  %v7405_v48 = vadd.f32 %v15196_v63, %v15146_v49  ;;  %vm17142_vm5 = vnez %v17141_v23  ;;  %vm17149_vm13 = vnez %v16785_v1 }
 0x4bd   : > { %v7871_v35 = vadd.f32 %v7870_v39, %v7869_v3  ;;  %v7831_v11 = vsel %vm13965_vm9, %v15327_v22, 0.0  ;;  %v7753_v16 = vadd.f32 %v7636_v31, %v7399_v62  ;;  %v15344_v0 = vadd.f32 %v15244_v41, %v7755_v36  ;;  %vm17140_vm9 = vmmov %vm17139_vm0  ;;  %v17143_v3 = vld [vmem:[#allocation95_spill] sm:$0xff] }
 0x4be   : > { %v10971_v17 = vpop.f32.mrf.mxu1  ;;  %v7874_v62 = vsel %vm17140_vm9, %v7831_v11, 0.0  ;;  %v7833_v28 = vsel %vm17142_vm5, %v15333_v50, 0.0  ;;  %vm17144_vm15 = vnez %v17143_v3  ;;  %v7403_v31 = vadd.f32 %v15204_v58, %v15151_v38  ;;  %vm17153_vm9 = vmmov %vm17145_vm1 }
 0x4bf   : > { %v7873_v14 = vadd.f32 %v7872_v32, %v7871_v35  ;;  %v15347_v54 = vadd.f32 %v15244_v41, %v7753_v16  ;;  %v7758_v33 = vadd.f32 %v10971_v17, %v7404_v25  ;;  %v17146_v35 = vld [vmem:[#allocation100_spill] sm:$0xff]  ;;  %v7878_v32 = vsel %vm17148_vm10, %v7833_v28, 0.0 }
 0x4c0   : > { %v7649_v20 = vpop.f32.mrf.mxu1  ;;  %vm17147_vm2 = vnez %v17146_v35  ;;  %v7406_v28 = vadd.f32 %v15220_v15, %v15159_v52  ;;  %v7409_v1 = vadd.f32 %v15228_v10, %v15162_v26  ;;  %v17154_v15 = vld [vmem:[#allocation98_spill] sm:$0xff] }
 0x4c1   : > { %v7875_v5 = vadd.f32 %v7874_v62, %v7873_v14  ;;  %v7832_v36 = vsel %vm17144_vm15, %v15347_v54, 0.0  ;;  %v7756_v39 = vadd.f32 %v7649_v20, %v7402_v55  ;;  %v7834_v19 = vsel %vm17147_vm2, %v15344_v0, 0.0  ;;  %v15373_v14 = vpop.f32.mrf.mxu0  ;;  %vm17156_vm15 = vmmov %vm17145_vm1 }
 0x4c2   : > { %v7876_v49 = vsel %vm17145_vm1, %v7832_v36, 0.0  ;;  %v10972_v63 = vpop.f32.mrf.mxu1  ;;  %v15371_v17 = vadd.f32 %v15244_v41, %v7758_v33  ;;  %v7408_v20 = vadd.f32 %v15212_v8, %v15154_v30  ;;  %v7880_v23 = vsel %vm17150_vm14, %v7834_v19, 0.0  ;;  %v17151_v36 = vld [vmem:[#allocation64_spill] sm:$0xff]  ;;  %vm17159_vm2 = vmmov %vm17153_vm9 }
 0x4c3   : > { %v7877_v11 = vadd.f32 %v7876_v49, %v7875_v5  ;;  %v15367_v16 = vadd.f32 %v15244_v41, %v7756_v39  ;;  %v7759_v25 = vadd.f32 %v10972_v63, %v7405_v48  ;;  %vm17152_vm0 = vnez %v17151_v36  ;;  %vm17163_vm14 = vmmov %vm17159_vm2 }
 0x4c4   : > { %v7652_v55 = vpop.f32.mrf.mxu1  ;;  %v7837_v30 = vsel %vm17152_vm0, %v15371_v17, 0.0  ;;  %vm17155_vm5 = vnez %v17154_v15  ;;  %v7407_v19 = vadd.f32 %v15239_v7, %v15167_v9  ;;  %v17160_v7 = vld [vmem:[#allocation25_spill] sm:$0xff]  ;;  %v7413_v15 = vadd.f32 %v15293_v34, %v15178_v12 }
 0x4c5   : > { %v7879_v38 = vadd.f32 %v7878_v32, %v7877_v11  ;;  %v7835_v58 = vsel %vm17149_vm13, %v15367_v16, 0.0  ;;  %v7757_v62 = vadd.f32 %v7652_v55, %v7403_v31  ;;  %v15384_v5 = vadd.f32 %v15244_v41, %v7759_v25  ;;  %v15395_v31 = vpop.f32.mrf.mxu0  ;;  %v17157_v11 = vld [vmem:[#allocation58_spill] sm:$0xff]  ;;  %vm17162_vm13 = vmmov %vm17159_vm2 }
 0x4c6   : > { %v10975_v48 = vpop.f32.mrf.mxu1  ;;  %v7882_v8 = vsel %vm17153_vm9, %v7835_v58, 0.0  ;;  %vm17158_vm1 = vnez %v17157_v11  ;;  %v7886_v58 = vsel %vm17159_vm2, %v7837_v30, 0.0  ;;  %vm17161_vm10 = vnez %v17160_v7  ;;  %vm17167_vm9 = vmmov %vm17159_vm2 }
 0x4c7   : > { %v7881_v33 = vadd.f32 %v7880_v23, %v7879_v38  ;;  %v15387_v3 = vadd.f32 %v15244_v41, %v7757_v62  ;;  %v7762_v63 = vadd.f32 %v10975_v48, %v7408_v20  ;;  %v7838_v25 = vsel %vm17158_vm1, %v15384_v5, 0.0  ;;  %v15410_v20 = vpop.f32.mrf.mxu0  ;;  %vm17173_vm1 = vmmov %vm17159_vm2 }
 0x4c8   : > { %v7665_v39 = vpop.f32.mrf.mxu1  ;;  %v7888_v36 = vsel %vm17162_vm13, %v7838_v25, 0.0  ;;  %v7410_v30 = vadd.f32 %v15271_v2, %v15175_v29  ;;  %v7411_v11 = vadd.f32 %v15315_v56, %v15183_v40  ;;  %v17168_v25 = vld [vmem:[#allocation67_spill] sm:$0xff]  ;;  %vm17178_vm13 = vmmov %vm17173_vm1 }
 0x4c9   : > { %v7883_v52 = vadd.f32 %v7882_v8, %v7881_v33  ;;  %v7836_v49 = vsel %vm17155_vm5, %v15387_v3, 0.0  ;;  %v7760_v35 = vadd.f32 %v7665_v39, %v7406_v28  ;;  %v15413_v9 = vadd.f32 %v15244_v41, %v7762_v63  ;;  %v17171_v56 = vld [vmem:[#allocation71_spill] sm:$0xff] }
 0x4ca   : > { %v7884_v26 = vsel %vm17156_vm15, %v7836_v49, 0.0  ;;  %v10976_v10 = vpop.f32.mrf.mxu1  ;;  %v7412_v33 = vadd.f32 %v15251_v59, %v15170_v18  ;;  %v7359_v59 = vpop.f32.mrf.mxu0  ;;  %vm17169_vm5 = vnez %v17168_v25  ;;  %vm17170_vm15 = vmmov %vm17159_vm2  ;;  %v17179_v25 = vld [vmem:[#allocation24_spill] sm:$0xff] }
 0x4cb   : > { %v7885_v32 = vadd.f32 %v7884_v26, %v7883_v52  ;;  %v15407_v55 = vadd.f32 %v15244_v41, %v7760_v35  ;;  %v7763_v38 = vadd.f32 %v10976_v10, %v7409_v1  ;;  %v17164_v35 = vld [vmem:[#allocation42_spill] sm:$0xff] }
 0x4cc   : > { %v7668_v62 = vpop.f32.mrf.mxu1  ;;  %vm17165_vm0 = vnez %v17164_v35  ;;  %v7417_v35 = vadd.f32 %v15373_v14, %v15194_v21 }
 0x4cd   : > { %v7887_v23 = vadd.f32 %v7886_v58, %v7885_v32  ;;  %v7839_v48 = vsel %vm17161_vm10, %v15407_v55, 0.0  ;;  %v7761_v28 = vadd.f32 %v7668_v62, %v7407_v19  ;;  %v15424_v39 = vadd.f32 %v15244_v41, %v7763_v38  ;;  %vm17176_vm10 = vmmov %vm17173_vm1 }
 0x4ce   : > { %v10979_v1 = vpop.f32.mrf.mxu1  ;;  %v7890_v49 = vsel %vm17163_vm14, %v7839_v48, 0.0  ;;  %v7841_v19 = vsel %vm17165_vm0, %v15413_v9, 0.0  ;;  %vm17180_vm14 = vnez %v17179_v25  ;;  %vm17181_vm0 = vmmov %vm17173_vm1  ;;  %v17191_v25 = vld [vmem:[#allocation106_spill] sm:$0xff] }
 0x4cf   : > { %v7889_v8 = vadd.f32 %v7888_v36, %v7887_v23  ;;  %v15427_v52 = vadd.f32 %v15244_v41, %v7761_v28  ;;  %v7766_v63 = vadd.f32 %v10979_v1, %v7412_v33  ;;  %v7842_v32 = vsel %vm17169_vm5, %v15424_v39, 0.0  ;;  %v10944_v28 = vpop.f32.mrf.mxu0  ;;  %vm17186_vm5 = vmmov %vm17181_vm0 }
 0x4d0   : > { %v7681_v18 = vpop.f32.mrf.mxu1  ;;  %v7894_v23 = vsel %vm17170_vm15, %v7841_v19, 0.0  ;;  %v7416_v1 = vadd.f32 %v15330_v44, %v15186_v4  ;;  %v17174_v19 = vld [vmem:[#allocation101_spill] sm:$0xff] }
 0x4d1   : > { %v7891_v29 = vadd.f32 %v7890_v49, %v7889_v8  ;;  %v7840_v26 = vsel %vm14187_vm3, %v15427_v52, 0.0  ;;  %v7764_v10 = vadd.f32 %v7681_v18, %v7410_v30  ;;  %v15449_v7 = vadd.f32 %v15244_v41, %v7766_v63  ;;  %v7362_v2 = vpop.f32.mrf.mxu0 }
 0x4d2   : > { %v7892_v12 = vsel %vm17167_vm9, %v7840_v26, 0.0  ;;  %v10980_v34 = vpop.f32.mrf.mxu1  ;;  %vm17172_vm3 = vnez %v17171_v56  ;;  %v7896_v30 = vsel %vm17173_vm1, %v7842_v32, 0.0  ;;  %vm17175_vm2 = vnez %v17174_v19  ;;  %vm17184_vm9 = vmmov %vm17181_vm0 }
 0x4d3   : > { %v7893_v38 = vadd.f32 %v7892_v12, %v7891_v29  ;;  %v15445_v58 = vadd.f32 %v15244_v41, %v7764_v10  ;;  %v7767_v62 = vadd.f32 %v10980_v34, %v7413_v15  ;;  %v7414_v15 = vadd.f32 %v15352_v43, %v15191_v60  ;;  %v10947_v34 = vpop.f32.mrf.mxu0 }
 0x4d4   : > { %v7684_v48 = vpop.f32.mrf.mxu1  ;;  %v7845_v4 = vsel %vm17175_vm2, %v15449_v7, 0.0  ;;  %v7415_v12 = vadd.f32 %v15395_v31, %v15199_v27  ;;  %v17182_v27 = vld [vmem:[#allocation83_spill] sm:$0xff]  ;;  %vm17192_vm1 = vnez %v17191_v25  ;;  %vm17193_vm2 = vmmov %vm17181_vm0 }
 0x4d5   : > { %v7895_v40 = vadd.f32 %v7894_v23, %v7893_v38  ;;  %v7843_v33 = vsel %vm17172_vm3, %v15445_v58, 0.0  ;;  %v7765_v36 = vadd.f32 %v7684_v48, %v7411_v11  ;;  %v15460_v63 = vadd.f32 %v15244_v41, %v7767_v62  ;;  %vm17190_vm3 = vmmov %vm17181_vm0 }
 0x4d6   : > { %v10983_v8 = vpop.f32.mrf.mxu1  ;;  %v7898_v44 = vsel %vm17176_vm10, %v7843_v33, 0.0  ;;  %v7902_v48 = vsel %vm17181_vm0, %v7845_v4, 0.0  ;;  %vm17197_vm10 = vmmov %vm17181_vm0 }
 0x4d7   : > { %v7897_v49 = vadd.f32 %v7896_v30, %v7895_v40  ;;  %v15463_v18 = vadd.f32 %v15244_v41, %v7765_v36  ;;  %v7770_v10 = vadd.f32 %v10983_v8, %v7416_v1  ;;  %v7846_v32 = vsel %vm17180_vm14, %v15460_v63, 0.0  ;;  %vm17200_vm14 = vmmov %vm17181_vm0 }
 0x4d8   : > { %v7697_v29 = vpop.f32.mrf.mxu1  ;;  %v7420_v1 = vadd.f32 %v15410_v20, %v15202_v13  ;;  %v7904_v30 = vsel %vm17184_vm9, %v7846_v32, 0.0  ;;  %v17187_v13 = vld [vmem:[#allocation104_spill] sm:$0xff]  ;;  %vm17211_vm9 = vmmov %vm17181_vm0 }
 0x4d9   : > { %v7899_v26 = vadd.f32 %v7898_v44, %v7897_v49  ;;  %v7844_v43 = vsel %vm14266_vm12, %v15463_v18, 0.0  ;;  %v7768_v11 = vadd.f32 %v7697_v29, %v7414_v15  ;;  %v15485_v33 = vadd.f32 %v15244_v41, %v7770_v10  ;;  %v7375_v49 = vpop.f32.mrf.mxu0  ;;  %v17185_v44 = vld [vmem:[#allocation70_spill] sm:$0xff] }
 0x4da   : > { %v7900_v21 = vsel %vm17178_vm13, %v7844_v43, 0.0  ;;  %v10984_v14 = vpop.f32.mrf.mxu1  ;;  %vm17183_vm12 = vnez %v17182_v27  ;;  %v7418_v15 = vadd.f32 %v7359_v59, %v15207_v57  ;;  %v7421_v29 = vadd.f32 %v10944_v28, %v17185_v44 }
 0x4db   : > { %v7901_v38 = vadd.f32 %v7900_v21, %v7899_v26  ;;  %v15481_v62 = vadd.f32 %v15244_v41, %v7768_v11  ;;  %v7771_v23 = vadd.f32 %v10984_v14, %v7417_v35  ;;  %vm17188_vm15 = vnez %v17187_v13  ;;  %v10948_v28 = vpop.f32.mrf.mxu0  ;;  %v17198_v13 = vld [vmem:[#allocation69_spill] sm:$0xff] }
 0x4dc   : > { %v7700_v40 = vpop.f32.mrf.mxu1  ;;  %v7849_v20 = vsel %vm17188_vm15, %v15485_v33, 0.0  ;;  %vm17199_vm13 = vnez %v17198_v13  ;;  %vm17214_vm15 = vmmov %vm17181_vm0 }
 0x4dd   : > { %v7903_v56 = vadd.f32 %v7902_v48, %v7901_v38  ;;  %v7847_v31 = vsel %vm17183_vm12, %v15481_v62, 0.0  ;;  %v7769_v36 = vadd.f32 %v7700_v40, %v7415_v12  ;;  %v15495_v19 = vadd.f32 %v15244_v41, %v7771_v23  ;;  %v7378_v44 = vpop.f32.mrf.mxu0  ;;  %vm17204_vm12 = vmmov %vm17181_vm0 }
 0x4de   : > { %v10987_v8 = vpop.f32.mrf.mxu1  ;;  %v7906_v26 = vsel %vm17186_vm5, %v7847_v31, 0.0  ;;  %v7419_v12 = vadd.f32 %v7362_v2, %v15215_v6  ;;  %v7910_v40 = vsel %vm17193_vm2, %v7849_v20, 0.0  ;;  %v17194_v2 = vld [vmem:[#allocation23_spill] sm:$0xff]  ;;  %vm17220_vm2 = vmmov %vm17181_vm0 }
 0x4df   : > { %v7905_v35 = vadd.f32 %v7904_v30, %v7903_v56  ;;  %v15498_v4 = vadd.f32 %v15244_v41, %v7769_v36  ;;  %v7774_v60 = vadd.f32 %v10987_v8, %v7420_v1  ;;  %v7850_v32 = vsel %vm17192_vm1, %v15495_v19, 0.0  ;;  %v17196_v1 = vld [vmem:[#allocation37_spill] sm:$0xff]  ;;  %vm17217_vm1 = vmmov %vm17181_vm0 }
 0x4e0   : > { %v7713_v43 = vpop.f32.mrf.mxu1  ;;  %v7424_v30 = vadd.f32 %v10947_v34, %v17196_v1  ;;  %v7912_v8 = vsel %vm17197_vm10, %v7850_v32, 0.0  ;;  %vm17222_vm10 = vmmov %vm17181_vm0 }
 0x4e1   : > { %v7907_v10 = vadd.f32 %v7906_v26, %v7905_v35  ;;  %v7848_v59 = vsel %vm14354_vm8, %v15498_v4, 0.0  ;;  %v7772_v11 = vadd.f32 %v7713_v43, %v7418_v15  ;;  %v15518_v56 = vadd.f32 %v15244_v41, %v7774_v60 }
 0x4e2   : > { %v7908_v21 = vsel %vm17190_vm3, %v7848_v59, 0.0  ;;  %v10988_v14 = vpop.f32.mrf.mxu1  ;;  %vm17195_vm8 = vnez %v17194_v2  ;;  %v7422_v35 = vadd.f32 %v7375_v49, %v15223_v37  ;;  %v7425_v43 = vadd.f32 %v10948_v28, %v15226_v42  ;;  %vm17215_vm3 = vmmov %vm17181_vm0 }
 0x4e3   : > { %v7909_v38 = vadd.f32 %v7908_v21, %v7907_v10  ;;  %v15514_v23 = vadd.f32 %v15244_v41, %v7772_v11  ;;  %v7775_v48 = vadd.f32 %v10988_v14, %v7421_v29  ;;  %v7853_v20 = vsel %vm17199_vm13, %v15518_v56, 0.0  ;;  %vm17223_vm13 = vmmov %vm17181_vm0 }
 0x4e4   : > { %v7716_v27 = vpop.f32.mrf.mxu1 }
 0x4e5   : > { %v7911_v6 = vadd.f32 %v7910_v40, %v7909_v38  ;;  %v7851_v31 = vsel %vm17195_vm8, %v15514_v23, 0.0  ;;  %v7773_v36 = vadd.f32 %v7716_v27, %v7419_v12  ;;  %v15527_v26 = vadd.f32 %v15244_v41, %v7775_v48  ;;  %v17202_v12 = vld [vmem:[#allocation81_spill] sm:$0xff]  ;;  %vm17221_vm8 = vmmov %vm17181_vm0 }
 0x4e6   : > { %v10991_v15 = vpop.f32.mrf.mxu1  ;;  %v7914_v34 = vsel %vm17200_vm14, %v7851_v31, 0.0  ;;  %v7423_v21 = vadd.f32 %v7378_v44, %v17202_v12  ;;  %v7918_v40 = vsel %vm17204_vm12, %v7853_v20, 0.0  ;;  %v17209_v20 = vld [vmem:[#allocation77_spill] sm:$0xff]  ;;  %v11644_v31 = vmov 0   ;;  %vm17224_vm14 = vmmov %vm17181_vm0 }
 0x4e7   : > { %v7913_v29 = vadd.f32 %v7912_v8, %v7911_v6  ;;  %v15530_v60 = vadd.f32 %v15244_v41, %v7773_v36  ;;  %v7778_v59 = vadd.f32 %v10991_v15, %v7424_v30  ;;  %v7854_v28 = vsel %vm14424_vm4, %v15527_v26, 0.0  ;;  %vm17207_vm4 = vmmov %vm17181_vm0  ;;  %11226 = vset.pattern.permute.xlu0 %v11644_v31  ;;  %11227 = vset.pattern.permute.xlu1 %v11644_v31 }
 0x4e8   : > { %v7729_v10 = vpop.f32.mrf.mxu1  ;;  %vm17225_vm12 = vmmov %vm17181_vm0 }
 0x4e9   : > { %v7915_v57 = vadd.f32 %v7914_v34, %v7913_v29  ;;  %v7852_v49 = vsel %vm14489_vm11, %v15530_v60, 0.0  ;;  %v7776_v11 = vadd.f32 %v7729_v10, %v7422_v35  ;;  %v15550_v2 = vadd.f32 %v15244_v41, %v7778_v59  ;;  %vm17206_vm11 = vmmov %vm17181_vm0 }
 0x4ea   : > { %v7916_v14 = vsel %vm17181_vm0, %v7852_v49, 0.0  ;;  %v10992_v25 = vpop.f32.mrf.mxu1  ;;  %v7920_v30 = vsel %vm17206_vm11, %v7854_v28, 0.0  ;;  %vm17226_vm11 = vmmov %vm17181_vm0 }
 0x4eb   : > { %v7917_v32 = vadd.f32 %v7916_v14, %v7915_v57  ;;  %v15546_v38 = vadd.f32 %v15244_v41, %v7776_v11  ;;  %v7779_v48 = vadd.f32 %v10992_v25, %v7425_v43  ;;  %v7857_v43 = vsel %vm14498_vm6, %v15550_v2, 0.0  ;;  %v17212_v57 = vld [vmem:[#allocation27_spill] sm:$0xff]  ;;  %vm17216_vm6 = vmmov %vm17181_vm0 }
 0x4ec   : > { %v7732_v27 = vpop.f32.mrf.mxu1  ;;  %vm17213_vm5 = vnez %v17212_v57  ;;  %v8007_v57 = vld [vmem:[%s16208_s9] sm:$0xff] }
 0x4ed   : > { %v7919_v6 = vadd.f32 %v7918_v40, %v7917_v32  ;;  %v7855_v36 = vsel %vm14516_vm7, %v15546_v38, 0.0  ;;  %v7777_v1 = vadd.f32 %v7732_v27, %v7423_v21  ;;  %v15557_v15 = vadd.f32 %v15244_v41, %v7779_v48  ;;  %v7937_v48 = vld [vmem:[%s16204_s5] sm:$0xff] }
 0x4ee   : > { %v7922_v44 = vsel %vm17207_vm4, %v7855_v36, 0.0  ;;  %vm17210_vm7 = vnez %v17209_v20  ;;  %v8014_v36 = vld [vmem:[%s16208_s9 + $0x38] sm:$0xff]  ;;  %vm17227_vm4 = vmmov %vm17181_vm0 }
 0x4ef   : > { %v7921_v8 = vadd.f32 %v7920_v30, %v7919_v6  ;;  %v15560_v35 = vadd.f32 %v15244_v41, %v7777_v1  ;;  %v7858_v37 = vsel %vm17213_vm5, %v15557_v15, 0.0  ;;  %v7926_v41 = vsel %vm17214_vm15, %v7857_v43, 0.0  ;;  %v8013_v1 = vld [vmem:[%s16208_s9 + $0x30] sm:$0xff]  ;;  %10993 = vmatprep.subr.mxu0 %v8014_v36  ;;  %11063 = vmatprep.subr.mxu1 %v8014_v36  ;;  %v7942_v30 = vld [vmem:[%s16205_s6] sm:$0xff]  ;;  %v8012_v43 = vld [vmem:[%s16208_s9 + $0x28] sm:$0xff] }
 0x4f0   : > { %v7928_v11 = vsel %vm17215_vm3, %v7858_v37, 0.0  ;;  %10994 = vmatpush3.msra.mxu0 %v8014_v36  ;;  %11071 = vmatpush3.msra.mxu1 %v8014_v36  ;;  %v8010_v20 = vld [vmem:[%s16208_s9 + $0x18] sm:$0xff]  ;;  %v7945_v37 = vld [vmem:[%s16206_s7] sm:$0xff]  ;;  %vm17230_vm5 = vmmov %vm17181_vm0 }
 0x4f1   : > { %v7923_v13 = vadd.f32 %v7922_v44, %v7921_v8  ;;  %v7856_v34 = vsel %vm17210_vm7, %v15560_v35, 0.0  ;;  %10995 = vmatprep.subr.mxu0 %v8013_v1  ;;  %11064 = vmatprep.subr.mxu1 %v8013_v1  ;;  %vm17228_vm7 = vmmov %vm17181_vm0 }
 0x4f2   : > { %v7924_v10 = vsel %vm17211_vm9, %v7856_v34, 0.0  ;;  %10996 = vmatpush3.msra.mxu0 %v8013_v1  ;;  %11072 = vmatpush3.msra.mxu1 %v8013_v1  ;;  %v8009_v34 = vld [vmem:[%s16208_s9 + $0x10] sm:$0xff]  ;;  %vm17229_vm9 = vmmov %vm17181_vm0 }
 0x4f3   : > { %v7925_v49 = vadd.f32 %v7924_v10, %v7923_v13  ;;  %v8011_v13 = vld [vmem:[%s16208_s9 + $0x20] sm:$0xff]  ;;  %10997 = vmatprep.subr.mxu0 %v8012_v43  ;;  %11065 = vmatprep.subr.mxu1 %v8012_v43  ;;  %v8008_v10 = vld [vmem:[%s16208_s9 + $0x8] sm:$0xff]  ;;  %vm17231_vm15 = vmmov %vm17181_vm0 }
 0x4f4   : > { %10998 = vmatpush3.msra.mxu0 %v8012_v43  ;;  %11073 = vmatpush3.msra.mxu1 %v8012_v43  ;;  %vm17232_vm3 = vmmov %vm17181_vm0 }
 0x4f5   : > { %v7927_v59 = vadd.f32 %v7926_v41, %v7925_v49  ;;  %10999 = vmatprep.subr.mxu0 %v8011_v13  ;;  %11066 = vmatprep.subr.mxu1 %v8011_v13 }
 0x4f6   : > { %11000 = vmatpush3.msra.mxu0 %v8011_v13  ;;  %11074 = vmatpush3.msra.mxu1 %v8011_v13 }
 0x4f7   : > { %v7929_v12 = vadd.f32 %v7928_v11, %v7927_v59  ;;  %11001 = vmatprep.subr.mxu0 %v8010_v20  ;;  %11067 = vmatprep.subr.mxu1 %v8010_v20 }
 0x4f8   : > { %11002 = vmatpush3.msra.mxu0 %v8010_v20  ;;  %11075 = vmatpush3.msra.mxu1 %v8010_v20 }
 0x4f9   : > { %v7930_v21 = vrot.slane %v7929_v12, 4  ;;  %11003 = vmatprep.subr.mxu0 %v8009_v34  ;;  %11068 = vmatprep.subr.mxu1 %v8009_v34 }
 0x4fa   : > { %11004 = vmatpush3.msra.mxu0 %v8009_v34  ;;  %11076 = vmatpush3.msra.mxu1 %v8009_v34 }
 0x4fb   : > { %v7931_v14 = vadd.f32 %v7930_v21, %v7929_v12  ;;  %11005 = vmatprep.subr.mxu0 %v8008_v10  ;;  %11069 = vmatprep.subr.mxu1 %v8008_v10 }
 0x4fc   : > { %11006 = vmatpush3.msra.mxu0 %v8008_v10  ;;  %11077 = vmatpush3.msra.mxu1 %v8008_v10 }
 0x4fd   : > { %v7932_v25 = vrot.slane %v7931_v14, 2  ;;  %11007 = vmatprep.subr.mxu0 %v8007_v57  ;;  %11070 = vmatprep.subr.mxu1 %v8007_v57 }
 0x4fe   : > { %11008 = vmatpush3.msra.mxu0 %v8007_v57  ;;  %11078 = vmatpush3.msra.mxu1 %v8007_v57 }
 0x4ff   : > { %v7933_v42 = vadd.f32 %v7932_v25, %v7931_v14 }
 0x501   : > { %v7934_v28 = vrot.slane %v7933_v42, 1 }
 0x503   : > { %v7935_v32 = vadd.f32 %v7934_v28, %v7933_v42  ;;  %v7959_v42 = vld [vmem:[%s16207_s8] sm:$0x1] }
 0x505   : > { %v7936_v40 = vmul.f32 0.00390625, %v7935_v32 }
 0x507   : > { %v7938_v27 = vmul.f32 %v7937_v48, %v7936_v40 }
 0x509   : > { %v7939_v6 = vsel %vm17216_vm6, %v7938_v27, 0.0  ;;  %vm17233_vm6 = vmmov %vm17181_vm0 }
 0x50a   : > { %7940 = vadd.xlane.f32.xlu0 %v7939_v6  ;;  %v17218_v6 = vld [vmem:[#allocation30_spill] sm:$0xff] }
 0x50b   : > { %v7969_v31 = vsub.s32 0, %v17218_v6 }
 0x593   : > { %v7941_v8 = vpop.xlane.xlu0 %7940 }
 0x594   : > { %v7943_v44 = vadd.f32 %v7942_v30, %v7941_v8 }
 0x596   : > { %v7944_v29 = vmax.f32 %v7943_v44, 0.0  ;;  %v17219_v44 = vld [vmem:[#allocation28_spill] sm:$0xff] }
 0x598   : > { %7948 = vperm.xlu0 %11226, %v7944_v29  }
 0x613   : > { %v7949_v49 = vpop.permute.xlu0 %7948 }
 0x614   : > { %v7951_v41 = vmul.f32 %v7949_v49, %v7945_v37 }
 0x616   : > { %v7952_v59 = vsel %vm17217_vm1, %v7951_v41, 0.0  ;;  %vm17234_vm1 = vmmov %vm17181_vm0 }
 0x617   : > { %v7953_v11 = vrot.slane %v7952_v59, 4 }
 0x619   : > { %v7954_v12 = vadd.f32 %v7953_v11, %v7952_v59 }
 0x61b   : > { %v7955_v21 = vrot.slane %v7954_v12, 2 }
 0x61d   : > { %v7956_v14 = vadd.f32 %v7955_v21, %v7954_v12 }
 0x61f   : > { %v7957_v25 = vrot.slane %v7956_v14, 1 }
 0x621   : > { %v7958_v28 = vadd.f32 %v7957_v25, %v7956_v14 }
 0x623   : > { %v7960_v32 = vadd.f32 %v7959_v42, %v7958_v28 }
 0x625   : > { %v9678_v48 = vmul.f32 -1.442695, %v7960_v32 }
 0x627   : > { %11300 = vpow2.f32 %v9678_v48 }
 0x634   : > { %v11301_v40 = vpop.eup %11300 }
 0x635   : > { %v7964_v27 = vadd.f32 1.0, %v11301_v40 }
 0x637   : > { %11302 = vrcp.f32 %v7964_v27 }
 0x644   : > { %v11303_v36 = vpop.eup %11302 }
 0x645   : > { %v15614_v1 = vrot.slane %v11303_v36, %v7969_v31 }
 0x647   : > { %v15618_v30 = vmul.f32 %v15614_v1, %v15249_v53  ;;  %v15622_v8 = vmul.f32 %v15614_v1, %v15267_v24  ;;  %v15626_v29 = vmul.f32 %v15614_v1, %v17219_v44  ;;  %v15634_v43 = vmul.f32 %v15614_v1, %v15413_v9 }
 0x648   : > { %v15638_v53 = vmul.f32 %v15614_v1, %v15424_v39  ;;  %v15644_v24 = vmul.f32 %v15614_v1, %v15445_v58  ;;  %v15650_v13 = vmul.f32 %v15614_v1, %v15264_v45  ;;  %v15656_v9 = vmul.f32 %v15614_v1, %v15287_v46 }
 0x649   : > { %11009 = vmatprep.mubr.msk.f32.mxu0 %vm17220_vm2, %v15618_v30  ;;  %11036 = vmatprep.mubr.msk.f32.mxu1 %vm17223_vm13, %v15634_v43  ;;  %v15662_v39 = vmul.f32 %v15614_v1, %v15463_v18  ;;  %v15668_v45 = vmul.f32 %v15614_v1, %v15449_v7  ;;  %v15674_v46 = vmul.f32 %v15614_v1, %v15307_v51  ;;  %vm17235_vm2 = vmmov %vm17181_vm0 }
 0x64a   : > { %11010 = vmatmul.mubr.msk.f32.vlgmr.msra.gmra.mxu0 %vm17221_vm8, %v15622_v8  ;;  %11037 = vmatmul.mubr.msk.f32.vlgmr.msra.gmra.mxu1 %vm17224_vm14, %v15638_v53  ;;  %v15680_v58 = vmul.f32 %v15614_v1, %v15291_v47  ;;  %v15686_v7 = vmul.f32 %v15614_v1, %v15460_v63  ;;  %v15692_v51 = vmul.f32 %v15614_v1, %v15481_v62  ;;  %vm17236_vm8 = vmmov %vm17181_vm0 }
 0x64b   : > { %11012 = vmatprep.mubr.msk.f32.mxu0 %vm17222_vm10, %v15626_v29  ;;  %11039 = vmatprep.mubr.msk.f32.mxu1 %vm17181_vm0, %v15644_v24  ;;  %v15698_v47 = vmul.f32 %v15614_v1, %v15304_v61  ;;  %v15704_v63 = vmul.f32 %v15614_v1, %v15327_v22  ;;  %v15710_v18 = vmul.f32 %v15614_v1, %v15498_v4  ;;  %vm17237_vm10 = vmmov %vm17181_vm0 }
 0x64c   : > { %v15716_v61 = vmul.f32 %v15614_v1, %v15485_v33  ;;  %v15722_v22 = vmul.f32 %v15614_v1, %v15347_v54  ;;  %v15728_v62 = vmul.f32 %v15614_v1, %v15333_v50  ;;  %v15734_v33 = vmul.f32 %v15614_v1, %v15495_v19  ;;  %vm17238_vm13 = vmmov %vm17181_vm0 }
 0x64d   : > { %v15740_v54 = vmul.f32 %v15614_v1, %v15514_v23  ;;  %v15746_v50 = vmul.f32 %v15614_v1, %v15344_v0  ;;  %vm17239_vm14 = vmmov %vm17181_vm0  ;;  %v15752_v19 = vmul.f32 %v15614_v1, %v15367_v16  ;;  %v15758_v4 = vmul.f32 %v15614_v1, %v15530_v60 }
 0x64e   : > { %11013 = vmatmul.mubr.msk.f32.gmra.mxu0 %vm17225_vm12, %v15650_v13  ;;  %11040 = vmatmul.mubr.msk.f32.gmra.mxu1 %vm17227_vm4, %v15662_v39  ;;  %vm17240_vm12 = vmmov %vm17181_vm0  ;;  %v15764_v0 = vmul.f32 %v15614_v1, %v15518_v56  ;;  %v15770_v16 = vmul.f32 %v15614_v1, %v15387_v3  ;;  %v15776_v23 = vmul.f32 %v15614_v1, %v15371_v17 }
 0x64f   : > { %11015 = vmatprep.mubr.msk.f32.mxu0 %vm17226_vm11, %v15656_v9  ;;  %11042 = vmatprep.mubr.msk.f32.mxu1 %vm17228_vm7, %v15668_v45  ;;  %vm17241_vm11 = vmmov %vm17181_vm0  ;;  %v15782_v56 = vmul.f32 %v15614_v1, %v15527_v26  ;;  %v15788_v3 = vmul.f32 %v15614_v1, %v15546_v38  ;;  %v15794_v17 = vmul.f32 %v15614_v1, %v15384_v5 }
 0x650   : > { %vm17242_vm4 = vmmov %vm17181_vm0  ;;  %17243 = vst [vmem:[#allocation72_spill] sm:$0xff] %v15776_v23  ;;  %v15800_v26 = vmul.f32 %v15614_v1, %v15407_v55  ;;  %v15806_v60 = vmul.f32 %v15614_v1, %v15560_v35  ;;  %v15812_v5 = vmul.f32 %v15614_v1, %v15550_v2  ;;  %v15818_v55 = vmul.f32 %v15614_v1, %v15427_v52  ;;  %v15835_v52 = vld [vmem:[%s16209_s10] ss:$0 sm:$0xff] }
 0x651   : > { %vm17244_vm7 = vmmov %vm17181_vm0  ;;  %17246 = vst [vmem:[#allocation85_spill] sm:$0xff] %v15788_v3  ;;  %v15826_v38 = vmul.f32 %v15614_v1, %v15557_v15  ;;  %v15841_v15 = vld [vmem:[%s16210_s11] ss:$0 sm:$0xff] }
 0x652   : > { %11016 = vmatmul.mubr.msk.f32.gmra.mxu0 %vm17229_vm9, %v15674_v46  ;;  %11043 = vmatmul.mubr.msk.f32.gmra.mxu1 %vm17231_vm15, %v15686_v7  ;;  %vm17245_vm9 = vmmov %vm17181_vm0  ;;  %17248 = vst [vmem:[#allocation84_spill] sm:$0xff] %v15794_v17 }
 0x653   : > { %11018 = vmatprep.mubr.msk.f32.mxu0 %vm17230_vm5, %v15680_v58  ;;  %11045 = vmatprep.mubr.msk.f32.mxu1 %vm17232_vm3, %v15692_v51  ;;  %vm17247_vm5 = vmmov %vm17181_vm0  ;;  %17250 = vst [vmem:[#allocation78_spill] sm:$0xff] %v15800_v26 }
 0x654   : > { %vm17249_vm15 = vmmov %vm17181_vm0  ;;  %17252 = vst [vmem:[#allocation32_spill] sm:$0xff] %v15806_v60 }
 0x655   : > { %vm17251_vm3 = vmmov %vm17181_vm0  ;;  %17254 = vst [vmem:[#allocation87_spill] sm:$0xff] %v15812_v5 }
 0x656   : > { %11019 = vmatmul.mubr.msk.f32.gmra.mxu0 %vm17233_vm6, %v15698_v47  ;;  %11046 = vmatmul.mubr.msk.f32.gmra.mxu1 %vm17235_vm2, %v15710_v18  ;;  %vm17253_vm6 = vmmov %vm17181_vm0  ;;  %17256 = vst [vmem:[#allocation80_spill] sm:$0xff] %v15818_v55 }
 0x657   : > { %11021 = vmatprep.mubr.msk.f32.mxu0 %vm17234_vm1, %v15704_v63  ;;  %11048 = vmatprep.mubr.msk.f32.mxu1 %vm17236_vm8, %v15716_v61  ;;  %vm17255_vm1 = vmmov %vm17181_vm0  ;;  %17259 = vst [vmem:[#allocation90_spill] sm:$0xff] %v15826_v38 }
 0x658   : > { %vm17257_vm2 = vmmov %vm17181_vm0 }
 0x659   : > { %vm17258_vm8 = vmmov %vm17181_vm0 }
 0x65a   : > { %11022 = vmatmul.mubr.msk.f32.gmra.mxu0 %vm17237_vm10, %v15722_v22  ;;  %11049 = vmatmul.mubr.msk.f32.gmra.mxu1 %vm17239_vm14, %v15734_v33  ;;  %vm17260_vm10 = vmmov %vm17181_vm0  ;;  %vm8454_vm14 = vcmask 64512  }
 0x65b   : > { %11024 = vmatprep.mubr.msk.f32.mxu0 %vm17238_vm13, %v15728_v62  ;;  %11051 = vmatprep.mubr.msk.f32.mxu1 %vm17181_vm0, %v15740_v54  ;;  %vm17261_vm13 = vmmov %vm17181_vm0 }
 0x65e   : > { %11025 = vmatmul.mubr.msk.f32.gmra.mxu0 %vm17240_vm12, %v15746_v50  ;;  %11052 = vmatmul.mubr.msk.f32.gmra.mxu1 %vm17242_vm4, %v15758_v4  ;;  %vm17264_vm12 = vmmov %vm17181_vm0 }
 0x65f   : > { %11027 = vmatprep.mubr.msk.f32.mxu0 %vm17241_vm11, %v15752_v19  ;;  %11054 = vmatprep.mubr.msk.f32.mxu1 %vm17244_vm7, %v15764_v0  ;;  %vm17265_vm11 = vmmov %vm17181_vm0 }
 0x660   : > { %vm17266_vm4 = vmmov %vm17181_vm0 }
 0x661   : > { %vm17267_vm7 = vmmov %vm17181_vm0 }
 0x662   : > { %11028 = vmatmul.mubr.msk.f32.gmra.mxu0 %vm17245_vm9, %v15770_v16  ;;  %11055 = vmatmul.mubr.msk.f32.gmra.mxu1 %vm17249_vm15, %v15782_v56  ;;  %vm17268_vm9 = vmmov %vm17181_vm0 }
 0x663   : > { %11030 = vmatprep.mubr.msk.f32.mxu0 %vm17247_vm5, %v15776_v23  ;;  %11057 = vmatprep.mubr.msk.f32.mxu1 %vm17251_vm3, %v15788_v3  ;;  %vm9112_vm5 = vcmask 523266   ;;  %vm17269_vm15 = vmmov %vm17181_vm0  ;;  %vm9115_vm3 = vcmask 517120  }
 0x666   : > { %11031 = vmatmul.mubr.msk.f32.gmra.mxu0 %vm17253_vm6, %v15794_v17  ;;  %11058 = vmatmul.mubr.msk.f32.gmra.mxu1 %vm17257_vm2, %v15806_v60  ;;  %vm9117_vm6 = vcmask 523268   ;;  %vm17271_vm2 = vmmov %vm17181_vm0 }
 0x667   : > { %11033 = vmatprep.mubr.msk.f32.mxu0 %vm17255_vm1, %v15800_v26  ;;  %11060 = vmatprep.mubr.msk.f32.mxu1 %vm17258_vm8, %v15812_v5  ;;  %vm17270_vm1 = vmmov %vm17181_vm0  ;;  %vm9120_vm8 = vcmask 519168  }
 0x66a   : > { %11034 = vmatmul.mubr.msk.f32.gmra.mxu0 %vm17260_vm10, %v15818_v55  ;;  %11061 = vmatmul.mubr.msk.f32.gmra.mxu1 %vm17261_vm13, %v15826_v38  ;;  %vm9122_vm10 = vcmask 523270   ;;  %vm17272_vm13 = vmmov %vm17181_vm0 }
 0x70a   : > { %v11011_v2 = vpop.f32.mrf.mxu0  ;;  %v11038_v10 = vpop.f32.mrf.mxu1 }
 0x70b   : > { %v8202_v35 = vadd.f32 %v11011_v2, %v15835_v52  ;;  %v8292_v37 = vadd.f32 %v11038_v10, %v15835_v52 }
 0x70c   : > { %v8196_v20 = vpop.f32.mrf.mxu0  ;;  %v8286_v41 = vpop.f32.mrf.mxu1 }
 0x70d   : > { %v8376_v34 = vmax.f32 %v8202_v35, 0.0  ;;  %v8197_v57 = vadd.f32 %v15835_v52, %v8196_v20  ;;  %v8394_v11 = vmax.f32 %v8292_v37, 0.0  ;;  %v8287_v14 = vadd.f32 %v15835_v52, %v8286_v41 }
 0x70e   : > { %v11014_v59 = vpop.f32.mrf.mxu0  ;;  %v11041_v25 = vpop.f32.mrf.mxu1 }
 0x70f   : > { %v8419_v49 = vmul.f32 %v15841_v15, %v8376_v34  ;;  %v8375_v21 = vmax.f32 %v8197_v57, 0.0  ;;  %v8302_v28 = vadd.f32 %v11041_v25, %v15835_v52  ;;  %v8437_v40 = vmul.f32 %v15841_v15, %v8394_v11 }
 0x710   : > { %v8206_v42 = vpop.f32.mrf.mxu0  ;;  %v8296_v32 = vpop.f32.mrf.mxu1  ;;  %v8212_v27 = vadd.f32 %v11014_v59, %v15835_v52  ;;  %v8393_v31 = vmax.f32 %v8287_v14, 0.0 }
 0x711   : > { %v8458_v12 = vsel %vm8454_vm14, %v8419_v49, 0.0  ;;  %v8396_v6 = vmax.f32 %v8302_v28, 0.0  ;;  %v8512_v44 = vsel %vm8454_vm14, %v8437_v40, 0.0  ;;  %v8418_v2 = vmul.f32 %v15841_v15, %v8375_v21 }
 0x712   : > { %8459 = vadd.xlane.f32.xlu1 %v8458_v12  ;;  %v11017_v48 = vpop.f32.mrf.mxu0  ;;  %v11044_v36 = vpop.f32.mrf.mxu1  ;;  %v8207_v35 = vadd.f32 %v15835_v52, %v8206_v42  ;;  %v8378_v37 = vmax.f32 %v8212_v27, 0.0  ;;  %v8297_v49 = vadd.f32 %v15835_v52, %v8296_v32  ;;  %v8436_v25 = vmul.f32 %v15841_v15, %v8393_v31 }
 0x713   : > { %v8312_v20 = vadd.f32 %v11044_v36, %v15835_v52  ;;  %v8439_v10 = vmul.f32 %v15841_v15, %v8396_v6  ;;  %v8222_v59 = vadd.f32 %v11017_v48, %v15835_v52  ;;  %v8455_v21 = vsel %vm8454_vm14, %v8418_v2, 0.0 }
 0x714   : > { %v8216_v1 = vpop.f32.mrf.mxu0  ;;  %v8306_v34 = vpop.f32.mrf.mxu1  ;;  %v8377_v42 = vmax.f32 %v8207_v35, 0.0  ;;  %v8395_v48 = vmax.f32 %v8297_v49, 0.0  ;;  %v8421_v36 = vmul.f32 %v15841_v15, %v8378_v37 }
 0x715   : > { %v8398_v41 = vmax.f32 %v8312_v20, 0.0  ;;  %v8518_v11 = vsel %vm8454_vm14, %v8439_v10, 0.0  ;;  %v8217_v2 = vadd.f32 %v15835_v52, %v8216_v1  ;;  %v8509_v10 = vsel %vm8454_vm14, %v8436_v25, 0.0 }
 0x716   : > { %8513 = vadd.xlane.f32.xlu1 %v8512_v44  ;;  %v11020_v57 = vpop.f32.mrf.mxu0  ;;  %v11047_v12 = vpop.f32.mrf.mxu1  ;;  %8519 = vadd.xlane.f32.xlu0 %v8518_v11  ;;  %v8380_v44 = vmax.f32 %v8222_v59, 0.0  ;;  %v15876_v49 = vadd.f32 %v15835_v52, %v8306_v34  ;;  %v8438_v34 = vmul.f32 %v15841_v15, %v8395_v48 }
 0x717   : > { %v8322_v28 = vadd.f32 %v11047_v12, %v15835_v52  ;;  %v8441_v32 = vmul.f32 %v15841_v15, %v8398_v41  ;;  %v8420_v41 = vmul.f32 %v15841_v15, %v8377_v42  ;;  %v15879_v37 = vadd.f32 %v11020_v57, %v15835_v52 }
 0x718   : > { %v8226_v14 = vpop.f32.mrf.mxu0  ;;  %v15862_v40 = vpop.f32.mrf.mxu1  ;;  %v8423_v57 = vmul.f32 %v15841_v15, %v8380_v44 }
 0x719   : > { %v8400_v6 = vmax.f32 %v8322_v28, 0.0  ;;  %v8524_v31 = vsel %vm8454_vm14, %v8441_v32, 0.0  ;;  %v8464_v28 = vsel %vm8454_vm14, %v8421_v36, 0.0  ;;  %v8379_v32 = vmax.f32 %v8217_v2, 0.0 }
 0x71a   : > { %8456 = vadd.xlane.f32.xlu1 %v8455_v21  ;;  %v15865_v27 = vpop.f32.mrf.mxu0  ;;  %v11050_v35 = vpop.f32.mrf.mxu1  ;;  %8525 = vadd.xlane.f32.xlu0 %v8524_v31  ;;  %v8515_v36 = vsel %vm8454_vm14, %v8438_v34, 0.0  ;;  %v8470_v2 = vsel %vm8454_vm14, %v8423_v57, 0.0 }
 0x71b   : > { %v8332_v11 = vadd.f32 %v11050_v35, %v15835_v52  ;;  %v8443_v59 = vmul.f32 %v15841_v15, %v8400_v6  ;;  %v8422_v55 = vmul.f32 %v15841_v15, %v8379_v32 }
 0x71c   : > { %v15870_v20 = vpop.f32.mrf.mxu0  ;;  %v15881_v1 = vpop.f32.mrf.mxu1 }
 0x71d   : > { %v8402_v21 = vmax.f32 %v8332_v11, 0.0  ;;  %v8530_v31 = vsel %vm8454_vm14, %v8443_v59, 0.0  ;;  %v8461_v11 = vsel %vm8454_vm14, %v8420_v41, 0.0  ;;  %v15895_v59 = vadd.f32 %v15835_v52, %v8226_v14 }
 0x71e   : > { %8510 = vadd.xlane.f32.xlu1 %v8509_v10  ;;  %v11026_v12 = vpop.f32.mrf.mxu0  ;;  %v11053_v42 = vpop.f32.mrf.mxu1  ;;  %8531 = vadd.xlane.f32.xlu0 %v8530_v31  ;;  %v8467_v60 = vsel %vm8454_vm14, %v8422_v55, 0.0 }
 0x71f   : > { %v8252_v25 = vadd.f32 %v11026_v12, %v15835_v52  ;;  %v8342_v5 = vadd.f32 %v11053_v42, %v15835_v52  ;;  %v8445_v48 = vmul.f32 %v15841_v15, %v8402_v21 }
 0x720   : > { %v8246_v35 = vpop.f32.mrf.mxu0  ;;  %v8336_v12 = vpop.f32.mrf.mxu1 }
 0x721   : > { %v8386_v10 = vmax.f32 %v8252_v25, 0.0  ;;  %v8247_v6 = vadd.f32 %v15835_v52, %v8246_v35  ;;  %v8404_v31 = vmax.f32 %v8342_v5, 0.0  ;;  %v8337_v42 = vadd.f32 %v15835_v52, %v8336_v12 }
 0x722   : > { %8465 = vadd.xlane.f32.xlu1 %v8464_v28  ;;  %v11029_v44 = vpop.f32.mrf.mxu0  ;;  %v8536_v28 = vsel %vm8454_vm14, %v8445_v48, 0.0  ;;  %v11056_v41 = vpop.f32.mrf.mxu1 }
 0x723   : > { %v8385_v25 = vmax.f32 %v8247_v6, 0.0  ;;  %v8262_v35 = vadd.f32 %v11029_v44, %v15835_v52  ;;  %v8429_v14 = vmul.f32 %v15841_v15, %v8386_v10  ;;  %v8403_v26 = vmax.f32 %v8337_v42, 0.0  ;;  %8537 = vadd.xlane.f32.xlu0 %v8536_v28 }
 0x724   : > { %v8256_v38 = vpop.f32.mrf.mxu0  ;;  %v8352_v5 = vadd.f32 %v11056_v41, %v15835_v52  ;;  %v8346_v12 = vpop.f32.mrf.mxu1  ;;  %v8447_v44 = vmul.f32 %v15841_v15, %v8404_v31 }
 0x725   : > { %v8388_v21 = vmax.f32 %v8262_v35, 0.0  ;;  %v8257_v6 = vadd.f32 %v15835_v52, %v8256_v38  ;;  %v15909_v34 = vsel %vm8454_vm14, %v8429_v14, 0.0  ;;  %v8428_v57 = vmul.f32 %v15841_v15, %v8385_v25 }
 0x726   : > { %8462 = vadd.xlane.f32.xlu1 %v8461_v11  ;;  %v11032_v48 = vpop.f32.mrf.mxu0  ;;  %v8406_v10 = vmax.f32 %v8352_v5, 0.0  ;;  %v8347_v35 = vadd.f32 %v15835_v52, %v8346_v12  ;;  %v8542_v38 = vsel %vm8454_vm14, %v8447_v44, 0.0  ;;  %v11059_v11 = vpop.f32.mrf.mxu1  ;;  %v8446_v32 = vmul.f32 %v15841_v15, %v8403_v26 }
 0x727   : > { %v8387_v42 = vmax.f32 %v8257_v6, 0.0  ;;  %v8272_v28 = vadd.f32 %v11032_v48, %v15835_v52  ;;  %v15916_v31 = vsel %vm8454_vm14, %v8428_v57, 0.0  ;;  %v8431_v14 = vmul.f32 %v15841_v15, %v8388_v21  ;;  %8543 = vadd.xlane.f32.xlu0 %v8542_v38 }
 0x728   : > { %v8266_v41 = vpop.f32.mrf.mxu0  ;;  %v8405_v3 = vmax.f32 %v8347_v35, 0.0  ;;  %v8362_v5 = vadd.f32 %v11059_v11, %v15835_v52  ;;  %v8356_v12 = vpop.f32.mrf.mxu1  ;;  %v8449_v44 = vmul.f32 %v15841_v15, %v8406_v10  ;;  %v15925_v57 = vsel %vm8454_vm14, %v8446_v32, 0.0 }
 0x729   : > { %v8390_v25 = vmax.f32 %v8272_v28, 0.0  ;;  %v8267_v6 = vadd.f32 %v15835_v52, %v8266_v41  ;;  %v15928_v26 = vsel %vm8454_vm14, %v8431_v14, 0.0  ;;  %v8357_v35 = vadd.f32 %v15835_v52, %v8356_v12 }
 0x72a   : > { %8516 = vadd.xlane.f32.xlu1 %v8515_v36  ;;  %v11035_v48 = vpop.f32.mrf.mxu0  ;;  %v8430_v38 = vmul.f32 %v15841_v15, %v8387_v42  ;;  %v8408_v36 = vmax.f32 %v8362_v5, 0.0  ;;  %v8548_v11 = vsel %vm8454_vm14, %v8449_v44, 0.0  ;;  %v11062_v10 = vpop.f32.mrf.mxu1  ;;  %v8448_v55 = vmul.f32 %v15841_v15, %v8405_v3 }
 0x72b   : > { %v8389_v21 = vmax.f32 %v8267_v6, 0.0  ;;  %v8282_v28 = vadd.f32 %v11035_v48, %v15835_v52  ;;  %v8433_v32 = vmul.f32 %v15841_v15, %v8390_v25  ;;  %v8407_v23 = vmax.f32 %v8357_v35, 0.0  ;;  %8549 = vadd.xlane.f32.xlu0 %v8548_v11 }
 0x72c   : > { %v8276_v41 = vpop.f32.mrf.mxu0  ;;  %v8372_v6 = vadd.f32 %v11062_v10, %v15835_v52  ;;  %v8366_v48 = vpop.f32.mrf.mxu1  ;;  %v17262_v42 = vmax.f32 %v15876_v49, 0.0  ;;  %v8545_v44 = vsel %vm8454_vm14, %v8448_v55, 0.0 }
 0x72d   : > { %v8392_v14 = vmax.f32 %v8282_v28, 0.0  ;;  %v8277_v12 = vadd.f32 %v15835_v52, %v8276_v41  ;;  %v8500_v17 = vsel %vm8454_vm14, %v8433_v32, 0.0  ;;  %v8432_v3 = vmul.f32 %v15841_v15, %v8389_v21 }
 0x72e   : > { %8471 = vadd.xlane.f32.xlu1 %v8470_v2  ;;  %v8440_v5 = vmul.f32 %v15841_v15, %v17262_v42  ;;  %v8367_v35 = vadd.f32 %v15835_v52, %v8366_v48  ;;  %v8491_v28 = vsel %vm8454_vm14, %v8430_v38, 0.0  ;;  %v8450_v11 = vmul.f32 %v15841_v15, %v8407_v23 }
 0x72f   : > { %v8391_v25 = vmax.f32 %v8277_v12, 0.0  ;;  %v8410_v10 = vmax.f32 %v8372_v6, 0.0  ;;  %v8451_v2 = vmul.f32 %v15841_v15, %v8408_v36  ;;  %v8497_v49 = vsel %vm8454_vm14, %v8432_v3, 0.0  ;;  %8492 = vadd.xlane.f32.xlu0 %v8491_v28 }
 0x730   : > { %v8435_v41 = vmul.f32 %v15841_v15, %v8392_v14  ;;  %v8409_v42 = vmax.f32 %v8367_v35, 0.0  ;;  %v8551_v55 = vsel %vm8454_vm14, %v8450_v11, 0.0  ;;  %v8381_v38 = vmax.f32 %v15895_v59, 0.0 }
 0x731   : > { %v8434_v21 = vmul.f32 %v15841_v15, %v8391_v25  ;;  %v8317_v23 = vadd.f32 %v15835_v52, %v15862_v40  ;;  %v8554_v14 = vsel %vm8454_vm14, %v8451_v2, 0.0  ;;  %v8453_v12 = vmul.f32 %v15841_v15, %v8410_v10 }
 0x732   : > { %8468 = vadd.xlane.f32.xlu1 %v8467_v60  ;;  %v8506_v32 = vsel %vm8454_vm14, %v8435_v41, 0.0  ;;  %v8452_v6 = vmul.f32 %v15841_v15, %v8409_v42  ;;  %v8521_v60 = vsel %vm8454_vm14, %v8440_v5, 0.0  ;;  %v17263_v48 = vmax.f32 %v15879_v37, 0.0 }
 0x733   : > { %v8503_v36 = vsel %vm8454_vm14, %v8434_v21, 0.0  ;;  %8555 = vadd.xlane.f32.xlu0 %v8554_v14  ;;  %v8242_v40 = vadd.f32 %v15865_v27, %v15835_v52  ;;  %v8399_v25 = vmax.f32 %v8317_v23, 0.0  ;;  %v8560_v35 = vsel %vm8454_vm14, %v8453_v12, 0.0 }
 0x734   : > { %v8425_v3 = vmul.f32 %v15841_v15, %v17263_v48  ;;  %v8557_v59 = vsel %vm8454_vm14, %v8452_v6, 0.0  ;;  %v8424_v11 = vmul.f32 %v15841_v15, %v8381_v38  ;;  %v8237_v37 = vadd.f32 %v15835_v52, %v15870_v20 }
 0x735   : > { %v8384_v5 = vmax.f32 %v8242_v40, 0.0  ;;  %v8442_v2 = vmul.f32 %v15841_v15, %v8399_v25  ;;  %v8327_v27 = vadd.f32 %v15835_v52, %v15881_v1  ;;  %v15987_v52 = vld [vmem:[#allocation4] ss:$0 sm:$0xff] }
 0x736   : > { %8522 = vadd.xlane.f32.xlu1 %v8521_v60  ;;  %v8476_v28 = vsel %vm8454_vm14, %v8425_v3, 0.0  ;;  %v8473_v10 = vsel %vm8454_vm14, %v8424_v11, 0.0  ;;  %v8383_v41 = vmax.f32 %v8237_v37, 0.0 }
 0x737   : > { %8561 = vadd.xlane.f32.xlu0 %v8560_v35  ;;  %v8527_v42 = vsel %vm8454_vm14, %v8442_v2, 0.0  ;;  %v8427_v21 = vmul.f32 %v15841_v15, %v8384_v5  ;;  %v8401_v38 = vmax.f32 %v8327_v27, 0.0 }
 0x738   : > { %v8426_v6 = vmul.f32 %v15841_v15, %v8383_v41 }
 0x739   : > { %v8482_v23 = vsel %vm8454_vm14, %v8427_v21, 0.0  ;;  %v8444_v14 = vmul.f32 %v15841_v15, %v8401_v38 }
 0x73a   : > { %8477 = vadd.xlane.f32.xlu1 %v8476_v28  ;;  %v8479_v20 = vsel %vm8454_vm14, %v8426_v6, 0.0 }
 0x73b   : > { %v8533_v12 = vsel %vm8454_vm14, %v8444_v14, 0.0  ;;  %vm17273_vm14 = vmmov %vm17181_vm0 }
 0x73e   : > { %8474 = vadd.xlane.f32.xlu1 %v8473_v10 }
 0x742   : > { %8528 = vadd.xlane.f32.xlu1 %v8527_v42 }
 0x746   : > { %8483 = vadd.xlane.f32.xlu1 %v8482_v23 }
 0x74a   : > { %8480 = vadd.xlane.f32.xlu1 %v8479_v20 }
 0x74e   : > { %8534 = vadd.xlane.f32.xlu1 %v8533_v12 }
 0x752   : > { %8489 = vadd.xlane.f32.xlu1 %v15909_v34 }
 0x756   : > { %8486 = vadd.xlane.f32.xlu1 %v15916_v31 }
 0x75a   : > { %8540 = vadd.xlane.f32.xlu1 %v15925_v57 }
 0x75e   : > { %8495 = vadd.xlane.f32.xlu1 %v15928_v26 }
 0x762   : > { %8546 = vadd.xlane.f32.xlu1 %v8545_v44 }
 0x766   : > { %8501 = vadd.xlane.f32.xlu1 %v8500_v17 }
 0x76a   : > { %8498 = vadd.xlane.f32.xlu1 %v8497_v49 }
 0x76e   : > { %8552 = vadd.xlane.f32.xlu1 %v8551_v55 }
 0x772   : > { %8507 = vadd.xlane.f32.xlu1 %v8506_v32 }
 0x776   : > { %8504 = vadd.xlane.f32.xlu1 %v8503_v36 }
 0x77a   : > { %8558 = vadd.xlane.f32.xlu1 %v8557_v59 }
 0x79b   : > { %v8460_v15 = vpop.xlane.xlu1 %8459 }
 0x79c   : > { %v8571_v1 = vadd.f32 %v15987_v52, %v8460_v15 }
 0x79e   : > { %v9719_v60 = vmul.f32 -1.442695, %v8571_v1 }
 0x79f   : > { %v8514_v34 = vpop.xlane.xlu1 %8513  ;;  %v8520_v26 = vpop.xlane.xlu0 %8519 }
 0x7a0   : > { %11304 = vpow2.f32 %v9719_v60  ;;  %v8589_v31 = vadd.f32 %v15987_v52, %v8514_v34  ;;  %v8591_v55 = vadd.f32 %v15987_v52, %v8520_v26 }
 0x7a2   : > { %v9737_v57 = vmul.f32 -1.442695, %v8589_v31  ;;  %v9739_v40 = vmul.f32 -1.442695, %v8591_v55 }
 0x7a3   : > { %v8457_v48 = vpop.xlane.xlu1 %8456  ;;  %v8526_v41 = vpop.xlane.xlu0 %8525 }
 0x7a4   : > { %11306 = vpow2.f32 %v9737_v57  ;;  %v8570_v17 = vadd.f32 %v15987_v52, %v8457_v48  ;;  %v8593_v38 = vadd.f32 %v15987_v52, %v8526_v41 }
 0x7a6   : > { %v9718_v44 = vmul.f32 -1.442695, %v8570_v17  ;;  %v9741_v15 = vmul.f32 -1.442695, %v8593_v38 }
 0x7a7   : > { %v8511_v49 = vpop.xlane.xlu1 %8510  ;;  %v8532_v1 = vpop.xlane.xlu0 %8531 }
 0x7a8   : > { %v8588_v32 = vadd.f32 %v15987_v52, %v8511_v49  ;;  %11308 = vpow2.f32 %v9718_v44  ;;  %v8595_v44 = vadd.f32 %v15987_v52, %v8532_v1 }
 0x7aa   : > { %v9736_v36 = vmul.f32 -1.442695, %v8588_v32 }
 0x7ab   : > { %v8466_v3 = vpop.xlane.xlu1 %8465 }
 0x7ac   : > { %v8573_v25 = vadd.f32 %v15987_v52, %v8466_v3  ;;  %11310 = vpow2.f32 %v9736_v36 }
 0x7ad   : > { %v11305_v59 = vpop.eup %11304 }
 0x7ae   : > { %v8715_v35 = vadd.f32 1.0, %v11305_v59  ;;  %v9721_v28 = vmul.f32 -1.442695, %v8573_v25 }
 0x7af   : > { %v8463_v11 = vpop.xlane.xlu1 %8462 }
 0x7b0   : > { %11312 = vrcp.f32 %v8715_v35  ;;  %v8572_v5 = vadd.f32 %v15987_v52, %v8463_v11 }
 0x7b1   : > { %11314 = vpow2.f32 %v9739_v40  ;;  %v11307_v37 = vpop.eup %11306  ;;  %v9743_v40 = vmul.f32 -1.442695, %v8595_v44 }
 0x7b2   : > { %11316 = vpow2.f32 %v9721_v28  ;;  %v8733_v10 = vadd.f32 1.0, %v11307_v37  ;;  %v9720_v2 = vmul.f32 -1.442695, %v8572_v5 }
 0x7b3   : > { %v8517_v27 = vpop.xlane.xlu1 %8516 }
 0x7b4   : > { %11318 = vrcp.f32 %v8733_v10  ;;  %v8590_v42 = vadd.f32 %v15987_v52, %v8517_v27 }
 0x7b5   : > { %v11309_v21 = vpop.eup %11308  ;;  %11320 = vpow2.f32 %v9720_v2 }
 0x7b6   : > { %v8714_v23 = vadd.f32 1.0, %v11309_v21  ;;  %v9738_v6 = vmul.f32 -1.442695, %v8590_v42  ;;  %v8538_v42 = vpop.xlane.xlu0 %8537 }
 0x7b7   : > { %v8472_v20 = vpop.xlane.xlu1 %8471 }
 0x7b8   : > { %v8575_v14 = vadd.f32 %v15987_v52, %v8472_v20  ;;  %11322 = vrcp.f32 %v8714_v23 }
 0x7b9   : > { %v11311_v12 = vpop.eup %11310  ;;  %11324 = vpow2.f32 %v9738_v6 }
 0x7ba   : > { %v8732_v60 = vadd.f32 1.0, %v11311_v12  ;;  %v9723_v34 = vmul.f32 -1.442695, %v8575_v14  ;;  %v8597_v12 = vadd.f32 %v15987_v52, %v8538_v42 }
 0x7bb   : > { %v8469_v31 = vpop.xlane.xlu1 %8468 }
 0x7bc   : > { %v8574_v48 = vadd.f32 %v15987_v52, %v8469_v31  ;;  %11326 = vrcp.f32 %v8732_v60 }
 0x7bd   : > { %v11313_v57 = vpop.eup %11312  ;;  %11328 = vpow2.f32 %v9741_v15 }
 0x7be   : > { %v11315_v17 = vpop.eup %11314  ;;  %8829 = vperm.xlu0 %11226, %v11313_v57   ;;  %11330 = vpow2.f32 %v9723_v34  ;;  %v9722_v55 = vmul.f32 -1.442695, %v8574_v48 }
 0x7bf   : > { %v11317_v26 = vpop.eup %11316  ;;  %v8523_v32 = vpop.xlane.xlu1 %8522  ;;  %v8735_v59 = vadd.f32 1.0, %v11315_v17  ;;  %v9745_v17 = vmul.f32 -1.442695, %v8597_v12 }
 0x7c0   : > { %v8717_v49 = vadd.f32 1.0, %v11317_v26  ;;  %v8592_v36 = vadd.f32 %v15987_v52, %v8523_v32  ;;  %v8544_v26 = vpop.xlane.xlu0 %8543 }
 0x7c1   : > { %v11319_v3 = vpop.eup %11318 }
 0x7c2   : > { %11332 = vrcp.f32 %v8717_v49  ;;  %8919 = vperm.xlu1 %11227, %v11319_v3   ;;  %v11321_v25 = vpop.eup %11320  ;;  %v9740_v35 = vmul.f32 -1.442695, %v8592_v36 }
 0x7c3   : > { %11334 = vpow2.f32 %v9722_v55  ;;  %v8478_v28 = vpop.xlane.xlu1 %8477  ;;  %v8716_v11 = vadd.f32 1.0, %v11321_v25 }
 0x7c4   : > { %v8577_v5 = vadd.f32 %v15987_v52, %v8478_v28  ;;  %11336 = vrcp.f32 %v8735_v59 }
 0x7c5   : > { %v11323_v37 = vpop.eup %11322  ;;  %11338 = vpow2.f32 %v9743_v40 }
 0x7c6   : > { %v9725_v10 = vmul.f32 -1.442695, %v8577_v5  ;;  %11340 = vpow2.f32 %v9740_v35  ;;  %8824 = vperm.xlu1 %11227, %v11323_v37   ;;  %v11325_v41 = vpop.eup %11324 }
 0x7c7   : > { %v8475_v2 = vpop.xlane.xlu1 %8474  ;;  %11342 = vrcp.f32 %v8716_v11  ;;  %v8734_v21 = vadd.f32 1.0, %v11325_v41  ;;  %v8550_v11 = vpop.xlane.xlu0 %8549 }
 0x7c8   : > { %v8576_v27 = vadd.f32 %v15987_v52, %v8475_v2  ;;  %11344 = vpow2.f32 %v9725_v10  ;;  %v8599_v10 = vadd.f32 %v15987_v52, %v8544_v26 }
 0x7c9   : > { %v11327_v38 = vpop.eup %11326  ;;  %11346 = vrcp.f32 %v8734_v21 }
 0x7ca   : > { %v9724_v23 = vmul.f32 -1.442695, %v8576_v27  ;;  %v11329_v6 = vpop.eup %11328  ;;  %8914 = vperm.xlu0 %11226, %v11327_v38  }
 0x7cb   : > { %v8529_v20 = vpop.xlane.xlu1 %8528  ;;  %v11331_v14 = vpop.eup %11330  ;;  %v8737_v34 = vadd.f32 1.0, %v11329_v6  ;;  %v9747_v6 = vmul.f32 -1.442695, %v8599_v10 }
 0x7cc   : > { %11348 = vpow2.f32 %v9724_v23  ;;  %v8594_v15 = vadd.f32 %v15987_v52, %v8529_v20  ;;  %v8719_v1 = vadd.f32 1.0, %v11331_v14  ;;  %v8493_v12 = vpop.xlane.xlu0 %8492 }
 0x7ce   : > { %v9742_v31 = vmul.f32 -1.442695, %v8594_v15  ;;  %11350 = vrcp.f32 %v8719_v1 }
 0x7cf   : > { %v11333_v60 = vpop.eup %11332  ;;  %v8484_v57 = vpop.xlane.xlu1 %8483 }
 0x7d0   : > { %8839 = vperm.xlu1 %11227, %v11333_v60   ;;  %v11335_v48 = vpop.eup %11334  ;;  %11352 = vpow2.f32 %v9742_v31  ;;  %v8579_v44 = vadd.f32 %v15987_v52, %v8484_v57  ;;  %v8582_v57 = vadd.f32 %v15987_v52, %v8493_v12 }
 0x7d1   : > { %v8718_v49 = vadd.f32 1.0, %v11335_v48  ;;  %v11337_v55 = vpop.eup %11336  ;;  %11354 = vrcp.f32 %v8737_v34 }
 0x7d2   : > { %v9727_v32 = vmul.f32 -1.442695, %v8579_v44  ;;  %v11339_v36 = vpop.eup %11338 }
 0x7d3   : > { %11356 = vrcp.f32 %v8718_v49  ;;  %v8481_v3 = vpop.xlane.xlu1 %8480  ;;  %v11341_v59 = vpop.eup %11340  ;;  %v8739_v37 = vadd.f32 1.0, %v11339_v36  ;;  %v9730_v36 = vmul.f32 -1.442695, %v8582_v57 }
 0x7d4   : > { %8929 = vperm.xlu1 %11227, %v11337_v55   ;;  %11358 = vpow2.f32 %v9745_v17  ;;  %v8578_v40 = vadd.f32 %v15987_v52, %v8481_v3  ;;  %v11343_v25 = vpop.eup %11342  ;;  %v8736_v35 = vadd.f32 1.0, %v11341_v59 }
 0x7d5   : > { %11360 = vpow2.f32 %v9727_v32  ;;  %v11345_v28 = vpop.eup %11344  ;;  %v8601_v32 = vadd.f32 %v15987_v52, %v8550_v11 }
 0x7d6   : > { %v9726_v5 = vmul.f32 -1.442695, %v8578_v40  ;;  %11362 = vrcp.f32 %v8736_v35  ;;  %v8721_v2 = vadd.f32 1.0, %v11345_v28  ;;  %v11347_v27 = vpop.eup %11346 }
 0x7d7   : > { %v8535_v41 = vpop.xlane.xlu1 %8534  ;;  %8924 = vperm.xlu0 %11226, %v11347_v27   ;;  %v9749_v10 = vmul.f32 -1.442695, %v8601_v32 }
 0x7d8   : > { %8834 = vperm.xlu1 %11227, %v11343_v25   ;;  %v8596_v42 = vadd.f32 %v15987_v52, %v8535_v41  ;;  %11364 = vrcp.f32 %v8721_v2  ;;  %v8556_v2 = vpop.xlane.xlu0 %8555 }
 0x7d9   : > { %v11349_v21 = vpop.eup %11348  ;;  %11366 = vpow2.f32 %v9726_v5 }
 0x7da   : > { %v8720_v38 = vadd.f32 1.0, %v11349_v21  ;;  %v9744_v23 = vmul.f32 -1.442695, %v8596_v42  ;;  %11368 = vrcp.f32 %v8739_v37 }
 0x7db   : > { %v8490_v20 = vpop.xlane.xlu1 %8489  ;;  %v11351_v14 = vpop.eup %11350 }
 0x7dc   : > { %11370 = vrcp.f32 %v8720_v38  ;;  %v8581_v15 = vadd.f32 %v15987_v52, %v8490_v20  ;;  %8849 = vperm.xlu1 %11227, %v11351_v14  }
 0x7dd   : > { %v11353_v1 = vpop.eup %11352  ;;  %11372 = vpow2.f32 %v9744_v23  ;;  %v8603_v23 = vadd.f32 %v15987_v52, %v8556_v2 }
 0x7de   : > { %v8738_v60 = vadd.f32 1.0, %v11353_v1  ;;  %v9729_v34 = vmul.f32 -1.442695, %v8581_v15  ;;  %v11355_v31 = vpop.eup %11354  ;;  %11374 = vpow2.f32 %v9747_v6 }
 0x7df   : > { %v8487_v48 = vpop.xlane.xlu1 %8486 }
 0x7e0   : > { %v11357_v17 = vpop.eup %11356  ;;  %11376 = vrcp.f32 %v8738_v60  ;;  %v8580_v26 = vadd.f32 %v15987_v52, %v8487_v48  ;;  %8939 = vperm.xlu1 %11227, %v11355_v31  }
 0x7e1   : > { %v11359_v44 = vpop.eup %11358  ;;  %11378 = vpow2.f32 %v9729_v34  ;;  %8844 = vperm.xlu0 %11226, %v11357_v17   ;;  %v9751_v34 = vmul.f32 -1.442695, %v8603_v23 }
 0x7e2   : > { %v11361_v49 = vpop.eup %11360  ;;  %v9728_v55 = vmul.f32 -1.442695, %v8580_v26  ;;  %v8741_v35 = vadd.f32 1.0, %v11359_v44 }
 0x7e3   : > { %v8723_v3 = vadd.f32 1.0, %v11361_v49  ;;  %v8541_v59 = vpop.xlane.xlu1 %8540  ;;  %v11363_v40 = vpop.eup %11362 }
 0x7e4   : > { %11380 = vpow2.f32 %v9728_v55  ;;  %v8598_v25 = vadd.f32 %v15987_v52, %v8541_v59 }
 0x7e5   : > { %11382 = vrcp.f32 %v8723_v3  ;;  %8934 = vperm.xlu0 %11226, %v11363_v40   ;;  %v11365_v28 = vpop.eup %11364 }
 0x7e6   : > { %v9746_v5 = vmul.f32 -1.442695, %v8598_v25  ;;  %v11367_v37 = vpop.eup %11366  ;;  %11384 = vpow2.f32 %v9730_v36  ;;  %8859 = vperm.xlu1 %11227, %v11365_v28   ;;  %v8562_v36 = vpop.xlane.xlu0 %8561 }
 0x7e7   : > { %v8496_v41 = vpop.xlane.xlu1 %8495  ;;  %v11369_v27 = vpop.eup %11368  ;;  %v8722_v11 = vadd.f32 1.0, %v11367_v37  ;;  %v8605_v28 = vadd.f32 %v15987_v52, %v8562_v36 }
 0x7e8   : > { %11386 = vpow2.f32 %v9746_v5  ;;  %v8583_v42 = vadd.f32 %v15987_v52, %v8496_v41 }
 0x7e9   : > { %v11371_v21 = vpop.eup %11370  ;;  %11388 = vrcp.f32 %v8741_v35 }
 0x7ea   : > { %v11373_v38 = vpop.eup %11372  ;;  %11390 = vrcp.f32 %v8722_v11  ;;  %v9731_v6 = vmul.f32 -1.442695, %v8583_v42  ;;  %8854 = vperm.xlu0 %11226, %v11371_v21   ;;  %8949 = vperm.xlu1 %11227, %v11369_v27  }
 0x7eb   : > { %11392 = vpow2.f32 %v9749_v10  ;;  %v8740_v20 = vadd.f32 1.0, %v11373_v38  ;;  %v8547_v14 = vpop.xlane.xlu1 %8546  ;;  %v11375_v12 = vpop.eup %11374  ;;  %v9753_v38 = vmul.f32 -1.442695, %v8605_v28 }
 0x7ec   : > { %11394 = vpow2.f32 %v9731_v6  ;;  %v8600_v15 = vadd.f32 %v15987_v52, %v8547_v14  ;;  %v8743_v57 = vadd.f32 1.0, %v11375_v12 }
 0x7ed   : > { %v11377_v1 = vpop.eup %11376  ;;  %11396 = vrcp.f32 %v8740_v20 }
 0x7ee   : > { %v11379_v60 = vpop.eup %11378  ;;  %v9748_v31 = vmul.f32 -1.442695, %v8600_v15  ;;  %8944 = vperm.xlu0 %11226, %v11377_v1  }
 0x7ef   : > { %v8725_v48 = vadd.f32 1.0, %v11379_v60  ;;  %v8502_v17 = vpop.xlane.xlu1 %8501 }
 0x7f0   : > { %11398 = vpow2.f32 %v9748_v31  ;;  %v8585_v26 = vadd.f32 %v15987_v52, %v8502_v17 }
 0x7f1   : > { %v11381_v44 = vpop.eup %11380  ;;  %11400 = vrcp.f32 %v8725_v48 }
 0x7f2   : > { %v11383_v49 = vpop.eup %11382  ;;  %11402 = vpow2.f32 %v9751_v34  ;;  %v8724_v55 = vadd.f32 1.0, %v11381_v44  ;;  %v9733_v32 = vmul.f32 -1.442695, %v8585_v26 }
 0x7f3   : > { %11404 = vrcp.f32 %v8743_v57  ;;  %8869 = vperm.xlu1 %11227, %v11383_v49   ;;  %v8499_v3 = vpop.xlane.xlu1 %8498  ;;  %v11385_v59 = vpop.eup %11384 }
 0x7f4   : > { %11406 = vrcp.f32 %v8724_v55  ;;  %v8584_v40 = vadd.f32 %v15987_v52, %v8499_v3  ;;  %v8726_v2 = vadd.f32 1.0, %v11385_v59 }
 0x7f5   : > { %v11387_v25 = vpop.eup %11386  ;;  %11408 = vpow2.f32 %v9733_v32 }
 0x7f6   : > { %v11389_v35 = vpop.eup %11388  ;;  %v8742_v5 = vadd.f32 1.0, %v11387_v25  ;;  %v9732_v37 = vmul.f32 -1.442695, %v8584_v40 }
 0x7f7   : > { %v11391_v10 = vpop.eup %11390  ;;  %8959 = vperm.xlu1 %11227, %v11389_v35   ;;  %v8553_v41 = vpop.xlane.xlu1 %8552 }
 0x7f8   : > { %v11393_v27 = vpop.eup %11392  ;;  %11410 = vrcp.f32 %v8742_v5  ;;  %8864 = vperm.xlu0 %11226, %v11391_v10   ;;  %v8602_v11 = vadd.f32 %v15987_v52, %v8553_v41 }
 0x7f9   : > { %v11395_v42 = vpop.eup %11394  ;;  %11412 = vpow2.f32 %v9732_v37  ;;  %v8745_v20 = vadd.f32 1.0, %v11393_v27 }
 0x7fa   : > { %v11397_v21 = vpop.eup %11396  ;;  %v8727_v23 = vadd.f32 1.0, %v11395_v42  ;;  %v9750_v6 = vmul.f32 -1.442695, %v8602_v11  ;;  %11414 = vrcp.f32 %v8726_v2 }
 0x7fb   : > { %v8508_v14 = vpop.xlane.xlu1 %8507 }
 0x7fc   : > { %11416 = vrcp.f32 %v8727_v23  ;;  %8954 = vperm.xlu0 %11226, %v11397_v21   ;;  %v8587_v12 = vadd.f32 %v15987_v52, %v8508_v14 }
 0x7fd   : > { %v11399_v15 = vpop.eup %11398  ;;  %11418 = vpow2.f32 %v9750_v6 }
 0x7fe   : > { %v11401_v1 = vpop.eup %11400  ;;  %11420 = vpow2.f32 %v9753_v38  ;;  %v8744_v60 = vadd.f32 1.0, %v11399_v15  ;;  %v9735_v34 = vmul.f32 -1.442695, %v8587_v12 }
 0x7ff   : > { %v11403_v31 = vpop.eup %11402  ;;  %11422 = vrcp.f32 %v8745_v20  ;;  %8879 = vperm.xlu1 %11227, %v11401_v1   ;;  %v8505_v57 = vpop.xlane.xlu1 %8504 }
 0x800   : > { %v11405_v48 = vpop.eup %11404  ;;  %11424 = vrcp.f32 %v8744_v60  ;;  %v8586_v17 = vadd.f32 %v15987_v52, %v8505_v57  ;;  %v8747_v55 = vadd.f32 1.0, %v11403_v31  ;;  %v9039_v57 = vld [vmem:[#allocation2 + $0x1b] sm:$0xff] }
 0x801   : > { %v11407_v26 = vpop.eup %11406  ;;  %11426 = vpow2.f32 %v9735_v34 }
 0x802   : > { %v11409_v44 = vpop.eup %11408  ;;  %v9734_v49 = vmul.f32 -1.442695, %v8586_v17  ;;  %8874 = vperm.xlu0 %11226, %v11407_v26  }
 0x803   : > { %v8729_v32 = vadd.f32 1.0, %v11409_v44  ;;  %8969 = vperm.xlu1 %11227, %v11405_v48   ;;  %v8559_v36 = vpop.xlane.xlu1 %8558  ;;  %v9057_v44 = vld [vmem:[#allocation2 + $0xab] sm:$0xff] }
 0x804   : > { %11428 = vpow2.f32 %v9734_v49  ;;  %v8604_v3 = vadd.f32 %v15987_v52, %v8559_v36  ;;  %v9038_v36 = vld [vmem:[#allocation2 + $0x13] sm:$0xff] }
 0x805   : > { %v11411_v59 = vpop.eup %11410  ;;  %11430 = vrcp.f32 %v8729_v32 }
 0x806   : > { %v11413_v40 = vpop.eup %11412  ;;  %v9752_v25 = vmul.f32 -1.442695, %v8604_v3  ;;  %8964 = vperm.xlu0 %11226, %v11411_v59   ;;  %11432 = vrcp.f32 %v8747_v55 }
 0x807   : > { %v8728_v35 = vadd.f32 1.0, %v11413_v40  ;;  %v11415_v28 = vpop.eup %11414 }
 0x808   : > { %11434 = vpow2.f32 %v9752_v25  ;;  %v9056_v25 = vld [vmem:[#allocation2 + $0xa3] sm:$0xff] }
 0x809   : > { %v11417_v5 = vpop.eup %11416  ;;  %11436 = vrcp.f32 %v8728_v35 }
 0x80a   : > { %v11419_v37 = vpop.eup %11418  ;;  %8884 = vperm.xlu0 %11226, %v11415_v28   ;;  %8889 = vperm.xlu1 %11227, %v11417_v5   ;;  %v9041_v5 = vld [vmem:[#allocation2 + $0x2b] sm:$0xff] }
 0x80b   : > { %v11421_v10 = vpop.eup %11420  ;;  %v8746_v2 = vadd.f32 1.0, %v11419_v37 }
 0x80c   : > { %v11423_v41 = vpop.eup %11422  ;;  %v8749_v21 = vadd.f32 1.0, %v11421_v10 }
 0x80d   : > { %v11425_v27 = vpop.eup %11424  ;;  %11438 = vrcp.f32 %v8746_v2  ;;  %v9059_v2 = vld [vmem:[#allocation2 + $0xbb] sm:$0xff] }
 0x80e   : > { %v11427_v52 = vpop.eup %11426  ;;  %8979 = vperm.xlu1 %11227, %v11423_v41   ;;  %8974 = vperm.xlu0 %11226, %v11425_v27  }
 0x80f   : > { %v8731_v11 = vadd.f32 1.0, %v11427_v52  ;;  %v9040_v52 = vld [vmem:[#allocation2 + $0x23] sm:$0xff] }
 0x811   : > { %v11429_v42 = vpop.eup %11428  ;;  %11440 = vrcp.f32 %v8731_v11 }
 0x812   : > { %v11431_v38 = vpop.eup %11430  ;;  %v8730_v23 = vadd.f32 1.0, %v11429_v42  ;;  %v9058_v42 = vld [vmem:[#allocation2 + $0xb3] sm:$0xff] }
 0x813   : > { %8899 = vperm.xlu1 %11227, %v11431_v38   ;;  %v11433_v6 = vpop.eup %11432 }
 0x814   : > { %11442 = vrcp.f32 %v8730_v23 }
 0x815   : > { %v11435_v20 = vpop.eup %11434  ;;  %11444 = vrcp.f32 %v8749_v21 }
 0x816   : > { %v11437_v14 = vpop.eup %11436  ;;  %v8748_v12 = vadd.f32 1.0, %v11435_v20 }
 0x817   : > { %8989 = vperm.xlu1 %11227, %v11433_v6   ;;  %8894 = vperm.xlu0 %11226, %v11437_v14   ;;  %v9043_v6 = vld [vmem:[#allocation2 + $0x3b] sm:$0xff] }
 0x818   : > { %11446 = vrcp.f32 %v8748_v12 }
 0x81a   : > { %v11439_v15 = vpop.eup %11438 }
 0x81b   : > { %8984 = vperm.xlu0 %11226, %v11439_v15   ;;  %v9061_v15 = vld [vmem:[#allocation2 + $0xcb] sm:$0xff] }
 0x81e   : > { %v11441_v1 = vpop.eup %11440 }
 0x81f   : > { %8909 = vperm.xlu1 %11227, %v11441_v1  }
 0x821   : > { %v11443_v60 = vpop.eup %11442 }
 0x822   : > { %v11445_v34 = vpop.eup %11444  ;;  %8904 = vperm.xlu0 %11226, %v11443_v60  }
 0x823   : > { %8999 = vperm.xlu1 %11227, %v11445_v34  }
 0x825   : > { %v11447_v31 = vpop.eup %11446 }
 0x826   : > { %8994 = vperm.xlu0 %11226, %v11447_v31  }
 0x839   : > { %v8830_v48 = vpop.permute.xlu0 %8829 }
 0x83a   : > { %v9003_v17 = vmul.f32 %v8830_v48, %v15622_v8 }
 0x83c   : > { %v9075_v26 = vadd.f32 %v9039_v57, %v9003_v17 }
 0x83d   : > { %v8920_v49 = vpop.permute.xlu1 %8919 }
 0x83e   : > { %9111 = vst.msk [vmem:[%s11863_s1 + $0x8] sm:$0xff] %vm17181_vm0, %v9075_v26  ;;  %v9021_v55 = vmul.f32 %v8920_v49, %v15638_v53  ;;  %v9044_v49 = vld [vmem:[#allocation2 + $0x43] sm:$0xff]  ;;  %vm9125_vm0 = vcmask 521216  }
 0x840   : > { %v9093_v32 = vadd.f32 %v9057_v44, %v9021_v55 }
 0x841   : > { %v8825_v3 = vpop.permute.xlu1 %8824 }
 0x842   : > { %9139 = vst.msk [vmem:[%s11863_s1 + $0x88] sm:$0xff] %vm17264_vm12, %v9093_v32  ;;  %v9002_v59 = vmul.f32 %v8825_v3, %v15618_v30  ;;  %vm17274_vm12 = vmmov %vm17270_vm1 }
 0x844   : > { %v9074_v40 = vadd.f32 %v9038_v36, %v9002_v59  ;;  %v9063_v36 = vld [vmem:[#allocation2 + $0xdb] sm:$0xff] }
 0x845   : > { %v8915_v35 = vpop.permute.xlu0 %8914 }
 0x846   : > { %9110 = vst.msk [vmem:[%s11863_s1] sm:$0xff] %vm17265_vm11, %v9074_v40  ;;  %v9020_v8 = vmul.f32 %v8915_v35, %v15634_v43  ;;  %v9062_v40 = vld [vmem:[#allocation2 + $0xd3] sm:$0xff]  ;;  %vm17275_vm11 = vmmov %vm17270_vm1 }
 0x848   : > { %v9092_v28 = vadd.f32 %v9056_v25, %v9020_v8 }
 0x84a   : > { %9138 = vst.msk [vmem:[%s11863_s1 + $0x80] sm:$0xff] %vm17266_vm4, %v9092_v28  ;;  %vm17276_vm4 = vmmov %vm17270_vm1 }
 0x84b   : > { %v8840_v37 = vpop.permute.xlu1 %8839 }
 0x84c   : > { %v9005_v53 = vmul.f32 %v8840_v37, %v15650_v13  ;;  %v9065_v37 = vld [vmem:[#allocation2 + $0xeb] sm:$0xff] }
 0x84e   : > { %v9077_v10 = vadd.f32 %v9041_v5, %v9005_v53 }
 0x84f   : > { %v8930_v41 = vpop.permute.xlu1 %8929 }
 0x850   : > { %9114 = vst.msk [vmem:[%s11863_s1 + $0x16] sm:$0xff] %vm17267_vm7, %v9077_v10  ;;  %v9023_v30 = vmul.f32 %v8930_v41, %v15662_v39  ;;  %v9046_v10 = vld [vmem:[#allocation2 + $0x53] sm:$0xff]  ;;  %vm17277_vm7 = vmmov %vm17270_vm1 }
 0x852   : > { %v9095_v27 = vadd.f32 %v9059_v2, %v9023_v30  ;;  %v8925_v13 = vpop.permute.xlu0 %8924 }
 0x853   : > { %v8835_v11 = vpop.permute.xlu1 %8834  ;;  %v9022_v21 = vmul.f32 %v8925_v13, %v15644_v24 }
 0x854   : > { %9141 = vst.msk [vmem:[%s11863_s1 + $0x96] sm:$0xff] %vm17268_vm9, %v9095_v27  ;;  %v9004_v43 = vmul.f32 %v8835_v11, %v15626_v29  ;;  %v9042_v29 = vld [vmem:[#allocation2 + $0x33] sm:$0xff]  ;;  %vm17278_vm9 = vmmov %vm17270_vm1 }
 0x855   : > { %v9094_v23 = vadd.f32 %v9058_v42, %v9022_v21  ;;  %v9049_v42 = vld [vmem:[#allocation2 + $0x6b] sm:$0xff]  ;;  %v9048_v21 = vld [vmem:[#allocation2 + $0x63] sm:$0xff] }
 0x856   : > { %v9076_v38 = vadd.f32 %v9040_v52, %v9004_v43  ;;  %v9064_v52 = vld [vmem:[#allocation2 + $0xe3] sm:$0xff] }
 0x857   : > { %v8850_v20 = vpop.permute.xlu1 %8849  ;;  %9140 = vst.msk [vmem:[%s11863_s1 + $0x8e] sm:$0xfc] %vm9112_vm5, %v9094_v23 }
 0x858   : > { %9113 = vst.msk [vmem:[%s11863_s1 + $0xe] sm:$0xfc] %vm9112_vm5, %v9076_v38  ;;  %v9007_v39 = vmul.f32 %v8850_v20, %v15674_v46  ;;  %v9060_v46 = vld [vmem:[#allocation2 + $0xc3] sm:$0xff] }
 0x85a   : > { %v9079_v14 = vadd.f32 %v9043_v6, %v9007_v39  ;;  %v9067_v6 = vld [vmem:[#allocation2 + $0xfb] sm:$0xff] }
 0x85b   : > { %v8940_v1 = vpop.permute.xlu1 %8939 }
 0x85c   : > { %v8845_v12 = vpop.permute.xlu0 %8844  ;;  %9119 = vst.msk [vmem:[%s11863_s1 + $0x24] sm:$0xff] %vm17269_vm15, %v9079_v14  ;;  %v9025_v60 = vmul.f32 %v8940_v1, %v15686_v7  ;;  %vm17284_vm15 = vmmov %vm17270_vm1 }
 0x85d   : > { %v9006_v24 = vmul.f32 %v8845_v12, %v15656_v9  ;;  %v9045_v9 = vld [vmem:[#allocation2 + $0x4b] sm:$0xff] }
 0x85e   : > { %v9097_v31 = vadd.f32 %v9061_v15, %v9025_v60  ;;  %v9050_v15 = vld [vmem:[#allocation2 + $0x73] sm:$0xff] }
 0x85f   : > { %v9078_v34 = vadd.f32 %v9042_v29, %v9006_v24  ;;  %v9066_v29 = vld [vmem:[#allocation2 + $0xf3] sm:$0xff]  ;;  %v9051_v24 = vld [vmem:[#allocation2 + $0x7b] sm:$0xff] }
 0x860   : > { %v8935_v57 = vpop.permute.xlu0 %8934  ;;  %9144 = vst.msk [vmem:[%s11863_s1 + $0xa4] sm:$0xff] %vm17270_vm1, %v9097_v31 }
 0x861   : > { %9116 = vst.msk [vmem:[%s11863_s1 + $0x1e] sm:$0x3] %vm9115_vm3, %v9078_v34  ;;  %v9024_v48 = vmul.f32 %v8935_v57, %v15668_v45  ;;  %v8860_v17 = vpop.permute.xlu1 %8859 }
 0x862   : > { %9118 = vst.msk [vmem:[%s11863_s1 + $0x1c] sm:$0xf0] %vm9117_vm6, %v9078_v34  ;;  %v9009_v7 = vmul.f32 %v8860_v17, %v15698_v47 }
 0x863   : > { %v9096_v26 = vadd.f32 %v9060_v46, %v9024_v48  ;;  %v9068_v46 = vld [vmem:[#allocation2 + $0x103] sm:$0xff]  ;;  %v9069_v48 = vld [vmem:[#allocation2 + $0x10b] sm:$0xff] }
 0x864   : > { %v9081_v44 = vadd.f32 %v9045_v9, %v9009_v7  ;;  %v9053_v7 = vld [vmem:[#allocation2 + $0x8b] sm:$0xff] }
 0x865   : > { %9142 = vst.msk [vmem:[%s11863_s1 + $0x9e] sm:$0x3] %vm9115_vm3, %v9096_v26  ;;  %v8855_v55 = vpop.permute.xlu0 %8854  ;;  %v8950_v45 = vpop.permute.xlu1 %8949 }
 0x866   : > { %9143 = vst.msk [vmem:[%s11863_s1 + $0x9c] sm:$0xf0] %vm9117_vm6, %v9096_v26  ;;  %v9008_v32 = vmul.f32 %v8855_v55, %v15680_v58  ;;  %v9027_v47 = vmul.f32 %v8950_v45, %v15710_v18  ;;  %v9047_v18 = vld [vmem:[#allocation2 + $0x5b] sm:$0xff] }
 0x867   : > { %9124 = vst.msk [vmem:[%s11863_s1 + $0x32] sm:$0xff] %vm17271_vm2, %v9081_v44  ;;  %v9071_v45 = vld [vmem:[#allocation2 + $0x11b] sm:$0xff] }
 0x868   : > { %v9080_v3 = vadd.f32 %v9044_v49, %v9008_v32  ;;  %v9099_v59 = vadd.f32 %v9063_v36, %v9027_v47  ;;  %v17279_v49 = vld [vmem:[#allocation84_spill] sm:$0xff] }
 0x869   : > { %v8945_v25 = vpop.permute.xlu0 %8944  ;;  %v17280_v47 = vld [vmem:[#allocation72_spill] sm:$0xff] }
 0x86a   : > { %9121 = vst.msk [vmem:[%s11863_s1 + $0x2c] sm:$0xf] %vm9120_vm8, %v9080_v3  ;;  %v9026_v58 = vmul.f32 %v8945_v25, %v15692_v51 }
 0x86b   : > { %9123 = vst.msk [vmem:[%s11863_s1 + $0x2a] sm:$0xc0] %vm9122_vm10, %v9080_v3 }
 0x86c   : > { %9147 = vst.msk [vmem:[%s11863_s1 + $0xb2] sm:$0xff] %vm17272_vm13, %v9099_v59  ;;  %v9098_v35 = vadd.f32 %v9062_v40, %v9026_v58  ;;  %v17281_v59 = vld [vmem:[#allocation32_spill] sm:$0xff] }
 0x86e   : > { %9145 = vst.msk [vmem:[%s11863_s1 + $0xac] sm:$0xf] %vm9120_vm8, %v9098_v35  ;;  %v8870_v8 = vpop.permute.xlu1 %8869 }
 0x86f   : > { %9146 = vst.msk [vmem:[%s11863_s1 + $0xaa] sm:$0xc0] %vm9122_vm10, %v9098_v35  ;;  %v9011_v28 = vmul.f32 %v8870_v8, %v15722_v22  ;;  %v9070_v35 = vld [vmem:[#allocation2 + $0x113] sm:$0xff] }
 0x870   : > { %v17283_v8 = vld [vmem:[#allocation85_spill] sm:$0xff] }
 0x871   : > { %v9083_v5 = vadd.f32 %v9047_v18, %v9011_v28 }
 0x872   : > { %v8960_v53 = vpop.permute.xlu1 %8959 }
 0x873   : > { %9127 = vst.msk [vmem:[%s11863_s1 + $0x40] sm:$0xff] %vm17273_vm14, %v9083_v5  ;;  %v8865_v51 = vpop.permute.xlu0 %8864  ;;  %v9029_v2 = vmul.f32 %v8960_v53, %v15734_v33 }
 0x874   : > { %v9010_v41 = vmul.f32 %v8865_v51, %v15704_v63 }
 0x875   : > { %v9101_v30 = vadd.f32 %v9065_v37, %v9029_v2  ;;  %v9055_v37 = vld [vmem:[#allocation2 + $0x9b] sm:$0xff] }
 0x876   : > { %v9082_v27 = vadd.f32 %v9046_v10, %v9010_v41  ;;  %v17285_v10 = vld [vmem:[#allocation80_spill] sm:$0xff]  ;;  %v9054_v41 = vld [vmem:[#allocation2 + $0x93] sm:$0xff] }
 0x877   : > { %9149 = vst.msk [vmem:[%s11863_s1 + $0xc0] sm:$0xff] %vm17274_vm12, %v9101_v30  ;;  %v8955_v22 = vpop.permute.xlu0 %8954 }
 0x878   : > { %9126 = vst.msk [vmem:[%s11863_s1 + $0x3a] sm:$0x3f] %vm9125_vm0, %v9082_v27  ;;  %v9028_v11 = vmul.f32 %v8955_v22, %v15716_v61  ;;  %v17286_v27 = vld [vmem:[#allocation78_spill] sm:$0xff]  ;;  %v9073_v22 = vld [vmem:[#allocation2 + $0x12b] sm:$0xff] }
 0x87a   : > { %v9100_v43 = vadd.f32 %v9064_v52, %v9028_v11  ;;  %v8880_v13 = vpop.permute.xlu1 %8879 }
 0x87b   : > { %v9013_v33 = vmul.f32 %v8880_v13, %v15746_v50 }
 0x87c   : > { %9148 = vst.msk [vmem:[%s11863_s1 + $0xba] sm:$0x3f] %vm9125_vm0, %v9100_v43  ;;  %v17287_v43 = vld [vmem:[#allocation90_spill] sm:$0xff] }
 0x87d   : > { %v9085_v63 = vadd.f32 %v9049_v42, %v9013_v33  ;;  %v8875_v38 = vpop.permute.xlu0 %8874 }
 0x87e   : > { %v9012_v23 = vmul.f32 %v8875_v38, %v15728_v62  ;;  %v8970_v20 = vpop.permute.xlu1 %8969  ;;  %v17289_v38 = vld [vmem:[#allocation87_spill] sm:$0xff] }
 0x87f   : > { %9129 = vst.msk [vmem:[%s11863_s1 + $0x4e] sm:$0xfc] %vm9112_vm5, %v9085_v63  ;;  %v9031_v61 = vmul.f32 %v8970_v20, %v15758_v4  ;;  %v9072_v63 = vld [vmem:[#allocation2 + $0x123] sm:$0xff] }
 0x880   : > { %v9084_v39 = vadd.f32 %v9048_v21, %v9012_v23 }
 0x881   : > { %v9103_v14 = vadd.f32 %v9067_v6, %v9031_v61  ;;  %v8965_v12 = vpop.permute.xlu0 %8964 }
 0x882   : > { %9128 = vst.msk [vmem:[%s11863_s1 + $0x48] sm:$0xff] %vm17275_vm11, %v9084_v39  ;;  %v9030_v50 = vmul.f32 %v8965_v12, %v15740_v54 }
 0x883   : > { %9151 = vst.msk [vmem:[%s11863_s1 + $0xce] sm:$0xfc] %vm9112_vm5, %v9103_v14  ;;  %vm17282_vm5 = vmmov %vm17270_vm1 }
 0x884   : > { %v9102_v62 = vadd.f32 %v9066_v29, %v9030_v50 }
 0x885   : > { %v8885_v1 = vpop.permute.xlu0 %8884  ;;  %v8890_v60 = vpop.permute.xlu1 %8889 }
 0x886   : > { %9150 = vst.msk [vmem:[%s11863_s1 + $0xc8] sm:$0xff] %vm17276_vm4, %v9102_v62  ;;  %v9014_v4 = vmul.f32 %v8885_v1, %v15752_v19  ;;  %v9015_v34 = vmul.f32 %v8890_v60, %v15770_v16 }
 0x888   : > { %v9086_v54 = vadd.f32 %v9050_v15, %v9014_v4  ;;  %v9087_v31 = vadd.f32 %v9051_v24, %v9015_v34 }
 0x889   : > { %v8975_v57 = vpop.permute.xlu0 %8974  ;;  %v8980_v9 = vpop.permute.xlu1 %8979 }
 0x88a   : > { %9130 = vst.msk [vmem:[%s11863_s1 + $0x56] sm:$0xff] %vm17277_vm7, %v9086_v54  ;;  %v9032_v17 = vmul.f32 %v8975_v57, %v15764_v0  ;;  %v9033_v19 = vmul.f32 %v8980_v9, %v15782_v56  ;;  %v9052_v0 = vld [vmem:[#allocation2 + $0x83] sm:$0xff] }
 0x88b   : > { %9131 = vst.msk [vmem:[%s11863_s1 + $0x5e] sm:$0x3] %vm9115_vm3, %v9087_v31 }
 0x88c   : > { %9132 = vst.msk [vmem:[%s11863_s1 + $0x5c] sm:$0xf0] %vm9117_vm6, %v9087_v31  ;;  %v9104_v16 = vadd.f32 %v9068_v46, %v9032_v17  ;;  %v9105_v26 = vadd.f32 %v9069_v48, %v9033_v19 }
 0x88e   : > { %9152 = vst.msk [vmem:[%s11863_s1 + $0xd6] sm:$0xff] %vm17278_vm9, %v9104_v16  ;;  %v8900_v44 = vpop.permute.xlu1 %8899 }
 0x88f   : > { %9153 = vst.msk [vmem:[%s11863_s1 + $0xde] sm:$0x3] %vm9115_vm3, %v9105_v26  ;;  %v9017_v55 = vmul.f32 %v8900_v44, %v17279_v49  ;;  %vm17288_vm3 = vmmov %vm17270_vm1 }
 0x890   : > { %9154 = vst.msk [vmem:[%s11863_s1 + $0xdc] sm:$0xf0] %vm9117_vm6, %v9105_v26  ;;  %vm17290_vm6 = vmmov %vm17270_vm1 }
 0x891   : > { %v9089_v32 = vadd.f32 %v9053_v7, %v9017_v55 }
 0x892   : > { %v8895_v36 = vpop.permute.xlu0 %8894  ;;  %v8990_v56 = vpop.permute.xlu1 %8989 }
 0x893   : > { %9134 = vst.msk [vmem:[%s11863_s1 + $0x6c] sm:$0xf] %vm9120_vm8, %v9089_v32  ;;  %v9016_v3 = vmul.f32 %v8895_v36, %v17280_v47  ;;  %v9035_v40 = vmul.f32 %v8990_v56, %v17281_v59 }
 0x894   : > { %9135 = vst.msk [vmem:[%s11863_s1 + $0x6a] sm:$0xc0] %vm9122_vm10, %v9089_v32 }
 0x895   : > { %v9088_v25 = vadd.f32 %v9052_v0, %v9016_v3  ;;  %v9107_v58 = vadd.f32 %v9071_v45, %v9035_v40 }
 0x896   : > { %v8985_v18 = vpop.permute.xlu0 %8984 }
 0x897   : > { %9133 = vst.msk [vmem:[%s11863_s1 + $0x64] sm:$0xff] %vm17282_vm5, %v9088_v25  ;;  %v9034_v28 = vmul.f32 %v8985_v18, %v17283_v8 }
 0x898   : > { %9156 = vst.msk [vmem:[%s11863_s1 + $0xec] sm:$0xf] %vm9120_vm8, %v9107_v58 }
 0x899   : > { %9157 = vst.msk [vmem:[%s11863_s1 + $0xea] sm:$0xc0] %vm9122_vm10, %v9107_v58  ;;  %v9106_v5 = vadd.f32 %v9070_v35, %v9034_v28 }
 0x89a   : > { %v8910_v53 = vpop.permute.xlu1 %8909 }
 0x89b   : > { %9155 = vst.msk [vmem:[%s11863_s1 + $0xe4] sm:$0xff] %vm17284_vm15, %v9106_v5  ;;  %v9019_v51 = vmul.f32 %v8910_v53, %v17285_v10 }
 0x89d   : > { %v9091_v2 = vadd.f32 %v9055_v37, %v9019_v51  ;;  %v8905_v30 = vpop.permute.xlu0 %8904 }
 0x89e   : > { %v9018_v52 = vmul.f32 %v8905_v30, %v17286_v27  ;;  %v9000_v11 = vpop.permute.xlu1 %8999 }
 0x89f   : > { %9137 = vst.msk [vmem:[%s11863_s1 + $0x7a] sm:$0x3f] %vm9125_vm0, %v9091_v2  ;;  %v9037_v42 = vmul.f32 %v9000_v11, %v17287_v43 }
 0x8a0   : > { %v9090_v13 = vadd.f32 %v9054_v41, %v9018_v52 }
 0x8a1   : > { %v9109_v33 = vadd.f32 %v9073_v22, %v9037_v42  ;;  %v8995_v21 = vpop.permute.xlu0 %8994 }
 0x8a2   : > { %9136 = vst.msk [vmem:[%s11863_s1 + $0x72] sm:$0xff] %vm17288_vm3, %v9090_v13  ;;  %v9036_v23 = vmul.f32 %v8995_v21, %v17289_v38 }
 0x8a3   : > { %9159 = vst.msk [vmem:[%s11863_s1 + $0xfa] sm:$0x3f] %vm9125_vm0, %v9109_v33 }
 0x8a4   : > { %v9108_v6 = vadd.f32 %v9072_v63, %v9036_v23 }
 0x8a6   : > { %9158 = vst.msk [vmem:[%s11863_s1 + $0xf2] sm:$0xff] %vm17290_vm6, %v9108_v6 }
 0x8a7   : > { %11579 = shalt.err (!%p11576_p0)
}
 0x8a8   : > { %s11580_s1 = scalar_lea.hbm %s16152_s25, 4096  ;;  %s11584_s21 = scalar_lea.hbm %s16212_s13, 8192 }
 0x8a9   : > { %p11581_p11 = scmp.ne.s32.totalorder %s16152_s25, %s11580_s1  ;;  %p11585_p9 = scmp.lt.s32.totalorder %s16152_s25, %s16212_s13 }
 0x8aa   : > { %p11586_p5 = scmp.lt.s32.totalorder %s11584_s21, %s11580_s1 }
 0x8ab   : > { %p11582_p3 = pnand %p11581_p11, %p17291_p1 }
 0x8ac   : > { %p11587_p12 = por %p11586_p5, %p11585_p9 }
 0x8ad   : > { %p11583_p4 = pneg %p11582_p3 }
 0x8af   : > { %p11588_p8 = pnand %p11587_p12, %p11583_p4 }
 0x8b1   : > { %11591 = shalt.err (!%p11588_p8)
}
 0x8b2   : > { %s11646_s30 = smov 128   ;;  %s11647_s23 = smov 8  }
 0x8b3   : > { %11161 = dma.vmem_to_hbm [thread:$0]  (%p17291_p1), %s16154_s24, 4096, %s16152_s25, %s9161_s12, %s11646_s30, %s11646_s30, %s11647_s23  }
 0x8b4 PF: > { %s17292_s3 = sld [smem:[#allocation16_spill]]  ;;  %s9189_s15 = sand.u32 1, %s11622_s27  }
 0x8b5   : > { %p17293_p2 = scmp.ne.s32.totalorder %s16401_s16, 0  ;;  %s9190_s17 = scalar_lea.sflag [#allocation7], %s9189_s15 }
 0x8ba   : > { %p17294_p6 = scmp.ge.s32.totalorder %s17292_s3, 2 }
 0x8bc   : > { %p11175_p13 = pnand %p17294_p6, %p17293_p2 }
 0x8be   : > { %p11176_p7 = pneg %p11175_p13 }
 0x8c0   : > { %11617 = dma.done.wait (%p11176_p7), %s9190_s17, 4096  }
 0x8c1   : > { %11619 = vsyncadd (%p11176_p7), %s9190_s17, 4294963200  ;;  %s17295_s30 = sld [smem:[#allocation17_spill]]  ;;  %s17298_s27 = smov %s11626_s28 }
 0x8c2   : > { %s17296_s19 = sld [smem:[#allocation15_spill]] }
 0x8c3   : > { %s17297_s29 = sld [smem:[#allocation18_spill]] }
 0x8c7   : > { %p29_p10 = scmp.ge.s32.totalorder %s17295_s30, 4  }
 0x8c8   : > { %s17299_s28 = smov %s17296_s19 }
 0x8c9   :  { %31 = sbr.rel (!%p29_p10) target bundleno = 9 (0x9), region = 145 }
 0x8ce   :  { %9195 = vsyncpa [#allocation6], 1 }
 0x8cf   :  { %9197 = vsyncpa [#allocation6 + $0x1], 1 }
 0x8d0   :  { %9198 = vsyncpa [#allocation9], 1 }
 0x8d1   :  { %9199 = vsyncpa [#allocation7], 1 }
 0x8d2   :  { %9201 = vsyncpa [#allocation7 + $0x1], 1 }

</bundles_post_ra>
